<compile_context>
chip_gen: v7x
topology: tpu7x:2x2x1
jax: 0.10.0
libtpu: 0.0.40
codegen_flags: <defaults>
</compile_context>

<pallas_src>
import jax
import jax.numpy as jnp
from jax import lax
from jax.experimental import pallas as pl
from jax.experimental.pallas import tpu as pltpu

# ---- module hyper-parameters (from the PyTorch file) ------------------------
d_ff = 32
d_model = 4
dropout = 0.2        # eval mode -> identity
feature = 4
n_heads = 2
n_layers = 3
number_car = 8

ACTION_DIM = d_model          # encoder output dim == action_dim
D_K = d_model // n_heads
NEG_INF = -1e9
LN_EPS = 1e-5

_NT = (((1,), (1,)), ((), ()))      # dot_general dims for A @ B^T (q@k^T style)


# =============================================================================
# Pallas kernel.  Processes TB samples per grid step.
# Activation layout: (rows, TB) slabs, lanes = batch, rows = channel*8 + car
# (feature-major).  The raw states arrive untransposed as (TB, 32), car-major
# columns; the first MXU dot performs the layout flip.
# =============================================================================
def policy_kernel(states_ref,
                  wenc_ref, benc_ref, msum_ref,
                  wqkv_ref, bqkv_ref,
                  wo_ref, bo_ref,
                  ln1_g_ref, ln1_b_ref,
                  ff1_w_ref, ff1_b_ref,
                  ff2_w_ref, ff2_b_ref,
                  ln2_g_ref, ln2_b_ref,
                  mean_ref):
    N, D = number_car, d_model
    f32 = jnp.float32
    bf16 = jnp.bfloat16

    s = states_ref[...]                                     # (TB, 32) f32, col = car*feature + f

    # ---- input encoder (layout flip folded into the packed weight) ----------
    # x[c*8 + n, b] = sum_f enco_w[f, c] * s[b, n*feature + f] + enco_b[c]
    x = lax.dot_general(wenc_ref[...], s.astype(bf16), _NT,
                        preferred_element_type=f32) + benc_ref[...]          # (32, TB)

    # ---- key-padding mask: car valid iff its raw features do not sum to 0 ---
    # (kept in f32 so the `!= 0` semantics match the reference exactly)
    feat_sum = lax.dot_general(msum_ref[...], s, _NT,
                               preferred_element_type=f32)                   # (8, TB)
    km_b = feat_sum != 0.0
    km_f = km_b.astype(f32)

    def layer_norm(y, g, b):
        # Per-(car, sample) stats over the d_model channels via aligned
        # 8-sublane slices (row = channel*8 + car) -- no selector matmuls.
        ys = [y[c * N:(c + 1) * N, :] for c in range(D)]
        mu = (ys[0] + ys[1] + ys[2] + ys[3]) * (1.0 / D)
        ds = [yc - mu for yc in ys]
        var = (ds[0] * ds[0] + ds[1] * ds[1] +
               ds[2] * ds[2] + ds[3] * ds[3]) * (1.0 / D)
        inv = lax.rsqrt(var + LN_EPS)
        return jnp.concatenate(
            [ds[c] * inv * g[c * N:(c + 1) * N, :] + b[c * N:(c + 1) * N, :]
             for c in range(D)], axis=0)

    for l in range(n_layers):
        # fused, pre-scaled Q/K/V projection (q rows already scaled by 1/sqrt(d_k))
        qkv = jnp.dot(wqkv_ref[l], x.astype(bf16),
                      preferred_element_type=f32) + bqkv_ref[l]              # (96, TB)

        ctx_parts = []
        for h in range(n_heads):
            cq0 = (h * D_K + 0) * N
            cq1 = (h * D_K + 1) * N
            ck0 = (D + h * D_K + 0) * N
            ck1 = (D + h * D_K + 1) * N
            cv0 = (2 * D + h * D_K + 0) * N
            cv1 = (2 * D + h * D_K + 1) * N
            q0 = qkv[cq0:cq0 + N, :]                                        # (8, TB)
            q1 = qkv[cq1:cq1 + N, :]
            k0 = qkv[ck0:ck0 + N, :]
            k1 = qkv[ck1:ck1 + N, :]
            v0 = qkv[cv0:cv0 + N, :]
            v1 = qkv[cv1:cv1 + N, :]

            # scores[i, j, b] = <q_i, k_j> / sqrt(d_k)   (scale folded into weights)
            scores = (q0[:, None, :] * k0[None, :, :] +
                      q1[:, None, :] * k1[None, :, :])                      # (8, 8, TB)
            scores = jnp.where(km_b[None, :, :], scores, NEG_INF)           # mask keys j
            e = jnp.exp(scores - jnp.max(scores, axis=1, keepdims=True))
            # normalize AFTER the value reduction: (8,TB) multiply, not (8,8,TB)
            r = pl.reciprocal(jnp.sum(e, axis=1), approx=True)              # (8, TB)
            ctx_parts.append(jnp.sum(e * v0[None, :, :], axis=1) * r)       # (8, TB)
            ctx_parts.append(jnp.sum(e * v1[None, :, :], axis=1) * r)

        ctx = jnp.concatenate(ctx_parts, axis=0)                            # (32, TB)
        attn = jnp.dot(wo_ref[l], ctx.astype(bf16),
                       preferred_element_type=f32) + bo_ref[l]
        x = layer_norm(x + attn, ln1_g_ref[l], ln1_b_ref[l])                # dropout = identity (eval)

        # position-wise FFN
        h1 = jnp.maximum(
            jnp.dot(ff1_w_ref[l], x.astype(bf16),
                    preferred_element_type=f32) + ff1_b_ref[l], 0.0)        # (256, TB)
        ff = jnp.dot(ff2_w_ref[l], h1.astype(bf16),
                     preferred_element_type=f32) + ff2_b_ref[l]             # (32, TB)
        x = layer_norm(x + ff, ln2_g_ref[l], ln2_b_ref[l])

    # ---- masked mean pooling over cars -> (d_model, TB), lane-dense store ---
    denom = jnp.maximum(jnp.sum(km_f, axis=0, keepdims=True), 1.0)          # (1, TB)
    inv_den = pl.reciprocal(denom, approx=True)
    for c in range(D):
        pooled_c = jnp.sum(x[c * N:(c + 1) * N, :] * km_f,
                           axis=0, keepdims=True)                           # (1, TB)
        mean_ref[pl.ds(c, 1), :] = pooled_c * inv_den


# =============================================================================
# Parameters (math layout, mirrors torch modules) and block-diagonal packing
# =============================================================================
def init_params(key, action_dim=ACTION_DIM):
    ks = jax.random.split(key, 16)
    nrm = lambda k, shape, s=0.2: (s * jax.random.normal(k, shape)).astype(jnp.float32)
    return {
        "enco_w": nrm(ks[0], (feature, d_model)),
        "enco_b": nrm(ks[1], (1, d_model)),
        "wq": nrm(ks[2], (n_layers, d_model, d_model)),
        "bq": nrm(ks[3], (n_layers, 1, d_model)),
        "wk": nrm(ks[4], (n_layers, d_model, d_model)),
        "bk": nrm(ks[5], (n_layers, 1, d_model)),
        "wv": nrm(ks[6], (n_layers, d_model, d_model)),
        "bv": nrm(ks[7], (n_layers, 1, d_model)),
        "wo": nrm(ks[8], (n_layers, d_model, d_model)),
        "bo": nrm(ks[9], (n_layers, 1, d_model)),
        "ln1_g": jnp.ones((n_layers, 1, d_model), jnp.float32),
        "ln1_b": jnp.zeros((n_layers, 1, d_model), jnp.float32),
        "ff1_w": nrm(ks[10], (n_layers, d_model, d_ff)),
        "ff1_b": nrm(ks[11], (n_layers, 1, d_ff)),
        "ff2_w": nrm(ks[12], (n_layers, d_ff, d_model)),
        "ff2_b": nrm(ks[13], (n_layers, 1, d_model)),
        "ln2_g": jnp.ones((n_layers, 1, d_model), jnp.float32),
        "ln2_b": jnp.zeros((n_layers, 1, d_model), jnp.float32),
        "log_std": jnp.zeros((action_dim,), jnp.float32),   # nn.Parameter(torch.zeros(action_dim))
    }


_PACKED_ORDER = ("wenc", "benc", "msum", "wqkv", "bqkv", "wo", "bo",
                 "ln1_g", "ln1_b", "ff1_w", "ff1_b", "ff2_w", "ff2_b",
                 "ln2_g", "ln2_b")
_BF16_KEYS = ("wenc", "wqkv", "wo", "ff1_w", "ff2_w")


def pack_params(params):
    """Pack once (outside the hot path): block-diag-over-cars bf16 weights for
    the feature-major (rows, TB) layout; the input encoder additionally folds
    in the car-major -> feature-major flip of the raw states."""
    I8 = jnp.eye(number_car, dtype=jnp.float32)
    scale = 1.0 / (D_K ** 0.5)

    def bd(w):          # (in, out) -> (out*8, in*8); y[u*8+n] = sum_e W[e,u] x[e*8+n]
        return jnp.kron(w.T.astype(jnp.float32), I8)

    def brep(b):        # (1, out)  -> (out*8, 1)
        return jnp.repeat(b.reshape(-1).astype(jnp.float32), number_car)[:, None]

    # Encoder weight expecting car-major input columns (col = n*feature + f):
    #   wenc[u*8+n, m*feature+f] = enco_w[f, u] * I8[n, m]
    w = params["enco_w"].astype(jnp.float32)
    wenc = jnp.einsum("fu,nm->unmf", w, I8).reshape(
        d_model * number_car, number_car * feature)
    # Per-car raw-feature sum selector (padding mask): msum[n, m*feature+f] = I8[n,m]
    msum = jnp.kron(I8, jnp.ones((1, feature), jnp.float32))

    packed = {"wenc": wenc, "benc": brep(params["enco_b"]), "msum": msum}
    per = {k: [] for k in _PACKED_ORDER[3:]}
    for l in range(n_layers):
        wcat = jnp.concatenate(
            [params["wq"][l] * scale, params["wk"][l], params["wv"][l]], axis=-1)   # (4, 12)
        bcat = jnp.concatenate(
            [params["bq"][l] * scale, params["bk"][l], params["bv"][l]], axis=-1)   # (1, 12)
        per["wqkv"].append(bd(wcat));            per["bqkv"].append(brep(bcat))
        per["wo"].append(bd(params["wo"][l]));   per["bo"].append(brep(params["bo"][l]))
        per["ln1_g"].append(brep(params["ln1_g"][l])); per["ln1_b"].append(brep(params["ln1_b"][l]))
        per["ff1_w"].append(bd(params["ff1_w"][l]));   per["ff1_b"].append(brep(params["ff1_b"][l]))
        per["ff2_w"].append(bd(params["ff2_w"][l]));   per["ff2_b"].append(brep(params["ff2_b"][l]))
        per["ln2_g"].append(brep(params["ln2_g"][l])); per["ln2_b"].append(brep(params["ln2_b"][l]))
    for k, v in per.items():
        packed[k] = jnp.stack(v, axis=0)
    for k in _BF16_KEYS:                               # bf16 MXU operands, f32 accumulate
        packed[k] = packed[k].astype(jnp.bfloat16)
    packed["log_std"] = params["log_std"].astype(jnp.float32)
    return packed


# =============================================================================
# Wrapper
# =============================================================================
def _round_up(x, m):
    return ((x + m - 1) // m) * m


def _full_spec(a):
    nd = a.ndim
    return pl.BlockSpec(a.shape, lambda b, nd=nd: (0,) * nd)


def policy_forward(states, packed, tile_b=1024):
    """Mirrors PolicyNetwork.forward (continuous branch). Returns (mean, cov).
    `packed` is the output of pack_params(init_params(...)), built once."""
    if states.ndim == 1:
        states = states[None, :]
    B = states.shape[0]
    s2 = states.reshape(B, number_car * feature).astype(jnp.float32)

    B128 = _round_up(B, 128)
    TB = min(_round_up(tile_b, 128), B128)
    # Prefer >= 2 grid steps when the batch allows it so the "parallel" batch
    # axis can shard across both v7x TensorCores.
    if B128 >= 2 * 128 and _round_up(B, TB) == TB:
        TB = _round_up((B128 + 1) // 2, 128)
    B_pad = _round_up(B, TB)
    if B_pad != B:
        s2 = jnp.pad(s2, ((0, B_pad - B), (0, 0)))

    flat = [packed[k] for k in _PACKED_ORDER]
    in_specs = [pl.BlockSpec((TB, number_car * feature), lambda b: (b, 0))]
    in_specs += [_full_spec(a) for a in flat]

    mean_fm = pl.pallas_call(
        policy_kernel,
        out_shape=jax.ShapeDtypeStruct((d_model, B_pad), jnp.float32),
        grid=(B_pad // TB,),
        in_specs=in_specs,
        out_specs=pl.BlockSpec((d_model, TB), lambda b: (0, b)),
        compiler_params=pltpu.CompilerParams(
            dimension_semantics=("parallel",),
            vmem_limit_bytes=48 * 1024 * 1024),
    )(s2, *flat)

    mean = mean_fm.T[:B]                         # (B, d_model)
    if mean.shape[0] == 1:                       # torch: mean.squeeze(0)
        mean = mean[0]

    std = jnp.exp(packed["log_std"])
    cov = jnp.eye(ACTION_DIM, dtype=jnp.float32) * std ** 2
    return mean, cov


# =============================================================================
# Pure-JAX reference (same reconstructed encoder) for a sanity check
# =============================================================================
def _ln_ref(x, g, b):
    mu = jnp.mean(x, axis=-1, keepdims=True)
    var = jnp.mean((x - mu) ** 2, axis=-1, keepdims=True)
    return (x - mu) * lax.rsqrt(var + LN_EPS) * g + b


def policy_forward_ref(states, params):
    if states.ndim == 1:
        states = states[None, :]
    B = states.shape[0]
    s = states.reshape(B, number_car, feature).astype(jnp.float32)
    km = jnp.sum(s, axis=-1) != 0.0                              # (B, 8)
    x = s @ params["enco_w"] + params["enco_b"]
    scale = 1.0 / (D_K ** 0.5)
    for l in range(n_layers):
        q = x @ params["wq"][l] + params["bq"][l]
        k = x @ params["wk"][l] + params["bk"][l]
        v = x @ params["wv"][l] + params["bv"][l]
        heads = []
        for h in range(n_heads):
            sl = slice(h * D_K, (h + 1) * D_K)
            sc = jnp.einsum("bid,bjd->bij", q[..., sl], k[..., sl]) * scale
            sc = jnp.where(km[:, None, :], sc, NEG_INF)
            p = jax.nn.softmax(sc, axis=-1)
            heads.append(jnp.einsum("bij,bjd->bid", p, v[..., sl]))
        ctx = jnp.concatenate(heads, axis=-1)
        x = _ln_ref(x + ctx @ params["wo"][l] + params["bo"][l],
                    params["ln1_g"][l], params["ln1_b"][l])
        h1 = jax.nn.relu(x @ params["ff1_w"][l] + params["ff1_b"][l])
        x = _ln_ref(x + h1 @ params["ff2_w"][l] + params["ff2_b"][l],
                    params["ln2_g"][l], params["ln2_b"][l])
    kmf = km.astype(jnp.float32)
    denom = jnp.maximum(jnp.sum(kmf, axis=-1, keepdims=True), 1.0)
    mean = jnp.sum(x * kmf[..., None], axis=1) / denom
    if mean.shape[0] == 1:
        mean = mean[0]
    return mean


if __name__ == "__main__":
    key = jax.random.PRNGKey(0)
    kx, kp = jax.random.split(key)

    # states: (batch=2, number_car * feature = 32)
    states = jax.random.normal(kx, (2, number_car * feature), dtype=jnp.float32)
    # zero out one car in the first sample so the mask path is exercised
    states = states.at[0, 1 * feature:2 * feature].set(0.0)

    params = init_params(kp)
    packed = pack_params(params)                 # packed ONCE, reused per call

    mean, cov = policy_forward(states, packed)
    jax.block_until_ready((mean, cov))

    mean_ref = policy_forward_ref(states, params)

    assert mean.shape == (2, ACTION_DIM)
    assert cov.shape == (ACTION_DIM, ACTION_DIM)
    assert bool(jnp.all(jnp.isfinite(mean))) and bool(jnp.all(jnp.isfinite(cov)))
    # bf16 MXU operands (f32 accumulate) -> compare at 5e-2 like before
    assert bool(jnp.allclose(mean, mean_ref, rtol=5e-2, atol=5e-2)), (
        f"kernel/reference mismatch:\n{mean}\nvs\n{mean_ref}")
    print("KERNEL_OK")
</pallas_src>

<mosaic_0001>
module attributes {stable_mosaic.version = 11 : i64} {
  func.func @policy_kernel(%arg0: i32, %arg1: memref<128x32xf32, #tpu.memory_space<vmem>>, %arg2: memref<32x32xbf16, #tpu.memory_space<vmem>>, %arg3: memref<32x1xf32, #tpu.memory_space<vmem>>, %arg4: memref<8x32xf32, #tpu.memory_space<vmem>>, %arg5: memref<3x96x32xbf16, #tpu.memory_space<vmem>>, %arg6: memref<3x96x1xf32, #tpu.memory_space<vmem>>, %arg7: memref<3x32x32xbf16, #tpu.memory_space<vmem>>, %arg8: memref<3x32x1xf32, #tpu.memory_space<vmem>>, %arg9: memref<3x32x1xf32, #tpu.memory_space<vmem>>, %arg10: memref<3x32x1xf32, #tpu.memory_space<vmem>>, %arg11: memref<3x256x32xbf16, #tpu.memory_space<vmem>>, %arg12: memref<3x256x1xf32, #tpu.memory_space<vmem>>, %arg13: memref<3x32x256xbf16, #tpu.memory_space<vmem>>, %arg14: memref<3x32x1xf32, #tpu.memory_space<vmem>>, %arg15: memref<3x32x1xf32, #tpu.memory_space<vmem>>, %arg16: memref<3x32x1xf32, #tpu.memory_space<vmem>>, %arg17: memref<4x128xf32, #tpu.memory_space<vmem>>) attributes {dimension_semantics = [#tpu.dimension_semantics<parallel>], iteration_bounds = array<i64: 1>, scalar_prefetch = 0 : i64, scratch_operands = 0 : i64, tpu.core_type = #tpu.core_type<tc>, window_params = [{transform_indices = @transform_0, window_bounds = array<i64: 128, 32>}, {pipeline_mode = #tpu.pipeline_mode<synchronous>, transform_indices = @transform_1, window_bounds = array<i64: 32, 32>}, {pipeline_mode = #tpu.pipeline_mode<synchronous>, transform_indices = @transform_2, window_bounds = array<i64: 32, 1>}, {pipeline_mode = #tpu.pipeline_mode<synchronous>, transform_indices = @transform_3, window_bounds = array<i64: 8, 32>}, {pipeline_mode = #tpu.pipeline_mode<synchronous>, transform_indices = @transform_4, window_bounds = array<i64: 3, 96, 32>}, {pipeline_mode = #tpu.pipeline_mode<synchronous>, transform_indices = @transform_5, window_bounds = array<i64: 3, 96, 1>}, {pipeline_mode = #tpu.pipeline_mode<synchronous>, transform_indices = @transform_6, window_bounds = array<i64: 3, 32, 32>}, {pipeline_mode = #tpu.pipeline_mode<synchronous>, transform_indices = @transform_7, window_bounds = array<i64: 3, 32, 1>}, {pipeline_mode = #tpu.pipeline_mode<synchronous>, transform_indices = @transform_8, window_bounds = array<i64: 3, 32, 1>}, {pipeline_mode = #tpu.pipeline_mode<synchronous>, transform_indices = @transform_9, window_bounds = array<i64: 3, 32, 1>}, {pipeline_mode = #tpu.pipeline_mode<synchronous>, transform_indices = @transform_10, window_bounds = array<i64: 3, 256, 32>}, {pipeline_mode = #tpu.pipeline_mode<synchronous>, transform_indices = @transform_11, window_bounds = array<i64: 3, 256, 1>}, {pipeline_mode = #tpu.pipeline_mode<synchronous>, transform_indices = @transform_12, window_bounds = array<i64: 3, 32, 256>}, {pipeline_mode = #tpu.pipeline_mode<synchronous>, transform_indices = @transform_13, window_bounds = array<i64: 3, 32, 1>}, {pipeline_mode = #tpu.pipeline_mode<synchronous>, transform_indices = @transform_14, window_bounds = array<i64: 3, 32, 1>}, {pipeline_mode = #tpu.pipeline_mode<synchronous>, transform_indices = @transform_15, window_bounds = array<i64: 3, 32, 1>}, {transform_indices = @transform_16, window_bounds = array<i64: 4, 128>}]} {
    %c0 = arith.constant 0 : index
    %c0_0 = arith.constant 0 : index
    %0 = vector.load %arg1[%c0, %c0_0] : memref<128x32xf32, #tpu.memory_space<vmem>>, vector<128x32xf32>
    %c0_1 = arith.constant 0 : index
    %c0_2 = arith.constant 0 : index
    %1 = vector.load %arg2[%c0_1, %c0_2] : memref<32x32xbf16, #tpu.memory_space<vmem>>, vector<32x32xbf16>
    %2 = arith.truncf %0 : vector<128x32xf32> to vector<128x32xbf16>
    %cst = arith.constant dense<0.000000e+00> : vector<32x128xf32>
    %3 = tpu.matmul %1, %2, %cst {dimension_numbers = #tpu.dot_dimension_numbers<[1], [1], [0], [0], [0, 0, 1, 0], [], []>} : vector<32x32xbf16>, vector<128x32xbf16>, vector<32x128xf32> -> vector<32x128xf32>
    %c0_3 = arith.constant 0 : index
    %c0_4 = arith.constant 0 : index
    %4 = vector.load %arg3[%c0_3, %c0_4] : memref<32x1xf32, #tpu.memory_space<vmem>>, vector<32x1xf32>
    %5 = vector.broadcast %4 : vector<32x1xf32> to vector<32x128xf32>
    %6 = arith.addf %3, %5 : vector<32x128xf32>
    %c0_5 = arith.constant 0 : index
    %c0_6 = arith.constant 0 : index
    %7 = vector.load %arg4[%c0_5, %c0_6] : memref<8x32xf32, #tpu.memory_space<vmem>>, vector<8x32xf32>
    %cst_7 = arith.constant dense<0.000000e+00> : vector<8x128xf32>
    %8 = tpu.matmul %7, %0, %cst_7 {dimension_numbers = #tpu.dot_dimension_numbers<[1], [1], [0], [0], [0, 0, 1, 0], [], []>} : vector<8x32xf32>, vector<128x32xf32>, vector<8x128xf32> -> vector<8x128xf32>
    %cst_8 = arith.constant 0.000000e+00 : f32
    %9 = vector.broadcast %cst_8 : f32 to vector<8x128xf32>
    %10 = arith.cmpf one, %8, %9 : vector<8x128xf32>
    %11 = arith.extui %10 : vector<8x128xi1> to vector<8x128xi32>
    %12 = arith.sitofp %11 : vector<8x128xi32> to vector<8x128xf32>
    %c0_9 = arith.constant 0 : index
    %c0_10 = arith.constant 0 : index
    %c0_11 = arith.constant 0 : index
    %13 = vector.load %arg5[%c0_9, %c0_10, %c0_11] : memref<3x96x32xbf16, #tpu.memory_space<vmem>>, vector<1x96x32xbf16>
    %14 = vector.shape_cast %13 : vector<1x96x32xbf16> to vector<96x32xbf16>
    %15 = arith.truncf %6 : vector<32x128xf32> to vector<32x128xbf16>
    %cst_12 = arith.constant dense<0.000000e+00> : vector<96x128xf32>
    %16 = tpu.matmul %14, %15, %cst_12 {dimension_numbers = #tpu.dot_dimension_numbers<[1], [0], [0], [1], [0, 0, 1, 1], [], []>} : vector<96x32xbf16>, vector<32x128xbf16>, vector<96x128xf32> -> vector<96x128xf32>
    %c0_13 = arith.constant 0 : index
    %c0_14 = arith.constant 0 : index
    %c0_15 = arith.constant 0 : index
    %17 = vector.load %arg6[%c0_13, %c0_14, %c0_15] : memref<3x96x1xf32, #tpu.memory_space<vmem>>, vector<1x96x1xf32>
    %18 = vector.shape_cast %17 : vector<1x96x1xf32> to vector<96x1xf32>
    %19 = vector.broadcast %18 : vector<96x1xf32> to vector<96x128xf32>
    %20 = arith.addf %16, %19 : vector<96x128xf32>
    %21 = vector.extract_strided_slice %20 {offsets = [0, 0], sizes = [8, 128], strides = [1, 1]} : vector<96x128xf32> to vector<8x128xf32>
    %22 = vector.extract_strided_slice %20 {offsets = [8, 0], sizes = [8, 128], strides = [1, 1]} : vector<96x128xf32> to vector<8x128xf32>
    %23 = vector.extract_strided_slice %20 {offsets = [32, 0], sizes = [8, 128], strides = [1, 1]} : vector<96x128xf32> to vector<8x128xf32>
    %24 = vector.extract_strided_slice %20 {offsets = [40, 0], sizes = [8, 128], strides = [1, 1]} : vector<96x128xf32> to vector<8x128xf32>
    %25 = vector.extract_strided_slice %20 {offsets = [64, 0], sizes = [8, 128], strides = [1, 1]} : vector<96x128xf32> to vector<8x128xf32>
    %26 = vector.extract_strided_slice %20 {offsets = [72, 0], sizes = [8, 128], strides = [1, 1]} : vector<96x128xf32> to vector<8x128xf32>
    %27 = vector.shape_cast %21 : vector<8x128xf32> to vector<8x1x128xf32>
    %28 = vector.shape_cast %23 : vector<8x128xf32> to vector<1x8x128xf32>
    %29 = vector.broadcast %27 : vector<8x1x128xf32> to vector<8x8x128xf32>
    %30 = vector.broadcast %28 : vector<1x8x128xf32> to vector<8x8x128xf32>
    %31 = arith.mulf %29, %30 : vector<8x8x128xf32>
    %32 = vector.shape_cast %22 : vector<8x128xf32> to vector<8x1x128xf32>
    %33 = vector.shape_cast %24 : vector<8x128xf32> to vector<1x8x128xf32>
    %34 = vector.broadcast %32 : vector<8x1x128xf32> to vector<8x8x128xf32>
    %35 = vector.broadcast %33 : vector<1x8x128xf32> to vector<8x8x128xf32>
    %36 = arith.mulf %34, %35 : vector<8x8x128xf32>
    %37 = arith.addf %31, %36 : vector<8x8x128xf32>
    %38 = vector.shape_cast %10 : vector<8x128xi1> to vector<1x8x128xi1>
    %cst_16 = arith.constant -1.000000e+09 : f32
    %39 = vector.shape_cast %38 : vector<1x8x128xi1> to vector<1x8x128xi1>
    %40 = vector.broadcast %39 : vector<1x8x128xi1> to vector<8x8x128xi1>
    %41 = vector.broadcast %cst_16 : f32 to vector<8x8x128xf32>
    %42 = arith.select %40, %37, %41 : vector<8x8x128xi1>, vector<8x8x128xf32>
    %cst_17 = arith.constant dense<0xFF800000> : vector<8x128xf32>
    %43 = vector.multi_reduction <maximumf>, %42, %cst_17 [1] : vector<8x8x128xf32> to vector<8x128xf32>
    %44 = vector.shape_cast %43 : vector<8x128xf32> to vector<8x1x128xf32>
    %45 = vector.broadcast %44 : vector<8x1x128xf32> to vector<8x8x128xf32>
    %46 = arith.subf %42, %45 : vector<8x8x128xf32>
    %47 = math.exp %46 : vector<8x8x128xf32>
    %cst_18 = arith.constant dense<0.000000e+00> : vector<8x128xf32>
    %48 = vector.multi_reduction <add>, %47, %cst_18 [1] : vector<8x8x128xf32> to vector<8x128xf32>
    %49 = tpu.reciprocal %48 {approx = true} : vector<8x128xf32> -> vector<8x128xf32>
    %50 = vector.shape_cast %25 : vector<8x128xf32> to vector<1x8x128xf32>
    %51 = vector.broadcast %50 : vector<1x8x128xf32> to vector<8x8x128xf32>
    %52 = arith.mulf %47, %51 : vector<8x8x128xf32>
    %cst_19 = arith.constant dense<0.000000e+00> : vector<8x128xf32>
    %53 = vector.multi_reduction <add>, %52, %cst_19 [1] : vector<8x8x128xf32> to vector<8x128xf32>
    %54 = arith.mulf %53, %49 : vector<8x128xf32>
    %55 = vector.shape_cast %26 : vector<8x128xf32> to vector<1x8x128xf32>
    %56 = vector.broadcast %55 : vector<1x8x128xf32> to vector<8x8x128xf32>
    %57 = arith.mulf %47, %56 : vector<8x8x128xf32>
    %cst_20 = arith.constant dense<0.000000e+00> : vector<8x128xf32>
    %58 = vector.multi_reduction <add>, %57, %cst_20 [1] : vector<8x8x128xf32> to vector<8x128xf32>
    %59 = arith.mulf %58, %49 : vector<8x128xf32>
    %60 = vector.extract_strided_slice %20 {offsets = [16, 0], sizes = [8, 128], strides = [1, 1]} : vector<96x128xf32> to vector<8x128xf32>
    %61 = vector.extract_strided_slice %20 {offsets = [24, 0], sizes = [8, 128], strides = [1, 1]} : vector<96x128xf32> to vector<8x128xf32>
    %62 = vector.extract_strided_slice %20 {offsets = [48, 0], sizes = [8, 128], strides = [1, 1]} : vector<96x128xf32> to vector<8x128xf32>
    %63 = vector.extract_strided_slice %20 {offsets = [56, 0], sizes = [8, 128], strides = [1, 1]} : vector<96x128xf32> to vector<8x128xf32>
    %64 = vector.extract_strided_slice %20 {offsets = [80, 0], sizes = [8, 128], strides = [1, 1]} : vector<96x128xf32> to vector<8x128xf32>
    %65 = vector.extract_strided_slice %20 {offsets = [88, 0], sizes = [8, 128], strides = [1, 1]} : vector<96x128xf32> to vector<8x128xf32>
    %66 = vector.shape_cast %60 : vector<8x128xf32> to vector<8x1x128xf32>
    %67 = vector.shape_cast %62 : vector<8x128xf32> to vector<1x8x128xf32>
    %68 = vector.broadcast %66 : vector<8x1x128xf32> to vector<8x8x128xf32>
    %69 = vector.broadcast %67 : vector<1x8x128xf32> to vector<8x8x128xf32>
    %70 = arith.mulf %68, %69 : vector<8x8x128xf32>
    %71 = vector.shape_cast %61 : vector<8x128xf32> to vector<8x1x128xf32>
    %72 = vector.shape_cast %63 : vector<8x128xf32> to vector<1x8x128xf32>
    %73 = vector.broadcast %71 : vector<8x1x128xf32> to vector<8x8x128xf32>
    %74 = vector.broadcast %72 : vector<1x8x128xf32> to vector<8x8x128xf32>
    %75 = arith.mulf %73, %74 : vector<8x8x128xf32>
    %76 = arith.addf %70, %75 : vector<8x8x128xf32>
    %77 = vector.shape_cast %10 : vector<8x128xi1> to vector<1x8x128xi1>
    %cst_21 = arith.constant -1.000000e+09 : f32
    %78 = vector.shape_cast %77 : vector<1x8x128xi1> to vector<1x8x128xi1>
    %79 = vector.broadcast %78 : vector<1x8x128xi1> to vector<8x8x128xi1>
    %80 = vector.broadcast %cst_21 : f32 to vector<8x8x128xf32>
    %81 = arith.select %79, %76, %80 : vector<8x8x128xi1>, vector<8x8x128xf32>
    %cst_22 = arith.constant dense<0xFF800000> : vector<8x128xf32>
    %82 = vector.multi_reduction <maximumf>, %81, %cst_22 [1] : vector<8x8x128xf32> to vector<8x128xf32>
    %83 = vector.shape_cast %82 : vector<8x128xf32> to vector<8x1x128xf32>
    %84 = vector.broadcast %83 : vector<8x1x128xf32> to vector<8x8x128xf32>
    %85 = arith.subf %81, %84 : vector<8x8x128xf32>
    %86 = math.exp %85 : vector<8x8x128xf32>
    %cst_23 = arith.constant dense<0.000000e+00> : vector<8x128xf32>
    %87 = vector.multi_reduction <add>, %86, %cst_23 [1] : vector<8x8x128xf32> to vector<8x128xf32>
    %88 = tpu.reciprocal %87 {approx = true} : vector<8x128xf32> -> vector<8x128xf32>
    %89 = vector.shape_cast %64 : vector<8x128xf32> to vector<1x8x128xf32>
    %90 = vector.broadcast %89 : vector<1x8x128xf32> to vector<8x8x128xf32>
    %91 = arith.mulf %86, %90 : vector<8x8x128xf32>
    %cst_24 = arith.constant dense<0.000000e+00> : vector<8x128xf32>
    %92 = vector.multi_reduction <add>, %91, %cst_24 [1] : vector<8x8x128xf32> to vector<8x128xf32>
    %93 = arith.mulf %92, %88 : vector<8x128xf32>
    %94 = vector.shape_cast %65 : vector<8x128xf32> to vector<1x8x128xf32>
    %95 = vector.broadcast %94 : vector<1x8x128xf32> to vector<8x8x128xf32>
    %96 = arith.mulf %86, %95 : vector<8x8x128xf32>
    %cst_25 = arith.constant dense<0.000000e+00> : vector<8x128xf32>
    %97 = vector.multi_reduction <add>, %96, %cst_25 [1] : vector<8x8x128xf32> to vector<8x128xf32>
    %98 = arith.mulf %97, %88 : vector<8x128xf32>
    %99 = tpu.concatenate %54, %59, %93, %98 in 0 : vector<8x128xf32>, vector<8x128xf32>, vector<8x128xf32>, vector<8x128xf32> -> vector<32x128xf32>
    %c0_26 = arith.constant 0 : index
    %c0_27 = arith.constant 0 : index
    %c0_28 = arith.constant 0 : index
    %100 = vector.load %arg7[%c0_26, %c0_27, %c0_28] : memref<3x32x32xbf16, #tpu.memory_space<vmem>>, vector<1x32x32xbf16>
    %101 = vector.shape_cast %100 : vector<1x32x32xbf16> to vector<32x32xbf16>
    %102 = arith.truncf %99 : vector<32x128xf32> to vector<32x128xbf16>
    %cst_29 = arith.constant dense<0.000000e+00> : vector<32x128xf32>
    %103 = tpu.matmul %101, %102, %cst_29 {dimension_numbers = #tpu.dot_dimension_numbers<[1], [0], [0], [1], [0, 0, 1, 1], [], []>} : vector<32x32xbf16>, vector<32x128xbf16>, vector<32x128xf32> -> vector<32x128xf32>
    %c0_30 = arith.constant 0 : index
    %c0_31 = arith.constant 0 : index
    %c0_32 = arith.constant 0 : index
    %104 = vector.load %arg8[%c0_30, %c0_31, %c0_32] : memref<3x32x1xf32, #tpu.memory_space<vmem>>, vector<1x32x1xf32>
    %105 = vector.shape_cast %104 : vector<1x32x1xf32> to vector<32x1xf32>
    %106 = vector.broadcast %105 : vector<32x1xf32> to vector<32x128xf32>
    %107 = arith.addf %103, %106 : vector<32x128xf32>
    %108 = arith.addf %6, %107 : vector<32x128xf32>
    %c0_33 = arith.constant 0 : index
    %c0_34 = arith.constant 0 : index
    %c0_35 = arith.constant 0 : index
    %109 = vector.load %arg9[%c0_33, %c0_34, %c0_35] : memref<3x32x1xf32, #tpu.memory_space<vmem>>, vector<1x32x1xf32>
    %110 = vector.shape_cast %109 : vector<1x32x1xf32> to vector<32x1xf32>
    %c0_36 = arith.constant 0 : index
    %c0_37 = arith.constant 0 : index
    %c0_38 = arith.constant 0 : index
    %111 = vector.load %arg10[%c0_36, %c0_37, %c0_38] : memref<3x32x1xf32, #tpu.memory_space<vmem>>, vector<1x32x1xf32>
    %112 = vector.shape_cast %111 : vector<1x32x1xf32> to vector<32x1xf32>
    %113 = vector.extract_strided_slice %108 {offsets = [0, 0], sizes = [8, 128], strides = [1, 1]} : vector<32x128xf32> to vector<8x128xf32>
    %114 = vector.extract_strided_slice %108 {offsets = [8, 0], sizes = [8, 128], strides = [1, 1]} : vector<32x128xf32> to vector<8x128xf32>
    %115 = vector.extract_strided_slice %108 {offsets = [16, 0], sizes = [8, 128], strides = [1, 1]} : vector<32x128xf32> to vector<8x128xf32>
    %116 = vector.extract_strided_slice %108 {offsets = [24, 0], sizes = [8, 128], strides = [1, 1]} : vector<32x128xf32> to vector<8x128xf32>
    %117 = arith.addf %113, %114 : vector<8x128xf32>
    %118 = arith.addf %117, %115 : vector<8x128xf32>
    %119 = arith.addf %118, %116 : vector<8x128xf32>
    %cst_39 = arith.constant 2.500000e-01 : f32
    %120 = vector.broadcast %cst_39 : f32 to vector<8x128xf32>
    %121 = arith.mulf %119, %120 : vector<8x128xf32>
    %122 = arith.subf %113, %121 : vector<8x128xf32>
    %123 = arith.subf %114, %121 : vector<8x128xf32>
    %124 = arith.subf %115, %121 : vector<8x128xf32>
    %125 = arith.subf %116, %121 : vector<8x128xf32>
    %126 = arith.mulf %122, %122 : vector<8x128xf32>
    %127 = arith.mulf %123, %123 : vector<8x128xf32>
    %128 = arith.addf %126, %127 : vector<8x128xf32>
    %129 = arith.mulf %124, %124 : vector<8x128xf32>
    %130 = arith.addf %128, %129 : vector<8x128xf32>
    %131 = arith.mulf %125, %125 : vector<8x128xf32>
    %132 = arith.addf %130, %131 : vector<8x128xf32>
    %cst_40 = arith.constant 2.500000e-01 : f32
    %133 = vector.broadcast %cst_40 : f32 to vector<8x128xf32>
    %134 = arith.mulf %132, %133 : vector<8x128xf32>
    %cst_41 = arith.constant 9.99999974E-6 : f32
    %135 = vector.broadcast %cst_41 : f32 to vector<8x128xf32>
    %136 = arith.addf %134, %135 : vector<8x128xf32>
    %137 = math.rsqrt %136 : vector<8x128xf32>
    %138 = arith.mulf %122, %137 : vector<8x128xf32>
    %139 = vector.extract_strided_slice %110 {offsets = [0, 0], sizes = [8, 1], strides = [1, 1]} : vector<32x1xf32> to vector<8x1xf32>
    %140 = vector.broadcast %139 : vector<8x1xf32> to vector<8x128xf32>
    %141 = arith.mulf %138, %140 : vector<8x128xf32>
    %142 = vector.extract_strided_slice %112 {offsets = [0, 0], sizes = [8, 1], strides = [1, 1]} : vector<32x1xf32> to vector<8x1xf32>
    %143 = vector.broadcast %142 : vector<8x1xf32> to vector<8x128xf32>
    %144 = arith.addf %141, %143 : vector<8x128xf32>
    %145 = arith.mulf %123, %137 : vector<8x128xf32>
    %146 = vector.extract_strided_slice %110 {offsets = [8, 0], sizes = [8, 1], strides = [1, 1]} : vector<32x1xf32> to vector<8x1xf32>
    %147 = vector.broadcast %146 : vector<8x1xf32> to vector<8x128xf32>
    %148 = arith.mulf %145, %147 : vector<8x128xf32>
    %149 = vector.extract_strided_slice %112 {offsets = [8, 0], sizes = [8, 1], strides = [1, 1]} : vector<32x1xf32> to vector<8x1xf32>
    %150 = vector.broadcast %149 : vector<8x1xf32> to vector<8x128xf32>
    %151 = arith.addf %148, %150 : vector<8x128xf32>
    %152 = arith.mulf %124, %137 : vector<8x128xf32>
    %153 = vector.extract_strided_slice %110 {offsets = [16, 0], sizes = [8, 1], strides = [1, 1]} : vector<32x1xf32> to vector<8x1xf32>
    %154 = vector.broadcast %153 : vector<8x1xf32> to vector<8x128xf32>
    %155 = arith.mulf %152, %154 : vector<8x128xf32>
    %156 = vector.extract_strided_slice %112 {offsets = [16, 0], sizes = [8, 1], strides = [1, 1]} : vector<32x1xf32> to vector<8x1xf32>
    %157 = vector.broadcast %156 : vector<8x1xf32> to vector<8x128xf32>
    %158 = arith.addf %155, %157 : vector<8x128xf32>
    %159 = arith.mulf %125, %137 : vector<8x128xf32>
    %160 = vector.extract_strided_slice %110 {offsets = [24, 0], sizes = [8, 1], strides = [1, 1]} : vector<32x1xf32> to vector<8x1xf32>
    %161 = vector.broadcast %160 : vector<8x1xf32> to vector<8x128xf32>
    %162 = arith.mulf %159, %161 : vector<8x128xf32>
    %163 = vector.extract_strided_slice %112 {offsets = [24, 0], sizes = [8, 1], strides = [1, 1]} : vector<32x1xf32> to vector<8x1xf32>
    %164 = vector.broadcast %163 : vector<8x1xf32> to vector<8x128xf32>
    %165 = arith.addf %162, %164 : vector<8x128xf32>
    %166 = tpu.concatenate %144, %151, %158, %165 in 0 : vector<8x128xf32>, vector<8x128xf32>, vector<8x128xf32>, vector<8x128xf32> -> vector<32x128xf32>
    %c0_42 = arith.constant 0 : index
    %c0_43 = arith.constant 0 : index
    %c0_44 = arith.constant 0 : index
    %167 = vector.load %arg11[%c0_42, %c0_43, %c0_44] : memref<3x256x32xbf16, #tpu.memory_space<vmem>>, vector<1x256x32xbf16>
    %168 = vector.shape_cast %167 : vector<1x256x32xbf16> to vector<256x32xbf16>
    %169 = arith.truncf %166 : vector<32x128xf32> to vector<32x128xbf16>
    %cst_45 = arith.constant dense<0.000000e+00> : vector<256x128xf32>
    %170 = tpu.matmul %168, %169, %cst_45 {dimension_numbers = #tpu.dot_dimension_numbers<[1], [0], [0], [1], [0, 0, 1, 1], [], []>} : vector<256x32xbf16>, vector<32x128xbf16>, vector<256x128xf32> -> vector<256x128xf32>
    %c0_46 = arith.constant 0 : index
    %c0_47 = arith.constant 0 : index
    %c0_48 = arith.constant 0 : index
    %171 = vector.load %arg12[%c0_46, %c0_47, %c0_48] : memref<3x256x1xf32, #tpu.memory_space<vmem>>, vector<1x256x1xf32>
    %172 = vector.shape_cast %171 : vector<1x256x1xf32> to vector<256x1xf32>
    %173 = vector.broadcast %172 : vector<256x1xf32> to vector<256x128xf32>
    %174 = arith.addf %170, %173 : vector<256x128xf32>
    %cst_49 = arith.constant 0.000000e+00 : f32
    %175 = vector.broadcast %cst_49 : f32 to vector<256x128xf32>
    %176 = arith.maximumf %174, %175 : vector<256x128xf32>
    %c0_50 = arith.constant 0 : index
    %c0_51 = arith.constant 0 : index
    %c0_52 = arith.constant 0 : index
    %177 = vector.load %arg13[%c0_50, %c0_51, %c0_52] : memref<3x32x256xbf16, #tpu.memory_space<vmem>>, vector<1x32x256xbf16>
    %178 = vector.shape_cast %177 : vector<1x32x256xbf16> to vector<32x256xbf16>
    %179 = arith.truncf %176 : vector<256x128xf32> to vector<256x128xbf16>
    %cst_53 = arith.constant dense<0.000000e+00> : vector<32x128xf32>
    %180 = tpu.matmul %178, %179, %cst_53 {dimension_numbers = #tpu.dot_dimension_numbers<[1], [0], [0], [1], [0, 0, 1, 1], [], []>} : vector<32x256xbf16>, vector<256x128xbf16>, vector<32x128xf32> -> vector<32x128xf32>
    %c0_54 = arith.constant 0 : index
    %c0_55 = arith.constant 0 : index
    %c0_56 = arith.constant 0 : index
    %181 = vector.load %arg14[%c0_54, %c0_55, %c0_56] : memref<3x32x1xf32, #tpu.memory_space<vmem>>, vector<1x32x1xf32>
    %182 = vector.shape_cast %181 : vector<1x32x1xf32> to vector<32x1xf32>
    %183 = vector.broadcast %182 : vector<32x1xf32> to vector<32x128xf32>
    %184 = arith.addf %180, %183 : vector<32x128xf32>
    %185 = arith.addf %166, %184 : vector<32x128xf32>
    %c0_57 = arith.constant 0 : index
    %c0_58 = arith.constant 0 : index
    %c0_59 = arith.constant 0 : index
    %186 = vector.load %arg15[%c0_57, %c0_58, %c0_59] : memref<3x32x1xf32, #tpu.memory_space<vmem>>, vector<1x32x1xf32>
    %187 = vector.shape_cast %186 : vector<1x32x1xf32> to vector<32x1xf32>
    %c0_60 = arith.constant 0 : index
    %c0_61 = arith.constant 0 : index
    %c0_62 = arith.constant 0 : index
    %188 = vector.load %arg16[%c0_60, %c0_61, %c0_62] : memref<3x32x1xf32, #tpu.memory_space<vmem>>, vector<1x32x1xf32>
    %189 = vector.shape_cast %188 : vector<1x32x1xf32> to vector<32x1xf32>
    %190 = vector.extract_strided_slice %185 {offsets = [0, 0], sizes = [8, 128], strides = [1, 1]} : vector<32x128xf32> to vector<8x128xf32>
    %191 = vector.extract_strided_slice %185 {offsets = [8, 0], sizes = [8, 128], strides = [1, 1]} : vector<32x128xf32> to vector<8x128xf32>
    %192 = vector.extract_strided_slice %185 {offsets = [16, 0], sizes = [8, 128], strides = [1, 1]} : vector<32x128xf32> to vector<8x128xf32>
    %193 = vector.extract_strided_slice %185 {offsets = [24, 0], sizes = [8, 128], strides = [1, 1]} : vector<32x128xf32> to vector<8x128xf32>
    %194 = arith.addf %190, %191 : vector<8x128xf32>
    %195 = arith.addf %194, %192 : vector<8x128xf32>
    %196 = arith.addf %195, %193 : vector<8x128xf32>
    %cst_63 = arith.constant 2.500000e-01 : f32
    %197 = vector.broadcast %cst_63 : f32 to vector<8x128xf32>
    %198 = arith.mulf %196, %197 : vector<8x128xf32>
    %199 = arith.subf %190, %198 : vector<8x128xf32>
    %200 = arith.subf %191, %198 : vector<8x128xf32>
    %201 = arith.subf %192, %198 : vector<8x128xf32>
    %202 = arith.subf %193, %198 : vector<8x128xf32>
    %203 = arith.mulf %199, %199 : vector<8x128xf32>
    %204 = arith.mulf %200, %200 : vector<8x128xf32>
    %205 = arith.addf %203, %204 : vector<8x128xf32>
    %206 = arith.mulf %201, %201 : vector<8x128xf32>
    %207 = arith.addf %205, %206 : vector<8x128xf32>
    %208 = arith.mulf %202, %202 : vector<8x128xf32>
    %209 = arith.addf %207, %208 : vector<8x128xf32>
    %cst_64 = arith.constant 2.500000e-01 : f32
    %210 = vector.broadcast %cst_64 : f32 to vector<8x128xf32>
    %211 = arith.mulf %209, %210 : vector<8x128xf32>
    %cst_65 = arith.constant 9.99999974E-6 : f32
    %212 = vector.broadcast %cst_65 : f32 to vector<8x128xf32>
    %213 = arith.addf %211, %212 : vector<8x128xf32>
    %214 = math.rsqrt %213 : vector<8x128xf32>
    %215 = arith.mulf %199, %214 : vector<8x128xf32>
    %216 = vector.extract_strided_slice %187 {offsets = [0, 0], sizes = [8, 1], strides = [1, 1]} : vector<32x1xf32> to vector<8x1xf32>
    %217 = vector.broadcast %216 : vector<8x1xf32> to vector<8x128xf32>
    %218 = arith.mulf %215, %217 : vector<8x128xf32>
    %219 = vector.extract_strided_slice %189 {offsets = [0, 0], sizes = [8, 1], strides = [1, 1]} : vector<32x1xf32> to vector<8x1xf32>
    %220 = vector.broadcast %219 : vector<8x1xf32> to vector<8x128xf32>
    %221 = arith.addf %218, %220 : vector<8x128xf32>
    %222 = arith.mulf %200, %214 : vector<8x128xf32>
    %223 = vector.extract_strided_slice %187 {offsets = [8, 0], sizes = [8, 1], strides = [1, 1]} : vector<32x1xf32> to vector<8x1xf32>
    %224 = vector.broadcast %223 : vector<8x1xf32> to vector<8x128xf32>
    %225 = arith.mulf %222, %224 : vector<8x128xf32>
    %226 = vector.extract_strided_slice %189 {offsets = [8, 0], sizes = [8, 1], strides = [1, 1]} : vector<32x1xf32> to vector<8x1xf32>
    %227 = vector.broadcast %226 : vector<8x1xf32> to vector<8x128xf32>
    %228 = arith.addf %225, %227 : vector<8x128xf32>
    %229 = arith.mulf %201, %214 : vector<8x128xf32>
    %230 = vector.extract_strided_slice %187 {offsets = [16, 0], sizes = [8, 1], strides = [1, 1]} : vector<32x1xf32> to vector<8x1xf32>
    %231 = vector.broadcast %230 : vector<8x1xf32> to vector<8x128xf32>
    %232 = arith.mulf %229, %231 : vector<8x128xf32>
    %233 = vector.extract_strided_slice %189 {offsets = [16, 0], sizes = [8, 1], strides = [1, 1]} : vector<32x1xf32> to vector<8x1xf32>
    %234 = vector.broadcast %233 : vector<8x1xf32> to vector<8x128xf32>
    %235 = arith.addf %232, %234 : vector<8x128xf32>
    %236 = arith.mulf %202, %214 : vector<8x128xf32>
    %237 = vector.extract_strided_slice %187 {offsets = [24, 0], sizes = [8, 1], strides = [1, 1]} : vector<32x1xf32> to vector<8x1xf32>
    %238 = vector.broadcast %237 : vector<8x1xf32> to vector<8x128xf32>
    %239 = arith.mulf %236, %238 : vector<8x128xf32>
    %240 = vector.extract_strided_slice %189 {offsets = [24, 0], sizes = [8, 1], strides = [1, 1]} : vector<32x1xf32> to vector<8x1xf32>
    %241 = vector.broadcast %240 : vector<8x1xf32> to vector<8x128xf32>
    %242 = arith.addf %239, %241 : vector<8x128xf32>
    %243 = tpu.concatenate %221, %228, %235, %242 in 0 : vector<8x128xf32>, vector<8x128xf32>, vector<8x128xf32>, vector<8x128xf32> -> vector<32x128xf32>
    %c1 = arith.constant 1 : index
    %c0_66 = arith.constant 0 : index
    %c0_67 = arith.constant 0 : index
    %244 = vector.load %arg5[%c1, %c0_66, %c0_67] : memref<3x96x32xbf16, #tpu.memory_space<vmem>>, vector<1x96x32xbf16>
    %245 = vector.shape_cast %244 : vector<1x96x32xbf16> to vector<96x32xbf16>
    %246 = arith.truncf %243 : vector<32x128xf32> to vector<32x128xbf16>
    %cst_68 = arith.constant dense<0.000000e+00> : vector<96x128xf32>
    %247 = tpu.matmul %245, %246, %cst_68 {dimension_numbers = #tpu.dot_dimension_numbers<[1], [0], [0], [1], [0, 0, 1, 1], [], []>} : vector<96x32xbf16>, vector<32x128xbf16>, vector<96x128xf32> -> vector<96x128xf32>
    %c1_69 = arith.constant 1 : index
    %c0_70 = arith.constant 0 : index
    %c0_71 = arith.constant 0 : index
    %248 = vector.load %arg6[%c1_69, %c0_70, %c0_71] : memref<3x96x1xf32, #tpu.memory_space<vmem>>, vector<1x96x1xf32>
    %249 = vector.shape_cast %248 : vector<1x96x1xf32> to vector<96x1xf32>
    %250 = vector.broadcast %249 : vector<96x1xf32> to vector<96x128xf32>
    %251 = arith.addf %247, %250 : vector<96x128xf32>
    %252 = vector.extract_strided_slice %251 {offsets = [0, 0], sizes = [8, 128], strides = [1, 1]} : vector<96x128xf32> to vector<8x128xf32>
    %253 = vector.extract_strided_slice %251 {offsets = [8, 0], sizes = [8, 128], strides = [1, 1]} : vector<96x128xf32> to vector<8x128xf32>
    %254 = vector.extract_strided_slice %251 {offsets = [32, 0], sizes = [8, 128], strides = [1, 1]} : vector<96x128xf32> to vector<8x128xf32>
    %255 = vector.extract_strided_slice %251 {offsets = [40, 0], sizes = [8, 128], strides = [1, 1]} : vector<96x128xf32> to vector<8x128xf32>
    %256 = vector.extract_strided_slice %251 {offsets = [64, 0], sizes = [8, 128], strides = [1, 1]} : vector<96x128xf32> to vector<8x128xf32>
    %257 = vector.extract_strided_slice %251 {offsets = [72, 0], sizes = [8, 128], strides = [1, 1]} : vector<96x128xf32> to vector<8x128xf32>
    %258 = vector.shape_cast %252 : vector<8x128xf32> to vector<8x1x128xf32>
    %259 = vector.shape_cast %254 : vector<8x128xf32> to vector<1x8x128xf32>
    %260 = vector.broadcast %258 : vector<8x1x128xf32> to vector<8x8x128xf32>
    %261 = vector.broadcast %259 : vector<1x8x128xf32> to vector<8x8x128xf32>
    %262 = arith.mulf %260, %261 : vector<8x8x128xf32>
    %263 = vector.shape_cast %253 : vector<8x128xf32> to vector<8x1x128xf32>
    %264 = vector.shape_cast %255 : vector<8x128xf32> to vector<1x8x128xf32>
    %265 = vector.broadcast %263 : vector<8x1x128xf32> to vector<8x8x128xf32>
    %266 = vector.broadcast %264 : vector<1x8x128xf32> to vector<8x8x128xf32>
    %267 = arith.mulf %265, %266 : vector<8x8x128xf32>
    %268 = arith.addf %262, %267 : vector<8x8x128xf32>
    %269 = vector.shape_cast %10 : vector<8x128xi1> to vector<1x8x128xi1>
    %cst_72 = arith.constant -1.000000e+09 : f32
    %270 = vector.shape_cast %269 : vector<1x8x128xi1> to vector<1x8x128xi1>
    %271 = vector.broadcast %270 : vector<1x8x128xi1> to vector<8x8x128xi1>
    %272 = vector.broadcast %cst_72 : f32 to vector<8x8x128xf32>
    %273 = arith.select %271, %268, %272 : vector<8x8x128xi1>, vector<8x8x128xf32>
    %cst_73 = arith.constant dense<0xFF800000> : vector<8x128xf32>
    %274 = vector.multi_reduction <maximumf>, %273, %cst_73 [1] : vector<8x8x128xf32> to vector<8x128xf32>
    %275 = vector.shape_cast %274 : vector<8x128xf32> to vector<8x1x128xf32>
    %276 = vector.broadcast %275 : vector<8x1x128xf32> to vector<8x8x128xf32>
    %277 = arith.subf %273, %276 : vector<8x8x128xf32>
    %278 = math.exp %277 : vector<8x8x128xf32>
    %cst_74 = arith.constant dense<0.000000e+00> : vector<8x128xf32>
    %279 = vector.multi_reduction <add>, %278, %cst_74 [1] : vector<8x8x128xf32> to vector<8x128xf32>
    %280 = tpu.reciprocal %279 {approx = true} : vector<8x128xf32> -> vector<8x128xf32>
    %281 = vector.shape_cast %256 : vector<8x128xf32> to vector<1x8x128xf32>
    %282 = vector.broadcast %281 : vector<1x8x128xf32> to vector<8x8x128xf32>
    %283 = arith.mulf %278, %282 : vector<8x8x128xf32>
    %cst_75 = arith.constant dense<0.000000e+00> : vector<8x128xf32>
    %284 = vector.multi_reduction <add>, %283, %cst_75 [1] : vector<8x8x128xf32> to vector<8x128xf32>
    %285 = arith.mulf %284, %280 : vector<8x128xf32>
    %286 = vector.shape_cast %257 : vector<8x128xf32> to vector<1x8x128xf32>
    %287 = vector.broadcast %286 : vector<1x8x128xf32> to vector<8x8x128xf32>
    %288 = arith.mulf %278, %287 : vector<8x8x128xf32>
    %cst_76 = arith.constant dense<0.000000e+00> : vector<8x128xf32>
    %289 = vector.multi_reduction <add>, %288, %cst_76 [1] : vector<8x8x128xf32> to vector<8x128xf32>
    %290 = arith.mulf %289, %280 : vector<8x128xf32>
    %291 = vector.extract_strided_slice %251 {offsets = [16, 0], sizes = [8, 128], strides = [1, 1]} : vector<96x128xf32> to vector<8x128xf32>
    %292 = vector.extract_strided_slice %251 {offsets = [24, 0], sizes = [8, 128], strides = [1, 1]} : vector<96x128xf32> to vector<8x128xf32>
    %293 = vector.extract_strided_slice %251 {offsets = [48, 0], sizes = [8, 128], strides = [1, 1]} : vector<96x128xf32> to vector<8x128xf32>
    %294 = vector.extract_strided_slice %251 {offsets = [56, 0], sizes = [8, 128], strides = [1, 1]} : vector<96x128xf32> to vector<8x128xf32>
    %295 = vector.extract_strided_slice %251 {offsets = [80, 0], sizes = [8, 128], strides = [1, 1]} : vector<96x128xf32> to vector<8x128xf32>
    %296 = vector.extract_strided_slice %251 {offsets = [88, 0], sizes = [8, 128], strides = [1, 1]} : vector<96x128xf32> to vector<8x128xf32>
    %297 = vector.shape_cast %291 : vector<8x128xf32> to vector<8x1x128xf32>
    %298 = vector.shape_cast %293 : vector<8x128xf32> to vector<1x8x128xf32>
    %299 = vector.broadcast %297 : vector<8x1x128xf32> to vector<8x8x128xf32>
    %300 = vector.broadcast %298 : vector<1x8x128xf32> to vector<8x8x128xf32>
    %301 = arith.mulf %299, %300 : vector<8x8x128xf32>
    %302 = vector.shape_cast %292 : vector<8x128xf32> to vector<8x1x128xf32>
    %303 = vector.shape_cast %294 : vector<8x128xf32> to vector<1x8x128xf32>
    %304 = vector.broadcast %302 : vector<8x1x128xf32> to vector<8x8x128xf32>
    %305 = vector.broadcast %303 : vector<1x8x128xf32> to vector<8x8x128xf32>
    %306 = arith.mulf %304, %305 : vector<8x8x128xf32>
    %307 = arith.addf %301, %306 : vector<8x8x128xf32>
    %308 = vector.shape_cast %10 : vector<8x128xi1> to vector<1x8x128xi1>
    %cst_77 = arith.constant -1.000000e+09 : f32
    %309 = vector.shape_cast %308 : vector<1x8x128xi1> to vector<1x8x128xi1>
    %310 = vector.broadcast %309 : vector<1x8x128xi1> to vector<8x8x128xi1>
    %311 = vector.broadcast %cst_77 : f32 to vector<8x8x128xf32>
    %312 = arith.select %310, %307, %311 : vector<8x8x128xi1>, vector<8x8x128xf32>
    %cst_78 = arith.constant dense<0xFF800000> : vector<8x128xf32>
    %313 = vector.multi_reduction <maximumf>, %312, %cst_78 [1] : vector<8x8x128xf32> to vector<8x128xf32>
    %314 = vector.shape_cast %313 : vector<8x128xf32> to vector<8x1x128xf32>
    %315 = vector.broadcast %314 : vector<8x1x128xf32> to vector<8x8x128xf32>
    %316 = arith.subf %312, %315 : vector<8x8x128xf32>
    %317 = math.exp %316 : vector<8x8x128xf32>
    %cst_79 = arith.constant dense<0.000000e+00> : vector<8x128xf32>
    %318 = vector.multi_reduction <add>, %317, %cst_79 [1] : vector<8x8x128xf32> to vector<8x128xf32>
    %319 = tpu.reciprocal %318 {approx = true} : vector<8x128xf32> -> vector<8x128xf32>
    %320 = vector.shape_cast %295 : vector<8x128xf32> to vector<1x8x128xf32>
    %321 = vector.broadcast %320 : vector<1x8x128xf32> to vector<8x8x128xf32>
    %322 = arith.mulf %317, %321 : vector<8x8x128xf32>
    %cst_80 = arith.constant dense<0.000000e+00> : vector<8x128xf32>
    %323 = vector.multi_reduction <add>, %322, %cst_80 [1] : vector<8x8x128xf32> to vector<8x128xf32>
    %324 = arith.mulf %323, %319 : vector<8x128xf32>
    %325 = vector.shape_cast %296 : vector<8x128xf32> to vector<1x8x128xf32>
    %326 = vector.broadcast %325 : vector<1x8x128xf32> to vector<8x8x128xf32>
    %327 = arith.mulf %317, %326 : vector<8x8x128xf32>
    %cst_81 = arith.constant dense<0.000000e+00> : vector<8x128xf32>
    %328 = vector.multi_reduction <add>, %327, %cst_81 [1] : vector<8x8x128xf32> to vector<8x128xf32>
    %329 = arith.mulf %328, %319 : vector<8x128xf32>
    %330 = tpu.concatenate %285, %290, %324, %329 in 0 : vector<8x128xf32>, vector<8x128xf32>, vector<8x128xf32>, vector<8x128xf32> -> vector<32x128xf32>
    %c1_82 = arith.constant 1 : index
    %c0_83 = arith.constant 0 : index
    %c0_84 = arith.constant 0 : index
    %331 = vector.load %arg7[%c1_82, %c0_83, %c0_84] : memref<3x32x32xbf16, #tpu.memory_space<vmem>>, vector<1x32x32xbf16>
    %332 = vector.shape_cast %331 : vector<1x32x32xbf16> to vector<32x32xbf16>
    %333 = arith.truncf %330 : vector<32x128xf32> to vector<32x128xbf16>
    %cst_85 = arith.constant dense<0.000000e+00> : vector<32x128xf32>
    %334 = tpu.matmul %332, %333, %cst_85 {dimension_numbers = #tpu.dot_dimension_numbers<[1], [0], [0], [1], [0, 0, 1, 1], [], []>} : vector<32x32xbf16>, vector<32x128xbf16>, vector<32x128xf32> -> vector<32x128xf32>
    %c1_86 = arith.constant 1 : index
    %c0_87 = arith.constant 0 : index
    %c0_88 = arith.constant 0 : index
    %335 = vector.load %arg8[%c1_86, %c0_87, %c0_88] : memref<3x32x1xf32, #tpu.memory_space<vmem>>, vector<1x32x1xf32>
    %336 = vector.shape_cast %335 : vector<1x32x1xf32> to vector<32x1xf32>
    %337 = vector.broadcast %336 : vector<32x1xf32> to vector<32x128xf32>
    %338 = arith.addf %334, %337 : vector<32x128xf32>
    %339 = arith.addf %243, %338 : vector<32x128xf32>
    %c1_89 = arith.constant 1 : index
    %c0_90 = arith.constant 0 : index
    %c0_91 = arith.constant 0 : index
    %340 = vector.load %arg9[%c1_89, %c0_90, %c0_91] : memref<3x32x1xf32, #tpu.memory_space<vmem>>, vector<1x32x1xf32>
    %341 = vector.shape_cast %340 : vector<1x32x1xf32> to vector<32x1xf32>
    %c1_92 = arith.constant 1 : index
    %c0_93 = arith.constant 0 : index
    %c0_94 = arith.constant 0 : index
    %342 = vector.load %arg10[%c1_92, %c0_93, %c0_94] : memref<3x32x1xf32, #tpu.memory_space<vmem>>, vector<1x32x1xf32>
    %343 = vector.shape_cast %342 : vector<1x32x1xf32> to vector<32x1xf32>
    %344 = vector.extract_strided_slice %339 {offsets = [0, 0], sizes = [8, 128], strides = [1, 1]} : vector<32x128xf32> to vector<8x128xf32>
    %345 = vector.extract_strided_slice %339 {offsets = [8, 0], sizes = [8, 128], strides = [1, 1]} : vector<32x128xf32> to vector<8x128xf32>
    %346 = vector.extract_strided_slice %339 {offsets = [16, 0], sizes = [8, 128], strides = [1, 1]} : vector<32x128xf32> to vector<8x128xf32>
    %347 = vector.extract_strided_slice %339 {offsets = [24, 0], sizes = [8, 128], strides = [1, 1]} : vector<32x128xf32> to vector<8x128xf32>
    %348 = arith.addf %344, %345 : vector<8x128xf32>
    %349 = arith.addf %348, %346 : vector<8x128xf32>
    %350 = arith.addf %349, %347 : vector<8x128xf32>
    %cst_95 = arith.constant 2.500000e-01 : f32
    %351 = vector.broadcast %cst_95 : f32 to vector<8x128xf32>
    %352 = arith.mulf %350, %351 : vector<8x128xf32>
    %353 = arith.subf %344, %352 : vector<8x128xf32>
    %354 = arith.subf %345, %352 : vector<8x128xf32>
    %355 = arith.subf %346, %352 : vector<8x128xf32>
    %356 = arith.subf %347, %352 : vector<8x128xf32>
    %357 = arith.mulf %353, %353 : vector<8x128xf32>
    %358 = arith.mulf %354, %354 : vector<8x128xf32>
    %359 = arith.addf %357, %358 : vector<8x128xf32>
    %360 = arith.mulf %355, %355 : vector<8x128xf32>
    %361 = arith.addf %359, %360 : vector<8x128xf32>
    %362 = arith.mulf %356, %356 : vector<8x128xf32>
    %363 = arith.addf %361, %362 : vector<8x128xf32>
    %cst_96 = arith.constant 2.500000e-01 : f32
    %364 = vector.broadcast %cst_96 : f32 to vector<8x128xf32>
    %365 = arith.mulf %363, %364 : vector<8x128xf32>
    %cst_97 = arith.constant 9.99999974E-6 : f32
    %366 = vector.broadcast %cst_97 : f32 to vector<8x128xf32>
    %367 = arith.addf %365, %366 : vector<8x128xf32>
    %368 = math.rsqrt %367 : vector<8x128xf32>
    %369 = arith.mulf %353, %368 : vector<8x128xf32>
    %370 = vector.extract_strided_slice %341 {offsets = [0, 0], sizes = [8, 1], strides = [1, 1]} : vector<32x1xf32> to vector<8x1xf32>
    %371 = vector.broadcast %370 : vector<8x1xf32> to vector<8x128xf32>
    %372 = arith.mulf %369, %371 : vector<8x128xf32>
    %373 = vector.extract_strided_slice %343 {offsets = [0, 0], sizes = [8, 1], strides = [1, 1]} : vector<32x1xf32> to vector<8x1xf32>
    %374 = vector.broadcast %373 : vector<8x1xf32> to vector<8x128xf32>
    %375 = arith.addf %372, %374 : vector<8x128xf32>
    %376 = arith.mulf %354, %368 : vector<8x128xf32>
    %377 = vector.extract_strided_slice %341 {offsets = [8, 0], sizes = [8, 1], strides = [1, 1]} : vector<32x1xf32> to vector<8x1xf32>
    %378 = vector.broadcast %377 : vector<8x1xf32> to vector<8x128xf32>
    %379 = arith.mulf %376, %378 : vector<8x128xf32>
    %380 = vector.extract_strided_slice %343 {offsets = [8, 0], sizes = [8, 1], strides = [1, 1]} : vector<32x1xf32> to vector<8x1xf32>
    %381 = vector.broadcast %380 : vector<8x1xf32> to vector<8x128xf32>
    %382 = arith.addf %379, %381 : vector<8x128xf32>
    %383 = arith.mulf %355, %368 : vector<8x128xf32>
    %384 = vector.extract_strided_slice %341 {offsets = [16, 0], sizes = [8, 1], strides = [1, 1]} : vector<32x1xf32> to vector<8x1xf32>
    %385 = vector.broadcast %384 : vector<8x1xf32> to vector<8x128xf32>
    %386 = arith.mulf %383, %385 : vector<8x128xf32>
    %387 = vector.extract_strided_slice %343 {offsets = [16, 0], sizes = [8, 1], strides = [1, 1]} : vector<32x1xf32> to vector<8x1xf32>
    %388 = vector.broadcast %387 : vector<8x1xf32> to vector<8x128xf32>
    %389 = arith.addf %386, %388 : vector<8x128xf32>
    %390 = arith.mulf %356, %368 : vector<8x128xf32>
    %391 = vector.extract_strided_slice %341 {offsets = [24, 0], sizes = [8, 1], strides = [1, 1]} : vector<32x1xf32> to vector<8x1xf32>
    %392 = vector.broadcast %391 : vector<8x1xf32> to vector<8x128xf32>
    %393 = arith.mulf %390, %392 : vector<8x128xf32>
    %394 = vector.extract_strided_slice %343 {offsets = [24, 0], sizes = [8, 1], strides = [1, 1]} : vector<32x1xf32> to vector<8x1xf32>
    %395 = vector.broadcast %394 : vector<8x1xf32> to vector<8x128xf32>
    %396 = arith.addf %393, %395 : vector<8x128xf32>
    %397 = tpu.concatenate %375, %382, %389, %396 in 0 : vector<8x128xf32>, vector<8x128xf32>, vector<8x128xf32>, vector<8x128xf32> -> vector<32x128xf32>
    %c1_98 = arith.constant 1 : index
    %c0_99 = arith.constant 0 : index
    %c0_100 = arith.constant 0 : index
    %398 = vector.load %arg11[%c1_98, %c0_99, %c0_100] : memref<3x256x32xbf16, #tpu.memory_space<vmem>>, vector<1x256x32xbf16>
    %399 = vector.shape_cast %398 : vector<1x256x32xbf16> to vector<256x32xbf16>
    %400 = arith.truncf %397 : vector<32x128xf32> to vector<32x128xbf16>
    %cst_101 = arith.constant dense<0.000000e+00> : vector<256x128xf32>
    %401 = tpu.matmul %399, %400, %cst_101 {dimension_numbers = #tpu.dot_dimension_numbers<[1], [0], [0], [1], [0, 0, 1, 1], [], []>} : vector<256x32xbf16>, vector<32x128xbf16>, vector<256x128xf32> -> vector<256x128xf32>
    %c1_102 = arith.constant 1 : index
    %c0_103 = arith.constant 0 : index
    %c0_104 = arith.constant 0 : index
    %402 = vector.load %arg12[%c1_102, %c0_103, %c0_104] : memref<3x256x1xf32, #tpu.memory_space<vmem>>, vector<1x256x1xf32>
    %403 = vector.shape_cast %402 : vector<1x256x1xf32> to vector<256x1xf32>
    %404 = vector.broadcast %403 : vector<256x1xf32> to vector<256x128xf32>
    %405 = arith.addf %401, %404 : vector<256x128xf32>
    %cst_105 = arith.constant 0.000000e+00 : f32
    %406 = vector.broadcast %cst_105 : f32 to vector<256x128xf32>
    %407 = arith.maximumf %405, %406 : vector<256x128xf32>
    %c1_106 = arith.constant 1 : index
    %c0_107 = arith.constant 0 : index
    %c0_108 = arith.constant 0 : index
    %408 = vector.load %arg13[%c1_106, %c0_107, %c0_108] : memref<3x32x256xbf16, #tpu.memory_space<vmem>>, vector<1x32x256xbf16>
    %409 = vector.shape_cast %408 : vector<1x32x256xbf16> to vector<32x256xbf16>
    %410 = arith.truncf %407 : vector<256x128xf32> to vector<256x128xbf16>
    %cst_109 = arith.constant dense<0.000000e+00> : vector<32x128xf32>
    %411 = tpu.matmul %409, %410, %cst_109 {dimension_numbers = #tpu.dot_dimension_numbers<[1], [0], [0], [1], [0, 0, 1, 1], [], []>} : vector<32x256xbf16>, vector<256x128xbf16>, vector<32x128xf32> -> vector<32x128xf32>
    %c1_110 = arith.constant 1 : index
    %c0_111 = arith.constant 0 : index
    %c0_112 = arith.constant 0 : index
    %412 = vector.load %arg14[%c1_110, %c0_111, %c0_112] : memref<3x32x1xf32, #tpu.memory_space<vmem>>, vector<1x32x1xf32>
    %413 = vector.shape_cast %412 : vector<1x32x1xf32> to vector<32x1xf32>
    %414 = vector.broadcast %413 : vector<32x1xf32> to vector<32x128xf32>
    %415 = arith.addf %411, %414 : vector<32x128xf32>
    %416 = arith.addf %397, %415 : vector<32x128xf32>
    %c1_113 = arith.constant 1 : index
    %c0_114 = arith.constant 0 : index
    %c0_115 = arith.constant 0 : index
    %417 = vector.load %arg15[%c1_113, %c0_114, %c0_115] : memref<3x32x1xf32, #tpu.memory_space<vmem>>, vector<1x32x1xf32>
    %418 = vector.shape_cast %417 : vector<1x32x1xf32> to vector<32x1xf32>
    %c1_116 = arith.constant 1 : index
    %c0_117 = arith.constant 0 : index
    %c0_118 = arith.constant 0 : index
    %419 = vector.load %arg16[%c1_116, %c0_117, %c0_118] : memref<3x32x1xf32, #tpu.memory_space<vmem>>, vector<1x32x1xf32>
    %420 = vector.shape_cast %419 : vector<1x32x1xf32> to vector<32x1xf32>
    %421 = vector.extract_strided_slice %416 {offsets = [0, 0], sizes = [8, 128], strides = [1, 1]} : vector<32x128xf32> to vector<8x128xf32>
    %422 = vector.extract_strided_slice %416 {offsets = [8, 0], sizes = [8, 128], strides = [1, 1]} : vector<32x128xf32> to vector<8x128xf32>
    %423 = vector.extract_strided_slice %416 {offsets = [16, 0], sizes = [8, 128], strides = [1, 1]} : vector<32x128xf32> to vector<8x128xf32>
    %424 = vector.extract_strided_slice %416 {offsets = [24, 0], sizes = [8, 128], strides = [1, 1]} : vector<32x128xf32> to vector<8x128xf32>
    %425 = arith.addf %421, %422 : vector<8x128xf32>
    %426 = arith.addf %425, %423 : vector<8x128xf32>
    %427 = arith.addf %426, %424 : vector<8x128xf32>
    %cst_119 = arith.constant 2.500000e-01 : f32
    %428 = vector.broadcast %cst_119 : f32 to vector<8x128xf32>
    %429 = arith.mulf %427, %428 : vector<8x128xf32>
    %430 = arith.subf %421, %429 : vector<8x128xf32>
    %431 = arith.subf %422, %429 : vector<8x128xf32>
    %432 = arith.subf %423, %429 : vector<8x128xf32>
    %433 = arith.subf %424, %429 : vector<8x128xf32>
    %434 = arith.mulf %430, %430 : vector<8x128xf32>
    %435 = arith.mulf %431, %431 : vector<8x128xf32>
    %436 = arith.addf %434, %435 : vector<8x128xf32>
    %437 = arith.mulf %432, %432 : vector<8x128xf32>
    %438 = arith.addf %436, %437 : vector<8x128xf32>
    %439 = arith.mulf %433, %433 : vector<8x128xf32>
    %440 = arith.addf %438, %439 : vector<8x128xf32>
    %cst_120 = arith.constant 2.500000e-01 : f32
    %441 = vector.broadcast %cst_120 : f32 to vector<8x128xf32>
    %442 = arith.mulf %440, %441 : vector<8x128xf32>
    %cst_121 = arith.constant 9.99999974E-6 : f32
    %443 = vector.broadcast %cst_121 : f32 to vector<8x128xf32>
    %444 = arith.addf %442, %443 : vector<8x128xf32>
    %445 = math.rsqrt %444 : vector<8x128xf32>
    %446 = arith.mulf %430, %445 : vector<8x128xf32>
    %447 = vector.extract_strided_slice %418 {offsets = [0, 0], sizes = [8, 1], strides = [1, 1]} : vector<32x1xf32> to vector<8x1xf32>
    %448 = vector.broadcast %447 : vector<8x1xf32> to vector<8x128xf32>
    %449 = arith.mulf %446, %448 : vector<8x128xf32>
    %450 = vector.extract_strided_slice %420 {offsets = [0, 0], sizes = [8, 1], strides = [1, 1]} : vector<32x1xf32> to vector<8x1xf32>
    %451 = vector.broadcast %450 : vector<8x1xf32> to vector<8x128xf32>
    %452 = arith.addf %449, %451 : vector<8x128xf32>
    %453 = arith.mulf %431, %445 : vector<8x128xf32>
    %454 = vector.extract_strided_slice %418 {offsets = [8, 0], sizes = [8, 1], strides = [1, 1]} : vector<32x1xf32> to vector<8x1xf32>
    %455 = vector.broadcast %454 : vector<8x1xf32> to vector<8x128xf32>
    %456 = arith.mulf %453, %455 : vector<8x128xf32>
    %457 = vector.extract_strided_slice %420 {offsets = [8, 0], sizes = [8, 1], strides = [1, 1]} : vector<32x1xf32> to vector<8x1xf32>
    %458 = vector.broadcast %457 : vector<8x1xf32> to vector<8x128xf32>
    %459 = arith.addf %456, %458 : vector<8x128xf32>
    %460 = arith.mulf %432, %445 : vector<8x128xf32>
    %461 = vector.extract_strided_slice %418 {offsets = [16, 0], sizes = [8, 1], strides = [1, 1]} : vector<32x1xf32> to vector<8x1xf32>
    %462 = vector.broadcast %461 : vector<8x1xf32> to vector<8x128xf32>
    %463 = arith.mulf %460, %462 : vector<8x128xf32>
    %464 = vector.extract_strided_slice %420 {offsets = [16, 0], sizes = [8, 1], strides = [1, 1]} : vector<32x1xf32> to vector<8x1xf32>
    %465 = vector.broadcast %464 : vector<8x1xf32> to vector<8x128xf32>
    %466 = arith.addf %463, %465 : vector<8x128xf32>
    %467 = arith.mulf %433, %445 : vector<8x128xf32>
    %468 = vector.extract_strided_slice %418 {offsets = [24, 0], sizes = [8, 1], strides = [1, 1]} : vector<32x1xf32> to vector<8x1xf32>
    %469 = vector.broadcast %468 : vector<8x1xf32> to vector<8x128xf32>
    %470 = arith.mulf %467, %469 : vector<8x128xf32>
    %471 = vector.extract_strided_slice %420 {offsets = [24, 0], sizes = [8, 1], strides = [1, 1]} : vector<32x1xf32> to vector<8x1xf32>
    %472 = vector.broadcast %471 : vector<8x1xf32> to vector<8x128xf32>
    %473 = arith.addf %470, %472 : vector<8x128xf32>
    %474 = tpu.concatenate %452, %459, %466, %473 in 0 : vector<8x128xf32>, vector<8x128xf32>, vector<8x128xf32>, vector<8x128xf32> -> vector<32x128xf32>
    %c2 = arith.constant 2 : index
    %c0_122 = arith.constant 0 : index
    %c0_123 = arith.constant 0 : index
    %475 = vector.load %arg5[%c2, %c0_122, %c0_123] : memref<3x96x32xbf16, #tpu.memory_space<vmem>>, vector<1x96x32xbf16>
    %476 = vector.shape_cast %475 : vector<1x96x32xbf16> to vector<96x32xbf16>
    %477 = arith.truncf %474 : vector<32x128xf32> to vector<32x128xbf16>
    %cst_124 = arith.constant dense<0.000000e+00> : vector<96x128xf32>
    %478 = tpu.matmul %476, %477, %cst_124 {dimension_numbers = #tpu.dot_dimension_numbers<[1], [0], [0], [1], [0, 0, 1, 1], [], []>} : vector<96x32xbf16>, vector<32x128xbf16>, vector<96x128xf32> -> vector<96x128xf32>
    %c2_125 = arith.constant 2 : index
    %c0_126 = arith.constant 0 : index
    %c0_127 = arith.constant 0 : index
    %479 = vector.load %arg6[%c2_125, %c0_126, %c0_127] : memref<3x96x1xf32, #tpu.memory_space<vmem>>, vector<1x96x1xf32>
    %480 = vector.shape_cast %479 : vector<1x96x1xf32> to vector<96x1xf32>
    %481 = vector.broadcast %480 : vector<96x1xf32> to vector<96x128xf32>
    %482 = arith.addf %478, %481 : vector<96x128xf32>
    %483 = vector.extract_strided_slice %482 {offsets = [0, 0], sizes = [8, 128], strides = [1, 1]} : vector<96x128xf32> to vector<8x128xf32>
    %484 = vector.extract_strided_slice %482 {offsets = [8, 0], sizes = [8, 128], strides = [1, 1]} : vector<96x128xf32> to vector<8x128xf32>
    %485 = vector.extract_strided_slice %482 {offsets = [32, 0], sizes = [8, 128], strides = [1, 1]} : vector<96x128xf32> to vector<8x128xf32>
    %486 = vector.extract_strided_slice %482 {offsets = [40, 0], sizes = [8, 128], strides = [1, 1]} : vector<96x128xf32> to vector<8x128xf32>
    %487 = vector.extract_strided_slice %482 {offsets = [64, 0], sizes = [8, 128], strides = [1, 1]} : vector<96x128xf32> to vector<8x128xf32>
    %488 = vector.extract_strided_slice %482 {offsets = [72, 0], sizes = [8, 128], strides = [1, 1]} : vector<96x128xf32> to vector<8x128xf32>
    %489 = vector.shape_cast %483 : vector<8x128xf32> to vector<8x1x128xf32>
    %490 = vector.shape_cast %485 : vector<8x128xf32> to vector<1x8x128xf32>
    %491 = vector.broadcast %489 : vector<8x1x128xf32> to vector<8x8x128xf32>
    %492 = vector.broadcast %490 : vector<1x8x128xf32> to vector<8x8x128xf32>
    %493 = arith.mulf %491, %492 : vector<8x8x128xf32>
    %494 = vector.shape_cast %484 : vector<8x128xf32> to vector<8x1x128xf32>
    %495 = vector.shape_cast %486 : vector<8x128xf32> to vector<1x8x128xf32>
    %496 = vector.broadcast %494 : vector<8x1x128xf32> to vector<8x8x128xf32>
    %497 = vector.broadcast %495 : vector<1x8x128xf32> to vector<8x8x128xf32>
    %498 = arith.mulf %496, %497 : vector<8x8x128xf32>
    %499 = arith.addf %493, %498 : vector<8x8x128xf32>
    %500 = vector.shape_cast %10 : vector<8x128xi1> to vector<1x8x128xi1>
    %cst_128 = arith.constant -1.000000e+09 : f32
    %501 = vector.shape_cast %500 : vector<1x8x128xi1> to vector<1x8x128xi1>
    %502 = vector.broadcast %501 : vector<1x8x128xi1> to vector<8x8x128xi1>
    %503 = vector.broadcast %cst_128 : f32 to vector<8x8x128xf32>
    %504 = arith.select %502, %499, %503 : vector<8x8x128xi1>, vector<8x8x128xf32>
    %cst_129 = arith.constant dense<0xFF800000> : vector<8x128xf32>
    %505 = vector.multi_reduction <maximumf>, %504, %cst_129 [1] : vector<8x8x128xf32> to vector<8x128xf32>
    %506 = vector.shape_cast %505 : vector<8x128xf32> to vector<8x1x128xf32>
    %507 = vector.broadcast %506 : vector<8x1x128xf32> to vector<8x8x128xf32>
    %508 = arith.subf %504, %507 : vector<8x8x128xf32>
    %509 = math.exp %508 : vector<8x8x128xf32>
    %cst_130 = arith.constant dense<0.000000e+00> : vector<8x128xf32>
    %510 = vector.multi_reduction <add>, %509, %cst_130 [1] : vector<8x8x128xf32> to vector<8x128xf32>
    %511 = tpu.reciprocal %510 {approx = true} : vector<8x128xf32> -> vector<8x128xf32>
    %512 = vector.shape_cast %487 : vector<8x128xf32> to vector<1x8x128xf32>
    %513 = vector.broadcast %512 : vector<1x8x128xf32> to vector<8x8x128xf32>
    %514 = arith.mulf %509, %513 : vector<8x8x128xf32>
    %cst_131 = arith.constant dense<0.000000e+00> : vector<8x128xf32>
    %515 = vector.multi_reduction <add>, %514, %cst_131 [1] : vector<8x8x128xf32> to vector<8x128xf32>
    %516 = arith.mulf %515, %511 : vector<8x128xf32>
    %517 = vector.shape_cast %488 : vector<8x128xf32> to vector<1x8x128xf32>
    %518 = vector.broadcast %517 : vector<1x8x128xf32> to vector<8x8x128xf32>
    %519 = arith.mulf %509, %518 : vector<8x8x128xf32>
    %cst_132 = arith.constant dense<0.000000e+00> : vector<8x128xf32>
    %520 = vector.multi_reduction <add>, %519, %cst_132 [1] : vector<8x8x128xf32> to vector<8x128xf32>
    %521 = arith.mulf %520, %511 : vector<8x128xf32>
    %522 = vector.extract_strided_slice %482 {offsets = [16, 0], sizes = [8, 128], strides = [1, 1]} : vector<96x128xf32> to vector<8x128xf32>
    %523 = vector.extract_strided_slice %482 {offsets = [24, 0], sizes = [8, 128], strides = [1, 1]} : vector<96x128xf32> to vector<8x128xf32>
    %524 = vector.extract_strided_slice %482 {offsets = [48, 0], sizes = [8, 128], strides = [1, 1]} : vector<96x128xf32> to vector<8x128xf32>
    %525 = vector.extract_strided_slice %482 {offsets = [56, 0], sizes = [8, 128], strides = [1, 1]} : vector<96x128xf32> to vector<8x128xf32>
    %526 = vector.extract_strided_slice %482 {offsets = [80, 0], sizes = [8, 128], strides = [1, 1]} : vector<96x128xf32> to vector<8x128xf32>
    %527 = vector.extract_strided_slice %482 {offsets = [88, 0], sizes = [8, 128], strides = [1, 1]} : vector<96x128xf32> to vector<8x128xf32>
    %528 = vector.shape_cast %522 : vector<8x128xf32> to vector<8x1x128xf32>
    %529 = vector.shape_cast %524 : vector<8x128xf32> to vector<1x8x128xf32>
    %530 = vector.broadcast %528 : vector<8x1x128xf32> to vector<8x8x128xf32>
    %531 = vector.broadcast %529 : vector<1x8x128xf32> to vector<8x8x128xf32>
    %532 = arith.mulf %530, %531 : vector<8x8x128xf32>
    %533 = vector.shape_cast %523 : vector<8x128xf32> to vector<8x1x128xf32>
    %534 = vector.shape_cast %525 : vector<8x128xf32> to vector<1x8x128xf32>
    %535 = vector.broadcast %533 : vector<8x1x128xf32> to vector<8x8x128xf32>
    %536 = vector.broadcast %534 : vector<1x8x128xf32> to vector<8x8x128xf32>
    %537 = arith.mulf %535, %536 : vector<8x8x128xf32>
    %538 = arith.addf %532, %537 : vector<8x8x128xf32>
    %539 = vector.shape_cast %10 : vector<8x128xi1> to vector<1x8x128xi1>
    %cst_133 = arith.constant -1.000000e+09 : f32
    %540 = vector.shape_cast %539 : vector<1x8x128xi1> to vector<1x8x128xi1>
    %541 = vector.broadcast %540 : vector<1x8x128xi1> to vector<8x8x128xi1>
    %542 = vector.broadcast %cst_133 : f32 to vector<8x8x128xf32>
    %543 = arith.select %541, %538, %542 : vector<8x8x128xi1>, vector<8x8x128xf32>
    %cst_134 = arith.constant dense<0xFF800000> : vector<8x128xf32>
    %544 = vector.multi_reduction <maximumf>, %543, %cst_134 [1] : vector<8x8x128xf32> to vector<8x128xf32>
    %545 = vector.shape_cast %544 : vector<8x128xf32> to vector<8x1x128xf32>
    %546 = vector.broadcast %545 : vector<8x1x128xf32> to vector<8x8x128xf32>
    %547 = arith.subf %543, %546 : vector<8x8x128xf32>
    %548 = math.exp %547 : vector<8x8x128xf32>
    %cst_135 = arith.constant dense<0.000000e+00> : vector<8x128xf32>
    %549 = vector.multi_reduction <add>, %548, %cst_135 [1] : vector<8x8x128xf32> to vector<8x128xf32>
    %550 = tpu.reciprocal %549 {approx = true} : vector<8x128xf32> -> vector<8x128xf32>
    %551 = vector.shape_cast %526 : vector<8x128xf32> to vector<1x8x128xf32>
    %552 = vector.broadcast %551 : vector<1x8x128xf32> to vector<8x8x128xf32>
    %553 = arith.mulf %548, %552 : vector<8x8x128xf32>
    %cst_136 = arith.constant dense<0.000000e+00> : vector<8x128xf32>
    %554 = vector.multi_reduction <add>, %553, %cst_136 [1] : vector<8x8x128xf32> to vector<8x128xf32>
    %555 = arith.mulf %554, %550 : vector<8x128xf32>
    %556 = vector.shape_cast %527 : vector<8x128xf32> to vector<1x8x128xf32>
    %557 = vector.broadcast %556 : vector<1x8x128xf32> to vector<8x8x128xf32>
    %558 = arith.mulf %548, %557 : vector<8x8x128xf32>
    %cst_137 = arith.constant dense<0.000000e+00> : vector<8x128xf32>
    %559 = vector.multi_reduction <add>, %558, %cst_137 [1] : vector<8x8x128xf32> to vector<8x128xf32>
    %560 = arith.mulf %559, %550 : vector<8x128xf32>
    %561 = tpu.concatenate %516, %521, %555, %560 in 0 : vector<8x128xf32>, vector<8x128xf32>, vector<8x128xf32>, vector<8x128xf32> -> vector<32x128xf32>
    %c2_138 = arith.constant 2 : index
    %c0_139 = arith.constant 0 : index
    %c0_140 = arith.constant 0 : index
    %562 = vector.load %arg7[%c2_138, %c0_139, %c0_140] : memref<3x32x32xbf16, #tpu.memory_space<vmem>>, vector<1x32x32xbf16>
    %563 = vector.shape_cast %562 : vector<1x32x32xbf16> to vector<32x32xbf16>
    %564 = arith.truncf %561 : vector<32x128xf32> to vector<32x128xbf16>
    %cst_141 = arith.constant dense<0.000000e+00> : vector<32x128xf32>
    %565 = tpu.matmul %563, %564, %cst_141 {dimension_numbers = #tpu.dot_dimension_numbers<[1], [0], [0], [1], [0, 0, 1, 1], [], []>} : vector<32x32xbf16>, vector<32x128xbf16>, vector<32x128xf32> -> vector<32x128xf32>
    %c2_142 = arith.constant 2 : index
    %c0_143 = arith.constant 0 : index
    %c0_144 = arith.constant 0 : index
    %566 = vector.load %arg8[%c2_142, %c0_143, %c0_144] : memref<3x32x1xf32, #tpu.memory_space<vmem>>, vector<1x32x1xf32>
    %567 = vector.shape_cast %566 : vector<1x32x1xf32> to vector<32x1xf32>
    %568 = vector.broadcast %567 : vector<32x1xf32> to vector<32x128xf32>
    %569 = arith.addf %565, %568 : vector<32x128xf32>
    %570 = arith.addf %474, %569 : vector<32x128xf32>
    %c2_145 = arith.constant 2 : index
    %c0_146 = arith.constant 0 : index
    %c0_147 = arith.constant 0 : index
    %571 = vector.load %arg9[%c2_145, %c0_146, %c0_147] : memref<3x32x1xf32, #tpu.memory_space<vmem>>, vector<1x32x1xf32>
    %572 = vector.shape_cast %571 : vector<1x32x1xf32> to vector<32x1xf32>
    %c2_148 = arith.constant 2 : index
    %c0_149 = arith.constant 0 : index
    %c0_150 = arith.constant 0 : index
    %573 = vector.load %arg10[%c2_148, %c0_149, %c0_150] : memref<3x32x1xf32, #tpu.memory_space<vmem>>, vector<1x32x1xf32>
    %574 = vector.shape_cast %573 : vector<1x32x1xf32> to vector<32x1xf32>
    %575 = vector.extract_strided_slice %570 {offsets = [0, 0], sizes = [8, 128], strides = [1, 1]} : vector<32x128xf32> to vector<8x128xf32>
    %576 = vector.extract_strided_slice %570 {offsets = [8, 0], sizes = [8, 128], strides = [1, 1]} : vector<32x128xf32> to vector<8x128xf32>
    %577 = vector.extract_strided_slice %570 {offsets = [16, 0], sizes = [8, 128], strides = [1, 1]} : vector<32x128xf32> to vector<8x128xf32>
    %578 = vector.extract_strided_slice %570 {offsets = [24, 0], sizes = [8, 128], strides = [1, 1]} : vector<32x128xf32> to vector<8x128xf32>
    %579 = arith.addf %575, %576 : vector<8x128xf32>
    %580 = arith.addf %579, %577 : vector<8x128xf32>
    %581 = arith.addf %580, %578 : vector<8x128xf32>
    %cst_151 = arith.constant 2.500000e-01 : f32
    %582 = vector.broadcast %cst_151 : f32 to vector<8x128xf32>
    %583 = arith.mulf %581, %582 : vector<8x128xf32>
    %584 = arith.subf %575, %583 : vector<8x128xf32>
    %585 = arith.subf %576, %583 : vector<8x128xf32>
    %586 = arith.subf %577, %583 : vector<8x128xf32>
    %587 = arith.subf %578, %583 : vector<8x128xf32>
    %588 = arith.mulf %584, %584 : vector<8x128xf32>
    %589 = arith.mulf %585, %585 : vector<8x128xf32>
    %590 = arith.addf %588, %589 : vector<8x128xf32>
    %591 = arith.mulf %586, %586 : vector<8x128xf32>
    %592 = arith.addf %590, %591 : vector<8x128xf32>
    %593 = arith.mulf %587, %587 : vector<8x128xf32>
    %594 = arith.addf %592, %593 : vector<8x128xf32>
    %cst_152 = arith.constant 2.500000e-01 : f32
    %595 = vector.broadcast %cst_152 : f32 to vector<8x128xf32>
    %596 = arith.mulf %594, %595 : vector<8x128xf32>
    %cst_153 = arith.constant 9.99999974E-6 : f32
    %597 = vector.broadcast %cst_153 : f32 to vector<8x128xf32>
    %598 = arith.addf %596, %597 : vector<8x128xf32>
    %599 = math.rsqrt %598 : vector<8x128xf32>
    %600 = arith.mulf %584, %599 : vector<8x128xf32>
    %601 = vector.extract_strided_slice %572 {offsets = [0, 0], sizes = [8, 1], strides = [1, 1]} : vector<32x1xf32> to vector<8x1xf32>
    %602 = vector.broadcast %601 : vector<8x1xf32> to vector<8x128xf32>
    %603 = arith.mulf %600, %602 : vector<8x128xf32>
    %604 = vector.extract_strided_slice %574 {offsets = [0, 0], sizes = [8, 1], strides = [1, 1]} : vector<32x1xf32> to vector<8x1xf32>
    %605 = vector.broadcast %604 : vector<8x1xf32> to vector<8x128xf32>
    %606 = arith.addf %603, %605 : vector<8x128xf32>
    %607 = arith.mulf %585, %599 : vector<8x128xf32>
    %608 = vector.extract_strided_slice %572 {offsets = [8, 0], sizes = [8, 1], strides = [1, 1]} : vector<32x1xf32> to vector<8x1xf32>
    %609 = vector.broadcast %608 : vector<8x1xf32> to vector<8x128xf32>
    %610 = arith.mulf %607, %609 : vector<8x128xf32>
    %611 = vector.extract_strided_slice %574 {offsets = [8, 0], sizes = [8, 1], strides = [1, 1]} : vector<32x1xf32> to vector<8x1xf32>
    %612 = vector.broadcast %611 : vector<8x1xf32> to vector<8x128xf32>
    %613 = arith.addf %610, %612 : vector<8x128xf32>
    %614 = arith.mulf %586, %599 : vector<8x128xf32>
    %615 = vector.extract_strided_slice %572 {offsets = [16, 0], sizes = [8, 1], strides = [1, 1]} : vector<32x1xf32> to vector<8x1xf32>
    %616 = vector.broadcast %615 : vector<8x1xf32> to vector<8x128xf32>
    %617 = arith.mulf %614, %616 : vector<8x128xf32>
    %618 = vector.extract_strided_slice %574 {offsets = [16, 0], sizes = [8, 1], strides = [1, 1]} : vector<32x1xf32> to vector<8x1xf32>
    %619 = vector.broadcast %618 : vector<8x1xf32> to vector<8x128xf32>
    %620 = arith.addf %617, %619 : vector<8x128xf32>
    %621 = arith.mulf %587, %599 : vector<8x128xf32>
    %622 = vector.extract_strided_slice %572 {offsets = [24, 0], sizes = [8, 1], strides = [1, 1]} : vector<32x1xf32> to vector<8x1xf32>
    %623 = vector.broadcast %622 : vector<8x1xf32> to vector<8x128xf32>
    %624 = arith.mulf %621, %623 : vector<8x128xf32>
    %625 = vector.extract_strided_slice %574 {offsets = [24, 0], sizes = [8, 1], strides = [1, 1]} : vector<32x1xf32> to vector<8x1xf32>
    %626 = vector.broadcast %625 : vector<8x1xf32> to vector<8x128xf32>
    %627 = arith.addf %624, %626 : vector<8x128xf32>
    %628 = tpu.concatenate %606, %613, %620, %627 in 0 : vector<8x128xf32>, vector<8x128xf32>, vector<8x128xf32>, vector<8x128xf32> -> vector<32x128xf32>
    %c2_154 = arith.constant 2 : index
    %c0_155 = arith.constant 0 : index
    %c0_156 = arith.constant 0 : index
    %629 = vector.load %arg11[%c2_154, %c0_155, %c0_156] : memref<3x256x32xbf16, #tpu.memory_space<vmem>>, vector<1x256x32xbf16>
    %630 = vector.shape_cast %629 : vector<1x256x32xbf16> to vector<256x32xbf16>
    %631 = arith.truncf %628 : vector<32x128xf32> to vector<32x128xbf16>
    %cst_157 = arith.constant dense<0.000000e+00> : vector<256x128xf32>
    %632 = tpu.matmul %630, %631, %cst_157 {dimension_numbers = #tpu.dot_dimension_numbers<[1], [0], [0], [1], [0, 0, 1, 1], [], []>} : vector<256x32xbf16>, vector<32x128xbf16>, vector<256x128xf32> -> vector<256x128xf32>
    %c2_158 = arith.constant 2 : index
    %c0_159 = arith.constant 0 : index
    %c0_160 = arith.constant 0 : index
    %633 = vector.load %arg12[%c2_158, %c0_159, %c0_160] : memref<3x256x1xf32, #tpu.memory_space<vmem>>, vector<1x256x1xf32>
    %634 = vector.shape_cast %633 : vector<1x256x1xf32> to vector<256x1xf32>
    %635 = vector.broadcast %634 : vector<256x1xf32> to vector<256x128xf32>
    %636 = arith.addf %632, %635 : vector<256x128xf32>
    %cst_161 = arith.constant 0.000000e+00 : f32
    %637 = vector.broadcast %cst_161 : f32 to vector<256x128xf32>
    %638 = arith.maximumf %636, %637 : vector<256x128xf32>
    %c2_162 = arith.constant 2 : index
    %c0_163 = arith.constant 0 : index
    %c0_164 = arith.constant 0 : index
    %639 = vector.load %arg13[%c2_162, %c0_163, %c0_164] : memref<3x32x256xbf16, #tpu.memory_space<vmem>>, vector<1x32x256xbf16>
    %640 = vector.shape_cast %639 : vector<1x32x256xbf16> to vector<32x256xbf16>
    %641 = arith.truncf %638 : vector<256x128xf32> to vector<256x128xbf16>
    %cst_165 = arith.constant dense<0.000000e+00> : vector<32x128xf32>
    %642 = tpu.matmul %640, %641, %cst_165 {dimension_numbers = #tpu.dot_dimension_numbers<[1], [0], [0], [1], [0, 0, 1, 1], [], []>} : vector<32x256xbf16>, vector<256x128xbf16>, vector<32x128xf32> -> vector<32x128xf32>
    %c2_166 = arith.constant 2 : index
    %c0_167 = arith.constant 0 : index
    %c0_168 = arith.constant 0 : index
    %643 = vector.load %arg14[%c2_166, %c0_167, %c0_168] : memref<3x32x1xf32, #tpu.memory_space<vmem>>, vector<1x32x1xf32>
    %644 = vector.shape_cast %643 : vector<1x32x1xf32> to vector<32x1xf32>
    %645 = vector.broadcast %644 : vector<32x1xf32> to vector<32x128xf32>
    %646 = arith.addf %642, %645 : vector<32x128xf32>
    %647 = arith.addf %628, %646 : vector<32x128xf32>
    %c2_169 = arith.constant 2 : index
    %c0_170 = arith.constant 0 : index
    %c0_171 = arith.constant 0 : index
    %648 = vector.load %arg15[%c2_169, %c0_170, %c0_171] : memref<3x32x1xf32, #tpu.memory_space<vmem>>, vector<1x32x1xf32>
    %649 = vector.shape_cast %648 : vector<1x32x1xf32> to vector<32x1xf32>
    %c2_172 = arith.constant 2 : index
    %c0_173 = arith.constant 0 : index
    %c0_174 = arith.constant 0 : index
    %650 = vector.load %arg16[%c2_172, %c0_173, %c0_174] : memref<3x32x1xf32, #tpu.memory_space<vmem>>, vector<1x32x1xf32>
    %651 = vector.shape_cast %650 : vector<1x32x1xf32> to vector<32x1xf32>
    %652 = vector.extract_strided_slice %647 {offsets = [0, 0], sizes = [8, 128], strides = [1, 1]} : vector<32x128xf32> to vector<8x128xf32>
    %653 = vector.extract_strided_slice %647 {offsets = [8, 0], sizes = [8, 128], strides = [1, 1]} : vector<32x128xf32> to vector<8x128xf32>
    %654 = vector.extract_strided_slice %647 {offsets = [16, 0], sizes = [8, 128], strides = [1, 1]} : vector<32x128xf32> to vector<8x128xf32>
    %655 = vector.extract_strided_slice %647 {offsets = [24, 0], sizes = [8, 128], strides = [1, 1]} : vector<32x128xf32> to vector<8x128xf32>
    %656 = arith.addf %652, %653 : vector<8x128xf32>
    %657 = arith.addf %656, %654 : vector<8x128xf32>
    %658 = arith.addf %657, %655 : vector<8x128xf32>
    %cst_175 = arith.constant 2.500000e-01 : f32
    %659 = vector.broadcast %cst_175 : f32 to vector<8x128xf32>
    %660 = arith.mulf %658, %659 : vector<8x128xf32>
    %661 = arith.subf %652, %660 : vector<8x128xf32>
    %662 = arith.subf %653, %660 : vector<8x128xf32>
    %663 = arith.subf %654, %660 : vector<8x128xf32>
    %664 = arith.subf %655, %660 : vector<8x128xf32>
    %665 = arith.mulf %661, %661 : vector<8x128xf32>
    %666 = arith.mulf %662, %662 : vector<8x128xf32>
    %667 = arith.addf %665, %666 : vector<8x128xf32>
    %668 = arith.mulf %663, %663 : vector<8x128xf32>
    %669 = arith.addf %667, %668 : vector<8x128xf32>
    %670 = arith.mulf %664, %664 : vector<8x128xf32>
    %671 = arith.addf %669, %670 : vector<8x128xf32>
    %cst_176 = arith.constant 2.500000e-01 : f32
    %672 = vector.broadcast %cst_176 : f32 to vector<8x128xf32>
    %673 = arith.mulf %671, %672 : vector<8x128xf32>
    %cst_177 = arith.constant 9.99999974E-6 : f32
    %674 = vector.broadcast %cst_177 : f32 to vector<8x128xf32>
    %675 = arith.addf %673, %674 : vector<8x128xf32>
    %676 = math.rsqrt %675 : vector<8x128xf32>
    %677 = arith.mulf %661, %676 : vector<8x128xf32>
    %678 = vector.extract_strided_slice %649 {offsets = [0, 0], sizes = [8, 1], strides = [1, 1]} : vector<32x1xf32> to vector<8x1xf32>
    %679 = vector.broadcast %678 : vector<8x1xf32> to vector<8x128xf32>
    %680 = arith.mulf %677, %679 : vector<8x128xf32>
    %681 = vector.extract_strided_slice %651 {offsets = [0, 0], sizes = [8, 1], strides = [1, 1]} : vector<32x1xf32> to vector<8x1xf32>
    %682 = vector.broadcast %681 : vector<8x1xf32> to vector<8x128xf32>
    %683 = arith.addf %680, %682 : vector<8x128xf32>
    %684 = arith.mulf %662, %676 : vector<8x128xf32>
    %685 = vector.extract_strided_slice %649 {offsets = [8, 0], sizes = [8, 1], strides = [1, 1]} : vector<32x1xf32> to vector<8x1xf32>
    %686 = vector.broadcast %685 : vector<8x1xf32> to vector<8x128xf32>
    %687 = arith.mulf %684, %686 : vector<8x128xf32>
    %688 = vector.extract_strided_slice %651 {offsets = [8, 0], sizes = [8, 1], strides = [1, 1]} : vector<32x1xf32> to vector<8x1xf32>
    %689 = vector.broadcast %688 : vector<8x1xf32> to vector<8x128xf32>
    %690 = arith.addf %687, %689 : vector<8x128xf32>
    %691 = arith.mulf %663, %676 : vector<8x128xf32>
    %692 = vector.extract_strided_slice %649 {offsets = [16, 0], sizes = [8, 1], strides = [1, 1]} : vector<32x1xf32> to vector<8x1xf32>
    %693 = vector.broadcast %692 : vector<8x1xf32> to vector<8x128xf32>
    %694 = arith.mulf %691, %693 : vector<8x128xf32>
    %695 = vector.extract_strided_slice %651 {offsets = [16, 0], sizes = [8, 1], strides = [1, 1]} : vector<32x1xf32> to vector<8x1xf32>
    %696 = vector.broadcast %695 : vector<8x1xf32> to vector<8x128xf32>
    %697 = arith.addf %694, %696 : vector<8x128xf32>
    %698 = arith.mulf %664, %676 : vector<8x128xf32>
    %699 = vector.extract_strided_slice %649 {offsets = [24, 0], sizes = [8, 1], strides = [1, 1]} : vector<32x1xf32> to vector<8x1xf32>
    %700 = vector.broadcast %699 : vector<8x1xf32> to vector<8x128xf32>
    %701 = arith.mulf %698, %700 : vector<8x128xf32>
    %702 = vector.extract_strided_slice %651 {offsets = [24, 0], sizes = [8, 1], strides = [1, 1]} : vector<32x1xf32> to vector<8x1xf32>
    %703 = vector.broadcast %702 : vector<8x1xf32> to vector<8x128xf32>
    %704 = arith.addf %701, %703 : vector<8x128xf32>
    %705 = tpu.concatenate %683, %690, %697, %704 in 0 : vector<8x128xf32>, vector<8x128xf32>, vector<8x128xf32>, vector<8x128xf32> -> vector<32x128xf32>
    %cst_178 = arith.constant dense<0.000000e+00> : vector<128xf32>
    %706 = vector.multi_reduction <add>, %12, %cst_178 [0] : vector<8x128xf32> to vector<128xf32>
    %707 = vector.shape_cast %706 : vector<128xf32> to vector<1x128xf32>
    %cst_179 = arith.constant 1.000000e+00 : f32
    %708 = vector.broadcast %cst_179 : f32 to vector<1x128xf32>
    %709 = arith.maximumf %707, %708 : vector<1x128xf32>
    %710 = tpu.reciprocal %709 {approx = true} : vector<1x128xf32> -> vector<1x128xf32>
    %711 = vector.extract_strided_slice %705 {offsets = [0, 0], sizes = [8, 128], strides = [1, 1]} : vector<32x128xf32> to vector<8x128xf32>
    %712 = arith.mulf %711, %12 : vector<8x128xf32>
    %cst_180 = arith.constant dense<0.000000e+00> : vector<128xf32>
    %713 = vector.multi_reduction <add>, %712, %cst_180 [0] : vector<8x128xf32> to vector<128xf32>
    %714 = vector.shape_cast %713 : vector<128xf32> to vector<1x128xf32>
    %715 = arith.mulf %714, %710 : vector<1x128xf32>
    %c0_181 = arith.constant 0 : index
    %c0_182 = arith.constant 0 : index
    %716 = vector.load %arg17[%c0_181, %c0_182] : memref<4x128xf32, #tpu.memory_space<vmem>>, vector<1x128xf32>
    tpu.vector_store %arg17[%c0_181, %c0_182], %715 {strides = array<i32>} : memref<4x128xf32, #tpu.memory_space<vmem>>, vector<1x128xf32>,
    %717 = vector.extract_strided_slice %705 {offsets = [8, 0], sizes = [8, 128], strides = [1, 1]} : vector<32x128xf32> to vector<8x128xf32>
    %718 = arith.mulf %717, %12 : vector<8x128xf32>
    %cst_183 = arith.constant dense<0.000000e+00> : vector<128xf32>
    %719 = vector.multi_reduction <add>, %718, %cst_183 [0] : vector<8x128xf32> to vector<128xf32>
    %720 = vector.shape_cast %719 : vector<128xf32> to vector<1x128xf32>
    %721 = arith.mulf %720, %710 : vector<1x128xf32>
    %c1_184 = arith.constant 1 : index
    %c0_185 = arith.constant 0 : index
    %722 = vector.load %arg17[%c1_184, %c0_185] : memref<4x128xf32, #tpu.memory_space<vmem>>, vector<1x128xf32>
    tpu.vector_store %arg17[%c1_184, %c0_185], %721 {strides = array<i32>} : memref<4x128xf32, #tpu.memory_space<vmem>>, vector<1x128xf32>,
    %723 = vector.extract_strided_slice %705 {offsets = [16, 0], sizes = [8, 128], strides = [1, 1]} : vector<32x128xf32> to vector<8x128xf32>
    %724 = arith.mulf %723, %12 : vector<8x128xf32>
    %cst_186 = arith.constant dense<0.000000e+00> : vector<128xf32>
    %725 = vector.multi_reduction <add>, %724, %cst_186 [0] : vector<8x128xf32> to vector<128xf32>
    %726 = vector.shape_cast %725 : vector<128xf32> to vector<1x128xf32>
    %727 = arith.mulf %726, %710 : vector<1x128xf32>
    %c2_187 = arith.constant 2 : index
    %c0_188 = arith.constant 0 : index
    %728 = vector.load %arg17[%c2_187, %c0_188] : memref<4x128xf32, #tpu.memory_space<vmem>>, vector<1x128xf32>
    tpu.vector_store %arg17[%c2_187, %c0_188], %727 {strides = array<i32>} : memref<4x128xf32, #tpu.memory_space<vmem>>, vector<1x128xf32>,
    %729 = vector.extract_strided_slice %705 {offsets = [24, 0], sizes = [8, 128], strides = [1, 1]} : vector<32x128xf32> to vector<8x128xf32>
    %730 = arith.mulf %729, %12 : vector<8x128xf32>
    %cst_189 = arith.constant dense<0.000000e+00> : vector<128xf32>
    %731 = vector.multi_reduction <add>, %730, %cst_189 [0] : vector<8x128xf32> to vector<128xf32>
    %732 = vector.shape_cast %731 : vector<128xf32> to vector<1x128xf32>
    %733 = arith.mulf %732, %710 : vector<1x128xf32>
    %c3 = arith.constant 3 : index
    %c0_190 = arith.constant 0 : index
    %734 = vector.load %arg17[%c3, %c0_190] : memref<4x128xf32, #tpu.memory_space<vmem>>, vector<1x128xf32>
    tpu.vector_store %arg17[%c3, %c0_190], %733 {strides = array<i32>} : memref<4x128xf32, #tpu.memory_space<vmem>>, vector<1x128xf32>,
    return
  }
  func.func @transform_0(%arg0: i32) -> (i32, i32) {
    %c0_i32 = arith.constant 0 : i32
    %c0_i32_0 = arith.constant 0 : i32
    return %arg0, %c0_i32 : i32, i32
  }
  func.func @transform_1(%arg0: i32) -> (i32, i32) {
    %c0_i32 = arith.constant 0 : i32
    %c0_i32_0 = arith.constant 0 : i32
    %c0_i32_1 = arith.constant 0 : i32
    return %c0_i32, %c0_i32_0 : i32, i32
  }
  func.func @transform_2(%arg0: i32) -> (i32, i32) {
    %c0_i32 = arith.constant 0 : i32
    %c0_i32_0 = arith.constant 0 : i32
    %c0_i32_1 = arith.constant 0 : i32
    return %c0_i32, %c0_i32_0 : i32, i32
  }
  func.func @transform_3(%arg0: i32) -> (i32, i32) {
    %c0_i32 = arith.constant 0 : i32
    %c0_i32_0 = arith.constant 0 : i32
    %c0_i32_1 = arith.constant 0 : i32
    return %c0_i32, %c0_i32_0 : i32, i32
  }
  func.func @transform_4(%arg0: i32) -> (i32, i32, i32) {
    %c0_i32 = arith.constant 0 : i32
    %c0_i32_0 = arith.constant 0 : i32
    %c0_i32_1 = arith.constant 0 : i32
    %c0_i32_2 = arith.constant 0 : i32
    return %c0_i32, %c0_i32_0, %c0_i32_1 : i32, i32, i32
  }
  func.func @transform_5(%arg0: i32) -> (i32, i32, i32) {
    %c0_i32 = arith.constant 0 : i32
    %c0_i32_0 = arith.constant 0 : i32
    %c0_i32_1 = arith.constant 0 : i32
    %c0_i32_2 = arith.constant 0 : i32
    return %c0_i32, %c0_i32_0, %c0_i32_1 : i32, i32, i32
  }
  func.func @transform_6(%arg0: i32) -> (i32, i32, i32) {
    %c0_i32 = arith.constant 0 : i32
    %c0_i32_0 = arith.constant 0 : i32
    %c0_i32_1 = arith.constant 0 : i32
    %c0_i32_2 = arith.constant 0 : i32
    return %c0_i32, %c0_i32_0, %c0_i32_1 : i32, i32, i32
  }
  func.func @transform_7(%arg0: i32) -> (i32, i32, i32) {
    %c0_i32 = arith.constant 0 : i32
    %c0_i32_0 = arith.constant 0 : i32
    %c0_i32_1 = arith.constant 0 : i32
    %c0_i32_2 = arith.constant 0 : i32
    return %c0_i32, %c0_i32_0, %c0_i32_1 : i32, i32, i32
  }
  func.func @transform_8(%arg0: i32) -> (i32, i32, i32) {
    %c0_i32 = arith.constant 0 : i32
    %c0_i32_0 = arith.constant 0 : i32
    %c0_i32_1 = arith.constant 0 : i32
    %c0_i32_2 = arith.constant 0 : i32
    return %c0_i32, %c0_i32_0, %c0_i32_1 : i32, i32, i32
  }
  func.func @transform_9(%arg0: i32) -> (i32, i32, i32) {
    %c0_i32 = arith.constant 0 : i32
    %c0_i32_0 = arith.constant 0 : i32
    %c0_i32_1 = arith.constant 0 : i32
    %c0_i32_2 = arith.constant 0 : i32
    return %c0_i32, %c0_i32_0, %c0_i32_1 : i32, i32, i32
  }
  func.func @transform_10(%arg0: i32) -> (i32, i32, i32) {
    %c0_i32 = arith.constant 0 : i32
    %c0_i32_0 = arith.constant 0 : i32
    %c0_i32_1 = arith.constant 0 : i32
    %c0_i32_2 = arith.constant 0 : i32
    return %c0_i32, %c0_i32_0, %c0_i32_1 : i32, i32, i32
  }
  func.func @transform_11(%arg0: i32) -> (i32, i32, i32) {
    %c0_i32 = arith.constant 0 : i32
    %c0_i32_0 = arith.constant 0 : i32
    %c0_i32_1 = arith.constant 0 : i32
    %c0_i32_2 = arith.constant 0 : i32
    return %c0_i32, %c0_i32_0, %c0_i32_1 : i32, i32, i32
  }
  func.func @transform_12(%arg0: i32) -> (i32, i32, i32) {
    %c0_i32 = arith.constant 0 : i32
    %c0_i32_0 = arith.constant 0 : i32
    %c0_i32_1 = arith.constant 0 : i32
    %c0_i32_2 = arith.constant 0 : i32
    return %c0_i32, %c0_i32_0, %c0_i32_1 : i32, i32, i32
  }
  func.func @transform_13(%arg0: i32) -> (i32, i32, i32) {
    %c0_i32 = arith.constant 0 : i32
    %c0_i32_0 = arith.constant 0 : i32
    %c0_i32_1 = arith.constant 0 : i32
    %c0_i32_2 = arith.constant 0 : i32
    return %c0_i32, %c0_i32_0, %c0_i32_1 : i32, i32, i32
  }
  func.func @transform_14(%arg0: i32) -> (i32, i32, i32) {
    %c0_i32 = arith.constant 0 : i32
    %c0_i32_0 = arith.constant 0 : i32
    %c0_i32_1 = arith.constant 0 : i32
    %c0_i32_2 = arith.constant 0 : i32
    return %c0_i32, %c0_i32_0, %c0_i32_1 : i32, i32, i32
  }
  func.func @transform_15(%arg0: i32) -> (i32, i32, i32) {
    %c0_i32 = arith.constant 0 : i32
    %c0_i32_0 = arith.constant 0 : i32
    %c0_i32_1 = arith.constant 0 : i32
    %c0_i32_2 = arith.constant 0 : i32
    return %c0_i32, %c0_i32_0, %c0_i32_1 : i32, i32, i32
  }
  func.func @transform_16(%arg0: i32) -> (i32, i32) {
    %c0_i32 = arith.constant 0 : i32
    %c0_i32_0 = arith.constant 0 : i32
    return %c0_i32, %arg0 : i32, i32
  }
}

</mosaic_0001>

<bundles_post_ra>
// kernel: tpu_custom_call.1
= control target key start
LH: loop header
LB: loop body
LE: loop exit
PB: predicated region body
PF: predicated region fallthrough
CT: control target
= control target key end

     0   :  { %s11889_s0 = inlined_call_operand.vmem [shape: f32[128,32], index: 0, kind: input, shape index: {}]   ;;  %s11890_s1 = inlined_call_operand.vmem [shape: bf16[32,32], index: 1, kind: input, shape index: {}]   ;;  %s11891_s2 = inlined_call_operand.vmem [shape: f32[32,1], index: 2, kind: input, shape index: {}]   ;;  %s11892_s3 = inlined_call_operand.vmem [shape: f32[8,32], index: 3, kind: input, shape index: {}]   ;;  %s11893_s4 = inlined_call_operand.vmem [shape: bf16[3,96,32], index: 4, kind: input, shape index: {}]   ;;  %s11894_s5 = inlined_call_operand.vmem [shape: f32[3,96,1], index: 5, kind: input, shape index: {}]   ;;  %s11895_s6 = inlined_call_operand.vmem [shape: bf16[3,32,32], index: 6, kind: input, shape index: {}]   ;;  %s11896_s7 = inlined_call_operand.vmem [shape: f32[3,32,1], index: 7, kind: input, shape index: {}]   ;;  %s11897_s8 = inlined_call_operand.vmem [shape: f32[3,32,1], index: 8, kind: input, shape index: {}]   ;;  %s11898_s9 = inlined_call_operand.vmem [shape: f32[3,32,1], index: 9, kind: input, shape index: {}]   ;;  %s11899_s10 = inlined_call_operand.vmem [shape: bf16[3,256,32], index: 10, kind: input, shape index: {}]   ;;  %s11900_s11 = inlined_call_operand.vmem [shape: f32[3,256,1], index: 11, kind: input, shape index: {}]   ;;  %s11901_s12 = inlined_call_operand.vmem [shape: bf16[3,32,256], index: 12, kind: input, shape index: {}]   ;;  %s11902_s13 = inlined_call_operand.vmem [shape: f32[3,32,1], index: 13, kind: input, shape index: {}]   ;;  %s11903_s14 = inlined_call_operand.vmem [shape: f32[3,32,1], index: 14, kind: input, shape index: {}]   ;;  %s11904_s15 = inlined_call_operand.vmem [shape: f32[3,32,1], index: 15, kind: input, shape index: {}]   ;;  %s11905_s16 = inlined_call_operand.hbm [shape: f32[4,128], index: 16, kind: output, shape index: {}]  }
   0x1   :  { %11942 = sst [smem:[#allocation112_spill]] %s11889_s0 }
   0x2   :  { %v85_v0 = vld [vmem:[%s11891_s2 + $0x10] sm:$0xff]  ;;  %v83_v1 = vld [vmem:[%s11891_s2] sm:$0xff]  ;;  %s11943_s27 = sld [smem:[#allocation112_spill]]  ;;  %v8038_v3 = vmov 0   ;;  %vm117_vm0 = vcmask 261120   ;;  %v86_v7 = vld [vmem:[%s11891_s2 + $0x18] sm:$0xff] }
   0x3   :  { %7715 = vset.pattern.permute.xlu1 %v8038_v3  ;;  %7714 = vset.pattern.permute.xlu0 %v8038_v3  ;;  %v84_v8 = vld [vmem:[%s11891_s2 + $0x8] sm:$0xff]  ;;  %v336_v13 = vld [vmem:[%s11894_s5] sm:$0xff]  ;;  %v339_v17 = vld [vmem:[%s11894_s5 + $0x18] sm:$0xff] }
   0x4   :  { %99 = vperm.xlu1 %7715, %v85_v0   ;;  %89 = vperm.xlu0 %7714, %v83_v1   ;;  %v337_v12 = vld [vmem:[%s11894_s5 + $0x8] sm:$0xff]  ;;  %v338_v18 = vld [vmem:[%s11894_s5 + $0x10] sm:$0xff]  ;;  %v340_v21 = vld [vmem:[%s11894_s5 + $0x20] sm:$0xff] }
   0x5   :  { %v341_v20 = vld [vmem:[%s11894_s5 + $0x28] sm:$0xff]  ;;  %v7716_v24 = vld [vmem:[%s11890_s1] sm:$0xff]   ;;  %v343_v26 = vld [vmem:[%s11894_s5 + $0x38] sm:$0xff] }
   0x6   :  { %v342_v27 = vld [vmem:[%s11894_s5 + $0x30] sm:$0xff]  ;;  %7449 = vmatprep.mubr.msk.bf16.mxu0 %vm117_vm0, %v7716_v24  ;;  %v345_v29 = vld [vmem:[%s11894_s5 + $0x48] sm:$0xff]  ;;  %v344_v30 = vld [vmem:[%s11894_s5 + $0x40] sm:$0xff] }
   0x7   :  { %v347_v34 = vld [vmem:[%s11894_s5 + $0x58] sm:$0xff]  ;;  %v346_v35 = vld [vmem:[%s11894_s5 + $0x50] sm:$0xff]  ;;  %v1552_v37 = vld [vmem:[%s11896_s7 + $0x8] sm:$0xff] }
   0x8   :  { %v55_v2 = vld [vmem:[%s11943_s27] sm:$0xff]  ;;  %v56_v4 = vld [vmem:[%s11943_s27 + $0x8] sm:$0xff]  ;;  %v57_v6 = vld [vmem:[%s11943_s27 + $0x10] sm:$0xff]  ;;  %104 = vperm.xlu1 %7715, %v86_v7   ;;  %94 = vperm.xlu0 %7714, %v84_v8  }
   0x9   :  { %v8141_v5 = vpack.c.bf16 %v56_v4, %v55_v2  ;;  %v58_v9 = vld [vmem:[%s11943_s27 + $0x18] sm:$0xff]  ;;  %v59_v14 = vld [vmem:[%s11943_s27 + $0x20] sm:$0xff]  ;;  %v60_v15 = vld [vmem:[%s11943_s27 + $0x28] sm:$0xff] }
   0xa   :  { %v8159_v11 = vpack.c.bf16 %v58_v9, %v57_v6  ;;  %v8183_v19 = vpack.c.bf16 %v60_v15, %v59_v14  ;;  %v61_v22 = vld [vmem:[%s11943_s27 + $0x30] sm:$0xff]  ;;  %v62_v23 = vld [vmem:[%s11943_s27 + $0x38] sm:$0xff]  ;;  %v63_v31 = vld [vmem:[%s11943_s27 + $0x40] sm:$0xff] }
   0xb   :  { %7700 = vmatprep.subr.msk.bf16.mxu0 %vm117_vm0, %v8141_v5  ;;  %v125_v10 = vsel %vm117_vm0, %v8141_v5, 0  ;;  %v8210_v28 = vpack.c.bf16 %v62_v23, %v61_v22  ;;  %v64_v32 = vld [vmem:[%s11943_s27 + $0x48] sm:$0xff]  ;;  %v1551_v38 = vld [vmem:[%s11896_s7] sm:$0xff]  ;;  %v65_v39 = vld [vmem:[%s11943_s27 + $0x50] sm:$0xff] }
   0xc   :  { %7434 = vmatpush3.bf16.xpose.msra.mxu0 %v125_v10  ;;  %355 = vperm.xlu1 %7715, %v337_v12   ;;  %v128_v16 = vsel %vm117_vm0, %v8159_v11, 0  ;;  %v131_v25 = vsel %vm117_vm0, %v8183_v19, 0  ;;  %v8235_v36 = vpack.c.bf16 %v64_v32, %v63_v31  ;;  %v66_v40 = vld [vmem:[%s11943_s27 + $0x58] sm:$0xff]  ;;  %v1553_v43 = vld [vmem:[%s11896_s7 + $0x10] sm:$0xff]  ;;  %v1645_v45 = vld [vmem:[%s11897_s8 + $0x8] sm:$0xff] }
   0xd   :  { %7701 = vmatprep.subr.msk.bf16.mxu0 %vm117_vm0, %v8159_v11  ;;  %350 = vperm.xlu0 %7714, %v336_v13   ;;  %v134_v33 = vsel %vm117_vm0, %v8210_v28, 0  ;;  %v1554_v42 = vld [vmem:[%s11896_s7 + $0x18] sm:$0xff]  ;;  %v8259_v44 = vpack.c.bf16 %v66_v40, %v65_v39  ;;  %v1644_v46 = vld [vmem:[%s11897_s8] sm:$0xff]  ;;  %v68_v48 = vld [vmem:[%s11943_s27 + $0x68] sm:$0xff] }
   0xe   :  { %v137_v41 = vsel %vm117_vm0, %v8235_v36, 0  ;;  %v67_v47 = vld [vmem:[%s11943_s27 + $0x60] sm:$0xff]  ;;  %v1649_v49 = vld [vmem:[%s11898_s9 + $0x8] sm:$0xff]  ;;  %v1647_v53 = vld [vmem:[%s11897_s8 + $0x18] sm:$0xff] }
   0xf   :  { %v140_v50 = vsel %vm117_vm0, %v8259_v44, 0  ;;  %v1648_v51 = vld [vmem:[%s11898_s9] sm:$0xff]  ;;  %v8283_v52 = vpack.c.bf16 %v68_v48, %v67_v47  ;;  %v1646_v54 = vld [vmem:[%s11897_s8 + $0x10] sm:$0xff]  ;;  %v70_v56 = vld [vmem:[%s11943_s27 + $0x78] sm:$0xff] }
  0x10   :  { %365 = vperm.xlu1 %7715, %v339_v17   ;;  %v69_v55 = vld [vmem:[%s11943_s27 + $0x70] sm:$0xff]  ;;  %v1651_v57 = vld [vmem:[%s11898_s9 + $0x18] sm:$0xff]  ;;  %v1773_v61 = vld [vmem:[%s11900_s11 + $0x88] sm:$0xff] }
  0x11   :  { %360 = vperm.xlu0 %7714, %v338_v18   ;;  %v143_v58 = vsel %vm117_vm0, %v8283_v52, 0  ;;  %v1650_v59 = vld [vmem:[%s11898_s9 + $0x10] sm:$0xff]  ;;  %v8307_v60 = vpack.c.bf16 %v70_v56, %v69_v55  ;;  %v1772_v62 = vld [vmem:[%s11900_s11 + $0x80] sm:$0xff]  ;;  %v1757_v63 = vld [vmem:[%s11900_s11 + $0x8] sm:$0xff] }
  0x12   :  { %v1756_v1 = vld [vmem:[%s11900_s11] sm:$0xff]  ;;  %v1775_v2 = vld [vmem:[%s11900_s11 + $0x98] sm:$0xff]  ;;  %v1774_v3 = vld [vmem:[%s11900_s11 + $0x90] sm:$0xff] }
  0x13   :  { %v146_v0 = vsel %vm117_vm0, %v8307_v60, 0  ;;  %v7717_v4 = vld [vmem:[%s11890_s1 + $0x8] sm:$0xff]   ;;  %v1759_v6 = vld [vmem:[%s11900_s11 + $0x18] sm:$0xff]  ;;  %v1758_v7 = vld [vmem:[%s11900_s11 + $0x10] sm:$0xff] }
  0x14   :  { %7436 = vmatpush3.bf16.xpose.msra.mxu0 %v128_v16  ;;  %375 = vperm.xlu1 %7715, %v341_v20   ;;  %v1777_v8 = vld [vmem:[%s11900_s11 + $0xa8] sm:$0xff]  ;;  %v1776_v9 = vld [vmem:[%s11900_s11 + $0xa0] sm:$0xff]  ;;  %v1779_v13 = vld [vmem:[%s11900_s11 + $0xb8] sm:$0xff] }
  0x15   :  { %7702 = vmatprep.subr.msk.bf16.mxu0 %vm117_vm0, %v8183_v19  ;;  %370 = vperm.xlu0 %7714, %v340_v21   ;;  %v1761_v10 = vld [vmem:[%s11900_s11 + $0x28] sm:$0xff]  ;;  %v1760_v12 = vld [vmem:[%s11900_s11 + $0x20] sm:$0xff]  ;;  %v1778_v14 = vld [vmem:[%s11900_s11 + $0xb0] sm:$0xff] }
  0x16   :  { %v1763_v15 = vld [vmem:[%s11900_s11 + $0x38] sm:$0xff]  ;;  %v1762_v16 = vld [vmem:[%s11900_s11 + $0x30] sm:$0xff]  ;;  %v1781_v17 = vld [vmem:[%s11900_s11 + $0xc8] sm:$0xff] }
  0x17   :  { %v1780_v18 = vld [vmem:[%s11900_s11 + $0xc0] sm:$0xff]  ;;  %v1765_v20 = vld [vmem:[%s11900_s11 + $0x48] sm:$0xff]  ;;  %v1783_v22 = vld [vmem:[%s11900_s11 + $0xd8] sm:$0xff] }
  0x18   :  { %385 = vperm.xlu1 %7715, %v343_v26   ;;  %v1764_v21 = vld [vmem:[%s11900_s11 + $0x40] sm:$0xff]  ;;  %v1782_v23 = vld [vmem:[%s11900_s11 + $0xd0] sm:$0xff] }
  0x19   :  { %380 = vperm.xlu0 %7714, %v342_v27  }
  0x1c   :  { %7438 = vmatpush3.bf16.xpose.msra.mxu0 %v131_v25  ;;  %395 = vperm.xlu1 %7715, %v345_v29  }
  0x1d   :  { %7703 = vmatprep.subr.msk.bf16.mxu0 %vm117_vm0, %v8210_v28  ;;  %390 = vperm.xlu0 %7714, %v344_v30  }
  0x20   :  { %405 = vperm.xlu1 %7715, %v347_v34  }
  0x21   :  { %400 = vperm.xlu0 %7714, %v346_v35  }
  0x24   :  { %7440 = vmatpush3.bf16.xpose.msra.mxu0 %v134_v33  ;;  %1562 = vperm.xlu1 %7715, %v1552_v37  }
  0x25   :  { %7704 = vmatprep.subr.msk.bf16.mxu0 %vm117_vm0, %v8235_v36  ;;  %1557 = vperm.xlu0 %7714, %v1551_v38  }
  0x28   :  { %1572 = vperm.xlu1 %7715, %v1554_v42  }
  0x29   :  { %1567 = vperm.xlu0 %7714, %v1553_v43  }
  0x2c   :  { %7442 = vmatpush3.bf16.xpose.msra.mxu0 %v137_v41  ;;  %1686 = vperm.xlu1 %7715, %v1645_v45  }
  0x2d   :  { %7705 = vmatprep.subr.msk.bf16.mxu0 %vm117_vm0, %v8259_v44  ;;  %1673 = vperm.xlu0 %7714, %v1644_v46  }
  0x30   :  { %1692 = vperm.xlu1 %7715, %v1649_v49  }
  0x31   :  { %1679 = vperm.xlu0 %7714, %v1648_v51  }
  0x34   :  { %7444 = vmatpush3.bf16.xpose.msra.mxu0 %v140_v50  ;;  %1712 = vperm.xlu1 %7715, %v1647_v53  }
  0x35   :  { %7706 = vmatprep.subr.msk.bf16.mxu0 %vm117_vm0, %v8283_v52  ;;  %1699 = vperm.xlu0 %7714, %v1646_v54  }
  0x38   :  { %1718 = vperm.xlu1 %7715, %v1651_v57  }
  0x39   :  { %1705 = vperm.xlu0 %7714, %v1650_v59  }
  0x3c   :  { %7446 = vmatpush3.bf16.xpose.msra.mxu0 %v143_v58  ;;  %1875 = vperm.xlu1 %7715, %v1773_v61  }
  0x3d   :  { %7707 = vmatprep.subr.msk.bf16.mxu0 %vm117_vm0, %v8307_v60  ;;  %1870 = vperm.xlu0 %7714, %v1772_v62  }
  0x40   :  { %1795 = vperm.xlu1 %7715, %v1757_v63  }
  0x41   :  { %1790 = vperm.xlu0 %7714, %v1756_v1  }
  0x44   :  { %7448 = vmatpush3.bf16.xpose.msra.mxu0 %v146_v0  ;;  %1885 = vperm.xlu1 %7715, %v1775_v2  }
  0x45   :  { %1880 = vperm.xlu0 %7714, %v1774_v3  }
  0x48   :  { %1805 = vperm.xlu1 %7715, %v1759_v6  }
  0x49   :  { %1800 = vperm.xlu0 %7714, %v1758_v7  }
  0x4b   :  { %7450 = vmatmul.mubr.msk.bf16.vlgmr.msra.gmra.mrb[0].mxu0 %vm117_vm0, %v7717_v4 }
  0x4c   :  { %1895 = vperm.xlu1 %7715, %v1777_v8  }
  0x4d   :  { %1890 = vperm.xlu0 %7714, %v1776_v9  }
  0x50   :  { %1815 = vperm.xlu1 %7715, %v1761_v10  }
  0x51   :  { %1810 = vperm.xlu0 %7714, %v1760_v12  }
  0x54   :  { %1905 = vperm.xlu1 %7715, %v1779_v13  }
  0x55   :  { %1900 = vperm.xlu0 %7714, %v1778_v14  }
  0x58   :  { %1825 = vperm.xlu1 %7715, %v1763_v15  }
  0x59   :  { %1820 = vperm.xlu0 %7714, %v1762_v16  }
  0x5c   :  { %1915 = vperm.xlu1 %7715, %v1781_v17  }
  0x5d   :  { %1910 = vperm.xlu0 %7714, %v1780_v18  }
  0x60   :  { %1835 = vperm.xlu1 %7715, %v1765_v20  }
  0x61   :  { %1830 = vperm.xlu0 %7714, %v1764_v21  }
  0x62   :  { %21 = vsyncpa [#allocation3], 0  ;;  %v1767_v24 = vld [vmem:[%s11900_s11 + $0x58] sm:$0xff]  ;;  %v1766_v25 = vld [vmem:[%s11900_s11 + $0x50] sm:$0xff]  ;;  %v8039_v33 = vmov 0.0|0.0   ;;  %vm8040_vm2 = vmmov 0  }
  0x63   :  { %v1785_v26 = vld [vmem:[%s11900_s11 + $0xe8] sm:$0xff]  ;;  %v1784_v27 = vld [vmem:[%s11900_s11 + $0xe0] sm:$0xff]  ;;  %v1787_v31 = vld [vmem:[%s11900_s11 + $0xf8] sm:$0xff]  ;;  %7668 = vmatprep.subr.bf16.mxu1 %v8039_v33  ;;  %vm1482_vm4 = vcmask 1041409   ;;  %vm1484_vm5 = vcmask 1042434   ;;  %vm1486_vm6 = vcmask 1043459  }
  0x64   :  { %1925 = vperm.xlu1 %7715, %v1783_v22   ;;  %v1769_v29 = vld [vmem:[%s11900_s11 + $0x68] sm:$0xff]  ;;  %v1768_v30 = vld [vmem:[%s11900_s11 + $0x60] sm:$0xff]  ;;  %v1786_v32 = vld [vmem:[%s11900_s11 + $0xf0] sm:$0xff]  ;;  %vm1488_vm7 = vcmask 1044484   ;;  %vm1490_vm8 = vcmask 1045509   ;;  %vm1492_vm9 = vcmask 1046534  }
  0x65   :  { %1920 = vperm.xlu0 %7714, %v1782_v23   ;;  %vm8410_vm1 = vmpackc.low %vm117_vm0, %vm117_vm0  ;;  %v1771_v35 = vld [vmem:[%s11900_s11 + $0x78] sm:$0xff]  ;;  %v1770_v37 = vld [vmem:[%s11900_s11 + $0x70] sm:$0xff]  ;;  %vm1494_vm10 = vcmask 1047559  }
  0x66   :  { %7671 = vmatpush3.bf16.xpose.msk.msra.mxu1 %vm8410_vm1, %v8141_v5  ;;  %v2290_v38 = vld [vmem:[%s11902_s13 + $0x8] sm:$0xff]  ;;  %v2289_v39 = vld [vmem:[%s11902_s13] sm:$0xff]  ;;  %v2292_v40 = vld [vmem:[%s11902_s13 + $0x18] sm:$0xff] }
  0x67   :  { %7672 = vmatprep.subr.bf16.mxu1 %v8039_v33  ;;  %v2291_v5 = vld [vmem:[%s11902_s13 + $0x10] sm:$0xff]  ;;  %v2387_v41 = vld [vmem:[%s11903_s14 + $0x8] sm:$0xff]  ;;  %v2386_v42 = vld [vmem:[%s11903_s14] sm:$0xff] }
  0x68   :  { %1845 = vperm.xlu1 %7715, %v1767_v24   ;;  %v2390_v46 = vld [vmem:[%s11904_s15] sm:$0xff]  ;;  %v2389_v49 = vld [vmem:[%s11903_s14 + $0x18] sm:$0xff]  ;;  %v2388_v50 = vld [vmem:[%s11903_s14 + $0x10] sm:$0xff] }
  0x69   :  { %1840 = vperm.xlu0 %7714, %v1766_v25   ;;  %v2392_v54 = vld [vmem:[%s11904_s15 + $0x10] sm:$0xff]  ;;  %v6901_v57 = vld [vmem:[%s11894_s5 + $0x68] sm:$0xff]  ;;  %v6900_v58 = vld [vmem:[%s11894_s5 + $0x60] sm:$0xff] }
  0x6a   :  { %v6902_v62 = vld [vmem:[%s11894_s5 + $0x70] sm:$0xff]  ;;  %v6905_v1 = vld [vmem:[%s11894_s5 + $0x88] sm:$0xff]  ;;  %v6904_v2 = vld [vmem:[%s11894_s5 + $0x80] sm:$0xff] }
  0x6b   :  { %v6906_v6 = vld [vmem:[%s11894_s5 + $0x90] sm:$0xff]  ;;  %v6909_v9 = vld [vmem:[%s11894_s5 + $0xa8] sm:$0xff]  ;;  %v6908_v10 = vld [vmem:[%s11894_s5 + $0xa0] sm:$0xff] }
  0x6c   :  { %1935 = vperm.xlu1 %7715, %v1785_v26   ;;  %v6910_v14 = vld [vmem:[%s11894_s5 + $0xb0] sm:$0xff]  ;;  %v7718_v15 = vld [vmem:[%s11893_s4] sm:$0xff]   ;;  %v6929_v18 = vld [vmem:[%s11896_s7 + $0x28] sm:$0xff] }
  0x6d   :  { %1930 = vperm.xlu0 %7714, %v1784_v27   ;;  %7492 = vmatprep.mubr.msk.bf16.mxu0 %vm117_vm0, %v7718_v15  ;;  %v6931_v22 = vld [vmem:[%s11896_s7 + $0x38] sm:$0xff]  ;;  %v6930_v23 = vld [vmem:[%s11896_s7 + $0x30] sm:$0xff]  ;;  %v6937_v26 = vld [vmem:[%s11897_s8 + $0x28] sm:$0xff] }
  0x6e   :  { %7675 = vmatpush3.bf16.xpose.msk.msra.mxu1 %vm8410_vm1, %v8159_v11  ;;  %v2391_v11 = vld [vmem:[%s11904_s15 + $0x8] sm:$0xff]  ;;  %v6936_v27 = vld [vmem:[%s11897_s8 + $0x20] sm:$0xff] }
  0x6f   :  { %7676 = vmatprep.subr.bf16.mxu1 %v8039_v33  ;;  %v6996_v15 = vld [vmem:[%s11900_s11 + $0x1a0] sm:$0xff] }
  0x70   :  { %1855 = vperm.xlu1 %7715, %v1769_v29   ;;  %v11907_v29 = vmov 0.0  }
  0x71   :  { %1850 = vperm.xlu0 %7714, %v1768_v30   ;;  %7485 = vmatprep.mubr.msk.f32.mxu1 %vm8040_vm2, %v11907_v29  ;;  %v7053_v29 = vld [vmem:[%s11903_s14 + $0x28] sm:$0xff] }
  0x74   :  { %1945 = vperm.xlu1 %7715, %v1787_v31  }
  0x75   :  { %1940 = vperm.xlu0 %7714, %v1786_v32   ;;  %v6941_v32 = vld [vmem:[%s11898_s9 + $0x28] sm:$0xff] }
  0x76   :  { %7679 = vmatpush3.bf16.xpose.msk.msra.mxu1 %vm8410_vm1, %v8183_v19  ;;  %v2393_v19 = vld [vmem:[%s11904_s15 + $0x18] sm:$0xff] }
  0x77   :  { %7680 = vmatprep.subr.bf16.mxu1 %v8039_v33 }
  0x78   :  { %1865 = vperm.xlu1 %7715, %v1771_v35  }
  0x79   :  { %1860 = vperm.xlu0 %7714, %v1770_v37   ;;  %v6939_v37 = vld [vmem:[%s11897_s8 + $0x38] sm:$0xff] }
  0x7c   :  { %2300 = vperm.xlu1 %7715, %v2290_v38   ;;  %v6938_v38 = vld [vmem:[%s11897_s8 + $0x30] sm:$0xff] }
  0x7d   :  { %2295 = vperm.xlu0 %7714, %v2289_v39  }
  0x7e   :  { %7683 = vmatpush3.bf16.xpose.msk.msra.mxu1 %vm8410_vm1, %v8210_v28  ;;  %v6903_v28 = vld [vmem:[%s11894_s5 + $0x78] sm:$0xff] }
  0x7f   :  { %7684 = vmatprep.subr.bf16.mxu1 %v8039_v33 }
  0x80   :  { %2310 = vperm.xlu1 %7715, %v2292_v40  }
  0x81   :  { %2305 = vperm.xlu0 %7714, %v2291_v5   ;;  %v6943_v5 = vld [vmem:[%s11898_s9 + $0x38] sm:$0xff] }
  0x83   :  { %v8446_v43 = vpop.permute.xlu1 %99  ;;  %v8448_v45 = vpop.permute.xlu0 %89 }
  0x84   :  { %2428 = vperm.xlu1 %7715, %v2387_v41   ;;  %v6942_v41 = vld [vmem:[%s11898_s9 + $0x30] sm:$0xff] }
  0x85   :  { %2415 = vperm.xlu0 %7714, %v2386_v42  }
  0x86   :  { %7687 = vmatpush3.bf16.xpose.msk.msra.mxu1 %vm8410_vm1, %v8235_v36  ;;  %v6907_v36 = vld [vmem:[%s11894_s5 + $0x98] sm:$0xff] }
  0x87   :  { %v8460_v47 = vpop.permute.xlu1 %104  ;;  %v8462_v48 = vpop.permute.xlu0 %94  ;;  %7688 = vmatprep.subr.bf16.mxu1 %v8039_v33 }
  0x88   :  { %2434 = vperm.xlu1 %7715, %v2391_v11  }
  0x89   :  { %2421 = vperm.xlu0 %7714, %v2390_v46   ;;  %v6993_v46 = vld [vmem:[%s11900_s11 + $0x188] sm:$0xff] }
  0x8b   :  { %v8470_v51 = vpop.permute.xlu1 %355 }
  0x8c   :  { %v8472_v53 = vpop.permute.xlu0 %350  ;;  %2454 = vperm.xlu1 %7715, %v2389_v49   ;;  %v6992_v49 = vld [vmem:[%s11900_s11 + $0x180] sm:$0xff] }
  0x8d   :  { %2441 = vperm.xlu0 %7714, %v2388_v50  }
  0x8e   :  { %7691 = vmatpush3.bf16.xpose.msk.msra.mxu1 %vm8410_vm1, %v8259_v44  ;;  %v6911_v44 = vld [vmem:[%s11894_s5 + $0xb8] sm:$0xff] }
  0x8f   :  { %v8484_v55 = vpop.permute.xlu1 %365  ;;  %7692 = vmatprep.subr.bf16.mxu1 %v8039_v33 }
  0x90   :  { %v8486_v56 = vpop.permute.xlu0 %360  ;;  %2460 = vperm.xlu1 %7715, %v2393_v19  }
  0x91   :  { %2447 = vperm.xlu0 %7714, %v2392_v54   ;;  %v6977_v54 = vld [vmem:[%s11900_s11 + $0x108] sm:$0xff] }
  0x93   :  { %v8494_v59 = vpop.permute.xlu1 %375 }
  0x94   :  { %v8496_v61 = vpop.permute.xlu0 %370  ;;  %2499 = vperm.xlu1 %7715, %v6901_v57   ;;  %v6976_v57 = vld [vmem:[%s11900_s11 + $0x100] sm:$0xff] }
  0x95   :  { %2494 = vperm.xlu0 %7714, %v6900_v58  }
  0x96   :  { %7695 = vmatpush3.bf16.xpose.msk.msra.mxu1 %vm8410_vm1, %v8283_v52  ;;  %v6928_v52 = vld [vmem:[%s11896_s7 + $0x20] sm:$0xff] }
  0x97   :  { %v8508_v63 = vpop.permute.xlu1 %385  ;;  %7696 = vmatprep.subr.bf16.mxu1 %v8039_v33  ;;  %v6940_v33 = vld [vmem:[%s11898_s9 + $0x20] sm:$0xff] }
  0x98   :  { %v8510_v0 = vpop.permute.xlu0 %380  ;;  %2509 = vperm.xlu1 %7715, %v6903_v28  }
  0x99   :  { %2504 = vperm.xlu0 %7714, %v6902_v62   ;;  %v6995_v62 = vld [vmem:[%s11900_s11 + $0x198] sm:$0xff] }
  0x9b   :  { %v8518_v3 = vpop.permute.xlu1 %395 }
  0x9c   :  { %11946 = vst [vmem:[#allocation5_spill] sm:$0xff] %v8518_v3  ;;  %v8520_v4 = vpop.permute.xlu0 %390  ;;  %2519 = vperm.xlu1 %7715, %v6905_v1   ;;  %v6994_v1 = vld [vmem:[%s11900_s11 + $0x190] sm:$0xff] }
  0x9d   :  { %11947 = vst [vmem:[#allocation6_spill] sm:$0xff] %v8520_v4  ;;  %2514 = vperm.xlu0 %7714, %v6904_v2  }
  0x9e   :  { %7699 = vmatpush3.bf16.xpose.msk.msra.mxu1 %vm8410_vm1, %v8307_v60  ;;  %v197_v60 = vld [vmem:[%s11892_s3] sm:$0xff] }
  0x9f   :  { %v8532_v7 = vpop.permute.xlu1 %405 }
  0xa0   :  { %11948 = vst [vmem:[#allocation7_spill] sm:$0xff] %v8532_v7  ;;  %v8534_v8 = vpop.permute.xlu0 %400  ;;  %2529 = vperm.xlu1 %7715, %v6907_v36  }
  0xa1   :  { %2524 = vperm.xlu0 %7714, %v6906_v6   ;;  %v6979_v6 = vld [vmem:[%s11900_s11 + $0x118] sm:$0xff] }
  0xa3   :  { %v8542_v12 = vpop.permute.xlu1 %1562 }
  0xa4   :  { %11949 = vst [vmem:[#allocation8_spill] sm:$0xff] %v8542_v12  ;;  %v8544_v13 = vpop.permute.xlu0 %1557  ;;  %2539 = vperm.xlu1 %7715, %v6909_v9   ;;  %v6978_v9 = vld [vmem:[%s11900_s11 + $0x110] sm:$0xff] }
  0xa5   :  { %11950 = vst [vmem:[#allocation9_spill] sm:$0xff] %v8544_v13  ;;  %2534 = vperm.xlu0 %7714, %v6908_v10   ;;  %7486 = vmatmul.mubr.msk.f32.vlgmr.msra.gmra.mrb[0].mxu1 %vm117_vm0, %v197_v60  ;;  %v6998_v60 = vld [vmem:[%s11900_s11 + $0x1b0] sm:$0xff] }
  0xa7   :  { %v8559_v16 = vpop.permute.xlu1 %1572 }
  0xa8   :  { %11951 = vst [vmem:[#allocation10_spill] sm:$0xff] %v8559_v16  ;;  %v8561_v17 = vpop.permute.xlu0 %1567  ;;  %2549 = vperm.xlu1 %7715, %v6911_v44  }
  0xa9   :  { %11952 = vst [vmem:[#allocation11_spill] sm:$0xff] %v8561_v17  ;;  %2544 = vperm.xlu0 %7714, %v6910_v14   ;;  %v6997_v14 = vld [vmem:[%s11900_s11 + $0x1a8] sm:$0xff] }
  0xab   :  { %v8570_v20 = vpop.permute.xlu1 %1686 }
  0xac   :  { %11953 = vst [vmem:[#allocation12_spill] sm:$0xff] %v8570_v20  ;;  %v8572_v21 = vpop.permute.xlu0 %1673  ;;  %3700 = vperm.xlu1 %7715, %v6929_v18  }
  0xad   :  { %11954 = vst [vmem:[#allocation13_spill] sm:$0xff] %v8572_v21  ;;  %3695 = vperm.xlu0 %7714, %v6928_v52  }
  0xaf   :  { %v8583_v24 = vpop.permute.xlu1 %1692 }
  0xb0   :  { %11955 = vst [vmem:[#allocation14_spill] sm:$0xff] %v8583_v24  ;;  %v8585_v25 = vpop.permute.xlu0 %1679  ;;  %3710 = vperm.xlu1 %7715, %v6931_v22   ;;  %v6981_v22 = vld [vmem:[%s11900_s11 + $0x128] sm:$0xff] }
  0xb1   :  { %11956 = vst [vmem:[#allocation15_spill] sm:$0xff] %v8585_v25  ;;  %3705 = vperm.xlu0 %7714, %v6930_v23   ;;  %v6980_v23 = vld [vmem:[%s11900_s11 + $0x120] sm:$0xff] }
  0xb3   :  { %v8597_v30 = vpop.permute.xlu1 %1712 }
  0xb4   :  { %11957 = vst [vmem:[#allocation16_spill] sm:$0xff] %v8597_v30  ;;  %v8599_v31 = vpop.permute.xlu0 %1699  ;;  %3826 = vperm.xlu1 %7715, %v6937_v26  }
  0xb5   :  { %11958 = vst [vmem:[#allocation17_spill] sm:$0xff] %v8599_v31  ;;  %3813 = vperm.xlu0 %7714, %v6936_v27   ;;  %v6999_v27 = vld [vmem:[%s11900_s11 + $0x1b8] sm:$0xff] }
  0xb7   :  { %v8608_v34 = vpop.permute.xlu1 %1718 }
  0xb8   :  { %11959 = vst [vmem:[#allocation18_spill] sm:$0xff] %v8608_v34  ;;  %v8610_v35 = vpop.permute.xlu0 %1705  ;;  %3832 = vperm.xlu1 %7715, %v6941_v32  }
  0xb9   :  { %11960 = vst [vmem:[#allocation19_spill] sm:$0xff] %v8610_v35  ;;  %3819 = vperm.xlu0 %7714, %v6940_v33   ;;  %v6983_v33 = vld [vmem:[%s11900_s11 + $0x138] sm:$0xff] }
  0xbb   :  { %v8618_v39 = vpop.permute.xlu1 %1875 }
  0xbc   :  { %11961 = vst [vmem:[#allocation20_spill] sm:$0xff] %v8618_v39  ;;  %v8620_v40 = vpop.permute.xlu0 %1870  ;;  %3852 = vperm.xlu1 %7715, %v6939_v37   ;;  %v6982_v37 = vld [vmem:[%s11900_s11 + $0x130] sm:$0xff] }
  0xbd   :  { %11962 = vst [vmem:[#allocation21_spill] sm:$0xff] %v8620_v40  ;;  %3839 = vperm.xlu0 %7714, %v6938_v38  }
  0xbf   :  { %v8628_v42 = vpop.permute.xlu1 %1795 }
  0xc0   :  { %11963 = vst [vmem:[#allocation22_spill] sm:$0xff] %v8628_v42  ;;  %v8630_v11 = vpop.permute.xlu0 %1790  ;;  %3858 = vperm.xlu1 %7715, %v6943_v5  }
  0xc1   :  { %11964 = vst [vmem:[#allocation23_spill] sm:$0xff] %v8630_v11  ;;  %3845 = vperm.xlu0 %7714, %v6942_v41   ;;  %v7001_v41 = vld [vmem:[%s11900_s11 + $0x1c8] sm:$0xff] }
  0xc3   :  { %v8638_v50 = vpop.permute.xlu1 %1885 }
  0xc4   :  { %11965 = vst [vmem:[#allocation24_spill] sm:$0xff] %v8638_v50  ;;  %v8640_v19 = vpop.permute.xlu0 %1880  ;;  %4017 = vperm.xlu1 %7715, %v6993_v46   ;;  %v7000_v46 = vld [vmem:[%s11900_s11 + $0x1c0] sm:$0xff] }
  0xc5   :  { %11966 = vst [vmem:[#allocation25_spill] sm:$0xff] %v8640_v19  ;;  %4012 = vperm.xlu0 %7714, %v6992_v49  }
  0xc7   :  { %v8648_v58 = vpop.permute.xlu1 %1805 }
  0xc8   :  { %11967 = vst [vmem:[#allocation26_spill] sm:$0xff] %v8648_v58  ;;  %v8650_v28 = vpop.permute.xlu0 %1800  ;;  %3937 = vperm.xlu1 %7715, %v6977_v54   ;;  %v6985_v54 = vld [vmem:[%s11900_s11 + $0x148] sm:$0xff] }
  0xc9   :  { %11968 = vst [vmem:[#allocation27_spill] sm:$0xff] %v8650_v28  ;;  %3932 = vperm.xlu0 %7714, %v6976_v57   ;;  %v6984_v57 = vld [vmem:[%s11900_s11 + $0x140] sm:$0xff] }
  0xcb   :  { %v8658_v2 = vpop.permute.xlu1 %1895 }
  0xcc   :  { %11969 = vst [vmem:[#allocation28_spill] sm:$0xff] %v8658_v2  ;;  %v8660_v36 = vpop.permute.xlu0 %1890  ;;  %4027 = vperm.xlu1 %7715, %v6995_v62  }
  0xcd   :  { %11970 = vst [vmem:[#allocation29_spill] sm:$0xff] %v8660_v36  ;;  %4022 = vperm.xlu0 %7714, %v6994_v1   ;;  %v7003_v1 = vld [vmem:[%s11900_s11 + $0x1d8] sm:$0xff] }
  0xcf   :  { %v8668_v10 = vpop.permute.xlu1 %1815 }
  0xd0   :  { %11971 = vst [vmem:[#allocation30_spill] sm:$0xff] %v8668_v10  ;;  %v8670_v44 = vpop.permute.xlu0 %1810  ;;  %3947 = vperm.xlu1 %7715, %v6979_v6   ;;  %v7002_v6 = vld [vmem:[%s11900_s11 + $0x1d0] sm:$0xff] }
  0xd1   :  { %11972 = vst [vmem:[#allocation31_spill] sm:$0xff] %v8670_v44  ;;  %3942 = vperm.xlu0 %7714, %v6978_v9  }
  0xd3   :  { %v8678_v18 = vpop.permute.xlu1 %1905 }
  0xd4   :  { %11973 = vst [vmem:[#allocation32_spill] sm:$0xff] %v8678_v18  ;;  %v8680_v52 = vpop.permute.xlu0 %1900  ;;  %4037 = vperm.xlu1 %7715, %v6997_v14  }
  0xd5   :  { %11974 = vst [vmem:[#allocation33_spill] sm:$0xff] %v8680_v52  ;;  %4032 = vperm.xlu0 %7714, %v6996_v15   ;;  %v6987_v15 = vld [vmem:[%s11900_s11 + $0x158] sm:$0xff] }
  0xd7   :  { %v8688_v26 = vpop.permute.xlu1 %1825 }
  0xd8   :  { %3957 = vperm.xlu1 %7715, %v6981_v22   ;;  %11975 = vst [vmem:[#allocation34_spill] sm:$0xff] %v8688_v26  ;;  %v8696_v32 = vpop.permute.xlu0 %1820  ;;  %v6986_v22 = vld [vmem:[%s11900_s11 + $0x150] sm:$0xff] }
  0xd9   :  { %3952 = vperm.xlu0 %7714, %v6980_v23   ;;  %11976 = vst [vmem:[#allocation35_spill] sm:$0xff] %v8696_v32 }
  0xdb   :  { %v8704_v38 = vpop.permute.xlu1 %1915 }
  0xdc   :  { %4047 = vperm.xlu1 %7715, %v6999_v27   ;;  %11977 = vst [vmem:[#allocation36_spill] sm:$0xff] %v8704_v38  ;;  %v8706_v5 = vpop.permute.xlu0 %1910  ;;  %v7005_v27 = vld [vmem:[%s11900_s11 + $0x1e8] sm:$0xff] }
  0xdd   :  { %4042 = vperm.xlu0 %7714, %v6998_v60   ;;  %11978 = vst [vmem:[#allocation37_spill] sm:$0xff] %v8706_v5  ;;  %v7004_v60 = vld [vmem:[%s11900_s11 + $0x1e0] sm:$0xff] }
  0xdf   :  { %v8714_v49 = vpop.permute.xlu1 %1835 }
  0xe0   :  { %3967 = vperm.xlu1 %7715, %v6983_v33   ;;  %11979 = vst [vmem:[#allocation38_spill] sm:$0xff] %v8714_v49  ;;  %v8722_v62 = vpop.permute.xlu0 %1830 }
  0xe1   :  { %3962 = vperm.xlu0 %7714, %v6982_v37   ;;  %11980 = vst [vmem:[#allocation39_spill] sm:$0xff] %v8722_v62  ;;  %v6989_v37 = vld [vmem:[%s11900_s11 + $0x168] sm:$0xff] }
  0xe3   :  { %v8730_v9 = vpop.permute.xlu1 %1925 }
  0xe4   :  { %4057 = vperm.xlu1 %7715, %v7001_v41   ;;  %11981 = vst [vmem:[#allocation40_spill] sm:$0xff] %v8730_v9  ;;  %v8732_v14 = vpop.permute.xlu0 %1920  ;;  %v6988_v41 = vld [vmem:[%s11900_s11 + $0x160] sm:$0xff] }
  0xe5   :  { %4052 = vperm.xlu0 %7714, %v7000_v46   ;;  %11982 = vst [vmem:[#allocation41_spill] sm:$0xff] %v8732_v14  ;;  %v7075_v14 = vld [vmem:[%s11894_s5 + $0xd8] sm:$0xff] }
  0xe7   :  { %v8740_v23 = vpop.permute.xlu1 %1845 }
  0xe8   :  { %3977 = vperm.xlu1 %7715, %v6985_v54   ;;  %11983 = vst [vmem:[#allocation42_spill] sm:$0xff] %v8740_v23  ;;  %v8748_v33 = vpop.permute.xlu0 %1840 }
  0xe9   :  { %3972 = vperm.xlu0 %7714, %v6984_v57   ;;  %11984 = vst [vmem:[#allocation43_spill] sm:$0xff] %v8748_v33  ;;  %v7007_v57 = vld [vmem:[%s11900_s11 + $0x1f8] sm:$0xff] }
  0xeb   :  { %v8756_v46 = vpop.permute.xlu1 %1935 }
  0xec   :  { %4067 = vperm.xlu1 %7715, %v7003_v1   ;;  %11985 = vst [vmem:[#allocation44_spill] sm:$0xff] %v8756_v46  ;;  %v8758_v54 = vpop.permute.xlu0 %1930  ;;  %v7006_v1 = vld [vmem:[%s11900_s11 + $0x1f0] sm:$0xff]  ;;  %v7057_v46 = vld [vmem:[%s11904_s15 + $0x28] sm:$0xff] }
  0xed   :  { %4062 = vperm.xlu0 %7714, %v7002_v6   ;;  %11986 = vst [vmem:[#allocation45_spill] sm:$0xff] %v8758_v54  ;;  %v7055_v54 = vld [vmem:[%s11903_s14 + $0x38] sm:$0xff] }
  0xef   :  { %v8766_v6 = vpop.permute.xlu1 %1855 }
  0xf0   :  { %3987 = vperm.xlu1 %7715, %v6987_v15   ;;  %11987 = vst [vmem:[#allocation46_spill] sm:$0xff] %v8766_v6  ;;  %v6991_v15 = vld [vmem:[%s11900_s11 + $0x178] sm:$0xff] }
  0xf1   :  { %3982 = vperm.xlu0 %7714, %v6986_v22   ;;  %v6990_v22 = vld [vmem:[%s11900_s11 + $0x170] sm:$0xff] }
  0xf4   :  { %4077 = vperm.xlu1 %7715, %v7005_v27   ;;  %v8774_v27 = vpop.permute.xlu0 %1850 }
  0xf5   :  { %4072 = vperm.xlu0 %7714, %v7004_v60   ;;  %11988 = vst [vmem:[#allocation47_spill] sm:$0xff] %v8774_v27  ;;  %v7045_v60 = vld [vmem:[%s11902_s13 + $0x28] sm:$0xff] }
  0xf8   :  { %3997 = vperm.xlu1 %7715, %v6989_v37   ;;  %v7044_v37 = vld [vmem:[%s11902_s13 + $0x20] sm:$0xff] }
  0xf9   :  { %3992 = vperm.xlu0 %7714, %v6988_v41   ;;  %v8782_v41 = vpop.permute.xlu1 %1945 }
  0xfa   :  { %11989 = vst [vmem:[#allocation48_spill] sm:$0xff] %v8782_v41 }
  0xfc   :  { %4087 = vperm.xlu1 %7715, %v7007_v57   ;;  %v8784_v57 = vpop.permute.xlu0 %1940 }
  0xfd   :  { %4082 = vperm.xlu0 %7714, %v7006_v1   ;;  %11990 = vst [vmem:[#allocation49_spill] sm:$0xff] %v8784_v57  ;;  %v7047_v1 = vld [vmem:[%s11902_s13 + $0x38] sm:$0xff] }
 0x100   :  { %4007 = vperm.xlu1 %7715, %v6991_v15   ;;  %v7046_v15 = vld [vmem:[%s11902_s13 + $0x30] sm:$0xff] }
 0x101   :  { %4002 = vperm.xlu0 %7714, %v6990_v22   ;;  %v8792_v22 = vpop.permute.xlu1 %1865 }
 0x102   :  { %11991 = vst [vmem:[#allocation50_spill] sm:$0xff] %v8792_v22 }
 0x104   :  { %4444 = vperm.xlu1 %7715, %v7045_v60   ;;  %v7052_v60 = vld [vmem:[%s11903_s14 + $0x20] sm:$0xff] }
 0x105   :  { %4439 = vperm.xlu0 %7714, %v7044_v37   ;;  %v8800_v37 = vpop.permute.xlu0 %1860 }
 0x106   :  { %11992 = vst [vmem:[#allocation51_spill] sm:$0xff] %v8800_v37 }
 0x108   :  { %4454 = vperm.xlu1 %7715, %v7047_v1   ;;  %v7056_v1 = vld [vmem:[%s11904_s15 + $0x20] sm:$0xff] }
 0x109   :  { %4449 = vperm.xlu0 %7714, %v7046_v15   ;;  %v8808_v15 = vpop.permute.xlu1 %2300  ;;  %v8810_v41 = vpop.permute.xlu0 %2295 }
 0x10a   :  { %11993 = vst [vmem:[#allocation52_spill] sm:$0xff] %v8808_v15  ;;  %11994 = vst [vmem:[#allocation53_spill] sm:$0xff] %v8810_v41  ;;  %v7059_v15 = vld [vmem:[%s11904_s15 + $0x38] sm:$0xff] }
 0x10c   :  { %4574 = vperm.xlu1 %7715, %v7053_v29   ;;  %v7054_v29 = vld [vmem:[%s11903_s14 + $0x30] sm:$0xff] }
 0x10d   :  { %4561 = vperm.xlu0 %7714, %v7052_v60   ;;  %v8818_v60 = vpop.permute.xlu1 %2310 }
 0x10e   :  { %11995 = vst [vmem:[#allocation54_spill] sm:$0xff] %v8818_v60 }
 0x110   :  { %4580 = vperm.xlu1 %7715, %v7057_v46   ;;  %v7058_v46 = vld [vmem:[%s11904_s15 + $0x30] sm:$0xff] }
 0x111   :  { %4567 = vperm.xlu0 %7714, %v7056_v1   ;;  %v8826_v1 = vpop.permute.xlu0 %2305  ;;  %v8834_v57 = vpop.permute.xlu1 %2428 }
 0x112   :  { %11996 = vst [vmem:[#allocation55_spill] sm:$0xff] %v8826_v1  ;;  %11997 = vst [vmem:[#allocation56_spill] sm:$0xff] %v8834_v57  ;;  %v7074_v57 = vld [vmem:[%s11894_s5 + $0xd0] sm:$0xff] }
 0x114   :  { %4600 = vperm.xlu1 %7715, %v7055_v54   ;;  %v7073_v54 = vld [vmem:[%s11894_s5 + $0xc8] sm:$0xff] }
 0x115   :  { %4587 = vperm.xlu0 %7714, %v7054_v29   ;;  %v7072_v29 = vld [vmem:[%s11894_s5 + $0xc0] sm:$0xff]  ;;  %v8836_v9 = vpop.permute.xlu0 %2415 }
 0x116   :  { %11998 = vst [vmem:[#allocation57_spill] sm:$0xff] %v8836_v9 }
 0x118   :  { %4606 = vperm.xlu1 %7715, %v7059_v15  }
 0x119   :  { %4593 = vperm.xlu0 %7714, %v7058_v46  }
 0x11c   :  { %4645 = vperm.xlu1 %7715, %v7073_v54  }
 0x11d   :  { %4640 = vperm.xlu0 %7714, %v7072_v29  }
 0x11e   :  { %v7451_v41 = vpop.f32.mrb[0].mxu0 }
 0x11f   :  { %v182_v60 = vpop.f32.mrb[1].mxu0  ;;  %v8854_v54 = vadd.f32 %v7451_v41, %v8446_v43  ;;  %v8868_v43 = vpop.permute.xlu0 %2421  ;;  %v7078_v41 = vld [vmem:[%s11894_s5 + $0xf0] sm:$0xff] }
 0x120   :  { %v7452_v38 = vpop.f32.mrb[2].mxu0  ;;  %v8839_v15 = vadd.f32 %v182_v60, %v8448_v45  ;;  %4655 = vperm.xlu1 %7715, %v7075_v14   ;;  %12004 = vst [vmem:[#allocation63_spill] sm:$0xff] %v8868_v43  ;;  %v7079_v14 = vld [vmem:[%s11894_s5 + $0xf8] sm:$0xff]  ;;  %v7720_v60 = vld [vmem:[%s11893_s4 + $0x10] sm:$0xff]  }
 0x121   :  { %v185_v5 = vpop.f32.mrb[3].mxu0  ;;  %v8842_v46 = vadd.f32 %v7452_v38, %v8460_v47  ;;  %12002 = vst [vmem:[#allocation61_spill] sm:$0xff] %v8854_v54  ;;  %4650 = vperm.xlu0 %7714, %v7074_v57   ;;  %v7076_v38 = vld [vmem:[%s11894_s5 + $0xe0] sm:$0xff]  ;;  %v7719_v57 = vld [vmem:[%s11893_s4 + $0x8] sm:$0xff]  }
 0x122   :  { %11999 = vst [vmem:[#allocation58_spill] sm:$0xff] %v8839_v15  ;;  %v8845_v1 = vadd.f32 %v185_v5, %v8462_v48  ;;  %v7077_v48 = vld [vmem:[%s11894_s5 + $0xe8] sm:$0xff]  ;;  %v8866_v5 = vpop.permute.xlu1 %2434 }
 0x123   :  { %12000 = vst [vmem:[#allocation59_spill] sm:$0xff] %v8842_v46  ;;  %v335_v47 = vpack.c.bf16 %v8842_v46, %v8854_v54  ;;  %12003 = vst [vmem:[#allocation62_spill] sm:$0xff] %v8866_v5 }
 0x124   :  { %12001 = vst [vmem:[#allocation60_spill] sm:$0xff] %v8845_v1  ;;  %v334_v45 = vpack.c.bf16 %v8845_v1, %v8839_v15  ;;  %4665 = vperm.xlu1 %7715, %v7077_v48   ;;  %v7081_v48 = vld [vmem:[%s11894_s5 + $0x108] sm:$0xff] }
 0x125   :  { %4660 = vperm.xlu0 %7714, %v7076_v38   ;;  %v7083_v38 = vld [vmem:[%s11894_s5 + $0x118] sm:$0xff] }
 0x126   :  { %7488 = vmatprep.subr.bf16.mxu0 %v334_v45  ;;  %v8882_v29 = vpop.permute.xlu1 %2454 }
 0x127   :  { %7489 = vmatpush3.bf16.msra.mxu0 %v334_v45  ;;  %12005 = vst [vmem:[#allocation64_spill] sm:$0xff] %v8882_v29  ;;  %v8884_v45 = vpop.permute.xlu0 %2441  ;;  %v8042_v29 = vmov 1966171168  }
 0x128   :  { %7490 = vmatprep.subr.bf16.mxu0 %v335_v47  ;;  %12006 = vst [vmem:[#allocation65_spill] sm:$0xff] %v8884_v45  ;;  %4675 = vperm.xlu1 %7715, %v7079_v14   ;;  %v7082_v14 = vld [vmem:[%s11894_s5 + $0x110] sm:$0xff]  ;;  %v542_v45 = vlaneseq }
 0x129   :  { %4670 = vperm.xlu0 %7714, %v7078_v41   ;;  %v7721_v41 = vld [vmem:[%s11893_s4 + $0x18] sm:$0xff]  }
 0x12b   :  { %7491 = vmatpush3.bf16.msra.mxu0 %v335_v47  ;;  %v7080_v47 = vld [vmem:[%s11894_s5 + $0x100] sm:$0xff]  ;;  %v8905_v5 = vpop.permute.xlu0 %2447 }
 0x12c   :  { %4685 = vperm.xlu1 %7715, %v7081_v48   ;;  %12008 = vst [vmem:[#allocation67_spill] sm:$0xff] %v8905_v5  ;;  %v7101_v48 = vld [vmem:[%s11896_s7 + $0x48] sm:$0xff] }
 0x12d   :  { %4680 = vperm.xlu0 %7714, %v7080_v47   ;;  %v7100_v47 = vld [vmem:[%s11896_s7 + $0x40] sm:$0xff] }
 0x12e   :  { %7493 = vmatmul.mubr.msk.bf16.vlgmr.msra.gmra.mrb[4].mxu0 %vm117_vm0, %v7719_v57  ;;  %v8903_v57 = vpop.permute.xlu1 %2460 }
 0x12f   :  { %7496 = vmatprep.mubr.msk.bf16.mxu0 %vm117_vm0, %v7720_v60  ;;  %12007 = vst [vmem:[#allocation66_spill] sm:$0xff] %v8903_v57  ;;  %v7722_v60 = vld [vmem:[%s11893_s4 + $0x20] sm:$0xff]   ;;  %v8920_v5 = vpop.permute.xlu0 %2494 }
 0x130   :  { %4695 = vperm.xlu1 %7715, %v7083_v38   ;;  %12010 = vst [vmem:[#allocation69_spill] sm:$0xff] %v8920_v5  ;;  %v7103_v38 = vld [vmem:[%s11896_s7 + $0x58] sm:$0xff] }
 0x131   :  { %4690 = vperm.xlu0 %7714, %v7082_v14   ;;  %v7102_v14 = vld [vmem:[%s11896_s7 + $0x50] sm:$0xff] }
 0x132   :  { %v8918_v57 = vpop.permute.xlu1 %2499 }
 0x133   :  { %12009 = vst [vmem:[#allocation68_spill] sm:$0xff] %v8918_v57  ;;  %v8940_v57 = vpop.permute.xlu0 %2504 }
 0x134   :  { %5846 = vperm.xlu1 %7715, %v7101_v48   ;;  %v7108_v48 = vld [vmem:[%s11897_s8 + $0x40] sm:$0xff]  ;;  %12012 = vst [vmem:[#allocation71_spill] sm:$0xff] %v8940_v57 }
 0x135   :  { %5841 = vperm.xlu0 %7714, %v7100_v47  }
 0x136   :  { %7497 = vmatmul.mubr.msk.bf16.gmra.mrb[8].mxu0 %vm117_vm0, %v7721_v41  ;;  %v7723_v41 = vld [vmem:[%s11893_s4 + $0x28] sm:$0xff]   ;;  %v8938_v47 = vpop.permute.xlu1 %2509 }
 0x137   :  { %7500 = vmatprep.mubr.msk.bf16.mxu0 %vm117_vm0, %v7722_v60  ;;  %v7109_v60 = vld [vmem:[%s11897_s8 + $0x48] sm:$0xff]  ;;  %12011 = vst [vmem:[#allocation70_spill] sm:$0xff] %v8938_v47  ;;  %v8950_v5 = vpop.permute.xlu0 %2514  ;;  %v7111_v47 = vld [vmem:[%s11897_s8 + $0x58] sm:$0xff] }
 0x138   :  { %5856 = vperm.xlu1 %7715, %v7103_v38   ;;  %v7113_v38 = vld [vmem:[%s11898_s9 + $0x48] sm:$0xff]  ;;  %12014 = vst [vmem:[#allocation73_spill] sm:$0xff] %v8950_v5 }
 0x139   :  { %5851 = vperm.xlu0 %7714, %v7102_v14   ;;  %v7112_v14 = vld [vmem:[%s11898_s9 + $0x40] sm:$0xff]  ;;  %v7165_v5 = vld [vmem:[%s11900_s11 + $0x288] sm:$0xff] }
 0x13c   :  { %5972 = vperm.xlu1 %7715, %v7109_v60   ;;  %v7110_v60 = vld [vmem:[%s11897_s8 + $0x50] sm:$0xff] }
 0x13d   :  { %5959 = vperm.xlu0 %7714, %v7108_v48   ;;  %v7115_v48 = vld [vmem:[%s11898_s9 + $0x58] sm:$0xff] }
 0x13e   :  { %7501 = vmatmul.mubr.msk.bf16.gmra.mrb[12].mxu0 %vm117_vm0, %v7723_v41  ;;  %v8948_v41 = vpop.permute.xlu1 %2519 }
 0x13f   :  { %12013 = vst [vmem:[#allocation72_spill] sm:$0xff] %v8948_v41  ;;  %v7114_v41 = vld [vmem:[%s11898_s9 + $0x50] sm:$0xff] }
 0x140   :  { %5978 = vperm.xlu1 %7715, %v7113_v38  }
 0x141   :  { %5965 = vperm.xlu0 %7714, %v7112_v14   ;;  %v8966_v14 = vpop.permute.xlu0 %2524 }
 0x142   :  { %v8964_v38 = vpop.permute.xlu1 %2529  ;;  %12016 = vst [vmem:[#allocation75_spill] sm:$0xff] %v8966_v14 }
 0x143   :  { %12015 = vst [vmem:[#allocation74_spill] sm:$0xff] %v8964_v38  ;;  %v7149_v38 = vld [vmem:[%s11900_s11 + $0x208] sm:$0xff] }
 0x144   :  { %5998 = vperm.xlu1 %7715, %v7111_v47   ;;  %v7164_v47 = vld [vmem:[%s11900_s11 + $0x280] sm:$0xff] }
 0x145   :  { %5985 = vperm.xlu0 %7714, %v7110_v60   ;;  %v8976_v57 = vpop.permute.xlu0 %2534 }
 0x146   :  { %v8974_v60 = vpop.permute.xlu1 %2539  ;;  %12018 = vst [vmem:[#allocation77_spill] sm:$0xff] %v8976_v57  ;;  %v7151_v57 = vld [vmem:[%s11900_s11 + $0x218] sm:$0xff] }
 0x147   :  { %12017 = vst [vmem:[#allocation76_spill] sm:$0xff] %v8974_v60  ;;  %v7166_v60 = vld [vmem:[%s11900_s11 + $0x290] sm:$0xff] }
 0x148   :  { %6004 = vperm.xlu1 %7715, %v7115_v48   ;;  %v7167_v48 = vld [vmem:[%s11900_s11 + $0x298] sm:$0xff] }
 0x149   :  { %5991 = vperm.xlu0 %7714, %v7114_v41   ;;  %v7148_v41 = vld [vmem:[%s11900_s11 + $0x200] sm:$0xff] }
 0x14c   :  { %6163 = vperm.xlu1 %7715, %v7165_v5   ;;  %v8990_v5 = vpop.permute.xlu1 %2549 }
 0x14d   :  { %6158 = vperm.xlu0 %7714, %v7164_v47   ;;  %12019 = vst [vmem:[#allocation78_spill] sm:$0xff] %v8990_v5  ;;  %v8992_v47 = vpop.permute.xlu0 %2544  ;;  %v7169_v5 = vld [vmem:[%s11900_s11 + $0x2a8] sm:$0xff] }
 0x14e   :  { %12020 = vst [vmem:[#allocation79_spill] sm:$0xff] %v8992_v47 }
 0x150   :  { %6083 = vperm.xlu1 %7715, %v7149_v38   ;;  %v7150_v38 = vld [vmem:[%s11900_s11 + $0x210] sm:$0xff] }
 0x151   :  { %6078 = vperm.xlu0 %7714, %v7148_v41   ;;  %v9000_v41 = vpop.permute.xlu1 %3700  ;;  %v9002_v14 = vpop.permute.xlu0 %3695 }
 0x152   :  { %12021 = vst [vmem:[#allocation80_spill] sm:$0xff] %v9000_v41  ;;  %12022 = vst [vmem:[#allocation81_spill] sm:$0xff] %v9002_v14  ;;  %v7152_v41 = vld [vmem:[%s11900_s11 + $0x220] sm:$0xff]  ;;  %v7171_v14 = vld [vmem:[%s11900_s11 + $0x2b8] sm:$0xff] }
 0x154   :  { %6173 = vperm.xlu1 %7715, %v7167_v48   ;;  %v7153_v48 = vld [vmem:[%s11900_s11 + $0x228] sm:$0xff] }
 0x155   :  { %6168 = vperm.xlu0 %7714, %v7166_v60   ;;  %v7168_v60 = vld [vmem:[%s11900_s11 + $0x2a0] sm:$0xff] }
 0x158   :  { %6093 = vperm.xlu1 %7715, %v7151_v57   ;;  %v9016_v57 = vpop.permute.xlu1 %3710 }
 0x159   :  { %6088 = vperm.xlu0 %7714, %v7150_v38   ;;  %12023 = vst [vmem:[#allocation82_spill] sm:$0xff] %v9016_v57  ;;  %v9018_v38 = vpop.permute.xlu0 %3705  ;;  %v7155_v57 = vld [vmem:[%s11900_s11 + $0x238] sm:$0xff] }
 0x15a   :  { %12024 = vst [vmem:[#allocation83_spill] sm:$0xff] %v9018_v38 }
 0x15c   :  { %6183 = vperm.xlu1 %7715, %v7169_v5   ;;  %v7170_v5 = vld [vmem:[%s11900_s11 + $0x2b0] sm:$0xff] }
 0x15d   :  { %6178 = vperm.xlu0 %7714, %v7168_v60   ;;  %v9026_v60 = vpop.permute.xlu1 %3826  ;;  %v9028_v47 = vpop.permute.xlu0 %3813 }
 0x15e   :  { %12025 = vst [vmem:[#allocation84_spill] sm:$0xff] %v9026_v60  ;;  %12026 = vst [vmem:[#allocation85_spill] sm:$0xff] %v9028_v47  ;;  %v7172_v60 = vld [vmem:[%s11900_s11 + $0x2c0] sm:$0xff]  ;;  %v7157_v47 = vld [vmem:[%s11900_s11 + $0x248] sm:$0xff] }
 0x160   :  { %6103 = vperm.xlu1 %7715, %v7153_v48   ;;  %v7173_v48 = vld [vmem:[%s11900_s11 + $0x2c8] sm:$0xff] }
 0x161   :  { %6098 = vperm.xlu0 %7714, %v7152_v41   ;;  %v7154_v41 = vld [vmem:[%s11900_s11 + $0x230] sm:$0xff] }
 0x164   :  { %6193 = vperm.xlu1 %7715, %v7171_v14   ;;  %v9042_v14 = vpop.permute.xlu1 %3832 }
 0x165   :  { %6188 = vperm.xlu0 %7714, %v7170_v5   ;;  %12027 = vst [vmem:[#allocation86_spill] sm:$0xff] %v9042_v14  ;;  %v9044_v5 = vpop.permute.xlu0 %3819  ;;  %v7175_v14 = vld [vmem:[%s11900_s11 + $0x2d8] sm:$0xff] }
 0x166   :  { %12028 = vst [vmem:[#allocation87_spill] sm:$0xff] %v9044_v5  ;;  %v7158_v5 = vld [vmem:[%s11900_s11 + $0x250] sm:$0xff] }
 0x168   :  { %6113 = vperm.xlu1 %7715, %v7155_v57   ;;  %v7156_v57 = vld [vmem:[%s11900_s11 + $0x240] sm:$0xff] }
 0x169   :  { %6108 = vperm.xlu0 %7714, %v7154_v41   ;;  %v9052_v41 = vpop.permute.xlu1 %3852  ;;  %v9054_v38 = vpop.permute.xlu0 %3839 }
 0x16a   :  { %12029 = vst [vmem:[#allocation88_spill] sm:$0xff] %v9052_v41  ;;  %12030 = vst [vmem:[#allocation89_spill] sm:$0xff] %v9054_v38  ;;  %v7177_v41 = vld [vmem:[%s11900_s11 + $0x2e8] sm:$0xff] }
 0x16c   :  { %6203 = vperm.xlu1 %7715, %v7173_v48   ;;  %v7159_v48 = vld [vmem:[%s11900_s11 + $0x258] sm:$0xff] }
 0x16d   :  { %6198 = vperm.xlu0 %7714, %v7172_v60   ;;  %v7174_v60 = vld [vmem:[%s11900_s11 + $0x2d0] sm:$0xff] }
 0x170   :  { %6123 = vperm.xlu1 %7715, %v7157_v47   ;;  %v9068_v47 = vpop.permute.xlu1 %3858 }
 0x171   :  { %6118 = vperm.xlu0 %7714, %v7156_v57   ;;  %12031 = vst [vmem:[#allocation90_spill] sm:$0xff] %v9068_v47  ;;  %v9070_v57 = vpop.permute.xlu0 %3845  ;;  %v7161_v47 = vld [vmem:[%s11900_s11 + $0x268] sm:$0xff] }
 0x172   :  { %12032 = vst [vmem:[#allocation91_spill] sm:$0xff] %v9070_v57 }
 0x174   :  { %6213 = vperm.xlu1 %7715, %v7175_v14   ;;  %v7176_v14 = vld [vmem:[%s11900_s11 + $0x2e0] sm:$0xff] }
 0x175   :  { %6208 = vperm.xlu0 %7714, %v7174_v60   ;;  %v9078_v60 = vpop.permute.xlu1 %4017  ;;  %v9080_v38 = vpop.permute.xlu0 %4012 }
 0x176   :  { %12033 = vst [vmem:[#allocation92_spill] sm:$0xff] %v9078_v60  ;;  %12034 = vst [vmem:[#allocation93_spill] sm:$0xff] %v9080_v38  ;;  %v7178_v60 = vld [vmem:[%s11900_s11 + $0x2f0] sm:$0xff]  ;;  %v7163_v38 = vld [vmem:[%s11900_s11 + $0x278] sm:$0xff] }
 0x178   :  { %6133 = vperm.xlu1 %7715, %v7159_v48   ;;  %v7179_v48 = vld [vmem:[%s11900_s11 + $0x2f8] sm:$0xff] }
 0x179   :  { %6128 = vperm.xlu0 %7714, %v7158_v5   ;;  %v7160_v5 = vld [vmem:[%s11900_s11 + $0x260] sm:$0xff] }
 0x17c   :  { %6223 = vperm.xlu1 %7715, %v7177_v41   ;;  %v9094_v41 = vpop.permute.xlu1 %3937 }
 0x17d   :  { %6218 = vperm.xlu0 %7714, %v7176_v14   ;;  %12035 = vst [vmem:[#allocation94_spill] sm:$0xff] %v9094_v41  ;;  %v9096_v14 = vpop.permute.xlu0 %3932  ;;  %v7217_v41 = vld [vmem:[%s11902_s13 + $0x48] sm:$0xff] }
 0x17e   :  { %12036 = vst [vmem:[#allocation95_spill] sm:$0xff] %v9096_v14 }
 0x180   :  { %6143 = vperm.xlu1 %7715, %v7161_v47   ;;  %v7162_v47 = vld [vmem:[%s11900_s11 + $0x270] sm:$0xff] }
 0x181   :  { %6138 = vperm.xlu0 %7714, %v7160_v5   ;;  %v9104_v5 = vpop.permute.xlu1 %4027  ;;  %v9106_v57 = vpop.permute.xlu0 %4022 }
 0x182   :  { %12037 = vst [vmem:[#allocation96_spill] sm:$0xff] %v9104_v5  ;;  %12038 = vst [vmem:[#allocation97_spill] sm:$0xff] %v9106_v57  ;;  %v7218_v5 = vld [vmem:[%s11902_s13 + $0x50] sm:$0xff]  ;;  %v7225_v57 = vld [vmem:[%s11903_s14 + $0x48] sm:$0xff] }
 0x184   :  { %6233 = vperm.xlu1 %7715, %v7179_v48   ;;  %v7219_v48 = vld [vmem:[%s11902_s13 + $0x58] sm:$0xff] }
 0x185   :  { %6228 = vperm.xlu0 %7714, %v7178_v60   ;;  %v7216_v60 = vld [vmem:[%s11902_s13 + $0x40] sm:$0xff] }
 0x188   :  { %6153 = vperm.xlu1 %7715, %v7163_v38   ;;  %v9120_v38 = vpop.permute.xlu1 %3947 }
 0x189   :  { %6148 = vperm.xlu0 %7714, %v7162_v47   ;;  %12039 = vst [vmem:[#allocation98_spill] sm:$0xff] %v9120_v38  ;;  %v9122_v47 = vpop.permute.xlu0 %3942  ;;  %v7227_v38 = vld [vmem:[%s11903_s14 + $0x58] sm:$0xff] }
 0x18a   :  { %12040 = vst [vmem:[#allocation99_spill] sm:$0xff] %v9122_v47 }
 0x18c   :  { %6590 = vperm.xlu1 %7715, %v7217_v41   ;;  %v7224_v41 = vld [vmem:[%s11903_s14 + $0x40] sm:$0xff] }
 0x18d   :  { %6585 = vperm.xlu0 %7714, %v7216_v60   ;;  %v9130_v60 = vpop.permute.xlu1 %4037  ;;  %v9132_v14 = vpop.permute.xlu0 %4032 }
 0x18e   :  { %12041 = vst [vmem:[#allocation100_spill] sm:$0xff] %v9130_v60  ;;  %12042 = vst [vmem:[#allocation101_spill] sm:$0xff] %v9132_v14  ;;  %v7229_v60 = vld [vmem:[%s11904_s15 + $0x48] sm:$0xff] }
 0x190   :  { %6600 = vperm.xlu1 %7715, %v7219_v48   ;;  %v9140_v48 = vpop.f32.mrb[0].mxu1 }
 0x191   :  { %6595 = vperm.xlu0 %7714, %v7218_v5   ;;  %v7226_v5 = vld [vmem:[%s11903_s14 + $0x50] sm:$0xff]  ;;  %12043 = vst [vmem:[#allocation102_spill] sm:$0xff] %v9140_v48  ;;  %v7487_v47 = vpop.f32.mrb[1].mxu1  ;;  %v9150_v14 = vpop.permute.xlu0 %3952  ;;  %vm319_vm3 = vcmp.ne.f32.partialorder %v9140_v48, 0.0 }
 0x192   :  { %12045 = vst [vmem:[#allocation104_spill] sm:$0xff] %v9150_v14  ;;  %v7231_v47 = vld [vmem:[%s11904_s15 + $0x58] sm:$0xff] }
 0x194   :  { %6720 = vperm.xlu1 %7715, %v7225_v57   ;;  %v7228_v57 = vld [vmem:[%s11904_s15 + $0x40] sm:$0xff] }
 0x195   :  { %6707 = vperm.xlu0 %7714, %v7224_v41   ;;  %v9148_v41 = vpop.permute.xlu1 %3957  ;;  %v9160_v43 = vpop.permute.xlu0 %4042 }
 0x196   :  { %12044 = vst [vmem:[#allocation103_spill] sm:$0xff] %v9148_v41  ;;  %12047 = vst [vmem:[#allocation106_spill] sm:$0xff] %v9160_v43  ;;  %v540_v41 = vunpack.c.l.s4 %v8042_v29 }
 0x198   :  { %6746 = vperm.xlu1 %7715, %v7227_v38   ;;  %v7230_v38 = vld [vmem:[%s11904_s15 + $0x50] sm:$0xff]  ;;  %v541_v14 = vunpack.c.0.s8 %v540_v41 }
 0x199   :  { %6733 = vperm.xlu0 %7714, %v7226_v5   ;;  %v9158_v5 = vpop.permute.xlu1 %4047 }
 0x19a   :  { %12046 = vst [vmem:[#allocation105_spill] sm:$0xff] %v9158_v5 }
 0x19c   :  { %6726 = vperm.xlu1 %7715, %v7229_v60   ;;  %v543_v60 = vshrl.u32 %v542_v45, 7 }
 0x19d   :  { %6713 = vperm.xlu0 %7714, %v7228_v57  }
 0x19e   :  { %v9162_v57 = vsub.s32 %v541_v14, %v543_v60  ;;  %v9168_v43 = vsub.s32 0, %v543_v60 }
 0x1a0   :  { %6752 = vperm.xlu1 %7715, %v7231_v47   ;;  %12048 = vst [vmem:[#allocation107_spill] sm:$0xff] %v9162_v57  ;;  %12049 = vst [vmem:[#allocation108_spill] sm:$0xff] %v9168_v43 }
 0x1a1   :  { %6739 = vperm.xlu0 %7714, %v7230_v38  }
 0x201   :  { %v7494_v9 = vpop.f32.mrb[4].mxu0 }
 0x202   :  { %v499_v2 = vadd.f32 %v7494_v9, %v8486_v56  ;;  %v490_v18 = vpop.f32.mrb[5].mxu0 }
 0x203   :  { %v491_v36 = vadd.f32 %v490_v18, %v8472_v53  ;;  %v7495_v52 = vpop.f32.mrb[6].mxu0 }
 0x204   :  { %v1007_v39 = vcombine.high %v499_v2, %v499_v2  ;;  %v1014_v5 = vrot.slane %v499_v2, %v9162_v57  ;;  %v502_v47 = vadd.f32 %v7495_v52, %v8484_v55  ;;  %v493_v38 = vpop.f32.mrb[7].mxu0 }
 0x205   :  { %v538_v29 = vcombine.high %v491_v36, %v491_v36  ;;  %v545_v45 = vrot.slane %v491_v36, %v9162_v57  ;;  %v494_v53 = vadd.f32 %v493_v38, %v8470_v51 }
 0x206   :  { %v1021_v14 = vrot.slane %v1007_v39, %v9162_v57  ;;  %v1022_v41 = vcombine.high %v1014_v5, %v1014_v5  ;;  %v9173_v56 = vrot.slane %v1014_v5, %v9162_v57  ;;  %v1105_v55 = vcombine.high %v502_v47, %v502_v47 }
 0x207   :  { %v552_v18 = vrot.slane %v538_v29, %v9162_v57  ;;  %v553_v9 = vcombine.high %v545_v45, %v545_v45  ;;  %v9178_v2 = vrot.slane %v545_v45, %v9162_v57  ;;  %v1112_v29 = vrot.slane %v502_v47, %v9162_v57 }
 0x208   :  { %v1023_v52 = vcombine.high %v1021_v14, %v1021_v14  ;;  %v9181_v60 = vrot.slane %v1021_v14, %v9162_v57  ;;  %v9184_v36 = vrot.slane %v1022_v41, %v9162_v57  ;;  %v1052_v39 = vcombine.high %v9173_v56, %v9173_v56 }
 0x209   :  { %v554_v5 = vcombine.high %v552_v18, %v552_v18  ;;  %v9189_v51 = vrot.slane %v552_v18, %v9162_v57  ;;  %v9192_v38 = vrot.slane %v553_v9, %v9162_v57  ;;  %v7498_v45 = vpop.f32.mrb[8].mxu0  ;;  %v1120_v26 = vcombine.high %v1112_v29, %v1112_v29 }
 0x20a   :  { %v9196_v50 = vrot.slane %v1023_v52, %v9162_v57  ;;  %v1053_v14 = vcombine.high %v9181_v60, %v9181_v60  ;;  %v1054_v41 = vcombine.high %v9184_v36, %v9184_v36  ;;  %v506_v18 = vpop.f32.mrb[9].mxu0  ;;  %v9207_v19 = vrot.slane %v1052_v39, %v9168_v43 }
 0x20b   :  { %v9210_v47 = vrot.slane %v554_v5, %v9162_v57  ;;  %v583_v52 = vcombine.high %v9178_v2, %v9178_v2  ;;  %v7499_v6 = vpop.f32.mrb[10].mxu0  ;;  %v584_v37 = vcombine.high %v9189_v51, %v9189_v51  ;;  %v585_v49 = vcombine.high %v9192_v38, %v9192_v38 }
 0x20c   :  { %v1055_v22 = vcombine.high %v9196_v50, %v9196_v50  ;;  %v9217_v27 = vrot.slane %v1054_v41, %v9168_v43  ;;  %v9223_v9 = vpop.f32.mrb[11].mxu0  ;;  %v9226_v5 = vrot.slane %v1053_v14, %v9168_v43  ;;  %v1119_v39 = vrot.slane %v1105_v55, %v9162_v57 }
 0x20d   :  { %v586_v41 = vcombine.high %v9210_v47, %v9210_v47  ;;  %v9242_v14 = vrot.slane %v583_v52, %v9168_v43  ;;  %v9245_v62 = vrot.slane %v585_v49, %v9168_v43  ;;  %v9256_v40 = vrot.slane %v1112_v29, %v9162_v57 }
 0x20e   :  { %v9235_v23 = vrot.slane %v1055_v22, %v9168_v43  ;;  %v9252_v22 = vrot.slane %v584_v37, %v9168_v43  ;;  %v636_v52 = vcombine.high %v494_v53, %v494_v53  ;;  %v643_v49 = vrot.slane %v494_v53, %v9162_v57 }
 0x20f   :  { %v618_v44 = vrot.slane %v586_v41, %v9168_v43  ;;  %v515_v32 = vadd.f32 %v7498_v45, %v8510_v0  ;;  %v507_v33 = vadd.f32 %v506_v18, %v8496_v61  ;;  %v1121_v10 = vcombine.high %v1119_v39, %v1119_v39 }
 0x210   :  { %v1135_v37 = vrot.slane %v1119_v39, %v9162_v57  ;;  %v1142_v55 = vrot.slane %v1120_v26, %v9162_v57  ;;  %v1150_v29 = vcombine.high %v9256_v40, %v9256_v40  ;;  %v650_v41 = vrot.slane %v636_v52, %v9162_v57 }
 0x211   :  { %v9262_v42 = vpop.f32.mrb[12].mxu0  ;;  %v651_v11 = vcombine.high %v643_v49, %v643_v49  ;;  %v9272_v53 = vrot.slane %v643_v49, %v9162_v57  ;;  %v518_v61 = vadd.f32 %v7499_v6, %v8508_v63  ;;  %v1149_v45 = vrot.slane %v1121_v10, %v9162_v57 }
 0x212   :  { %v9268_v58 = vpop.f32.mrb[13].mxu0  ;;  %v1151_v18 = vcombine.high %v1135_v37, %v1135_v37  ;;  %v1152_v39 = vcombine.high %v1142_v55, %v1142_v55  ;;  %v1157_v26 = vrot.slane %v9256_v40, %v9168_v43  ;;  %v1161_v34 = vrot.slane %v1142_v55, %v9168_v43 }
 0x213   :  { %12050 = vst [vmem:[#allocation109_spill] sm:$0xff] %v9268_v58  ;;  %v9275_v0 = vpop.f32.mrb[14].mxu0  ;;  %v1165_v52 = vrot.slane %v1150_v29, %v9168_v43  ;;  %v652_v35 = vcombine.high %v650_v41, %v650_v41  ;;  %v9285_v49 = vrot.slane %v650_v41, %v9162_v57  ;;  %v1153_v63 = vcombine.high %v1149_v45, %v1149_v45 }
 0x214   :  { %12051 = vst [vmem:[#allocation110_spill] sm:$0xff] %v9275_v0  ;;  %v9280_v28 = vpop.f32.mrb[15].mxu0  ;;  %v1169_v6 = vrot.slane %v1152_v39, %v9168_v43  ;;  %v1173_v10 = vrot.slane %v1135_v37, %v9168_v43  ;;  %v1177_v24 = vrot.slane %v1149_v45, %v9168_v43  ;;  %v9291_v25 = vrot.slane %v651_v11, %v9162_v57 }
 0x215   :  { %12052 = vst [vmem:[#allocation111_spill] sm:$0xff] %v9280_v28  ;;  %v9294_v40 = vrot.slane %v652_v35, %v9162_v57  ;;  %v681_v55 = vcombine.high %v9272_v53, %v9272_v53  ;;  %v682_v29 = vcombine.high %v9285_v49, %v9285_v49  ;;  %v1181_v41 = vrot.slane %v1151_v18, %v9168_v43 }
 0x216   :  { %v1185_v39 = vrot.slane %v1153_v63, %v9168_v43  ;;  %v12053_v11 = vrot.slane %v9173_v56, %v9168_v43  ;;  %v683_v35 = vcombine.high %v9291_v25, %v9291_v25  ;;  %v1098_v31 = vmul.f32 %v9207_v19, %v515_v32 }
 0x217   :  { %v684_v57 = vcombine.high %v9294_v40, %v9294_v40  ;;  %v9317_v63 = vrot.slane %v681_v55, %v9168_v43  ;;  %v9329_v30 = vrot.slane %v682_v29, %v9168_v43  ;;  %v1099_v18 = vmul.f32 %v9217_v27, %v515_v32 }
 0x218   :  { %v1096_v45 = vmul.f32 %v12053_v11, %v515_v32  ;;  %v12054_v11 = vrot.slane %v9184_v36, %v9168_v43  ;;  %v9326_v20 = vrot.slane %v683_v35, %v9168_v43  ;;  %v12055_v55 = vrot.slane %v9181_v60, %v9168_v43 }
 0x219   :  { %v12056_v56 = vrot.slane %v9196_v50, %v9168_v43  ;;  %v1102_v36 = vmul.f32 %v9226_v5, %v515_v32  ;;  %v1103_v19 = vmul.f32 %v9235_v23, %v515_v32  ;;  %v12057_v35 = vrot.slane %v9178_v2, %v9168_v43 }
 0x21a   :  { %v1097_v37 = vmul.f32 %v12054_v11, %v515_v32  ;;  %v1100_v21 = vmul.f32 %v12055_v55, %v515_v32  ;;  %v12058_v27 = vrot.slane %v9192_v38, %v9168_v43  ;;  %v9351_v60 = vmul.f32 %v9242_v14, %v507_v33 }
 0x21b   :  { %v1101_v46 = vmul.f32 %v12056_v56, %v515_v32  ;;  %v9343_v11 = vmul.f32 %v12057_v35, %v507_v33  ;;  %v9354_v50 = vmul.f32 %v9245_v62, %v507_v33  ;;  %v12059_v5 = vrot.slane %v9189_v51, %v9168_v43 }
 0x21c   :  { %v9348_v29 = vmul.f32 %v12058_v27, %v507_v33  ;;  %v12060_v23 = vrot.slane %v9210_v47, %v9168_v43  ;;  %v9367_v38 = vmul.f32 %v9252_v22, %v507_v33  ;;  %v9369_v56 = vmul.f32 %v618_v44, %v507_v33 }
 0x21d   :  { %v9359_v32 = vmul.f32 %v12059_v5, %v507_v33  ;;  %v1194_v14 = vmul.f32 %v1157_v26, %v518_v61  ;;  %v1195_v55 = vmul.f32 %v1161_v34, %v518_v61  ;;  %v1196_v35 = vmul.f32 %v1165_v52, %v518_v61 }
 0x21e   :  { %v9364_v2 = vmul.f32 %v12060_v23, %v507_v33  ;;  %v1197_v62 = vmul.f32 %v1169_v6, %v518_v61  ;;  %v1198_v27 = vmul.f32 %v1173_v10, %v518_v61  ;;  %v1199_v54 = vmul.f32 %v1177_v24, %v518_v61 }
 0x21f   :  { %v1200_v1 = vmul.f32 %v1181_v41, %v518_v61  ;;  %v1201_v51 = vmul.f32 %v1185_v39, %v518_v61  ;;  %v1202_v5 = vadd.f32 %v1194_v14, %v1096_v45  ;;  %v1203_v16 = vadd.f32 %v1195_v55, %v1097_v37 }
 0x220   :  { %v1204_v15 = vadd.f32 %v1196_v35, %v1098_v31  ;;  %v1205_v12 = vadd.f32 %v1197_v62, %v1099_v18  ;;  %v1206_v47 = vadd.f32 %v1198_v27, %v1100_v21  ;;  %v1207_v23 = vadd.f32 %v1199_v54, %v1101_v46 }
 0x221   :  { %v1208_v17 = vadd.f32 %v1200_v1, %v1102_v36  ;;  %v1209_v13 = vadd.f32 %v1201_v51, %v1103_v19  ;;  %v9373_v44 = vsel %vm319_vm3, %v1202_v5, -1e+09  ;;  %v9376_v34 = vrot.slane %v684_v57, %v9168_v43 }
 0x222   :  { %v9380_v24 = vsel %vm319_vm3, %v1203_v16, -1e+09  ;;  %v9384_v33 = vsel %vm319_vm3, %v1204_v15, -1e+09  ;;  %v9388_v21 = vsel %vm319_vm3, %v1205_v12, -1e+09  ;;  %v9404_v15 = vadd.f32 %v9223_v9, %v8494_v59 }
 0x223   :  { %v9392_v31 = vsel %vm319_vm3, %v1206_v47, -1e+09  ;;  %v9396_v1 = vsel %vm319_vm3, %v1207_v23, -1e+09  ;;  %v9400_v16 = vsel %vm319_vm3, %v1208_v17, -1e+09 }
 0x224   :  { %v9408_v12 = vsel %vm319_vm3, %v1209_v13, -1e+09  ;;  %v1218_v46 = vrot.slane %v9373_v44, 4  ;;  %v1224_v54 = vrot.slane %v9380_v24, 4  ;;  %v1230_v57 = vrot.slane %v9384_v33, 4 }
 0x225   :  { %v1236_v22 = vrot.slane %v9388_v21, 4  ;;  %v1242_v61 = vrot.slane %v9392_v31, 4  ;;  %v1248_v17 = vrot.slane %v9396_v1, 4  ;;  %v1254_v26 = vrot.slane %v9400_v16, 4 }
 0x226   :  { %v1219_v59 = vmax.f32 %v9373_v44, %v1218_v46  ;;  %v1225_v9 = vmax.f32 %v9380_v24, %v1224_v54  ;;  %v1231_v13 = vmax.f32 %v9384_v33, %v1230_v57  ;;  %v1260_v52 = vrot.slane %v9408_v12, 4 }
 0x227   :  { %v1237_v6 = vmax.f32 %v9388_v21, %v1236_v22  ;;  %v1243_v10 = vmax.f32 %v9392_v31, %v1242_v61  ;;  %v1249_v41 = vmax.f32 %v9396_v1, %v1248_v17  ;;  %v1255_v39 = vmax.f32 %v9400_v16, %v1254_v26 }
 0x228   :  { %v1220_v37 = vrot.slane %v1219_v59, 2  ;;  %v1226_v45 = vrot.slane %v1225_v9, 2  ;;  %v1232_v18 = vrot.slane %v1231_v13, 2  ;;  %v1261_v36 = vmax.f32 %v9408_v12, %v1260_v52 }
 0x229   :  { %v1238_v19 = vrot.slane %v1237_v6, 2  ;;  %v1244_v14 = vrot.slane %v1243_v10, 2  ;;  %v1250_v55 = vrot.slane %v1249_v41, 2  ;;  %v1256_v35 = vrot.slane %v1255_v39, 2 }
 0x22a   :  { %v1221_v62 = vmax.f32 %v1219_v59, %v1220_v37  ;;  %v1227_v27 = vmax.f32 %v1225_v9, %v1226_v45  ;;  %v1233_v51 = vmax.f32 %v1231_v13, %v1232_v18  ;;  %v1262_v5 = vrot.slane %v1261_v36, 2 }
 0x22b   :  { %v1239_v47 = vmax.f32 %v1237_v6, %v1238_v19  ;;  %v1245_v23 = vmax.f32 %v1243_v10, %v1244_v14  ;;  %v1251_v46 = vmax.f32 %v1249_v41, %v1250_v55  ;;  %v1257_v54 = vmax.f32 %v1255_v39, %v1256_v35 }
 0x22c   :  { %v1222_v57 = vrot.slane %v1221_v62, 1  ;;  %v1228_v22 = vrot.slane %v1227_v27, 1  ;;  %v1234_v61 = vrot.slane %v1233_v51, 1  ;;  %v1263_v17 = vmax.f32 %v1261_v36, %v1262_v5 }
 0x22d   :  { %v1240_v26 = vrot.slane %v1239_v47, 1  ;;  %v1246_v28 = vrot.slane %v1245_v23, 1  ;;  %v1252_v3 = vrot.slane %v1251_v46, 1  ;;  %v1258_v52 = vrot.slane %v1257_v54, 1 }
 0x22e   :  { %v1223_v0 = vmax.f32 %v1221_v62, %v1222_v57  ;;  %v1229_v7 = vmax.f32 %v1227_v27, %v1228_v22  ;;  %v1235_v58 = vmax.f32 %v1233_v51, %v1234_v61  ;;  %v1264_v4 = vrot.slane %v1263_v17, 1 }
 0x22f   :  { %v1241_v59 = vmax.f32 %v1239_v47, %v1240_v26  ;;  %v1247_v9 = vmax.f32 %v1245_v23, %v1246_v28  ;;  %v1253_v13 = vmax.f32 %v1251_v46, %v1252_v3  ;;  %v1259_v37 = vmax.f32 %v1257_v54, %v1258_v52  ;;  %v7724_v46 = vld [vmem:[%s11895_s6] sm:$0xff]  }
 0x230   :  { %v1265_v6 = vmax.f32 %v1263_v17, %v1264_v4  ;;  %v1266_v10 = vsub.f32 %v9373_v44, %v1223_v0  ;;  %v1267_v41 = vsub.f32 %v9380_v24, %v1229_v7  ;;  %v1268_v39 = vsub.f32 %v9384_v33, %v1235_v58  ;;  %7508 = vmatprep.mubr.msk.bf16.mxu1 %vm117_vm0, %v7724_v46 }
 0x231   :  { %v1269_v45 = vsub.f32 %v9388_v21, %v1241_v59  ;;  %v1270_v18 = vsub.f32 %v9392_v31, %v1247_v9  ;;  %v1271_v36 = vsub.f32 %v9396_v1, %v1253_v13  ;;  %v1272_v19 = vsub.f32 %v9400_v16, %v1259_v37 }
 0x232   :  { %v1273_v14 = vsub.f32 %v9408_v12, %v1265_v6  ;;  %v1274_v28 = vmul.f32 1.442695, %v1266_v10  ;;  %v1276_v3 = vmul.f32 1.442695, %v1267_v41  ;;  %v1278_v55 = vmul.f32 1.442695, %v1268_v39 }
 0x233   :  { %v1280_v4 = vmul.f32 1.442695, %v1269_v45  ;;  %v1282_v35 = vmul.f32 1.442695, %v1270_v18  ;;  %v1284_v0 = vmul.f32 1.442695, %v1271_v36  ;;  %v12061_v7 = vrot.slane %v9272_v53, %v9168_v43 }
 0x234   :  { %7808 = vpow2.f32 %v1274_v28  ;;  %v1286_v44 = vmul.f32 1.442695, %v1272_v19  ;;  %v1288_v24 = vmul.f32 1.442695, %v1273_v14  ;;  %v12062_v33 = vrot.slane %v9291_v25, %v9168_v43 }
 0x235   :  { %v725_v58 = vmul.f32 %v12061_v7, %v9404_v15  ;;  %7810 = vpow2.f32 %v1276_v3  ;;  %v727_v31 = vmul.f32 %v9317_v63, %v9404_v15  ;;  %v728_v1 = vmul.f32 %v9326_v20, %v9404_v15 }
 0x236   :  { %v726_v21 = vmul.f32 %v12062_v33, %v9404_v15  ;;  %v12063_v53 = vrot.slane %v9285_v49, %v9168_v43  ;;  %7812 = vpow2.f32 %v1278_v55  ;;  %v12064_v12 = vrot.slane %v9294_v40, %v9168_v43 }
 0x237   :  { %v731_v25 = vmul.f32 %v9329_v30, %v9404_v15  ;;  %v732_v63 = vmul.f32 %v9376_v34, %v9404_v15  ;;  %7814 = vpow2.f32 %v1280_v4  ;;  %v733_v20 = vadd.f32 %v725_v58, %v9343_v11 }
 0x238   :  { %v729_v16 = vmul.f32 %v12063_v53, %v9404_v15  ;;  %v730_v62 = vmul.f32 %v12064_v12, %v9404_v15  ;;  %v734_v27 = vadd.f32 %v726_v21, %v9348_v29  ;;  %v735_v49 = vadd.f32 %v727_v31, %v9351_v60 }
 0x239   :  { %7816 = vpow2.f32 %v1282_v35  ;;  %v736_v51 = vadd.f32 %v728_v1, %v9354_v50  ;;  %v739_v30 = vadd.f32 %v731_v25, %v9367_v38  ;;  %v740_v47 = vadd.f32 %v732_v63, %v9369_v56 }
 0x23a   :  { %v737_v5 = vadd.f32 %v729_v16, %v9359_v32  ;;  %v738_v40 = vadd.f32 %v730_v62, %v9364_v2  ;;  %7818 = vpow2.f32 %v1284_v0  ;;  %v9468_v34 = vsel %vm319_vm3, %v733_v20, -1e+09 }
 0x23b   :  { %7820 = vpow2.f32 %v1286_v44  ;;  %v9472_v11 = vsel %vm319_vm3, %v734_v27, -1e+09  ;;  %v9476_v29 = vsel %vm319_vm3, %v735_v49, -1e+09  ;;  %v9480_v60 = vsel %vm319_vm3, %v736_v51, -1e+09 }
 0x23c   :  { %7822 = vpow2.f32 %v1288_v24  ;;  %v9484_v50 = vsel %vm319_vm3, %v737_v5, -1e+09  ;;  %v9488_v32 = vsel %vm319_vm3, %v738_v40, -1e+09  ;;  %v9492_v2 = vsel %vm319_vm3, %v739_v30, -1e+09 }
 0x23d   :  { %v9496_v38 = vsel %vm319_vm3, %v740_v47, -1e+09  ;;  %v750_v56 = vrot.slane %v9468_v34, 4  ;;  %v756_v15 = vrot.slane %v9472_v11, 4  ;;  %v762_v23 = vrot.slane %v9476_v29, 4 }
 0x23e   :  { %v768_v54 = vrot.slane %v9480_v60, 4  ;;  %v774_v57 = vrot.slane %v9484_v50, 4  ;;  %v780_v22 = vrot.slane %v9488_v32, 4  ;;  %v786_v61 = vrot.slane %v9492_v2, 4  ;;  %v9508_v17 = vpop.eup %7808 }
 0x23f   :  { %v751_v26 = vmax.f32 %v9468_v34, %v750_v56  ;;  %v757_v52 = vmax.f32 %v9472_v11, %v756_v15  ;;  %v763_v59 = vmax.f32 %v9476_v29, %v762_v23  ;;  %v792_v9 = vrot.slane %v9496_v38, 4  ;;  %v9515_v13 = vpop.eup %7810 }
 0x240   :  { %v769_v37 = vmax.f32 %v9480_v60, %v768_v54  ;;  %v775_v6 = vmax.f32 %v9484_v50, %v774_v57  ;;  %v781_v10 = vmax.f32 %v9488_v32, %v780_v22  ;;  %v787_v41 = vmax.f32 %v9492_v2, %v786_v61  ;;  %v9521_v39 = vpop.eup %7812 }
 0x241   :  { %v752_v45 = vrot.slane %v751_v26, 2  ;;  %v758_v18 = vrot.slane %v757_v52, 2  ;;  %v764_v36 = vrot.slane %v763_v59, 2  ;;  %v793_v19 = vmax.f32 %v9496_v38, %v792_v9  ;;  %v9524_v14 = vpop.eup %7814 }
 0x242   :  { %v770_v28 = vrot.slane %v769_v37, 2  ;;  %v776_v3 = vrot.slane %v775_v6, 2  ;;  %v782_v55 = vrot.slane %v781_v10, 2  ;;  %v788_v4 = vrot.slane %v787_v41, 2 }
 0x243   :  { %v9526_v35 = vpop.eup %7816  ;;  %v753_v0 = vmax.f32 %v751_v26, %v752_v45  ;;  %v759_v7 = vmax.f32 %v757_v52, %v758_v18  ;;  %v765_v58 = vmax.f32 %v763_v59, %v764_v36  ;;  %v794_v44 = vrot.slane %v793_v19, 2  ;;  %v12066_v18 = vld [vmem:[#allocation109_spill] sm:$0xff]  ;;  %v12068_v36 = vld [vmem:[#allocation110_spill] sm:$0xff] }
 0x244   :  { %v9528_v24 = vpop.eup %7818  ;;  %v771_v33 = vmax.f32 %v769_v37, %v770_v28  ;;  %v777_v21 = vmax.f32 %v775_v6, %v776_v3  ;;  %v783_v31 = vmax.f32 %v781_v10, %v782_v55  ;;  %v789_v1 = vmax.f32 %v787_v41, %v788_v4  ;;  %v12069_v28 = vld [vmem:[#allocation5_spill] sm:$0xff]  ;;  %v12070_v3 = vld [vmem:[#allocation111_spill] sm:$0xff] }
 0x245   :  { %v9530_v53 = vpop.eup %7820  ;;  %v754_v16 = vrot.slane %v753_v0, 1  ;;  %v760_v12 = vrot.slane %v759_v7, 1  ;;  %v766_v62 = vrot.slane %v765_v58, 1  ;;  %v795_v25 = vmax.f32 %v793_v19, %v794_v44 }
 0x246   :  { %v9532_v63 = vpop.eup %7822  ;;  %v772_v20 = vrot.slane %v771_v33, 1  ;;  %v778_v27 = vrot.slane %v777_v21, 1  ;;  %v784_v49 = vrot.slane %v783_v31, 1  ;;  %v790_v51 = vrot.slane %v789_v1, 1 }
 0x247   :  { %v755_v5 = vmax.f32 %v753_v0, %v754_v16  ;;  %v761_v40 = vmax.f32 %v759_v7, %v760_v12  ;;  %v767_v30 = vmax.f32 %v765_v58, %v766_v62  ;;  %v796_v47 = vrot.slane %v795_v25, 1 }
 0x248   :  { %v773_v56 = vmax.f32 %v771_v33, %v772_v20  ;;  %v779_v15 = vmax.f32 %v777_v21, %v778_v27  ;;  %v785_v23 = vmax.f32 %v783_v31, %v784_v49  ;;  %v791_v46 = vmax.f32 %v789_v1, %v790_v51 }
 0x249   :  { %v797_v54 = vmax.f32 %v795_v25, %v796_v47  ;;  %v798_v57 = vsub.f32 %v9468_v34, %v755_v5  ;;  %v799_v22 = vsub.f32 %v9472_v11, %v761_v40  ;;  %v800_v61 = vsub.f32 %v9476_v29, %v767_v30 }
 0x24a   :  { %v801_v26 = vsub.f32 %v9480_v60, %v773_v56  ;;  %v802_v52 = vsub.f32 %v9484_v50, %v779_v15  ;;  %v803_v59 = vsub.f32 %v9488_v32, %v785_v23  ;;  %v804_v9 = vsub.f32 %v9492_v2, %v791_v46  ;;  %v12065_v32 = vld [vmem:[#allocation6_spill] sm:$0xff] }
 0x24b   :  { %v805_v37 = vsub.f32 %v9496_v38, %v797_v54  ;;  %v806_v6 = vmul.f32 1.442695, %v798_v57  ;;  %v808_v10 = vmul.f32 1.442695, %v799_v22  ;;  %v810_v41 = vmul.f32 1.442695, %v800_v61 }
 0x24c   :  { %v812_v45 = vmul.f32 1.442695, %v801_v26  ;;  %v814_v34 = vmul.f32 1.442695, %v802_v52  ;;  %v816_v11 = vmul.f32 1.442695, %v803_v59  ;;  %v9544_v29 = vadd.f32 %v9262_v42, %v8534_v8 }
 0x24d   :  { %7824 = vpow2.f32 %v806_v6  ;;  %v818_v60 = vmul.f32 1.442695, %v804_v9  ;;  %v820_v50 = vmul.f32 1.442695, %v805_v37  ;;  %v9548_v2 = vadd.f32 %v12066_v18, %v12065_v32  ;;  %v12067_v38 = vld [vmem:[#allocation7_spill] sm:$0xff] }
 0x24e   :  { %7826 = vpow2.f32 %v808_v10  ;;  %v9552_v19 = vadd.f32 %v12068_v36, %v12067_v38  ;;  %v9556_v55 = vadd.f32 %v12070_v3, %v12069_v28  ;;  %v1290_v4 = vrot.slane %v9508_v17, 4 }
 0x24f   :  { %7828 = vpow2.f32 %v810_v41  ;;  %v1296_v8 = vrot.slane %v9515_v13, 4  ;;  %v1302_v42 = vrot.slane %v9521_v39, 4  ;;  %v1308_v0 = vrot.slane %v9524_v14, 4 }
 0x250   :  { %7830 = vpow2.f32 %v812_v45  ;;  %v1291_v7 = vadd.f32 %v9508_v17, %v1290_v4  ;;  %v1314_v58 = vrot.slane %v9526_v35, 4  ;;  %v1320_v44 = vrot.slane %v9528_v24, 4 }
 0x251   :  { %7832 = vpow2.f32 %v814_v34  ;;  %v1297_v33 = vadd.f32 %v9515_v13, %v1296_v8  ;;  %v1303_v21 = vadd.f32 %v9521_v39, %v1302_v42  ;;  %v1309_v31 = vadd.f32 %v9524_v14, %v1308_v0 }
 0x252   :  { %7834 = vpow2.f32 %v816_v11  ;;  %v1292_v1 = vrot.slane %v1291_v7, 2  ;;  %v9569_v16 = vadd.f32 %v9526_v35, %v1314_v58  ;;  %v9572_v12 = vadd.f32 %v9528_v24, %v1320_v44 }
 0x253   :  { %7836 = vpow2.f32 %v818_v60  ;;  %v1298_v62 = vrot.slane %v1297_v33, 2  ;;  %v1304_v25 = vrot.slane %v1303_v21, 2  ;;  %v1310_v20 = vrot.slane %v1309_v31, 2 }
 0x254   :  { %7838 = vpow2.f32 %v820_v50  ;;  %v1326_v27 = vrot.slane %v9530_v53, 4  ;;  %v9575_v49 = vadd.f32 %v1292_v1, %v1291_v7 }
 0x255   :  { %v9580_v47 = vadd.f32 %v1298_v62, %v1297_v33  ;;  %v9582_v56 = vadd.f32 %v1304_v25, %v1303_v21  ;;  %v9584_v15 = vadd.f32 %v1310_v20, %v1309_v31 }
 0x256   :  { %v9587_v23 = vadd.f32 %v9530_v53, %v1326_v27 }
 0x257   :  { %v7825_v30 = vpop.eup %7824 }
 0x258   :  { %v7827_v46 = vpop.eup %7826  ;;  %v822_v54 = vrot.slane %v7825_v30, 4  ;;  %v9590_v57 = vmul.f32 %v7825_v30, %v9548_v2  ;;  %v9593_v22 = vmul.f32 %v7825_v30, %v9556_v55 }
 0x259   :  { %v9596_v26 = vpop.eup %7828  ;;  %v828_v52 = vrot.slane %v7827_v46, 4  ;;  %v9599_v59 = vmul.f32 %v7827_v46, %v9548_v2  ;;  %v9602_v9 = vmul.f32 %v7827_v46, %v9556_v55 }
 0x25a   :  { %v9605_v6 = vpop.eup %7830  ;;  %v823_v10 = vadd.f32 %v7825_v30, %v822_v54  ;;  %v834_v41 = vrot.slane %v9596_v26, 4  ;;  %v9610_v45 = vmul.f32 %v9596_v26, %v9548_v2  ;;  %v886_v34 = vrot.slane %v9590_v57, 4 }
 0x25b   :  { %v9613_v11 = vpop.eup %7832  ;;  %v829_v60 = vadd.f32 %v7827_v46, %v828_v52  ;;  %v840_v50 = vrot.slane %v9605_v6, 4  ;;  %v9618_v32 = vmul.f32 %v9605_v6, %v9548_v2  ;;  %v892_v18 = vrot.slane %v9599_v59, 4 }
 0x25c   :  { %v9621_v38 = vpop.eup %7834  ;;  %v824_v36 = vrot.slane %v823_v10, 2  ;;  %v835_v28 = vadd.f32 %v9596_v26, %v834_v41  ;;  %v846_v3 = vrot.slane %v9613_v11, 4  ;;  %v9627_v4 = vmul.f32 %v9613_v11, %v9548_v2 }
 0x25d   :  { %v9629_v8 = vpop.eup %7836  ;;  %v830_v42 = vrot.slane %v829_v60, 2  ;;  %v841_v0 = vadd.f32 %v9605_v6, %v840_v50  ;;  %v852_v7 = vrot.slane %v9621_v38, 4  ;;  %v9635_v58 = vmul.f32 %v9621_v38, %v9548_v2 }
 0x25e   :  { %v9637_v44 = vpop.eup %7838  ;;  %v825_v33 = vadd.f32 %v824_v36, %v823_v10  ;;  %v836_v21 = vrot.slane %v835_v28, 2  ;;  %v847_v31 = vadd.f32 %v9613_v11, %v846_v3  ;;  %v858_v1 = vrot.slane %v9629_v8, 4 }
 0x25f   :  { %v831_v62 = vadd.f32 %v830_v42, %v829_v60  ;;  %v842_v25 = vrot.slane %v841_v0, 2  ;;  %v853_v20 = vadd.f32 %v9621_v38, %v852_v7  ;;  %v864_v27 = vrot.slane %v9637_v44, 4 }
 0x260   :  { %v826_v30 = vrot.slane %v825_v33, 1  ;;  %v837_v46 = vadd.f32 %v836_v21, %v835_v28  ;;  %v848_v54 = vrot.slane %v847_v31, 2  ;;  %v859_v52 = vadd.f32 %v9629_v8, %v858_v1 }
 0x261   :  { %v832_v41 = vrot.slane %v831_v62, 1  ;;  %v843_v50 = vadd.f32 %v842_v25, %v841_v0  ;;  %v854_v40 = vrot.slane %v853_v20, 2  ;;  %v865_v10 = vadd.f32 %v9637_v44, %v864_v27 }
 0x262   :  { %v827_v36 = vadd.f32 %v826_v30, %v825_v33  ;;  %v838_v3 = vrot.slane %v837_v46, 1  ;;  %v849_v5 = vadd.f32 %v848_v54, %v847_v31  ;;  %v860_v51 = vrot.slane %v859_v52, 2 }
 0x263   :  { %v833_v60 = vadd.f32 %v832_v41, %v831_v62  ;;  %v844_v42 = vrot.slane %v843_v50, 1  ;;  %v855_v37 = vadd.f32 %v854_v40, %v853_v20  ;;  %v866_v7 = vrot.slane %v865_v10, 2 }
 0x264   :  { %v839_v61 = vadd.f32 %v838_v3, %v837_v46  ;;  %v850_v48 = vrot.slane %v849_v5, 1  ;;  %v861_v43 = vadd.f32 %v860_v51, %v859_v52  ;;  %7840 = vrcp.f32 %v827_v36 }
 0x265   :  { %v845_v28 = vadd.f32 %v844_v42, %v843_v50  ;;  %v856_v21 = vrot.slane %v855_v37, 1  ;;  %v867_v1 = vadd.f32 %v866_v7, %v865_v10  ;;  %7842 = vrcp.f32 %v833_v60 }
 0x266   :  { %v851_v0 = vadd.f32 %v850_v48, %v849_v5  ;;  %v862_v25 = vrot.slane %v861_v43, 1  ;;  %7844 = vrcp.f32 %v839_v61  ;;  %v884_v33 = vmul.f32 %v9629_v8, %v9548_v2 }
 0x267   :  { %v857_v31 = vadd.f32 %v856_v21, %v855_v37  ;;  %v868_v27 = vrot.slane %v867_v1, 1  ;;  %7846 = vrcp.f32 %v845_v28  ;;  %v885_v40 = vmul.f32 %v9637_v44, %v9548_v2 }
 0x268   :  { %v863_v62 = vadd.f32 %v862_v25, %v861_v43  ;;  %7848 = vrcp.f32 %v851_v0  ;;  %v887_v51 = vadd.f32 %v886_v34, %v9590_v57  ;;  %v893_v20 = vadd.f32 %v892_v18, %v9599_v59 }
 0x269   :  { %v869_v30 = vadd.f32 %v868_v27, %v867_v1  ;;  %7850 = vrcp.f32 %v857_v31  ;;  %v898_v48 = vrot.slane %v9610_v45, 4  ;;  %v904_v5 = vrot.slane %v9618_v32, 4 }
 0x26a   :  { %7852 = vrcp.f32 %v863_v62  ;;  %v888_v61 = vrot.slane %v887_v51, 2  ;;  %v894_v37 = vrot.slane %v893_v20, 2  ;;  %v910_v46 = vrot.slane %v9627_v4, 4 }
 0x26b   :  { %7854 = vrcp.f32 %v869_v30  ;;  %v899_v2 = vadd.f32 %v898_v48, %v9610_v45  ;;  %v905_v43 = vadd.f32 %v904_v5, %v9618_v32  ;;  %v916_v57 = vrot.slane %v9635_v58, 4 }
 0x26c   :  { %v889_v34 = vadd.f32 %v888_v61, %v887_v51  ;;  %v895_v59 = vadd.f32 %v894_v37, %v893_v20  ;;  %v911_v18 = vadd.f32 %v910_v46, %v9627_v4  ;;  %v922_v54 = vrot.slane %v884_v33, 4 }
 0x26d   :  { %v900_v52 = vrot.slane %v899_v2, 2  ;;  %v906_v41 = vrot.slane %v905_v43, 2  ;;  %v917_v50 = vadd.f32 %v916_v57, %v9635_v58  ;;  %v928_v10 = vrot.slane %v885_v40, 4 }
 0x26e   :  { %v9659_v36 = vpop.eup %7840  ;;  %v890_v3 = vrot.slane %v889_v34, 1  ;;  %v896_v60 = vrot.slane %v895_v59, 1  ;;  %v912_v42 = vrot.slane %v911_v18, 2  ;;  %v923_v45 = vadd.f32 %v922_v54, %v884_v33 }
 0x26f   :  { %v9661_v7 = vpop.eup %7842  ;;  %v901_v32 = vadd.f32 %v900_v52, %v899_v2  ;;  %v907_v28 = vadd.f32 %v906_v41, %v905_v43  ;;  %v918_v21 = vrot.slane %v917_v50, 2  ;;  %v929_v1 = vadd.f32 %v928_v10, %v885_v40 }
 0x270   :  { %v9663_v0 = vpop.eup %7844  ;;  %v891_v4 = vadd.f32 %v890_v3, %v889_v34  ;;  %v897_v25 = vadd.f32 %v896_v60, %v895_v59  ;;  %v913_v31 = vadd.f32 %v912_v42, %v911_v18  ;;  %v924_v27 = vrot.slane %v923_v45, 2 }
 0x271   :  { %v9665_v58 = vpop.eup %7846  ;;  %v902_v62 = vrot.slane %v901_v32, 1  ;;  %v908_v51 = vrot.slane %v907_v28, 1  ;;  %v919_v20 = vadd.f32 %v918_v21, %v917_v50  ;;  %v930_v30 = vrot.slane %v929_v1, 2 }
 0x272   :  { %v9667_v48 = vpop.eup %7848  ;;  %v914_v33 = vrot.slane %v913_v31, 1  ;;  %v925_v5 = vadd.f32 %v924_v27, %v923_v45  ;;  %v9670_v61 = vmul.f32 %v9659_v36, %v891_v4  ;;  %v9673_v40 = vmul.f32 %v9661_v7, %v897_v25 }
 0x273   :  { %v9675_v37 = vpop.eup %7850  ;;  %v903_v46 = vadd.f32 %v902_v62, %v901_v32  ;;  %v909_v2 = vadd.f32 %v908_v51, %v907_v28  ;;  %v920_v43 = vrot.slane %v919_v20, 1  ;;  %v931_v57 = vadd.f32 %v930_v30, %v929_v1 }
 0x274   :  { %v9677_v34 = vpop.eup %7852  ;;  %v915_v59 = vadd.f32 %v914_v33, %v913_v31  ;;  %v926_v18 = vrot.slane %v925_v5, 1  ;;  %v944_v54 = vmul.f32 %v9596_v26, %v9556_v55  ;;  %v945_v52 = vmul.f32 %v9605_v6, %v9556_v55 }
 0x275   :  { %v9683_v41 = vpop.eup %7854  ;;  %v921_v50 = vadd.f32 %v920_v43, %v919_v20  ;;  %v932_v10 = vrot.slane %v931_v57, 1  ;;  %v9686_v3 = vmul.f32 %v9663_v0, %v903_v46  ;;  %v9689_v60 = vmul.f32 %v9665_v58, %v909_v2 }
 0x276   :  { %v927_v42 = vadd.f32 %v926_v18, %v925_v5  ;;  %v9692_v45 = vmul.f32 %v9667_v48, %v915_v59  ;;  %v946_v26 = vmul.f32 %v9613_v11, %v9556_v55  ;;  %v947_v6 = vmul.f32 %v9621_v38, %v9556_v55 }
 0x277   :  { %v933_v32 = vadd.f32 %v932_v10, %v931_v57  ;;  %v9699_v28 = vmul.f32 %v9675_v37, %v921_v50  ;;  %v948_v21 = vmul.f32 %v9629_v8, %v9556_v55  ;;  %v949_v1 = vmul.f32 %v9637_v44, %v9556_v55 }
 0x278   :  { %v9706_v4 = vmul.f32 %v9677_v34, %v927_v42  ;;  %v950_v25 = vrot.slane %v9593_v22, 4  ;;  %v956_v11 = vrot.slane %v9602_v9, 4  ;;  %v962_v31 = vrot.slane %v944_v54, 4 }
 0x279   :  { %v9711_v38 = vmul.f32 %v9683_v41, %v933_v32  ;;  %v968_v27 = vrot.slane %v945_v52, 4  ;;  %v974_v62 = vrot.slane %v946_v26, 4  ;;  %v980_v51 = vrot.slane %v947_v6, 4 }
 0x27a   :  { %v951_v20 = vadd.f32 %v950_v25, %v9593_v22  ;;  %v957_v8 = vadd.f32 %v956_v11, %v9602_v9  ;;  %v963_v30 = vadd.f32 %v962_v31, %v944_v54  ;;  %v986_v55 = vrot.slane %v948_v21, 4 }
 0x27b   :  { %v969_v44 = vadd.f32 %v968_v27, %v945_v52  ;;  %v975_v33 = vadd.f32 %v974_v62, %v946_v26  ;;  %v981_v5 = vadd.f32 %v980_v51, %v947_v6  ;;  %v992_v46 = vrot.slane %v949_v1, 4 }
 0x27c   :  { %v952_v2 = vrot.slane %v951_v20, 2  ;;  %v958_v43 = vrot.slane %v957_v8, 2  ;;  %v964_v57 = vrot.slane %v963_v30, 2  ;;  %v987_v59 = vadd.f32 %v986_v55, %v948_v21 }
 0x27d   :  { %v970_v18 = vrot.slane %v969_v44, 2  ;;  %v976_v50 = vrot.slane %v975_v33, 2  ;;  %v982_v10 = vrot.slane %v981_v5, 2  ;;  %v993_v42 = vadd.f32 %v992_v46, %v949_v1 }
 0x27e   :  { %v953_v22 = vadd.f32 %v952_v2, %v951_v20  ;;  %v959_v32 = vadd.f32 %v958_v43, %v957_v8  ;;  %v965_v9 = vadd.f32 %v964_v57, %v963_v30  ;;  %v988_v54 = vrot.slane %v987_v59, 2 }
 0x27f   :  { %v971_v52 = vadd.f32 %v970_v18, %v969_v44  ;;  %v977_v26 = vadd.f32 %v976_v50, %v975_v33  ;;  %v983_v6 = vadd.f32 %v982_v10, %v981_v5  ;;  %v994_v25 = vrot.slane %v993_v42, 2 }
 0x280   :  { %v954_v11 = vrot.slane %v953_v22, 1  ;;  %v960_v31 = vrot.slane %v959_v32, 1  ;;  %v966_v27 = vrot.slane %v965_v9, 1  ;;  %v989_v21 = vadd.f32 %v988_v54, %v987_v59 }
 0x281   :  { %v972_v62 = vrot.slane %v971_v52, 1  ;;  %v978_v51 = vrot.slane %v977_v26, 1  ;;  %v984_v55 = vrot.slane %v983_v6, 1  ;;  %v995_v1 = vadd.f32 %v994_v25, %v993_v42 }
 0x282   :  { %v955_v20 = vadd.f32 %v954_v11, %v953_v22  ;;  %v961_v8 = vadd.f32 %v960_v31, %v959_v32  ;;  %v967_v30 = vadd.f32 %v966_v27, %v965_v9  ;;  %v990_v46 = vrot.slane %v989_v21, 1 }
 0x283   :  { %v973_v2 = vadd.f32 %v972_v62, %v971_v52  ;;  %v979_v44 = vadd.f32 %v978_v51, %v977_v26  ;;  %v985_v33 = vadd.f32 %v984_v55, %v983_v6  ;;  %v996_v5 = vrot.slane %v995_v1, 1 }
 0x284   :  { %v991_v43 = vadd.f32 %v990_v46, %v989_v21  ;;  %v998_v57 = vmul.f32 %v9659_v36, %v955_v20  ;;  %v999_v18 = vmul.f32 %v9661_v7, %v961_v8  ;;  %v1000_v59 = vmul.f32 %v9663_v0, %v967_v30 }
 0x285   :  { %v997_v50 = vadd.f32 %v996_v5, %v995_v1  ;;  %v1001_v10 = vmul.f32 %v9665_v58, %v973_v2  ;;  %v1002_v42 = vmul.f32 %v9667_v48, %v979_v44  ;;  %v1003_v22 = vmul.f32 %v9675_v37, %v985_v33 }
 0x286   :  { %v1004_v32 = vmul.f32 %v9677_v34, %v991_v43  ;;  %v1483_v9 = vsel %vm1482_vm4, %v9673_v40, %v9670_v61  ;;  %v1505_v54 = vsel %vm1482_vm4, %v999_v18, %v998_v57  ;;  %v12071_v36 = vrot.slane %v9575_v49, 1 }
 0x287   :  { %v1005_v0 = vmul.f32 %v9683_v41, %v997_v50  ;;  %v1485_v58 = vsel %vm1484_vm5, %v9686_v3, %v1483_v9  ;;  %v1506_v48 = vsel %vm1484_vm5, %v1000_v59, %v1505_v54  ;;  %v12072_v37 = vrot.slane %v9580_v47, 1 }
 0x288   :  { %v1295_v7 = vadd.f32 %v12071_v36, %v9575_v49  ;;  %v1487_v61 = vsel %vm1486_vm6, %v9689_v60, %v1485_v58  ;;  %v1507_v40 = vsel %vm1486_vm6, %v1001_v10, %v1506_v48  ;;  %v1306_v52 = vrot.slane %v9582_v56, 1 }
 0x289   :  { %v1301_v34 = vadd.f32 %v12072_v37, %v9580_v47  ;;  %v1312_v49 = vrot.slane %v9584_v15, 1  ;;  %v1489_v41 = vsel %vm1488_vm7, %v9692_v45, %v1487_v61  ;;  %v1508_v3 = vsel %vm1488_vm7, %v1002_v42, %v1507_v40 }
 0x28a   :  { %v12073_v26 = vrot.slane %v9569_v16, 2  ;;  %v12074_v47 = vrot.slane %v9572_v12, 2  ;;  %v1491_v60 = vsel %vm1490_vm8, %v9699_v28, %v1489_v41  ;;  %v1509_v11 = vsel %vm1490_vm8, %v1003_v22, %v1508_v3 }
 0x28b   :  { %v1307_v31 = vadd.f32 %v1306_v52, %v9582_v56  ;;  %v1313_v27 = vadd.f32 %v1312_v49, %v9584_v15  ;;  %v1493_v45 = vsel %vm1492_vm9, %v9706_v4, %v1491_v60  ;;  %v1510_v21 = vsel %vm1492_vm9, %v1004_v32, %v1509_v11 }
 0x28c   :  { %v1317_v6 = vadd.f32 %v12073_v26, %v9569_v16  ;;  %v1323_v25 = vadd.f32 %v12074_v47, %v9572_v12  ;;  %v1495_v51 = vsel %vm1494_vm10, %v9711_v38, %v1493_v45  ;;  %v1511_v12 = vsel %vm1494_vm10, %v1005_v0, %v1510_v21 }
 0x28d   :  { %v1328_v28 = vrot.slane %v9587_v23, 2  ;;  %v12075_v55 = vrot.slane %v9532_v63, 4  ;;  %v1549_v1 = vpack.c.bf16 %v1511_v12, %v1495_v51  ;;  %7856 = vrcp.f32 %v1295_v7 }
 0x28e   :  { %v1318_v62 = vrot.slane %v1317_v6, 1  ;;  %v1324_v16 = vrot.slane %v1323_v25, 1  ;;  %7858 = vrcp.f32 %v1301_v34  ;;  %v1346_v30 = vmul.f32 %v9508_v17, %v9544_v29 }
 0x28f   :  { %v1333_v56 = vadd.f32 %v9532_v63, %v12075_v55  ;;  %v1329_v4 = vadd.f32 %v1328_v28, %v9587_v23  ;;  %7504 = vmatprep.subr.bf16.mxu1 %v1549_v1  ;;  %7860 = vrcp.f32 %v1307_v31  ;;  %v1347_v38 = vmul.f32 %v9515_v13, %v9544_v29 }
 0x290   :  { %v1319_v15 = vadd.f32 %v1318_v62, %v1317_v6  ;;  %v1325_v20 = vadd.f32 %v1324_v16, %v1323_v25  ;;  %v1348_v46 = vmul.f32 %v9521_v39, %v9544_v29  ;;  %v1349_v2 = vmul.f32 %v9524_v14, %v9544_v29  ;;  %7505 = vmatpush3.bf16.msra.mxu1 %v1549_v1 }
 0x291   :  { %v1334_v8 = vrot.slane %v1333_v56, 2  ;;  %v1330_v44 = vrot.slane %v1329_v4, 1  ;;  %7862 = vrcp.f32 %v1313_v27  ;;  %v1350_v23 = vmul.f32 %v9526_v35, %v9544_v29 }
 0x292   :  { %7864 = vrcp.f32 %v1319_v15  ;;  %v1351_v5 = vmul.f32 %v9528_v24, %v9544_v29  ;;  %v1352_v43 = vmul.f32 %v9530_v53, %v9544_v29  ;;  %v1353_v57 = vmul.f32 %v9532_v63, %v9544_v29 }
 0x293   :  { %v1335_v33 = vadd.f32 %v1334_v8, %v1333_v56  ;;  %v1331_v18 = vadd.f32 %v1330_v44, %v1329_v4  ;;  %7866 = vrcp.f32 %v1325_v20  ;;  %v1354_v50 = vrot.slane %v1346_v30, 4 }
 0x294   :  { %v1360_v10 = vrot.slane %v1347_v38, 4  ;;  %v1366_v42 = vrot.slane %v1348_v46, 4  ;;  %v1372_v22 = vrot.slane %v1349_v2, 4  ;;  %v1378_v32 = vrot.slane %v1350_v23, 4 }
 0x295   :  { %v1336_v59 = vrot.slane %v1335_v33, 1  ;;  %7868 = vrcp.f32 %v1331_v18  ;;  %v1355_v54 = vadd.f32 %v1354_v50, %v1346_v30  ;;  %v1384_v36 = vrot.slane %v1351_v5, 4 }
 0x296   :  { %v1361_v7 = vadd.f32 %v1360_v10, %v1347_v38  ;;  %v1367_v0 = vadd.f32 %v1366_v42, %v1348_v46  ;;  %v1373_v58 = vadd.f32 %v1372_v22, %v1349_v2  ;;  %v1379_v48 = vadd.f32 %v1378_v32, %v1350_v23 }
 0x297   :  { %v1337_v9 = vadd.f32 %v1336_v59, %v1335_v33  ;;  %v1356_v37 = vrot.slane %v1355_v54, 2  ;;  %v1385_v34 = vadd.f32 %v1384_v36, %v1351_v5  ;;  %v1390_v29 = vrot.slane %v1352_v43, 4  ;;  %v9782_v61 = vpop.eup %7856 }
 0x298   :  { %v1362_v40 = vrot.slane %v1361_v7, 2  ;;  %v1368_v52 = vrot.slane %v1367_v0, 2  ;;  %v1374_v49 = vrot.slane %v1373_v58, 2  ;;  %v1380_v41 = vrot.slane %v1379_v48, 2  ;;  %v9784_v3 = vpop.eup %7858 }
 0x299   :  { %7870 = vrcp.f32 %v1337_v9  ;;  %v1357_v26 = vadd.f32 %v1356_v37, %v1355_v54  ;;  %v1386_v6 = vrot.slane %v1385_v34, 2  ;;  %v1391_v47 = vadd.f32 %v1390_v29, %v1352_v43  ;;  %v9786_v60 = vpop.eup %7860 }
 0x29a   :  { %v1396_v25 = vrot.slane %v1353_v57, 4  ;;  %v1363_v11 = vadd.f32 %v1362_v40, %v1361_v7  ;;  %v1369_v31 = vadd.f32 %v1368_v52, %v1367_v0  ;;  %v1375_v27 = vadd.f32 %v1374_v49, %v1373_v58 }
 0x29b   :  { %v1381_v45 = vadd.f32 %v1380_v41, %v1379_v48  ;;  %v9788_v21 = vpop.eup %7862  ;;  %v1358_v62 = vrot.slane %v1357_v26, 1  ;;  %v1387_v16 = vadd.f32 %v1386_v6, %v1385_v34  ;;  %v1392_v51 = vrot.slane %v1391_v47, 2 }
 0x29c   :  { %v1397_v12 = vadd.f32 %v1396_v25, %v1353_v57  ;;  %v9790_v28 = vpop.eup %7864  ;;  %v1364_v55 = vrot.slane %v1363_v11, 1  ;;  %v1370_v56 = vrot.slane %v1369_v31, 1  ;;  %v1376_v1 = vrot.slane %v1375_v27, 1 }
 0x29d   :  { %v1382_v15 = vrot.slane %v1381_v45, 1  ;;  %v9792_v20 = vpop.eup %7866  ;;  %v1359_v4 = vadd.f32 %v1358_v62, %v1357_v26  ;;  %v1388_v8 = vrot.slane %v1387_v16, 1  ;;  %v1393_v30 = vadd.f32 %v1392_v51, %v1391_v47 }
 0x29e   :  { %v1398_v38 = vrot.slane %v1397_v12, 2  ;;  %v1365_v46 = vadd.f32 %v1364_v55, %v1363_v11  ;;  %v1371_v2 = vadd.f32 %v1370_v56, %v1369_v31  ;;  %v1377_v44 = vadd.f32 %v1376_v1, %v1375_v27 }
 0x29f   :  { %v1383_v33 = vadd.f32 %v1382_v15, %v1381_v45  ;;  %v9794_v23 = vpop.eup %7868  ;;  %v1389_v5 = vadd.f32 %v1388_v8, %v1387_v16  ;;  %v1394_v43 = vrot.slane %v1393_v30, 1  ;;  %v9797_v18 = vmul.f32 %v9782_v61, %v1359_v4 }
 0x2a0   :  { %v1399_v57 = vadd.f32 %v1398_v38, %v1397_v12  ;;  %v9800_v59 = vmul.f32 %v9784_v3, %v1365_v46  ;;  %v9803_v50 = vmul.f32 %v9786_v60, %v1371_v2  ;;  %v9806_v10 = vmul.f32 %v9788_v21, %v1377_v44 }
 0x2a1   :  { %v9809_v42 = vmul.f32 %v9790_v28, %v1383_v33  ;;  %v1395_v32 = vadd.f32 %v1394_v43, %v1393_v30  ;;  %v9814_v54 = vmul.f32 %v9792_v20, %v1389_v5  ;;  %v1410_v36 = vmul.f32 %v9508_v17, %v9552_v19 }
 0x2a2   :  { %v1400_v9 = vrot.slane %v1399_v57, 1  ;;  %v1411_v7 = vmul.f32 %v9515_v13, %v9552_v19  ;;  %v1412_v0 = vmul.f32 %v9521_v39, %v9552_v19  ;;  %v1413_v58 = vmul.f32 %v9524_v14, %v9552_v19 }
 0x2a3   :  { %v9811_v22 = vpop.eup %7870  ;;  %v1414_v48 = vmul.f32 %v9526_v35, %v9552_v19  ;;  %v9827_v34 = vmul.f32 %v9794_v23, %v1395_v32  ;;  %v1415_v29 = vmul.f32 %v9528_v24, %v9552_v19  ;;  %v1416_v17 = vmul.f32 %v9530_v53, %v9552_v19 }
 0x2a4   :  { %v1401_v37 = vadd.f32 %v1400_v9, %v1399_v57  ;;  %v1417_v13 = vmul.f32 %v9532_v63, %v9552_v19  ;;  %v1418_v39 = vrot.slane %v1410_v36, 4  ;;  %v1424_v40 = vrot.slane %v1411_v7, 4 }
 0x2a5   :  { %v1430_v52 = vrot.slane %v1412_v0, 4  ;;  %v1436_v35 = vrot.slane %v1413_v58, 4  ;;  %v1442_v49 = vrot.slane %v1414_v48, 4  ;;  %v1448_v41 = vrot.slane %v1415_v29, 4 }
 0x2a6   :  { %v9836_v14 = vmul.f32 %v9811_v22, %v1401_v37  ;;  %v1419_v26 = vadd.f32 %v1418_v39, %v1410_v36  ;;  %v1425_v6 = vadd.f32 %v1424_v40, %v1411_v7  ;;  %v1454_v25 = vrot.slane %v1416_v17, 4 }
 0x2a7   :  { %v1431_v47 = vadd.f32 %v1430_v52, %v1412_v0  ;;  %v1437_v24 = vadd.f32 %v1436_v35, %v1413_v58  ;;  %v1443_v11 = vadd.f32 %v1442_v49, %v1414_v48  ;;  %v1449_v31 = vadd.f32 %v1448_v41, %v1415_v29 }
 0x2a8   :  { %v1460_v53 = vrot.slane %v1417_v13, 4  ;;  %v1420_v27 = vrot.slane %v1419_v26, 2  ;;  %v1426_v45 = vrot.slane %v1425_v6, 2  ;;  %v1455_v19 = vadd.f32 %v1454_v25, %v1416_v17 }
 0x2a9   :  { %v1432_v63 = vrot.slane %v1431_v47, 2  ;;  %v1438_v62 = vrot.slane %v1437_v24, 2  ;;  %v1444_v16 = vrot.slane %v1443_v11, 2  ;;  %v1450_v51 = vrot.slane %v1449_v31, 2 }
 0x2aa   :  { %v1461_v12 = vadd.f32 %v1460_v53, %v1417_v13  ;;  %v1421_v55 = vadd.f32 %v1420_v27, %v1419_v26  ;;  %v1427_v56 = vadd.f32 %v1426_v45, %v1425_v6  ;;  %v1456_v15 = vrot.slane %v1455_v19, 2  ;;  %v12077_v45 = vld [vmem:[#allocation11_spill] sm:$0xff] }
 0x2ab   :  { %v1433_v1 = vadd.f32 %v1432_v63, %v1431_v47  ;;  %v1439_v4 = vadd.f32 %v1438_v62, %v1437_v24  ;;  %v1445_v8 = vadd.f32 %v1444_v16, %v1443_v11  ;;  %v1451_v30 = vadd.f32 %v1450_v51, %v1449_v31  ;;  %v12079_v16 = vld [vmem:[#allocation58_spill] sm:$0xff] }
 0x2ac   :  { %v1462_v38 = vrot.slane %v1461_v12, 2  ;;  %v1422_v46 = vrot.slane %v1421_v55, 1  ;;  %v1428_v2 = vrot.slane %v1427_v56, 1  ;;  %v1457_v33 = vadd.f32 %v1456_v15, %v1455_v19  ;;  %v12078_v19 = vld [vmem:[#allocation8_spill] sm:$0xff]  ;;  %v12082_v15 = vld [vmem:[#allocation61_spill] sm:$0xff] }
 0x2ad   :  { %v1434_v44 = vrot.slane %v1433_v1, 1  ;;  %v1440_v5 = vrot.slane %v1439_v4, 1  ;;  %v1446_v43 = vrot.slane %v1445_v8, 1  ;;  %v1452_v57 = vrot.slane %v1451_v30, 1 }
 0x2ae   :  { %v1463_v32 = vadd.f32 %v1462_v38, %v1461_v12  ;;  %v1423_v9 = vadd.f32 %v1422_v46, %v1421_v55  ;;  %v1429_v36 = vadd.f32 %v1428_v2, %v1427_v56  ;;  %v1458_v0 = vrot.slane %v1457_v33, 1  ;;  %v12080_v12 = vld [vmem:[#allocation10_spill] sm:$0xff]  ;;  %v12081_v56 = vld [vmem:[#allocation60_spill] sm:$0xff] }
 0x2af   :  { %v1435_v7 = vadd.f32 %v1434_v44, %v1433_v1  ;;  %v1441_v58 = vadd.f32 %v1440_v5, %v1439_v4  ;;  %v1447_v48 = vadd.f32 %v1446_v43, %v1445_v8  ;;  %v1453_v37 = vadd.f32 %v1452_v57, %v1451_v30  ;;  %v12083_v30 = vld [vmem:[#allocation59_spill] sm:$0xff] }
 0x2b0   :  { %v1464_v29 = vrot.slane %v1463_v32, 1  ;;  %v1459_v17 = vadd.f32 %v1458_v0, %v1457_v33  ;;  %v1466_v13 = vmul.f32 %v9782_v61, %v1423_v9  ;;  %v1467_v39 = vmul.f32 %v9784_v3, %v1429_v36 }
 0x2b1   :  { %v1468_v40 = vmul.f32 %v9786_v60, %v1435_v7  ;;  %v1469_v35 = vmul.f32 %v9788_v21, %v1441_v58  ;;  %v1470_v49 = vmul.f32 %v9790_v28, %v1447_v48  ;;  %v1471_v41 = vmul.f32 %v9792_v20, %v1453_v37 }
 0x2b2   :  { %v1465_v52 = vadd.f32 %v1464_v29, %v1463_v32  ;;  %v1472_v26 = vmul.f32 %v9794_v23, %v1459_v17  ;;  %v1521_v6 = vsel %vm1482_vm4, %v9800_v59, %v9797_v18  ;;  %v1537_v47 = vsel %vm1482_vm4, %v1467_v39, %v1466_v13 }
 0x2b3   :  { %v1522_v3 = vsel %vm1484_vm5, %v9803_v50, %v1521_v6  ;;  %v1538_v60 = vsel %vm1484_vm5, %v1468_v40, %v1537_v47  ;;  %v12086_v6 = vld [vmem:[#allocation17_spill] sm:$0xff] }
 0x2b4   :  { %v1473_v61 = vmul.f32 %v9811_v22, %v1465_v52  ;;  %v1523_v21 = vsel %vm1486_vm6, %v9806_v10, %v1522_v3  ;;  %v1539_v28 = vsel %vm1486_vm6, %v1469_v35, %v1538_v60  ;;  %v12084_v35 = vld [vmem:[#allocation13_spill] sm:$0xff]  ;;  %v12088_v60 = vld [vmem:[#allocation15_spill] sm:$0xff] }
 0x2b5   :  { %v1524_v20 = vsel %vm1488_vm7, %v9809_v42, %v1523_v21  ;;  %v1540_v23 = vsel %vm1488_vm7, %v1470_v49, %v1539_v28  ;;  %v7725_v42 = vld [vmem:[%s11895_s6 + $0x8] sm:$0xff]  }
 0x2b6   :  { %v1525_v18 = vsel %vm1490_vm8, %v9814_v54, %v1524_v20  ;;  %v1541_v59 = vsel %vm1490_vm8, %v1471_v41, %v1540_v23  ;;  %v7726_v54 = vld [vmem:[%s11899_s10] sm:$0xff]   ;;  %v12089_v28 = vld [vmem:[#allocation14_spill] sm:$0xff]  ;;  %v12090_v23 = vld [vmem:[#allocation19_spill] sm:$0xff] }
 0x2b7   :  { %v1526_v50 = vsel %vm1492_vm9, %v9827_v34, %v1525_v18  ;;  %v1542_v22 = vsel %vm1492_vm9, %v1472_v26, %v1541_v59  ;;  %v12085_v41 = vld [vmem:[#allocation12_spill] sm:$0xff]  ;;  %v12091_v59 = vld [vmem:[#allocation18_spill] sm:$0xff] }
 0x2b8   :  { %v1527_v10 = vsel %vm1494_vm10, %v9836_v14, %v1526_v50  ;;  %v1543_v25 = vsel %vm1494_vm10, %v1473_v61, %v1542_v22  ;;  %v12076_v14 = vld [vmem:[#allocation9_spill] sm:$0xff]  ;;  %v12087_v61 = vld [vmem:[#allocation16_spill] sm:$0xff] }
 0x2b9   :  { %v1550_v24 = vpack.c.bf16 %v1543_v25, %v1527_v10  ;;  %v7727_v25 = vld [vmem:[%s11899_s10 + $0x8] sm:$0xff]  }
 0x2bb   :  { %7506 = vmatprep.subr.bf16.mxu1 %v1550_v24 }
 0x2bc   :  { %7507 = vmatpush3.bf16.msra.mxu1 %v1550_v24  ;;  %v7728_v24 = vld [vmem:[%s11899_s10 + $0x10] sm:$0xff]  }
 0x2bf   :  { %7509 = vmatmul.mubr.msk.bf16.vlgmr.msra.gmra.mrb[4].mxu1 %vm117_vm0, %v7725_v42  ;;  %v7729_v42 = vld [vmem:[%s11899_s10 + $0x18] sm:$0xff]  }
 0x2c0   :  { %7516 = vmatprep.mubr.msk.bf16.mxu1 %vm117_vm0, %v7726_v54  ;;  %v7730_v54 = vld [vmem:[%s11899_s10 + $0x20] sm:$0xff]  }
 0x392   :  { %v7510_v34 = vpop.f32.mrb[4].mxu1 }
 0x393   :  { %v1625_v11 = vpop.f32.mrb[5].mxu1  ;;  %v1634_v63 = vadd.f32 %v7510_v34, %v12077_v45  ;;  %v7731_v34 = vld [vmem:[%s11899_s10 + $0x28] sm:$0xff]   ;;  %v7737_v45 = vld [vmem:[%s11899_s10 + $0x58] sm:$0xff]  }
 0x394   :  { %v1626_v31 = vadd.f32 %v1625_v11, %v12076_v14  ;;  %v7511_v53 = vpop.f32.mrb[6].mxu1  ;;  %v7732_v11 = vld [vmem:[%s11899_s10 + $0x30] sm:$0xff]   ;;  %v7733_v14 = vld [vmem:[%s11899_s10 + $0x38] sm:$0xff]  }
 0x395   :  { %v1628_v27 = vpop.f32.mrb[7].mxu1  ;;  %v1637_v55 = vadd.f32 %v7511_v53, %v12080_v12  ;;  %v1642_v4 = vadd.f32 %v1634_v63, %v12082_v15  ;;  %v7735_v53 = vld [vmem:[%s11899_s10 + $0x48] sm:$0xff]   ;;  %v7738_v63 = vld [vmem:[%s11899_s10 + $0x60] sm:$0xff]   ;;  %v12093_v15 = vld [vmem:[#allocation23_spill] sm:$0xff] }
 0x396   :  { %v1629_v62 = vadd.f32 %v1628_v27, %v12078_v19  ;;  %v1640_v51 = vadd.f32 %v1626_v31, %v12079_v16  ;;  %v7734_v31 = vld [vmem:[%s11899_s10 + $0x40] sm:$0xff]   ;;  %v7736_v27 = vld [vmem:[%s11899_s10 + $0x50] sm:$0xff]   ;;  %v7739_v19 = vld [vmem:[%s11899_s10 + $0x68] sm:$0xff]  }
 0x397   :  { %v1643_v38 = vadd.f32 %v1637_v55, %v12083_v30  ;;  %v7741_v16 = vld [vmem:[%s11899_s10 + $0x78] sm:$0xff]   ;;  %v12094_v30 = vld [vmem:[#allocation26_spill] sm:$0xff] }
 0x398   :  { %v1641_v1 = vadd.f32 %v1629_v62, %v12081_v56  ;;  %v7740_v62 = vld [vmem:[%s11899_s10 + $0x70] sm:$0xff]  }
 0x399   :  { %v12092_v55 = vld [vmem:[#allocation27_spill] sm:$0xff] }
 0x39a   :  { %v1652_v8 = vadd.f32 %v1641_v1, %v1640_v51 }
 0x39c   :  { %v1653_v46 = vadd.f32 %v1652_v8, %v1642_v4 }
 0x39e   :  { %v1654_v2 = vadd.f32 %v1653_v46, %v1643_v38 }
 0x3a0   :  { %v1655_v44 = vmul.f32 0.25, %v1654_v2  ;;  %v12095_v2 = vld [vmem:[#allocation22_spill] sm:$0xff] }
 0x3a2   :  { %v1656_v33 = vsub.f32 %v1640_v51, %v1655_v44  ;;  %v1657_v5 = vsub.f32 %v1641_v1, %v1655_v44  ;;  %v1658_v43 = vsub.f32 %v1642_v4, %v1655_v44  ;;  %v1659_v57 = vsub.f32 %v1643_v38, %v1655_v44  ;;  %v7744_v51 = vld [vmem:[%s11901_s12 + $0x4] ss:$8 sps:$4 sm:$0xff]  }
 0x3a3   :  { %2365 = vmatprep.mubr.bf16.mxu0 %v7744_v51 }
 0x3a4   :  { %v1660_v32 = vmul.f32 %v1656_v33, %v1656_v33  ;;  %v1661_v9 = vmul.f32 %v1657_v5, %v1657_v5  ;;  %v1663_v7 = vmul.f32 %v1658_v43, %v1658_v43  ;;  %v1665_v58 = vmul.f32 %v1659_v57, %v1659_v57 }
 0x3a6   :  { %v1662_v36 = vadd.f32 %v1661_v9, %v1660_v32 }
 0x3a8   :  { %v1664_v0 = vadd.f32 %v1663_v7, %v1662_v36  ;;  %v12096_v7 = vld [vmem:[#allocation35_spill] sm:$0xff] }
 0x3aa   :  { %v1666_v48 = vadd.f32 %v1665_v58, %v1664_v0 }
 0x3ac   :  { %v1667_v37 = vmul.f32 0.25, %v1666_v48  ;;  %v12097_v48 = vld [vmem:[#allocation31_spill] sm:$0xff] }
 0x3ae   :  { %v1668_v29 = vadd.f32 1e-05, %v1667_v37 }
 0x3b0   :  { %7872 = vrsqrt.f32 %v1668_v29 }
 0x3ba   :  { %v7873_v17 = vpop.eup %7872 }
 0x3bb   :  { %v1683_v13 = vmul.f32 %v7873_v17, %v1657_v5  ;;  %v1670_v39 = vmul.f32 %v7873_v17, %v1656_v33  ;;  %v1696_v40 = vmul.f32 %v7873_v17, %v1658_v43  ;;  %v1709_v52 = vmul.f32 %v7873_v17, %v1659_v57  ;;  %v12098_v17 = vld [vmem:[#allocation34_spill] sm:$0xff] }
 0x3bd   :  { %v1676_v49 = vmul.f32 %v12084_v35, %v1670_v39  ;;  %v1689_v26 = vmul.f32 %v12085_v41, %v1683_v13  ;;  %v1702_v47 = vmul.f32 %v12086_v6, %v1696_v40  ;;  %v1715_v3 = vmul.f32 %v12087_v61, %v1709_v52  ;;  %v12099_v40 = vld [vmem:[#allocation30_spill] sm:$0xff] }
 0x3bf   :  { %v9889_v21 = vadd.f32 %v12088_v60, %v1676_v49  ;;  %v9892_v20 = vadd.f32 %v12089_v28, %v1689_v26  ;;  %v9895_v18 = vadd.f32 %v12090_v23, %v1702_v47  ;;  %v9898_v50 = vadd.f32 %v12091_v59, %v1715_v3  ;;  %v12100_v3 = vld [vmem:[#allocation43_spill] sm:$0xff] }
 0x3c0   :  { %v12101_v23 = vld [vmem:[#allocation39_spill] sm:$0xff] }
 0x3c1   :  { %v1754_v22 = vpack.c.bf16 %v9892_v20, %v9889_v21  ;;  %v1755_v10 = vpack.c.bf16 %v9898_v50, %v9895_v18 }
 0x3c3   :  { %7512 = vmatprep.subr.bf16.mxu1 %v1754_v22 }
 0x3c4   :  { %7513 = vmatpush3.bf16.msra.mxu1 %v1754_v22 }
 0x3c5   :  { %7514 = vmatprep.subr.bf16.mxu1 %v1755_v10 }
 0x3c8   :  { %7515 = vmatpush3.bf16.msra.mxu1 %v1755_v10  ;;  %v12102_v10 = vld [vmem:[#allocation42_spill] sm:$0xff] }
 0x3cb   :  { %7517 = vmatmul.mubr.msk.bf16.vlgmr.msra.gmra.mrb[8].mxu1 %vm117_vm0, %v7727_v25 }
 0x3cc   :  { %7520 = vmatprep.mubr.msk.bf16.mxu1 %vm117_vm0, %v7728_v24 }
 0x3d3   :  { %7521 = vmatmul.mubr.msk.bf16.gmra.mrb[12].mxu1 %vm117_vm0, %v7729_v42  ;;  %v12103_v42 = vld [vmem:[#allocation38_spill] sm:$0xff] }
 0x3d4   :  { %7524 = vmatprep.mubr.msk.bf16.mxu1 %vm117_vm0, %v7730_v54 }
 0x3db   :  { %7525 = vmatmul.mubr.msk.bf16.gmra.mrb[16].mxu1 %vm117_vm0, %v7731_v34 }
 0x3dc   :  { %7528 = vmatprep.mubr.msk.bf16.mxu1 %vm117_vm0, %v7732_v11 }
 0x3e3   :  { %7529 = vmatmul.mubr.msk.bf16.gmra.mrb[20].mxu1 %vm117_vm0, %v7733_v14 }
 0x3e4   :  { %7532 = vmatprep.mubr.msk.bf16.mxu1 %vm117_vm0, %v7734_v31 }
 0x3eb   :  { %7533 = vmatmul.mubr.msk.bf16.gmra.mrb[24].mxu1 %vm117_vm0, %v7735_v53 }
 0x3ec   :  { %7536 = vmatprep.mubr.msk.bf16.mxu1 %vm117_vm0, %v7736_v27 }
 0x3f3   :  { %7537 = vmatmul.mubr.msk.bf16.gmra.mrb[28].mxu1 %vm117_vm0, %v7737_v45 }
 0x3f4   :  { %7540 = vmatprep.mubr.msk.bf16.mxu1 %vm117_vm0, %v7738_v63  ;;  %v12104_v63 = vld [vmem:[#allocation51_spill] sm:$0xff] }
 0x3fb   :  { %7541 = vmatmul.mubr.msk.bf16.gmra.mrb[32].mxu1 %vm117_vm0, %v7739_v19 }
 0x3fc   :  { %7544 = vmatprep.mubr.msk.bf16.mxu1 %vm117_vm0, %v7740_v62 }
 0x403   :  { %7545 = vmatmul.mubr.msk.bf16.gmra.mrb[36].mxu1 %vm117_vm0, %v7741_v16  ;;  %v12105_v16 = vld [vmem:[#allocation47_spill] sm:$0xff] }
 0x49e   :  { %v7518_v12 = vpop.f32.mrb[8].mxu1 }
 0x49f   :  { %v2119_v56 = vadd.f32 %v7518_v12, %v12092_v55  ;;  %v2110_v1 = vpop.f32.mrb[9].mxu1  ;;  %v12106_v55 = vld [vmem:[#allocation50_spill] sm:$0xff] }
 0x4a0   :  { %v2111_v4 = vadd.f32 %v2110_v1, %v12093_v15  ;;  %v7519_v8 = vpop.f32.mrb[10].mxu1  ;;  %v12107_v15 = vld [vmem:[#allocation46_spill] sm:$0xff] }
 0x4a1   :  { %v2122_v38 = vadd.f32 %v7519_v8, %v12094_v30  ;;  %v2113_v46 = vpop.f32.mrb[11].mxu1  ;;  %v2239_v33 = vmax.f32 %v2119_v56, 0.0 }
 0x4a2   :  { %v2114_v44 = vadd.f32 %v2113_v46, %v12095_v2  ;;  %v2237_v43 = vmax.f32 %v2111_v4, 0.0 }
 0x4a3   :  { %v2240_v5 = vmax.f32 %v2122_v38, 0.0 }
 0x4a4   :  { %v2238_v57 = vmax.f32 %v2114_v44, 0.0 }
 0x4a5   :  { %v9971_v32 = vpack.c.bf16 %v2240_v5, %v2239_v33  ;;  %v12108_v5 = vld [vmem:[#allocation25_spill] sm:$0xff] }
 0x4a6   :  { %v9973_v9 = vpack.c.bf16 %v2238_v57, %v2237_v43  ;;  %v7522_v36 = vpop.f32.mrb[12].mxu1 }
 0x4a7   :  { %v2135_v0 = vadd.f32 %v7522_v36, %v12096_v7  ;;  %v2126_v58 = vpop.f32.mrb[13].mxu1  ;;  %v12109_v36 = vld [vmem:[#allocation21_spill] sm:$0xff] }
 0x4a8   :  { %v2127_v37 = vadd.f32 %v2126_v58, %v12097_v48  ;;  %v7523_v29 = vpop.f32.mrb[14].mxu1  ;;  %v12110_v58 = vld [vmem:[#allocation24_spill] sm:$0xff] }
 0x4a9   :  { %v2138_v13 = vadd.f32 %v7523_v29, %v12098_v17  ;;  %v2129_v39 = vpop.f32.mrb[15].mxu1  ;;  %v2243_v35 = vmax.f32 %v2135_v0, 0.0  ;;  %v12111_v29 = vld [vmem:[#allocation20_spill] sm:$0xff] }
 0x4aa   :  { %v2130_v52 = vadd.f32 %v2129_v39, %v12099_v40  ;;  %v2241_v41 = vmax.f32 %v2127_v37, 0.0 }
 0x4ab   :  { %v2244_v49 = vmax.f32 %v2138_v13, 0.0 }
 0x4ac   :  { %v2242_v26 = vmax.f32 %v2130_v52, 0.0 }
 0x4ad   :  { %v9979_v6 = vpack.c.bf16 %v2244_v49, %v2243_v35 }
 0x4ae   :  { %v9981_v47 = vpack.c.bf16 %v2242_v26, %v2241_v41  ;;  %v7526_v61 = vpop.f32.mrb[16].mxu1  ;;  %v12112_v26 = vld [vmem:[#allocation33_spill] sm:$0xff] }
 0x4af   :  { %v2151_v60 = vadd.f32 %v7526_v61, %v12100_v3  ;;  %v2142_v28 = vpop.f32.mrb[17].mxu1 }
 0x4b0   :  { %v2143_v59 = vadd.f32 %v2142_v28, %v12101_v23  ;;  %v7527_v22 = vpop.f32.mrb[18].mxu1 }
 0x4b1   :  { %v2154_v25 = vadd.f32 %v7527_v22, %v12102_v10  ;;  %v2145_v24 = vpop.f32.mrb[19].mxu1  ;;  %v2247_v34 = vmax.f32 %v2151_v60, 0.0  ;;  %v12113_v60 = vld [vmem:[#allocation29_spill] sm:$0xff] }
 0x4b2   :  { %v2146_v54 = vadd.f32 %v2145_v24, %v12103_v42  ;;  %v2245_v14 = vmax.f32 %v2143_v59, 0.0  ;;  %v12114_v59 = vld [vmem:[#allocation32_spill] sm:$0xff] }
 0x4b3   :  { %v2248_v11 = vmax.f32 %v2154_v25, 0.0  ;;  %v12115_v25 = vld [vmem:[#allocation28_spill] sm:$0xff] }
 0x4b4   :  { %v2246_v31 = vmax.f32 %v2146_v54, 0.0 }
 0x4b5   :  { %v9987_v53 = vpack.c.bf16 %v2248_v11, %v2247_v34 }
 0x4b6   :  { %v9989_v27 = vpack.c.bf16 %v2246_v31, %v2245_v14  ;;  %v7530_v45 = vpop.f32.mrb[20].mxu1 }
 0x4b7   :  { %v2167_v19 = vadd.f32 %v7530_v45, %v12104_v63  ;;  %v2158_v62 = vpop.f32.mrb[21].mxu1  ;;  %v12116_v63 = vld [vmem:[#allocation41_spill] sm:$0xff] }
 0x4b8   :  { %v2159_v51 = vadd.f32 %v2158_v62, %v12105_v16  ;;  %v7531_v12 = vpop.f32.mrb[22].mxu1  ;;  %v12117_v16 = vld [vmem:[#allocation37_spill] sm:$0xff] }
 0x4b9   :  { %v2170_v56 = vadd.f32 %v7531_v12, %v12106_v55  ;;  %v2161_v1 = vpop.f32.mrb[23].mxu1  ;;  %v2251_v8 = vmax.f32 %v2167_v19, 0.0 }
 0x4ba   :  { %v2162_v4 = vadd.f32 %v2161_v1, %v12107_v15  ;;  %v2249_v38 = vmax.f32 %v2159_v51, 0.0  ;;  %v12119_v1 = vld [vmem:[#allocation36_spill] sm:$0xff] }
 0x4bb   :  { %v2252_v30 = vmax.f32 %v2170_v56, 0.0 }
 0x4bc   :  { %v2250_v46 = vmax.f32 %v2162_v4, 0.0 }
 0x4bd   :  { %v9995_v2 = vpack.c.bf16 %v2252_v30, %v2251_v8 }
 0x4be   :  { %v9997_v44 = vpack.c.bf16 %v2250_v46, %v2249_v38  ;;  %v7534_v33 = vpop.f32.mrb[24].mxu1 }
 0x4bf   :  { %v2183_v43 = vadd.f32 %v7534_v33, %v12108_v5  ;;  %v2174_v57 = vpop.f32.mrb[25].mxu1  ;;  %v12120_v5 = vld [vmem:[#allocation49_spill] sm:$0xff] }
 0x4c0   :  { %v2175_v7 = vadd.f32 %v2174_v57, %v12109_v36  ;;  %v7535_v0 = vpop.f32.mrb[26].mxu1  ;;  %v12121_v36 = vld [vmem:[#allocation45_spill] sm:$0xff] }
 0x4c1   :  { %v2186_v48 = vadd.f32 %v7535_v0, %v12110_v58  ;;  %v2177_v37 = vpop.f32.mrb[27].mxu1  ;;  %v2255_v13 = vmax.f32 %v2183_v43, 0.0 }
 0x4c2   :  { %v2178_v17 = vadd.f32 %v2177_v37, %v12111_v29  ;;  %v2253_v40 = vmax.f32 %v2175_v7, 0.0  ;;  %v12123_v37 = vld [vmem:[#allocation44_spill] sm:$0xff] }
 0x4c3   :  { %v2256_v39 = vmax.f32 %v2186_v48, 0.0 }
 0x4c4   :  { %v2254_v52 = vmax.f32 %v2178_v17, 0.0 }
 0x4c5   :  { %v2282_v35 = vpack.c.bf16 %v2256_v39, %v2255_v13 }
 0x4c6   :  { %v2281_v49 = vpack.c.bf16 %v2254_v52, %v2253_v40  ;;  %v7538_v41 = vpop.f32.mrb[28].mxu1 }
 0x4c7   :  { %v2199_v61 = vadd.f32 %v7538_v41, %v12112_v26  ;;  %v2190_v3 = vpop.f32.mrb[29].mxu1 }
 0x4c8   :  { %v2191_v28 = vadd.f32 %v2190_v3, %v12113_v60  ;;  %v7539_v23 = vpop.f32.mrb[30].mxu1  ;;  %7289 = vmatprep.subr.bf16.mxu0 %v2281_v49  ;;  %v12124_v3 = vld [vmem:[#allocation53_spill] sm:$0xff] }
 0x4c9   :  { %v2202_v22 = vadd.f32 %v7539_v23, %v12114_v59  ;;  %v2193_v10 = vpop.f32.mrb[31].mxu1  ;;  %7290 = vmatpush3.bf16.msra.mxu0 %v9973_v9  ;;  %v2259_v42 = vmax.f32 %v2199_v61, 0.0  ;;  %v12118_v9 = vld [vmem:[#allocation40_spill] sm:$0xff] }
 0x4ca   :  { %v2194_v24 = vadd.f32 %v2193_v10, %v12115_v25  ;;  %7291 = vmatprep.subr.bf16.mxu0 %v2282_v35  ;;  %v2257_v34 = vmax.f32 %v2191_v28, 0.0  ;;  %v7742_v35 = vld [vmem:[%s11901_s12] ss:$8 sps:$4 sm:$0xff]  }
 0x4cb   :  { %v2260_v54 = vmax.f32 %v2202_v22, 0.0  ;;  %v12125_v23 = vld [vmem:[#allocation52_spill] sm:$0xff] }
 0x4cc   :  { %v2258_v11 = vmax.f32 %v2194_v24, 0.0 }
 0x4cd   :  { %v2284_v14 = vpack.c.bf16 %v2260_v54, %v2259_v42  ;;  %7292 = vmatpush3.bf16.msra.mxu0 %v9971_v32 }
 0x4ce   :  { %v2283_v31 = vpack.c.bf16 %v2258_v11, %v2257_v34  ;;  %v7542_v45 = vpop.f32.mrb[32].mxu1 }
 0x4cf   :  { %v2215_v19 = vadd.f32 %v7542_v45, %v12116_v63  ;;  %v2206_v62 = vpop.f32.mrb[33].mxu1 }
 0x4d0   :  { %v2207_v51 = vadd.f32 %v2206_v62, %v12117_v16  ;;  %v7543_v12 = vpop.f32.mrb[34].mxu1  ;;  %7293 = vmatprep.subr.bf16.mxu0 %v2283_v31 }
 0x4d1   :  { %v2218_v55 = vadd.f32 %v7543_v12, %v12118_v9  ;;  %v2209_v56 = vpop.f32.mrb[35].mxu1  ;;  %7294 = vmatpush3.bf16.msra.mxu0 %v9981_v47  ;;  %v2263_v4 = vmax.f32 %v2215_v19, 0.0  ;;  %v12122_v47 = vld [vmem:[#allocation48_spill] sm:$0xff]  ;;  %v12127_v19 = vld [vmem:[#allocation54_spill] sm:$0xff] }
 0x4d2   :  { %v2210_v15 = vadd.f32 %v2209_v56, %v12119_v1  ;;  %7295 = vmatprep.subr.bf16.mxu0 %v2284_v14  ;;  %v2261_v32 = vmax.f32 %v2207_v51, 0.0  ;;  %v12126_v14 = vld [vmem:[#allocation55_spill] sm:$0xff] }
 0x4d3   :  { %v2264_v8 = vmax.f32 %v2218_v55, 0.0 }
 0x4d4   :  { %v2262_v30 = vmax.f32 %v2210_v15, 0.0 }
 0x4d5   :  { %v2286_v38 = vpack.c.bf16 %v2264_v8, %v2263_v4  ;;  %7296 = vmatpush3.bf16.msra.mxu0 %v9979_v6 }
 0x4d6   :  { %v2285_v46 = vpack.c.bf16 %v2262_v30, %v2261_v32  ;;  %v7546_v33 = vpop.f32.mrb[36].mxu1 }
 0x4d7   :  { %v2231_v43 = vadd.f32 %v7546_v33, %v12120_v5  ;;  %v2222_v57 = vpop.f32.mrb[37].mxu1 }
 0x4d8   :  { %v2223_v7 = vadd.f32 %v2222_v57, %v12121_v36  ;;  %v7547_v0 = vpop.f32.mrb[38].mxu1  ;;  %7297 = vmatprep.subr.bf16.mxu0 %v2285_v46  ;;  %v12128_v36 = vld [vmem:[#allocation57_spill] sm:$0xff] }
 0x4d9   :  { %v2234_v58 = vadd.f32 %v7547_v0, %v12122_v47  ;;  %v2225_v48 = vpop.f32.mrb[39].mxu1  ;;  %7298 = vmatpush3.bf16.msra.mxu0 %v9989_v27  ;;  %v2267_v17 = vmax.f32 %v2231_v43, 0.0  ;;  %v7745_v27 = vld [vmem:[%s11901_s12 + $0x14] ss:$8 sps:$4 sm:$0xff]  }
 0x4da   :  { %v2226_v29 = vadd.f32 %v2225_v48, %v12123_v37  ;;  %7299 = vmatprep.subr.bf16.mxu0 %v2286_v38  ;;  %v2265_v6 = vmax.f32 %v2223_v7, 0.0  ;;  %v12129_v0 = vld [vmem:[#allocation56_spill] sm:$0xff] }
 0x4db   :  { %v2268_v13 = vmax.f32 %v2234_v58, 0.0  ;;  %v12130_v58 = vld [vmem:[#allocation65_spill] sm:$0xff]  ;;  %v12131_v37 = vld [vmem:[#allocation64_spill] sm:$0xff] }
 0x4dc   :  { %v2266_v39 = vmax.f32 %v2226_v29, 0.0 }
 0x4dd   :  { %v2288_v40 = vpack.c.bf16 %v2268_v13, %v2267_v17  ;;  %7300 = vmatpush3.bf16.msra.mxu0 %v9987_v53  ;;  %v7747_v53 = vld [vmem:[%s11901_s12 + $0x10] ss:$8 sps:$4 sm:$0xff]  }
 0x4de   :  { %v2287_v52 = vpack.c.bf16 %v2266_v39, %v2265_v6  ;;  %v12132_v17 = vld [vmem:[#allocation63_spill] sm:$0xff]  ;;  %v12134_v6 = vld [vmem:[#allocation62_spill] sm:$0xff] }
 0x4e0   :  { %7301 = vmatprep.subr.bf16.mxu0 %v2287_v52 }
 0x4e1   :  { %7302 = vmatpush3.bf16.msra.mxu0 %v9997_v44  ;;  %v7748_v44 = vld [vmem:[%s11893_s4 + $0x30] sm:$0xff]  }
 0x4e2   :  { %7303 = vmatprep.subr.bf16.mxu0 %v2288_v40  ;;  %v12136_v40 = vld [vmem:[#allocation67_spill] sm:$0xff] }
 0x4e5   :  { %7304 = vmatpush3.bf16.msra.mxu0 %v9995_v2 }
 0x4e8   :  { %2366 = vmatmul.mubr.bf16.vlgmr.msra.gmra.mrb[16].mxu0 %v7742_v35  ;;  %v12138_v35 = vld [vmem:[#allocation66_spill] sm:$0xff] }
 0x4e9   :  { %2373 = vmatprep.mubr.bf16.mxu0 %v7745_v27 }
 0x4f0   :  { %2374 = vmatmul.mubr.bf16.gmra.mrb[20].mxu0 %v7747_v53 }
 0x4f1   :  { %7552 = vmatprep.mubr.msk.bf16.mxu0 %vm117_vm0, %v7748_v44 }
 0x5bb   :  { %v7305_v49 = vpop.f32.mrb[16].mxu0 }
 0x5bc   :  { %v7306_v41 = vpop.f32.mrb[17].mxu0 }
 0x5bd   :  { %v7307_v2 = vadd.f32 %v7306_v41, %v7305_v49  ;;  %v7308_v26 = vpop.f32.mrb[18].mxu0  ;;  %v7749_v49 = vld [vmem:[%s11893_s4 + $0x38] sm:$0xff]   ;;  %v7750_v41 = vld [vmem:[%s11893_s4 + $0x40] sm:$0xff]  }
 0x5be   :  { %v7309_v61 = vpop.f32.mrb[19].mxu0 }
 0x5bf   :  { %v2368_v60 = vadd.f32 %v7307_v2, %v12124_v3  ;;  %v7310_v28 = vadd.f32 %v7309_v61, %v7308_v26  ;;  %v7751_v2 = vld [vmem:[%s11893_s4 + $0x48] sm:$0xff]   ;;  %v7752_v26 = vld [vmem:[%s11893_s4 + $0x50] sm:$0xff]   ;;  %v7753_v61 = vld [vmem:[%s11893_s4 + $0x58] sm:$0xff]  }
 0x5c1   :  { %v2371_v59 = vadd.f32 %v7310_v28, %v12125_v23  ;;  %v2382_v22 = vadd.f32 %v2368_v60, %v9889_v21  ;;  %v12140_v60 = vld [vmem:[#allocation71_spill] sm:$0xff] }
 0x5c3   :  { %v2383_v10 = vadd.f32 %v2371_v59, %v9892_v20  ;;  %v7311_v25 = vpop.f32.mrb[20].mxu0  ;;  %v12141_v59 = vld [vmem:[#allocation69_spill] sm:$0xff] }
 0x5c4   :  { %v7312_v24 = vpop.f32.mrb[21].mxu0 }
 0x5c5   :  { %v2394_v42 = vadd.f32 %v2383_v10, %v2382_v22  ;;  %v7313_v54 = vadd.f32 %v7312_v24, %v7311_v25  ;;  %v7314_v34 = vpop.f32.mrb[22].mxu0  ;;  %v12142_v24 = vld [vmem:[#allocation107_spill] sm:$0xff] }
 0x5c6   :  { %v7315_v11 = vpop.f32.mrb[23].mxu0 }
 0x5c7   :  { %v2376_v31 = vadd.f32 %v7313_v54, %v12126_v14  ;;  %v7316_v45 = vadd.f32 %v7315_v11, %v7314_v34  ;;  %v12143_v54 = vld [vmem:[#allocation70_spill] sm:$0xff] }
 0x5c9   :  { %v2384_v63 = vadd.f32 %v2376_v31, %v9895_v18  ;;  %v2379_v62 = vadd.f32 %v7316_v45, %v12127_v19  ;;  %v12144_v45 = vld [vmem:[#allocation68_spill] sm:$0xff] }
 0x5cb   :  { %v2395_v16 = vadd.f32 %v2394_v42, %v2384_v63  ;;  %v2385_v51 = vadd.f32 %v2379_v62, %v9898_v50 }
 0x5cd   :  { %v2396_v12 = vadd.f32 %v2395_v16, %v2385_v51 }
 0x5cf   :  { %v2397_v21 = vmul.f32 0.25, %v2396_v12 }
 0x5d1   :  { %v2398_v9 = vsub.f32 %v2382_v22, %v2397_v21  ;;  %v2399_v20 = vsub.f32 %v2383_v10, %v2397_v21  ;;  %v2400_v55 = vsub.f32 %v2384_v63, %v2397_v21  ;;  %v2401_v56 = vsub.f32 %v2385_v51, %v2397_v21 }
 0x5d3   :  { %v2402_v1 = vmul.f32 %v2398_v9, %v2398_v9  ;;  %v2403_v15 = vmul.f32 %v2399_v20, %v2399_v20  ;;  %v2405_v8 = vmul.f32 %v2400_v55, %v2400_v55  ;;  %v2407_v30 = vmul.f32 %v2401_v56, %v2401_v56 }
 0x5d5   :  { %v2404_v4 = vadd.f32 %v2403_v15, %v2402_v1 }
 0x5d7   :  { %v2406_v32 = vadd.f32 %v2405_v8, %v2404_v4  ;;  %v12145_v4 = vld [vmem:[#allocation108_spill] sm:$0xff] }
 0x5d9   :  { %v2408_v38 = vadd.f32 %v2407_v30, %v2406_v32 }
 0x5db   :  { %v2409_v46 = vmul.f32 0.25, %v2408_v38 }
 0x5dd   :  { %v2410_v18 = vadd.f32 1e-05, %v2409_v46 }
 0x5df   :  { %7874 = vrsqrt.f32 %v2410_v18 }
 0x5e9   :  { %v7875_v33 = vpop.eup %7874 }
 0x5ea   :  { %v2451_v5 = vmul.f32 %v7875_v33, %v2401_v56  ;;  %v2412_v43 = vmul.f32 %v7875_v33, %v2398_v9  ;;  %v2425_v50 = vmul.f32 %v7875_v33, %v2399_v20  ;;  %v2438_v57 = vmul.f32 %v7875_v33, %v2400_v55 }
 0x5ec   :  { %v2418_v7 = vmul.f32 %v12128_v36, %v2412_v43  ;;  %v2431_v47 = vmul.f32 %v12129_v0, %v2425_v50  ;;  %v2444_v48 = vmul.f32 %v12130_v58, %v2438_v57  ;;  %v2457_v29 = vmul.f32 %v12131_v37, %v2451_v5 }
 0x5ee   :  { %v10049_v13 = vadd.f32 %v12132_v17, %v2418_v7  ;;  %v10052_v39 = vadd.f32 %v12134_v6, %v2431_v47  ;;  %v10055_v52 = vadd.f32 %v12136_v40, %v2444_v48  ;;  %v10058_v27 = vadd.f32 %v12138_v35, %v2457_v29 }
 0x5f0   :  { %12133 = vst [vmem:[#allocation6_spill] sm:$0xff] %v10049_v13  ;;  %12135 = vst [vmem:[#allocation109_spill] sm:$0xff] %v10052_v39  ;;  %v2477_v53 = vpack.c.bf16 %v10052_v39, %v10049_v13  ;;  %v2478_v44 = vpack.c.bf16 %v10058_v27, %v10055_v52 }
 0x5f1   :  { %12137 = vst [vmem:[#allocation7_spill] sm:$0xff] %v10055_v52  ;;  %12139 = vst [vmem:[#allocation110_spill] sm:$0xff] %v10058_v27 }
 0x5f2   :  { %7548 = vmatprep.subr.bf16.mxu0 %v2477_v53 }
 0x5f3   :  { %7549 = vmatpush3.bf16.msra.mxu0 %v2477_v53 }
 0x5f4   :  { %7550 = vmatprep.subr.bf16.mxu0 %v2478_v44 }
 0x5f7   :  { %7551 = vmatpush3.bf16.msra.mxu0 %v2478_v44 }
 0x5fa   :  { %7553 = vmatmul.mubr.msk.bf16.vlgmr.msra.gmra.mrb[24].mxu0 %vm117_vm0, %v7749_v49 }
 0x5fb   :  { %7556 = vmatprep.mubr.msk.bf16.mxu0 %vm117_vm0, %v7750_v41 }
 0x602   :  { %7557 = vmatmul.mubr.msk.bf16.gmra.mrb[28].mxu0 %vm117_vm0, %v7751_v2 }
 0x603   :  { %7560 = vmatprep.mubr.msk.bf16.mxu0 %vm117_vm0, %v7752_v26 }
 0x60a   :  { %7561 = vmatmul.mubr.msk.bf16.gmra.mrb[32].mxu0 %vm117_vm0, %v7753_v61 }
 0x6cd   :  { %v7554_v3 = vpop.f32.mrb[24].mxu0 }
 0x6ce   :  { %v2643_v28 = vadd.f32 %v7554_v3, %v12140_v60  ;;  %v2634_v23 = vpop.f32.mrb[25].mxu0 }
 0x6cf   :  { %v2635_v22 = vadd.f32 %v2634_v23, %v12141_v59  ;;  %v7555_v10 = vpop.f32.mrb[26].mxu0 }
 0x6d0   :  { %v3150_v25 = vcombine.high %v2643_v28, %v2643_v28  ;;  %v3157_v42 = vrot.slane %v2643_v28, %v12142_v24  ;;  %v2646_v34 = vadd.f32 %v7555_v10, %v12143_v54  ;;  %v2637_v11 = vpop.f32.mrb[27].mxu0  ;;  %v12147_v54 = vld [vmem:[#allocation73_spill] sm:$0xff] }
 0x6d1   :  { %v2682_v14 = vcombine.high %v2635_v22, %v2635_v22  ;;  %v2689_v31 = vrot.slane %v2635_v22, %v12142_v24  ;;  %v2638_v63 = vadd.f32 %v2637_v11, %v12144_v45  ;;  %v12148_v11 = vld [vmem:[#allocation74_spill] sm:$0xff] }
 0x6d2   :  { %v3164_v19 = vrot.slane %v3150_v25, %v12142_v24  ;;  %v3165_v62 = vcombine.high %v3157_v42, %v3157_v42  ;;  %v10092_v16 = vrot.slane %v3157_v42, %v12142_v24  ;;  %v3248_v51 = vcombine.high %v2646_v34, %v2646_v34  ;;  %v12146_v25 = vld [vmem:[#allocation75_spill] sm:$0xff] }
 0x6d3   :  { %v2696_v12 = vrot.slane %v2682_v14, %v12142_v24  ;;  %v2697_v21 = vcombine.high %v2689_v31, %v2689_v31  ;;  %v10096_v9 = vrot.slane %v2689_v31, %v12142_v24  ;;  %v3255_v20 = vrot.slane %v2646_v34, %v12142_v24 }
 0x6d4   :  { %v3166_v55 = vcombine.high %v3164_v19, %v3164_v19  ;;  %v10100_v56 = vrot.slane %v3164_v19, %v12142_v24  ;;  %v10103_v1 = vrot.slane %v3165_v62, %v12142_v24  ;;  %v3195_v15 = vcombine.high %v10092_v16, %v10092_v16 }
 0x6d5   :  { %v3202_v8 = vrot.slane %v10092_v16, %v12145_v4  ;;  %v2698_v32 = vcombine.high %v2696_v12, %v2696_v12  ;;  %v10110_v30 = vrot.slane %v2696_v12, %v12142_v24  ;;  %v10113_v38 = vrot.slane %v2697_v21, %v12142_v24  ;;  %v7558_v46 = vpop.f32.mrb[28].mxu0 }
 0x6d6   :  { %v10116_v18 = vrot.slane %v3166_v55, %v12142_v24  ;;  %v3196_v33 = vcombine.high %v10100_v56, %v10100_v56  ;;  %v3197_v5 = vcombine.high %v10103_v1, %v10103_v1  ;;  %v3206_v43 = vrot.slane %v10103_v1, %v12145_v4  ;;  %v2650_v50 = vpop.f32.mrb[29].mxu0 }
 0x6d7   :  { %v10125_v57 = vrot.slane %v3195_v15, %v12145_v4  ;;  %v3218_v36 = vrot.slane %v10100_v56, %v12145_v4  ;;  %v10130_v7 = vrot.slane %v2698_v32, %v12142_v24  ;;  %v2727_v0 = vcombine.high %v10096_v9, %v10096_v9  ;;  %v7559_v47 = vpop.f32.mrb[30].mxu0 }
 0x6d8   :  { %v3198_v58 = vcombine.high %v10116_v18, %v10116_v18  ;;  %v10137_v48 = vrot.slane %v3197_v5, %v12145_v4  ;;  %v3222_v37 = vrot.slane %v10116_v18, %v12145_v4  ;;  %v10142_v29 = vrot.slane %v3196_v33, %v12145_v4  ;;  %v10144_v17 = vpop.f32.mrb[31].mxu0 }
 0x6d9   :  { %v2728_v6 = vcombine.high %v10110_v30, %v10110_v30  ;;  %v2729_v40 = vcombine.high %v10113_v38, %v10113_v38  ;;  %v2730_v35 = vcombine.high %v10130_v7, %v10130_v7  ;;  %v2734_v53 = vrot.slane %v10096_v9, %v12145_v4 }
 0x6da   :  { %v3230_v44 = vrot.slane %v3198_v58, %v12145_v4  ;;  %v2738_v49 = vrot.slane %v10113_v38, %v12145_v4  ;;  %v10158_v41 = vrot.slane %v2727_v0, %v12145_v4  ;;  %v2750_v2 = vrot.slane %v10110_v30, %v12145_v4 }
 0x6db   :  { %v2746_v26 = vrot.slane %v2729_v40, %v12145_v4  ;;  %v2754_v61 = vrot.slane %v10130_v7, %v12145_v4  ;;  %v10166_v3 = vrot.slane %v2728_v6, %v12145_v4  ;;  %v10169_v60 = vrot.slane %v2730_v35, %v12145_v4 }
 0x6dc   :  { %v3262_v28 = vrot.slane %v3248_v51, %v12142_v24  ;;  %v3263_v23 = vcombine.high %v3255_v20, %v3255_v20  ;;  %v3271_v59 = vrot.slane %v3255_v20, %v12142_v24  ;;  %v2780_v22 = vcombine.high %v2638_v63, %v2638_v63 }
 0x6dd   :  { %v2787_v10 = vrot.slane %v2638_v63, %v12142_v24  ;;  %v2659_v42 = vadd.f32 %v7558_v46, %v12146_v25  ;;  %v2651_v34 = vadd.f32 %v2650_v50, %v12147_v54  ;;  %v10177_v14 = vadd.f32 %v7559_v47, %v12148_v11  ;;  %v10179_v31 = vpop.f32.mrb[32].mxu0 }
 0x6de   :  { %v3264_v45 = vcombine.high %v3262_v28, %v3262_v28  ;;  %v3278_v19 = vrot.slane %v3262_v28, %v12142_v24  ;;  %v3285_v62 = vrot.slane %v3263_v23, %v12142_v24  ;;  %v3293_v51 = vcombine.high %v3271_v59, %v3271_v59  ;;  %v10183_v12 = vpop.f32.mrb[33].mxu0 }
 0x6df   :  { %v3300_v21 = vrot.slane %v3271_v59, %v12145_v4  ;;  %v2794_v63 = vrot.slane %v2780_v22, %v12142_v24  ;;  %v2795_v20 = vcombine.high %v2787_v10, %v2787_v10  ;;  %v10188_v55 = vrot.slane %v2787_v10, %v12142_v24  ;;  %v10190_v15 = vpop.f32.mrb[34].mxu0 }
 0x6e0   :  { %v3292_v32 = vrot.slane %v3264_v45, %v12142_v24  ;;  %v3294_v46 = vcombine.high %v3278_v19, %v3278_v19  ;;  %v3295_v33 = vcombine.high %v3285_v62, %v3285_v62  ;;  %v3304_v5 = vrot.slane %v3285_v62, %v12145_v4  ;;  %v10194_v50 = vpop.f32.mrb[35].mxu0 }
 0x6e1   :  { %12149 = vst [vmem:[#allocation5_spill] sm:$0xff] %v10194_v50  ;;  %v3308_v0 = vrot.slane %v3293_v51, %v12145_v4  ;;  %v3316_v47 = vrot.slane %v3278_v19, %v12145_v4  ;;  %v2796_v58 = vcombine.high %v2794_v63, %v2794_v63  ;;  %v10199_v6 = vrot.slane %v2794_v63, %v12142_v24 }
 0x6e2   :  { %v3296_v40 = vcombine.high %v3292_v32, %v3292_v32  ;;  %v3312_v35 = vrot.slane %v3295_v33, %v12145_v4  ;;  %v3320_v28 = vrot.slane %v3292_v32, %v12145_v4  ;;  %v3324_v23 = vrot.slane %v3294_v46, %v12145_v4 }
 0x6e3   :  { %v10205_v59 = vrot.slane %v2795_v20, %v12142_v24  ;;  %v10208_v22 = vrot.slane %v2796_v58, %v12142_v24  ;;  %v2825_v10 = vcombine.high %v10188_v55, %v10188_v55  ;;  %v2826_v25 = vcombine.high %v10199_v6, %v10199_v6 }
 0x6e4   :  { %v3328_v54 = vrot.slane %v3296_v40, %v12145_v4  ;;  %v3239_v19 = vmul.f32 %v3202_v8, %v2659_v42  ;;  %v3240_v16 = vmul.f32 %v3206_v43, %v2659_v42  ;;  %v3241_v8 = vmul.f32 %v10125_v57, %v2659_v42 }
 0x6e5   :  { %v2827_v62 = vcombine.high %v10205_v59, %v10205_v59  ;;  %v2828_v51 = vcombine.high %v10208_v22, %v10208_v22  ;;  %v10229_v20 = vrot.slane %v2825_v10, %v12145_v4  ;;  %v10234_v46 = vrot.slane %v2826_v25, %v12145_v4 }
 0x6e6   :  { %v3242_v40 = vmul.f32 %v10137_v48, %v2659_v42  ;;  %v3243_v10 = vmul.f32 %v3218_v36, %v2659_v42  ;;  %v3244_v25 = vmul.f32 %v3222_v37, %v2659_v42  ;;  %v3245_v1 = vmul.f32 %v10142_v29, %v2659_v42 }
 0x6e7   :  { %v10241_v33 = vrot.slane %v2827_v62, %v12145_v4  ;;  %v10244_v58 = vrot.slane %v2828_v51, %v12145_v4  ;;  %v3246_v43 = vmul.f32 %v3230_v44, %v2659_v42  ;;  %v10257_v57 = vmul.f32 %v2734_v53, %v2651_v34 }
 0x6e8   :  { %v10262_v48 = vmul.f32 %v2738_v49, %v2651_v34  ;;  %v10265_v56 = vmul.f32 %v10158_v41, %v2651_v34  ;;  %v10267_v36 = vmul.f32 %v2746_v26, %v2651_v34  ;;  %v10272_v18 = vmul.f32 %v2750_v2, %v2651_v34 }
 0x6e9   :  { %v10277_v9 = vmul.f32 %v2754_v61, %v2651_v34  ;;  %v10280_v37 = vmul.f32 %v10166_v3, %v2651_v34  ;;  %v10283_v38 = vmul.f32 %v10169_v60, %v2651_v34  ;;  %v3337_v29 = vmul.f32 %v3300_v21, %v10177_v14 }
 0x6ea   :  { %v3338_v53 = vmul.f32 %v3304_v5, %v10177_v14  ;;  %v3339_v44 = vmul.f32 %v3308_v0, %v10177_v14  ;;  %v3340_v30 = vmul.f32 %v3312_v35, %v10177_v14  ;;  %v3341_v49 = vmul.f32 %v3316_v47, %v10177_v14 }
 0x6eb   :  { %v3342_v7 = vmul.f32 %v3320_v28, %v10177_v14  ;;  %v3343_v41 = vmul.f32 %v3324_v23, %v10177_v14  ;;  %v3344_v2 = vmul.f32 %v3328_v54, %v10177_v14  ;;  %v3345_v26 = vadd.f32 %v3337_v29, %v3239_v19  ;;  %v12151_v28 = vld [vmem:[#allocation72_spill] sm:$0xff] }
 0x6ec   :  { %v3346_v61 = vadd.f32 %v3338_v53, %v3240_v16  ;;  %v3347_v3 = vadd.f32 %v3339_v44, %v3241_v8  ;;  %v3348_v60 = vadd.f32 %v3340_v30, %v3242_v40  ;;  %v3349_v42 = vadd.f32 %v3341_v49, %v3243_v10  ;;  %v12152_v16 = vld [vmem:[#allocation79_spill] sm:$0xff] }
 0x6ed   :  { %v3350_v34 = vadd.f32 %v3342_v7, %v3244_v25  ;;  %v3351_v21 = vadd.f32 %v3343_v41, %v3245_v1  ;;  %v3352_v5 = vadd.f32 %v3344_v2, %v3246_v43  ;;  %v10295_v0 = vsel %vm319_vm3, %v3345_v26, -1e+09 }
 0x6ee   :  { %v10299_v47 = vsel %vm319_vm3, %v3346_v61, -1e+09  ;;  %v10303_v35 = vsel %vm319_vm3, %v3347_v3, -1e+09  ;;  %v10307_v14 = vsel %vm319_vm3, %v3348_v60, -1e+09  ;;  %v10311_v23 = vadd.f32 %v10144_v17, %v12151_v28 }
 0x6ef   :  { %v10315_v54 = vsel %vm319_vm3, %v3349_v42, -1e+09  ;;  %v10319_v19 = vsel %vm319_vm3, %v3350_v34, -1e+09  ;;  %v10323_v51 = vsel %vm319_vm3, %v3351_v21, -1e+09  ;;  %v10327_v8 = vadd.f32 %v10179_v31, %v12152_v16 }
 0x6f0   :  { %v10331_v17 = vsel %vm319_vm3, %v3352_v5, -1e+09  ;;  %v3361_v40 = vrot.slane %v10295_v0, 4  ;;  %v3367_v10 = vrot.slane %v10299_v47, 4  ;;  %v3373_v25 = vrot.slane %v10303_v35, 4 }
 0x6f1   :  { %12153 = vst [vmem:[#allocation111_spill] sm:$0xff] %v10327_v8  ;;  %v3379_v1 = vrot.slane %v10307_v14, 4  ;;  %v3385_v43 = vrot.slane %v10315_v54, 4  ;;  %v3391_v29 = vrot.slane %v10319_v19, 4  ;;  %v3397_v53 = vrot.slane %v10323_v51, 4 }
 0x6f2   :  { %v3362_v31 = vmax.f32 %v10295_v0, %v3361_v40  ;;  %v3368_v44 = vmax.f32 %v10299_v47, %v3367_v10  ;;  %v3374_v30 = vmax.f32 %v10303_v35, %v3373_v25  ;;  %v3403_v49 = vrot.slane %v10331_v17, 4 }
 0x6f3   :  { %v3380_v7 = vmax.f32 %v10307_v14, %v3379_v1  ;;  %v3386_v41 = vmax.f32 %v10315_v54, %v3385_v43  ;;  %v3392_v2 = vmax.f32 %v10319_v19, %v3391_v29  ;;  %v3398_v26 = vmax.f32 %v10323_v51, %v3397_v53 }
 0x6f4   :  { %v3363_v61 = vrot.slane %v3362_v31, 2  ;;  %v3369_v3 = vrot.slane %v3368_v44, 2  ;;  %v3375_v60 = vrot.slane %v3374_v30, 2  ;;  %v3404_v42 = vmax.f32 %v10331_v17, %v3403_v49 }
 0x6f5   :  { %v3381_v34 = vrot.slane %v3380_v7, 2  ;;  %v3387_v21 = vrot.slane %v3386_v41, 2  ;;  %v3393_v5 = vrot.slane %v3392_v2, 2  ;;  %v3399_v28 = vrot.slane %v3398_v26, 2 }
 0x6f6   :  { %v3364_v16 = vmax.f32 %v3362_v31, %v3363_v61  ;;  %v3370_v40 = vmax.f32 %v3368_v44, %v3369_v3  ;;  %v3376_v10 = vmax.f32 %v3374_v30, %v3375_v60  ;;  %v3405_v25 = vrot.slane %v3404_v42, 2 }
 0x6f7   :  { %v3382_v1 = vmax.f32 %v3380_v7, %v3381_v34  ;;  %v3388_v32 = vmax.f32 %v3386_v41, %v3387_v21  ;;  %v3394_v43 = vmax.f32 %v3392_v2, %v3393_v5  ;;  %v3400_v45 = vmax.f32 %v3398_v26, %v3399_v28 }
 0x6f8   :  { %v3365_v29 = vrot.slane %v3364_v16, 1  ;;  %v3371_v63 = vrot.slane %v3370_v40, 1  ;;  %v3377_v53 = vrot.slane %v3376_v10, 1  ;;  %v3406_v11 = vmax.f32 %v3404_v42, %v3405_v25 }
 0x6f9   :  { %v3383_v24 = vrot.slane %v3382_v1, 1  ;;  %v3389_v27 = vrot.slane %v3388_v32, 1  ;;  %v3395_v52 = vrot.slane %v3394_v43, 1  ;;  %v3401_v49 = vrot.slane %v3400_v45, 1 }
 0x6fa   :  { %v3366_v39 = vmax.f32 %v3364_v16, %v3365_v29  ;;  %v3372_v13 = vmax.f32 %v3370_v40, %v3371_v63  ;;  %v3378_v8 = vmax.f32 %v3376_v10, %v3377_v53  ;;  %v3407_v50 = vrot.slane %v3406_v11, 1 }
 0x6fb   :  { %v3384_v31 = vmax.f32 %v3382_v1, %v3383_v24  ;;  %v3390_v44 = vmax.f32 %v3388_v32, %v3389_v27  ;;  %v3396_v30 = vmax.f32 %v3394_v43, %v3395_v52  ;;  %v3402_v61 = vmax.f32 %v3400_v45, %v3401_v49 }
 0x6fc   :  { %v3408_v7 = vmax.f32 %v3406_v11, %v3407_v50  ;;  %v3409_v41 = vsub.f32 %v10295_v0, %v3366_v39  ;;  %v3410_v2 = vsub.f32 %v10299_v47, %v3372_v13  ;;  %v3411_v26 = vsub.f32 %v10303_v35, %v3378_v8 }
 0x6fd   :  { %v3412_v3 = vsub.f32 %v10307_v14, %v3384_v31  ;;  %v3413_v60 = vsub.f32 %v10315_v54, %v3390_v44  ;;  %v3414_v42 = vsub.f32 %v10319_v19, %v3396_v30  ;;  %v3415_v63 = vsub.f32 %v10323_v51, %v3402_v61 }
 0x6fe   :  { %v3416_v24 = vsub.f32 %v10331_v17, %v3408_v7  ;;  %v3417_v27 = vmul.f32 1.442695, %v3409_v41  ;;  %v3419_v52 = vmul.f32 1.442695, %v3410_v2  ;;  %v3421_v45 = vmul.f32 1.442695, %v3411_v26 }
 0x6ff   :  { %v3423_v50 = vmul.f32 1.442695, %v3412_v3  ;;  %v3425_v11 = vmul.f32 1.442695, %v3413_v60  ;;  %v3427_v39 = vmul.f32 1.442695, %v3414_v42  ;;  %v12154_v13 = vrot.slane %v10188_v55, %v12145_v4 }
 0x700   :  { %7876 = vpow2.f32 %v3417_v27  ;;  %v3429_v0 = vmul.f32 1.442695, %v3415_v63  ;;  %v3431_v47 = vmul.f32 1.442695, %v3416_v24  ;;  %v12155_v35 = vrot.slane %v10205_v59, %v12145_v4 }
 0x701   :  { %v2869_v32 = vmul.f32 %v12154_v13, %v10311_v23  ;;  %7878 = vpow2.f32 %v3419_v52  ;;  %v2871_v54 = vmul.f32 %v10229_v20, %v10311_v23  ;;  %v2872_v19 = vmul.f32 %v10241_v33, %v10311_v23 }
 0x702   :  { %v2870_v14 = vmul.f32 %v12155_v35, %v10311_v23  ;;  %v12156_v55 = vrot.slane %v10199_v6, %v12145_v4  ;;  %7880 = vpow2.f32 %v3421_v45  ;;  %v12157_v8 = vrot.slane %v10208_v22, %v12145_v4 }
 0x703   :  { %v2875_v59 = vmul.f32 %v10234_v46, %v10311_v23  ;;  %v2876_v20 = vmul.f32 %v10244_v58, %v10311_v23  ;;  %7882 = vpow2.f32 %v3423_v50  ;;  %v2877_v33 = vadd.f32 %v2869_v32, %v10257_v57  ;;  %v7754_v57 = vld [vmem:[%s11895_s6 + $0x10] sm:$0xff]  }
 0x704   :  { %v2873_v51 = vmul.f32 %v12156_v55, %v10311_v23  ;;  %v2874_v17 = vmul.f32 %v12157_v8, %v10311_v23  ;;  %v2878_v34 = vadd.f32 %v2870_v14, %v10262_v48  ;;  %v2879_v6 = vadd.f32 %v2871_v54, %v10265_v56  ;;  %7568 = vmatprep.mubr.msk.bf16.mxu1 %vm117_vm0, %v7754_v57 }
 0x705   :  { %7884 = vpow2.f32 %v3425_v11  ;;  %v2880_v21 = vadd.f32 %v2872_v19, %v10267_v36  ;;  %v2883_v46 = vadd.f32 %v2875_v59, %v10280_v37  ;;  %v2884_v28 = vadd.f32 %v2876_v20, %v10283_v38 }
 0x706   :  { %v2881_v5 = vadd.f32 %v2873_v51, %v10272_v18  ;;  %v2882_v22 = vadd.f32 %v2874_v17, %v10277_v9  ;;  %7886 = vpow2.f32 %v3427_v39  ;;  %v10391_v58 = vsel %vm319_vm3, %v2877_v33, -1e+09 }
 0x707   :  { %7888 = vpow2.f32 %v3429_v0  ;;  %v10398_v48 = vsel %vm319_vm3, %v2878_v34, -1e+09  ;;  %v10402_v56 = vsel %vm319_vm3, %v2879_v6, -1e+09  ;;  %v10406_v36 = vsel %vm319_vm3, %v2880_v21, -1e+09 }
 0x708   :  { %7890 = vpow2.f32 %v3431_v47  ;;  %v10410_v18 = vsel %vm319_vm3, %v2881_v5, -1e+09  ;;  %v10414_v9 = vsel %vm319_vm3, %v2882_v22, -1e+09  ;;  %v10418_v37 = vsel %vm319_vm3, %v2883_v46, -1e+09 }
 0x709   :  { %v10423_v38 = vsel %vm319_vm3, %v2884_v28, -1e+09  ;;  %v2893_v23 = vrot.slane %v10391_v58, 4  ;;  %v2899_v16 = vrot.slane %v10398_v48, 4  ;;  %v2905_v40 = vrot.slane %v10402_v56, 4 }
 0x70a   :  { %v2911_v10 = vrot.slane %v10406_v36, 4  ;;  %v2917_v25 = vrot.slane %v10410_v18, 4  ;;  %v2923_v1 = vrot.slane %v10414_v9, 4  ;;  %v2929_v43 = vrot.slane %v10418_v37, 4  ;;  %v10432_v29 = vpop.eup %7876 }
 0x70b   :  { %v2894_v53 = vmax.f32 %v10391_v58, %v2893_v23  ;;  %v2900_v49 = vmax.f32 %v10398_v48, %v2899_v16  ;;  %v2906_v31 = vmax.f32 %v10402_v56, %v2905_v40  ;;  %v2935_v44 = vrot.slane %v10423_v38, 4  ;;  %v10438_v30 = vpop.eup %7878 }
 0x70c   :  { %v2912_v61 = vmax.f32 %v10406_v36, %v2911_v10  ;;  %v2918_v7 = vmax.f32 %v10410_v18, %v2917_v25  ;;  %v2924_v41 = vmax.f32 %v10414_v9, %v2923_v1  ;;  %v2930_v2 = vmax.f32 %v10418_v37, %v2929_v43  ;;  %v10444_v26 = vpop.eup %7880 }
 0x70d   :  { %v2895_v3 = vrot.slane %v2894_v53, 2  ;;  %v2901_v60 = vrot.slane %v2900_v49, 2  ;;  %v2907_v42 = vrot.slane %v2906_v31, 2  ;;  %v2936_v63 = vmax.f32 %v10423_v38, %v2935_v44  ;;  %v10447_v24 = vpop.eup %7882 }
 0x70e   :  { %v2913_v27 = vrot.slane %v2912_v61, 2  ;;  %v2919_v52 = vrot.slane %v2918_v7, 2  ;;  %v2925_v45 = vrot.slane %v2924_v41, 2  ;;  %v2931_v50 = vrot.slane %v2930_v2, 2 }
 0x70f   :  { %v10449_v11 = vpop.eup %7884  ;;  %v2896_v39 = vmax.f32 %v2894_v53, %v2895_v3  ;;  %v2902_v13 = vmax.f32 %v2900_v49, %v2901_v60  ;;  %v2908_v32 = vmax.f32 %v2906_v31, %v2907_v42  ;;  %v2937_v0 = vrot.slane %v2936_v63, 2  ;;  %v12160_v42 = vld [vmem:[#allocation77_spill] sm:$0xff] }
 0x710   :  { %v10451_v47 = vpop.eup %7886  ;;  %v2914_v35 = vmax.f32 %v2912_v61, %v2913_v27  ;;  %v2920_v14 = vmax.f32 %v2918_v7, %v2919_v52  ;;  %v2926_v54 = vmax.f32 %v2924_v41, %v2925_v45  ;;  %v2932_v19 = vmax.f32 %v2930_v2, %v2931_v50 }
 0x711   :  { %12158 = vst [vmem:[#allocation9_spill] sm:$0xff] %v10451_v47  ;;  %v10453_v55 = vpop.eup %7888  ;;  %v2897_v51 = vrot.slane %v2896_v39, 1  ;;  %v2903_v8 = vrot.slane %v2902_v13, 1  ;;  %v2909_v17 = vrot.slane %v2908_v32, 1  ;;  %v2938_v59 = vmax.f32 %v2936_v63, %v2937_v0 }
 0x712   :  { %12159 = vst [vmem:[#allocation11_spill] sm:$0xff] %v10453_v55  ;;  %v10455_v20 = vpop.eup %7890  ;;  %v2915_v33 = vrot.slane %v2914_v35, 1  ;;  %v2921_v34 = vrot.slane %v2920_v14, 1  ;;  %v2927_v6 = vrot.slane %v2926_v54, 1  ;;  %v2933_v21 = vrot.slane %v2932_v19, 1 }
 0x713   :  { %v2898_v5 = vmax.f32 %v2896_v39, %v2897_v51  ;;  %v2904_v22 = vmax.f32 %v2902_v13, %v2903_v8  ;;  %v2910_v46 = vmax.f32 %v2908_v32, %v2909_v17  ;;  %v2939_v28 = vrot.slane %v2938_v59, 1 }
 0x714   :  { %v2916_v57 = vmax.f32 %v2914_v35, %v2915_v33  ;;  %v2922_v23 = vmax.f32 %v2920_v14, %v2921_v34  ;;  %v2928_v16 = vmax.f32 %v2926_v54, %v2927_v6  ;;  %v2934_v40 = vmax.f32 %v2932_v19, %v2933_v21 }
 0x715   :  { %v2940_v10 = vmax.f32 %v2938_v59, %v2939_v28  ;;  %v2941_v25 = vsub.f32 %v10391_v58, %v2898_v5  ;;  %v2942_v1 = vsub.f32 %v10398_v48, %v2904_v22  ;;  %v2943_v43 = vsub.f32 %v10402_v56, %v2910_v46 }
 0x716   :  { %v2944_v53 = vsub.f32 %v10406_v36, %v2916_v57  ;;  %v2945_v49 = vsub.f32 %v10410_v18, %v2922_v23  ;;  %v2946_v31 = vsub.f32 %v10414_v9, %v2928_v16  ;;  %v2947_v44 = vsub.f32 %v10418_v37, %v2934_v40  ;;  %v12161_v18 = vld [vmem:[#allocation78_spill] sm:$0xff]  ;;  %v12163_v37 = vld [vmem:[#allocation76_spill] sm:$0xff] }
 0x717   :  { %v2948_v61 = vsub.f32 %v10423_v38, %v2940_v10  ;;  %v2949_v7 = vmul.f32 1.442695, %v2941_v25  ;;  %v2951_v41 = vmul.f32 1.442695, %v2942_v1  ;;  %v2953_v2 = vmul.f32 1.442695, %v2943_v43 }
 0x718   :  { %v2955_v3 = vmul.f32 1.442695, %v2944_v53  ;;  %v2957_v60 = vmul.f32 1.442695, %v2945_v49  ;;  %v2959_v58 = vmul.f32 1.442695, %v2946_v31  ;;  %v10467_v48 = vadd.f32 %v10183_v12, %v12160_v42 }
 0x719   :  { %7892 = vpow2.f32 %v2949_v7  ;;  %v2961_v56 = vmul.f32 1.442695, %v2947_v44  ;;  %v2963_v36 = vmul.f32 1.442695, %v2948_v61  ;;  %v10471_v9 = vadd.f32 %v10190_v15, %v12161_v18  ;;  %v12164_v38 = vld [vmem:[#allocation5_spill] sm:$0xff] }
 0x71a   :  { %7894 = vpow2.f32 %v2951_v41  ;;  %v10475_v63 = vadd.f32 %v12164_v38, %v12163_v37  ;;  %v3433_v27 = vrot.slane %v10432_v29, 4  ;;  %v3439_v52 = vrot.slane %v10438_v30, 4 }
 0x71b   :  { %12162 = vst [vmem:[#allocation8_spill] sm:$0xff] %v10471_v9  ;;  %7896 = vpow2.f32 %v2953_v2  ;;  %v3445_v12 = vrot.slane %v10444_v26, 4  ;;  %v3451_v45 = vrot.slane %v10447_v24, 4  ;;  %v3457_v50 = vrot.slane %v10449_v11, 4 }
 0x71c   :  { %7898 = vpow2.f32 %v2955_v3  ;;  %v3434_v15 = vadd.f32 %v10432_v29, %v3433_v27  ;;  %v3440_v39 = vadd.f32 %v10438_v30, %v3439_v52  ;;  %v3463_v13 = vrot.slane %v10451_v47, 4 }
 0x71d   :  { %7900 = vpow2.f32 %v2957_v60  ;;  %v3446_v32 = vadd.f32 %v10444_v26, %v3445_v12  ;;  %v3452_v0 = vadd.f32 %v10447_v24, %v3451_v45  ;;  %v3458_v35 = vadd.f32 %v10449_v11, %v3457_v50 }
 0x71e   :  { %7902 = vpow2.f32 %v2959_v58  ;;  %v3435_v14 = vrot.slane %v3434_v15, 2  ;;  %v3441_v54 = vrot.slane %v3440_v39, 2  ;;  %v3464_v19 = vadd.f32 %v10451_v47, %v3463_v13 }
 0x71f   :  { %7904 = vpow2.f32 %v2961_v56  ;;  %v3447_v51 = vrot.slane %v3446_v32, 2  ;;  %v3453_v8 = vrot.slane %v3452_v0, 2  ;;  %v3459_v17 = vrot.slane %v3458_v35, 2 }
 0x720   :  { %7906 = vpow2.f32 %v2963_v36  ;;  %v3436_v59 = vadd.f32 %v3435_v14, %v3434_v15  ;;  %v3442_v33 = vadd.f32 %v3441_v54, %v3440_v39  ;;  %v3465_v34 = vrot.slane %v3464_v19, 2 }
 0x721   :  { %v10489_v6 = vadd.f32 %v3447_v51, %v3446_v32  ;;  %v10491_v21 = vadd.f32 %v3453_v8, %v3452_v0  ;;  %v10493_v5 = vadd.f32 %v3459_v17, %v3458_v35  ;;  %v3469_v22 = vrot.slane %v10453_v55, 4 }
 0x722   :  { %v3437_v46 = vrot.slane %v3436_v59, 1  ;;  %v3443_v28 = vrot.slane %v3442_v33, 1  ;;  %v10496_v57 = vadd.f32 %v3465_v34, %v3464_v19 }
 0x723   :  { %v7893_v16 = vpop.eup %7892  ;;  %v10503_v1 = vadd.f32 %v10453_v55, %v3469_v22 }
 0x724   :  { %v7895_v43 = vpop.eup %7894  ;;  %v2965_v53 = vrot.slane %v7893_v16, 4  ;;  %v10506_v49 = vmul.f32 %v7893_v16, %v10467_v48  ;;  %v10509_v31 = vmul.f32 %v7893_v16, %v10475_v63  ;;  %v10511_v44 = vadd.f32 %v3437_v46, %v3436_v59 }
 0x725   :  { %v10513_v61 = vpop.eup %7896  ;;  %v2971_v7 = vrot.slane %v7895_v43, 4  ;;  %v10516_v41 = vmul.f32 %v7895_v43, %v10467_v48  ;;  %v10519_v2 = vmul.f32 %v7895_v43, %v10475_v63  ;;  %v10521_v3 = vadd.f32 %v3443_v28, %v3442_v33 }
 0x726   :  { %v10523_v60 = vpop.eup %7898  ;;  %v2966_v58 = vadd.f32 %v7893_v16, %v2965_v53  ;;  %v2977_v42 = vrot.slane %v10513_v61, 4  ;;  %v10528_v56 = vmul.f32 %v10513_v61, %v10467_v48  ;;  %v3029_v36 = vrot.slane %v10506_v49, 4 }
 0x727   :  { %v10531_v18 = vpop.eup %7900  ;;  %v2972_v37 = vadd.f32 %v7895_v43, %v2971_v7  ;;  %v2983_v38 = vrot.slane %v10523_v60, 4  ;;  %v10536_v27 = vmul.f32 %v10523_v60, %v10467_v48  ;;  %v3035_v52 = vrot.slane %v10516_v41, 4 }
 0x728   :  { %v10539_v12 = vpop.eup %7902  ;;  %v2967_v45 = vrot.slane %v2966_v58, 2  ;;  %v2978_v50 = vadd.f32 %v10513_v61, %v2977_v42  ;;  %v2989_v15 = vrot.slane %v10531_v18, 4  ;;  %v10545_v39 = vmul.f32 %v10531_v18, %v10467_v48 }
 0x729   :  { %v10547_v13 = vpop.eup %7904  ;;  %v2973_v32 = vrot.slane %v2972_v37, 2  ;;  %v2984_v0 = vadd.f32 %v10523_v60, %v2983_v38  ;;  %v2995_v35 = vrot.slane %v10539_v12, 4  ;;  %v10553_v14 = vmul.f32 %v10539_v12, %v10467_v48 }
 0x72a   :  { %v10555_v54 = vpop.eup %7906  ;;  %v2968_v19 = vadd.f32 %v2967_v45, %v2966_v58  ;;  %v2979_v51 = vrot.slane %v2978_v50, 2  ;;  %v2990_v8 = vadd.f32 %v10531_v18, %v2989_v15  ;;  %v3001_v17 = vrot.slane %v10547_v13, 4 }
 0x72b   :  { %v2974_v59 = vadd.f32 %v2973_v32, %v2972_v37  ;;  %v2985_v33 = vrot.slane %v2984_v0, 2  ;;  %v2996_v34 = vadd.f32 %v10539_v12, %v2995_v35  ;;  %v3007_v22 = vrot.slane %v10555_v54, 4 }
 0x72c   :  { %v2969_v46 = vrot.slane %v2968_v19, 1  ;;  %v2980_v28 = vadd.f32 %v2979_v51, %v2978_v50  ;;  %v2991_v16 = vrot.slane %v2990_v8, 2  ;;  %v3002_v43 = vadd.f32 %v10547_v13, %v3001_v17 }
 0x72d   :  { %v2975_v53 = vrot.slane %v2974_v59, 1  ;;  %v2986_v7 = vadd.f32 %v2985_v33, %v2984_v0  ;;  %v2997_v42 = vrot.slane %v2996_v34, 2  ;;  %v3008_v58 = vadd.f32 %v10555_v54, %v3007_v22 }
 0x72e   :  { %v2970_v38 = vadd.f32 %v2969_v46, %v2968_v19  ;;  %v2981_v45 = vrot.slane %v2980_v28, 1  ;;  %v2992_v15 = vadd.f32 %v2991_v16, %v2990_v8  ;;  %v3003_v23 = vrot.slane %v3002_v43, 2 }
 0x72f   :  { %v2976_v37 = vadd.f32 %v2975_v53, %v2974_v59  ;;  %v2987_v32 = vrot.slane %v2986_v7, 1  ;;  %v2998_v25 = vadd.f32 %v2997_v42, %v2996_v34  ;;  %v3009_v35 = vrot.slane %v3008_v58, 2 }
 0x730   :  { %v2982_v10 = vadd.f32 %v2981_v45, %v2980_v28  ;;  %v2993_v40 = vrot.slane %v2992_v15, 1  ;;  %v3004_v62 = vadd.f32 %v3003_v23, %v3002_v43  ;;  %7908 = vrcp.f32 %v2970_v38 }
 0x731   :  { %v2988_v50 = vadd.f32 %v2987_v32, %v2986_v7  ;;  %v2999_v51 = vrot.slane %v2998_v25, 1  ;;  %v3010_v17 = vadd.f32 %v3009_v35, %v3008_v58  ;;  %7910 = vrcp.f32 %v2976_v37 }
 0x732   :  { %v2994_v0 = vadd.f32 %v2993_v40, %v2992_v15  ;;  %v3005_v33 = vrot.slane %v3004_v62, 1  ;;  %7912 = vrcp.f32 %v2982_v10  ;;  %v3027_v19 = vmul.f32 %v10547_v13, %v10467_v48 }
 0x733   :  { %v3000_v8 = vadd.f32 %v2999_v51, %v2998_v25  ;;  %v3011_v22 = vrot.slane %v3010_v17, 1  ;;  %7914 = vrcp.f32 %v2988_v50  ;;  %v3028_v59 = vmul.f32 %v10555_v54, %v10467_v48 }
 0x734   :  { %v3006_v34 = vadd.f32 %v3005_v33, %v3004_v62  ;;  %7916 = vrcp.f32 %v2994_v0  ;;  %v3030_v23 = vadd.f32 %v3029_v36, %v10506_v49  ;;  %v3036_v46 = vadd.f32 %v3035_v52, %v10516_v41 }
 0x735   :  { %v3012_v28 = vadd.f32 %v3011_v22, %v3010_v17  ;;  %7918 = vrcp.f32 %v3000_v8  ;;  %v3041_v40 = vrot.slane %v10528_v56, 4  ;;  %v3047_v10 = vrot.slane %v10536_v27, 4 }
 0x736   :  { %7920 = vrcp.f32 %v3006_v34  ;;  %v3031_v16 = vrot.slane %v3030_v23, 2  ;;  %v3037_v25 = vrot.slane %v3036_v46, 2  ;;  %v3053_v43 = vrot.slane %v10545_v39, 4 }
 0x737   :  { %7922 = vrcp.f32 %v3012_v28  ;;  %v3042_v48 = vadd.f32 %v3041_v40, %v10528_v56  ;;  %v3048_v62 = vadd.f32 %v3047_v10, %v10536_v27  ;;  %v3059_v49 = vrot.slane %v10553_v14, 4 }
 0x738   :  { %v3032_v36 = vadd.f32 %v3031_v16, %v3030_v23  ;;  %v3038_v41 = vadd.f32 %v3037_v25, %v3036_v46  ;;  %v3054_v52 = vadd.f32 %v3053_v43, %v10545_v39  ;;  %v3065_v53 = vrot.slane %v3027_v19, 4 }
 0x739   :  { %v3043_v7 = vrot.slane %v3042_v48, 2  ;;  %v3049_v42 = vrot.slane %v3048_v62, 2  ;;  %v3060_v58 = vadd.f32 %v3059_v49, %v10553_v14  ;;  %v3071_v38 = vrot.slane %v3028_v59, 4 }
 0x73a   :  { %v10577_v45 = vpop.eup %7908  ;;  %v3033_v15 = vrot.slane %v3032_v36, 1  ;;  %v3039_v37 = vrot.slane %v3038_v41, 1  ;;  %v3055_v32 = vrot.slane %v3054_v52, 2  ;;  %v3066_v56 = vadd.f32 %v3065_v53, %v3027_v19 }
 0x73b   :  { %v10579_v35 = vpop.eup %7910  ;;  %v3044_v27 = vadd.f32 %v3043_v7, %v3042_v48  ;;  %v3050_v50 = vadd.f32 %v3049_v42, %v3048_v62  ;;  %v3061_v51 = vrot.slane %v3060_v58, 2  ;;  %v3072_v17 = vadd.f32 %v3071_v38, %v3028_v59 }
 0x73c   :  { %v10581_v0 = vpop.eup %7912  ;;  %v3034_v39 = vadd.f32 %v3033_v15, %v3032_v36  ;;  %v3040_v33 = vadd.f32 %v3039_v37, %v3038_v41  ;;  %v3056_v8 = vadd.f32 %v3055_v32, %v3054_v52  ;;  %v3067_v22 = vrot.slane %v3066_v56, 2 }
 0x73d   :  { %v10583_v14 = vpop.eup %7914  ;;  %v3045_v34 = vrot.slane %v3044_v27, 1  ;;  %v3051_v23 = vrot.slane %v3050_v50, 1  ;;  %v3062_v46 = vadd.f32 %v3061_v51, %v3060_v58  ;;  %v3073_v28 = vrot.slane %v3072_v17, 2 }
 0x73e   :  { %v10585_v40 = vpop.eup %7916  ;;  %v3057_v19 = vrot.slane %v3056_v8, 1  ;;  %v3068_v10 = vadd.f32 %v3067_v22, %v3066_v56  ;;  %v10588_v16 = vmul.f32 %v10577_v45, %v3034_v39  ;;  %v10591_v59 = vmul.f32 %v10579_v35, %v3040_v33 }
 0x73f   :  { %v10593_v25 = vpop.eup %7918  ;;  %v3046_v43 = vadd.f32 %v3045_v34, %v3044_v27  ;;  %v3052_v48 = vadd.f32 %v3051_v23, %v3050_v50  ;;  %v3063_v62 = vrot.slane %v3062_v46, 1  ;;  %v3074_v49 = vadd.f32 %v3073_v28, %v3072_v17 }
 0x740   :  { %v10595_v36 = vpop.eup %7920  ;;  %v3058_v41 = vadd.f32 %v3057_v19, %v3056_v8  ;;  %v3069_v52 = vrot.slane %v3068_v10, 1  ;;  %v3087_v53 = vmul.f32 %v10513_v61, %v10475_v63  ;;  %v3088_v7 = vmul.f32 %v10523_v60, %v10475_v63 }
 0x741   :  { %v10601_v42 = vpop.eup %7922  ;;  %v3064_v58 = vadd.f32 %v3063_v62, %v3062_v46  ;;  %v3075_v38 = vrot.slane %v3074_v49, 1  ;;  %v10604_v15 = vmul.f32 %v10581_v0, %v3046_v43  ;;  %v10607_v37 = vmul.f32 %v10583_v14, %v3052_v48 }
 0x742   :  { %v3070_v32 = vadd.f32 %v3069_v52, %v3068_v10  ;;  %v10610_v56 = vmul.f32 %v10585_v40, %v3058_v41  ;;  %v3089_v61 = vmul.f32 %v10531_v18, %v10475_v63  ;;  %v3090_v60 = vmul.f32 %v10539_v12, %v10475_v63 }
 0x743   :  { %v3076_v27 = vadd.f32 %v3075_v38, %v3074_v49  ;;  %v10617_v50 = vmul.f32 %v10593_v25, %v3064_v58  ;;  %v3091_v51 = vmul.f32 %v10547_v13, %v10475_v63  ;;  %v3092_v17 = vmul.f32 %v10555_v54, %v10475_v63 }
 0x744   :  { %v10624_v39 = vmul.f32 %v10595_v36, %v3070_v32  ;;  %v3093_v33 = vrot.slane %v10509_v31, 4  ;;  %v3099_v18 = vrot.slane %v10519_v2, 4  ;;  %v3105_v8 = vrot.slane %v3087_v53, 4 }
 0x745   :  { %v10629_v12 = vmul.f32 %v10601_v42, %v3076_v27  ;;  %v3111_v22 = vrot.slane %v3088_v7, 4  ;;  %v3117_v34 = vrot.slane %v3089_v61, 4  ;;  %v3123_v23 = vrot.slane %v3090_v60, 4 }
 0x746   :  { %v3094_v46 = vadd.f32 %v3093_v33, %v10509_v31  ;;  %v3100_v13 = vadd.f32 %v3099_v18, %v10519_v2  ;;  %v3106_v28 = vadd.f32 %v3105_v8, %v3087_v53  ;;  %v3129_v63 = vrot.slane %v3091_v51, 4 }
 0x747   :  { %v3112_v54 = vadd.f32 %v3111_v22, %v3088_v7  ;;  %v3118_v19 = vadd.f32 %v3117_v34, %v3089_v61  ;;  %v3124_v10 = vadd.f32 %v3123_v23, %v3090_v60  ;;  %v3135_v43 = vrot.slane %v3092_v17, 4 }
 0x748   :  { %v3095_v48 = vrot.slane %v3094_v46, 2  ;;  %v3101_v62 = vrot.slane %v3100_v13, 2  ;;  %v3107_v49 = vrot.slane %v3106_v28, 2  ;;  %v3130_v41 = vadd.f32 %v3129_v63, %v3091_v51 }
 0x749   :  { %v3113_v52 = vrot.slane %v3112_v54, 2  ;;  %v3119_v58 = vrot.slane %v3118_v19, 2  ;;  %v3125_v38 = vrot.slane %v3124_v10, 2  ;;  %v3136_v32 = vadd.f32 %v3135_v43, %v3092_v17 }
 0x74a   :  { %v3096_v27 = vadd.f32 %v3095_v48, %v3094_v46  ;;  %v3102_v4 = vadd.f32 %v3101_v62, %v3100_v13  ;;  %v3108_v9 = vadd.f32 %v3107_v49, %v3106_v28  ;;  %v3131_v31 = vrot.slane %v3130_v41, 2 }
 0x74b   :  { %v3114_v33 = vadd.f32 %v3113_v52, %v3112_v54  ;;  %v3120_v2 = vadd.f32 %v3119_v58, %v3118_v19  ;;  %v3126_v53 = vadd.f32 %v3125_v38, %v3124_v10  ;;  %v3137_v18 = vrot.slane %v3136_v32, 2 }
 0x74c   :  { %v3097_v7 = vrot.slane %v3096_v27, 1  ;;  %v3103_v61 = vrot.slane %v3102_v4, 1  ;;  %v3109_v60 = vrot.slane %v3108_v9, 1  ;;  %v3132_v8 = vadd.f32 %v3131_v31, %v3130_v41 }
 0x74d   :  { %v3115_v22 = vrot.slane %v3114_v33, 1  ;;  %v3121_v34 = vrot.slane %v3120_v2, 1  ;;  %v3127_v23 = vrot.slane %v3126_v53, 1  ;;  %v3138_v51 = vadd.f32 %v3137_v18, %v3136_v32 }
 0x74e   :  { %v3098_v63 = vadd.f32 %v3097_v7, %v3096_v27  ;;  %v3104_v55 = vadd.f32 %v3103_v61, %v3102_v4  ;;  %v3110_v47 = vadd.f32 %v3109_v60, %v3108_v9  ;;  %v3133_v17 = vrot.slane %v3132_v8, 1 }
 0x74f   :  { %v3116_v46 = vadd.f32 %v3115_v22, %v3114_v33  ;;  %v3122_v13 = vadd.f32 %v3121_v34, %v3120_v2  ;;  %v3128_v28 = vadd.f32 %v3127_v23, %v3126_v53  ;;  %v3139_v43 = vrot.slane %v3138_v51, 1  ;;  %v12170_v22 = vld [vmem:[#allocation9_spill] sm:$0xff]  ;;  %v12171_v23 = vld [vmem:[#allocation11_spill] sm:$0xff] }
 0x750   :  { %v3134_v54 = vadd.f32 %v3133_v17, %v3132_v8  ;;  %v3141_v19 = vmul.f32 %v10577_v45, %v3098_v63  ;;  %v3142_v10 = vmul.f32 %v10579_v35, %v3104_v55  ;;  %v3143_v48 = vmul.f32 %v10581_v0, %v3110_v47 }
 0x751   :  { %v3140_v62 = vadd.f32 %v3139_v43, %v3138_v51  ;;  %v3144_v49 = vmul.f32 %v10583_v14, %v3116_v46  ;;  %v3145_v41 = vmul.f32 %v10585_v40, %v3122_v13  ;;  %v3146_v4 = vmul.f32 %v10593_v25, %v3128_v28 }
 0x752   :  { %v3147_v9 = vmul.f32 %v10595_v36, %v3134_v54  ;;  %v3625_v52 = vsel %vm1482_vm4, %v10591_v59, %v10588_v16  ;;  %v3641_v58 = vsel %vm1482_vm4, %v3142_v10, %v3141_v19  ;;  %v12165_v55 = vrot.slane %v10489_v6, 1 }
 0x753   :  { %v3148_v47 = vmul.f32 %v10601_v42, %v3140_v62  ;;  %v3626_v35 = vsel %vm1484_vm5, %v10604_v15, %v3625_v52  ;;  %v3642_v0 = vsel %vm1484_vm5, %v3143_v48, %v3641_v58  ;;  %v12166_v14 = vrot.slane %v10491_v21, 1 }
 0x754   :  { %v3450_v45 = vadd.f32 %v12165_v55, %v10489_v6  ;;  %v3627_v16 = vsel %vm1486_vm6, %v10607_v37, %v3626_v35  ;;  %v3643_v59 = vsel %vm1486_vm6, %v3144_v49, %v3642_v0  ;;  %v12167_v25 = vrot.slane %v10493_v5, 1 }
 0x755   :  { %v3456_v40 = vadd.f32 %v12166_v14, %v10491_v21  ;;  %v3467_v36 = vrot.slane %v10496_v57, 1  ;;  %v3628_v42 = vsel %vm1488_vm7, %v10610_v56, %v3627_v16  ;;  %v3644_v15 = vsel %vm1488_vm7, %v3145_v41, %v3643_v59 }
 0x756   :  { %v3462_v6 = vadd.f32 %v12167_v25, %v10493_v5  ;;  %v3471_v38 = vrot.slane %v10503_v1, 2  ;;  %v12168_v21 = vrot.slane %v10455_v20, 4  ;;  %v3629_v37 = vsel %vm1490_vm8, %v10617_v50, %v3628_v42  ;;  %v12169_v50 = vld [vmem:[#allocation111_spill] sm:$0xff] }
 0x757   :  { %v3645_v27 = vsel %vm1490_vm8, %v3146_v4, %v3644_v15  ;;  %v3468_v5 = vadd.f32 %v3467_v36, %v10496_v57  ;;  %7924 = vrcp.f32 %v10511_v44  ;;  %v3630_v56 = vsel %vm1492_vm9, %v10624_v39, %v3629_v37 }
 0x758   :  { %v3476_v32 = vadd.f32 %v10455_v20, %v12168_v21  ;;  %v3646_v31 = vsel %vm1492_vm9, %v3147_v9, %v3645_v27  ;;  %v3472_v33 = vadd.f32 %v3471_v38, %v10503_v1  ;;  %v3631_v53 = vsel %vm1494_vm10, %v10629_v12, %v3630_v56 }
 0x759   :  { %v3647_v18 = vsel %vm1494_vm10, %v3148_v47, %v3646_v31  ;;  %7926 = vrcp.f32 %v10521_v3  ;;  %v3489_v57 = vmul.f32 %v10432_v29, %v12169_v50  ;;  %v3490_v39 = vmul.f32 %v10438_v30, %v12169_v50 }
 0x75a   :  { %v3477_v2 = vrot.slane %v3476_v32, 2  ;;  %v3686_v7 = vpack.c.bf16 %v3647_v18, %v3631_v53  ;;  %v3473_v44 = vrot.slane %v3472_v33, 1  ;;  %7928 = vrcp.f32 %v3450_v45 }
 0x75b   :  { %7930 = vrcp.f32 %v3456_v40  ;;  %v3491_v1 = vmul.f32 %v10444_v26, %v12169_v50  ;;  %v3492_v12 = vmul.f32 %v10447_v24, %v12169_v50  ;;  %v3493_v8 = vmul.f32 %v10449_v11, %v12169_v50 }
 0x75c   :  { %v3478_v61 = vadd.f32 %v3477_v2, %v3476_v32  ;;  %7564 = vmatprep.subr.bf16.mxu1 %v3686_v7  ;;  %v3474_v60 = vadd.f32 %v3473_v44, %v3472_v33  ;;  %7932 = vrcp.f32 %v3462_v6  ;;  %v3494_v34 = vmul.f32 %v12170_v22, %v12169_v50 }
 0x75d   :  { %7565 = vmatpush3.bf16.msra.mxu1 %v3686_v7  ;;  %7934 = vrcp.f32 %v3468_v5  ;;  %v3495_v51 = vmul.f32 %v12171_v23, %v12169_v50  ;;  %v3496_v63 = vmul.f32 %v10455_v20, %v12169_v50  ;;  %v3497_v46 = vrot.slane %v3489_v57, 4 }
 0x75e   :  { %v3479_v3 = vrot.slane %v3478_v61, 1  ;;  %7936 = vrcp.f32 %v3474_v60  ;;  %v3503_v13 = vrot.slane %v3490_v39, 4  ;;  %v3509_v28 = vrot.slane %v3491_v1, 4 }
 0x75f   :  { %v3515_v43 = vrot.slane %v3492_v12, 4  ;;  %v3521_v54 = vrot.slane %v3493_v8, 4  ;;  %v3527_v19 = vrot.slane %v3494_v34, 4  ;;  %v3498_v10 = vadd.f32 %v3497_v46, %v3489_v57 }
 0x760   :  { %v3480_v17 = vadd.f32 %v3479_v3, %v3478_v61  ;;  %v3504_v48 = vadd.f32 %v3503_v13, %v3490_v39  ;;  %v3533_v62 = vrot.slane %v3495_v51, 4  ;;  %v3510_v41 = vadd.f32 %v3509_v28, %v3491_v1 }
 0x761   :  { %v10697_v49 = vpop.eup %7924  ;;  %v3516_v4 = vadd.f32 %v3515_v43, %v3492_v12  ;;  %v3522_v9 = vadd.f32 %v3521_v54, %v3493_v8  ;;  %v3528_v52 = vadd.f32 %v3527_v19, %v3494_v34  ;;  %v3499_v58 = vrot.slane %v3498_v10, 2 }
 0x762   :  { %7938 = vrcp.f32 %v3480_v17  ;;  %v3505_v55 = vrot.slane %v3504_v48, 2  ;;  %v3534_v45 = vadd.f32 %v3533_v62, %v3495_v51  ;;  %v3539_v47 = vrot.slane %v3496_v63, 4 }
 0x763   :  { %v10699_v35 = vpop.eup %7926  ;;  %v3511_v0 = vrot.slane %v3510_v41, 2  ;;  %v3517_v14 = vrot.slane %v3516_v4, 2  ;;  %v3523_v40 = vrot.slane %v3522_v9, 2  ;;  %v3529_v16 = vrot.slane %v3528_v52, 2 }
 0x764   :  { %v10701_v59 = vpop.eup %7928  ;;  %v3500_v25 = vadd.f32 %v3499_v58, %v3498_v10  ;;  %v3506_v6 = vadd.f32 %v3505_v55, %v3504_v48  ;;  %v3535_v36 = vrot.slane %v3534_v45, 2  ;;  %v3540_v42 = vadd.f32 %v3539_v47, %v3496_v63  ;;  %v12172_v48 = vld [vmem:[#allocation8_spill] sm:$0xff] }
 0x765   :  { %v10703_v15 = vpop.eup %7930  ;;  %v3512_v38 = vadd.f32 %v3511_v0, %v3510_v41  ;;  %v3518_v21 = vadd.f32 %v3517_v14, %v3516_v4  ;;  %v3524_v32 = vadd.f32 %v3523_v40, %v3522_v9  ;;  %v3530_v37 = vadd.f32 %v3529_v16, %v3528_v52 }
 0x766   :  { %v10705_v27 = vpop.eup %7932  ;;  %v3501_v5 = vrot.slane %v3500_v25, 1  ;;  %v3507_v56 = vrot.slane %v3506_v6, 1  ;;  %v3536_v31 = vadd.f32 %v3535_v36, %v3534_v45  ;;  %v3541_v33 = vrot.slane %v3540_v42, 2 }
 0x767   :  { %v10707_v2 = vpop.eup %7934  ;;  %v3513_v53 = vrot.slane %v3512_v38, 1  ;;  %v3519_v18 = vrot.slane %v3518_v21, 1  ;;  %v3525_v50 = vrot.slane %v3524_v32, 1  ;;  %v3531_v57 = vrot.slane %v3530_v37, 1 }
 0x768   :  { %v10709_v7 = vpop.eup %7936  ;;  %v3502_v44 = vadd.f32 %v3501_v5, %v3500_v25  ;;  %v3508_v61 = vadd.f32 %v3507_v56, %v3506_v6  ;;  %v3537_v39 = vrot.slane %v3536_v31, 1  ;;  %v3542_v1 = vadd.f32 %v3541_v33, %v3540_v42 }
 0x769   :  { %v3514_v12 = vadd.f32 %v3513_v53, %v3512_v38  ;;  %v3520_v60 = vadd.f32 %v3519_v18, %v3518_v21  ;;  %v3526_v3 = vadd.f32 %v3525_v50, %v3524_v32  ;;  %v3532_v8 = vadd.f32 %v3531_v57, %v3530_v37 }
 0x76a   :  { %v3538_v51 = vadd.f32 %v3537_v39, %v3536_v31  ;;  %v3543_v63 = vrot.slane %v3542_v1, 1  ;;  %v10714_v17 = vmul.f32 %v10697_v49, %v3502_v44  ;;  %v10717_v46 = vmul.f32 %v10699_v35, %v3508_v61 }
 0x76b   :  { %v10720_v13 = vmul.f32 %v10701_v59, %v3514_v12  ;;  %v10723_v28 = vmul.f32 %v10703_v15, %v3520_v60  ;;  %v10726_v43 = vmul.f32 %v10705_v27, %v3526_v3  ;;  %v10729_v54 = vmul.f32 %v10707_v2, %v3532_v8 }
 0x76c   :  { %v10711_v34 = vpop.eup %7938  ;;  %v3544_v19 = vadd.f32 %v3543_v63, %v3542_v1  ;;  %v10732_v10 = vmul.f32 %v10709_v7, %v3538_v51  ;;  %v3553_v62 = vmul.f32 %v10432_v29, %v12172_v48  ;;  %v3554_v41 = vmul.f32 %v10438_v30, %v12172_v48 }
 0x76d   :  { %v3555_v4 = vmul.f32 %v10444_v26, %v12172_v48  ;;  %v3556_v9 = vmul.f32 %v10447_v24, %v12172_v48  ;;  %v3557_v52 = vmul.f32 %v10449_v11, %v12172_v48  ;;  %v3558_v58 = vmul.f32 %v12170_v22, %v12172_v48 }
 0x76e   :  { %v10747_v55 = vmul.f32 %v10711_v34, %v3544_v19  ;;  %v3559_v29 = vmul.f32 %v12171_v23, %v12172_v48  ;;  %v3560_v30 = vmul.f32 %v10455_v20, %v12172_v48  ;;  %v3561_v45 = vrot.slane %v3553_v62, 4 }
 0x76f   :  { %v3567_v26 = vrot.slane %v3554_v41, 4  ;;  %v3573_v47 = vrot.slane %v3555_v4, 4  ;;  %v3579_v0 = vrot.slane %v3556_v9, 4  ;;  %v3585_v24 = vrot.slane %v3557_v52, 4 }
 0x770   :  { %v3562_v14 = vadd.f32 %v3561_v45, %v3553_v62  ;;  %v3591_v40 = vrot.slane %v3558_v58, 4  ;;  %v3597_v11 = vrot.slane %v3559_v29, 4  ;;  %v3603_v16 = vrot.slane %v3560_v30, 4 }
 0x771   :  { %v3568_v25 = vadd.f32 %v3567_v26, %v3554_v41  ;;  %v3574_v22 = vadd.f32 %v3573_v47, %v3555_v4  ;;  %v3580_v6 = vadd.f32 %v3579_v0, %v3556_v9  ;;  %v3586_v36 = vadd.f32 %v3585_v24, %v3557_v52 }
 0x772   :  { %v3563_v42 = vrot.slane %v3562_v14, 2  ;;  %v3592_v38 = vadd.f32 %v3591_v40, %v3558_v58  ;;  %v3598_v21 = vadd.f32 %v3597_v11, %v3559_v29  ;;  %v3604_v23 = vadd.f32 %v3603_v16, %v3560_v30 }
 0x773   :  { %v3569_v32 = vrot.slane %v3568_v25, 2  ;;  %v3575_v37 = vrot.slane %v3574_v22, 2  ;;  %v3581_v20 = vrot.slane %v3580_v6, 2  ;;  %v3587_v5 = vrot.slane %v3586_v36, 2 }
 0x774   :  { %v3564_v56 = vadd.f32 %v3563_v42, %v3562_v14  ;;  %v3593_v31 = vrot.slane %v3592_v38, 2  ;;  %v3599_v33 = vrot.slane %v3598_v21, 2  ;;  %v3605_v53 = vrot.slane %v3604_v23, 2 }
 0x775   :  { %v3570_v18 = vadd.f32 %v3569_v32, %v3568_v25  ;;  %v3576_v50 = vadd.f32 %v3575_v37, %v3574_v22  ;;  %v3582_v57 = vadd.f32 %v3581_v20, %v3580_v6  ;;  %v3588_v44 = vadd.f32 %v3587_v5, %v3586_v36  ;;  %v12173_v6 = vld [vmem:[#allocation81_spill] sm:$0xff]  ;;  %v12175_v32 = vld [vmem:[#allocation80_spill] sm:$0xff]  ;;  %v12176_v20 = vld [vmem:[#allocation6_spill] sm:$0xff] }
 0x776   :  { %v3565_v61 = vrot.slane %v3564_v56, 1  ;;  %v3594_v39 = vadd.f32 %v3593_v31, %v3592_v38  ;;  %v3600_v1 = vadd.f32 %v3599_v33, %v3598_v21  ;;  %v3606_v12 = vadd.f32 %v3605_v53, %v3604_v23  ;;  %v12174_v21 = vld [vmem:[#allocation83_spill] sm:$0xff]  ;;  %v12178_v33 = vld [vmem:[#allocation109_spill] sm:$0xff] }
 0x777   :  { %v3571_v60 = vrot.slane %v3570_v18, 1  ;;  %v3577_v3 = vrot.slane %v3576_v50, 1  ;;  %v3583_v8 = vrot.slane %v3582_v57, 1  ;;  %v3589_v51 = vrot.slane %v3588_v44, 1 }
 0x778   :  { %v3566_v63 = vadd.f32 %v3565_v61, %v3564_v56  ;;  %v3595_v19 = vrot.slane %v3594_v39, 1  ;;  %v3601_v48 = vrot.slane %v3600_v1, 1  ;;  %v3607_v62 = vrot.slane %v3606_v12, 1  ;;  %v12177_v56 = vld [vmem:[#allocation82_spill] sm:$0xff] }
 0x779   :  { %v3572_v41 = vadd.f32 %v3571_v60, %v3570_v18  ;;  %v3578_v4 = vadd.f32 %v3577_v3, %v3576_v50  ;;  %v3584_v9 = vadd.f32 %v3583_v8, %v3582_v57  ;;  %v3590_v52 = vadd.f32 %v3589_v51, %v3588_v44  ;;  %v12179_v18 = vld [vmem:[#allocation7_spill] sm:$0xff]  ;;  %v12180_v44 = vld [vmem:[#allocation110_spill] sm:$0xff] }
 0x77a   :  { %v3596_v58 = vadd.f32 %v3595_v19, %v3594_v39  ;;  %v3602_v29 = vadd.f32 %v3601_v48, %v3600_v1  ;;  %v3608_v30 = vadd.f32 %v3607_v62, %v3606_v12  ;;  %v3609_v45 = vmul.f32 %v10697_v49, %v3566_v63 }
 0x77b   :  { %v3610_v26 = vmul.f32 %v10699_v35, %v3572_v41  ;;  %v3611_v47 = vmul.f32 %v10701_v59, %v3578_v4  ;;  %v3612_v0 = vmul.f32 %v10703_v15, %v3584_v9  ;;  %v3613_v24 = vmul.f32 %v10705_v27, %v3590_v52 }
 0x77c   :  { %v3614_v14 = vmul.f32 %v10707_v2, %v3596_v58  ;;  %v3615_v40 = vmul.f32 %v10709_v7, %v3602_v29  ;;  %v3616_v11 = vmul.f32 %v10711_v34, %v3608_v30  ;;  %v3657_v16 = vsel %vm1482_vm4, %v10717_v46, %v10714_v17 }
 0x77d   :  { %v3658_v49 = vsel %vm1484_vm5, %v10720_v13, %v3657_v16  ;;  %v3673_v35 = vsel %vm1482_vm4, %v3610_v26, %v3609_v45 }
 0x77e   :  { %v3659_v59 = vsel %vm1486_vm6, %v10723_v28, %v3658_v49  ;;  %v3674_v15 = vsel %vm1484_vm5, %v3611_v47, %v3673_v35  ;;  %v12184_v49 = vld [vmem:[#allocation88_spill] sm:$0xff] }
 0x77f   :  { %v3660_v27 = vsel %vm1488_vm7, %v10726_v43, %v3659_v59  ;;  %v3675_v2 = vsel %vm1486_vm6, %v3612_v0, %v3674_v15  ;;  %v12181_v0 = vld [vmem:[#allocation85_spill] sm:$0xff]  ;;  %v12185_v59 = vld [vmem:[#allocation87_spill] sm:$0xff] }
 0x780   :  { %v3661_v7 = vsel %vm1490_vm8, %v10729_v54, %v3660_v27  ;;  %v3676_v34 = vsel %vm1488_vm7, %v3613_v24, %v3675_v2  ;;  %v7755_v54 = vld [vmem:[%s11895_s6 + $0x18] sm:$0xff]   ;;  %v12186_v27 = vld [vmem:[#allocation86_spill] sm:$0xff] }
 0x781   :  { %v3662_v17 = vsel %vm1492_vm9, %v10732_v10, %v3661_v7  ;;  %v3677_v46 = vsel %vm1490_vm8, %v3614_v14, %v3676_v34  ;;  %v7756_v10 = vld [vmem:[%s11899_s10 + $0x80] sm:$0xff]   ;;  %v12187_v7 = vld [vmem:[#allocation91_spill] sm:$0xff] }
 0x782   :  { %v3663_v13 = vsel %vm1494_vm10, %v10747_v55, %v3662_v17  ;;  %v3678_v28 = vsel %vm1492_vm9, %v3615_v40, %v3677_v46  ;;  %v12182_v14 = vld [vmem:[#allocation84_spill] sm:$0xff]  ;;  %v12188_v17 = vld [vmem:[#allocation90_spill] sm:$0xff] }
 0x783   :  { %v3679_v25 = vsel %vm1494_vm10, %v3616_v11, %v3678_v28  ;;  %v12183_v11 = vld [vmem:[#allocation89_spill] sm:$0xff] }
 0x784   :  { %v3687_v43 = vpack.c.bf16 %v3679_v25, %v3663_v13  ;;  %v7757_v25 = vld [vmem:[%s11899_s10 + $0x88] sm:$0xff]  }
 0x786   :  { %7566 = vmatprep.subr.bf16.mxu1 %v3687_v43 }
 0x787   :  { %7567 = vmatpush3.bf16.msra.mxu1 %v3687_v43  ;;  %v7758_v43 = vld [vmem:[%s11899_s10 + $0x90] sm:$0xff]  }
 0x78a   :  { %7569 = vmatmul.mubr.msk.bf16.vlgmr.msra.gmra.mrb[40].mxu1 %vm117_vm0, %v7755_v54  ;;  %v7759_v54 = vld [vmem:[%s11899_s10 + $0x98] sm:$0xff]  }
 0x78b   :  { %7576 = vmatprep.mubr.msk.bf16.mxu1 %vm117_vm0, %v7756_v10  ;;  %v7760_v10 = vld [vmem:[%s11899_s10 + $0xa0] sm:$0xff]  }
 0x85d   :  { %v7570_v55 = vpop.f32.mrb[40].mxu1 }
 0x85e   :  { %v3763_v22 = vpop.f32.mrb[41].mxu1  ;;  %v3772_v23 = vadd.f32 %v7570_v55, %v12174_v21  ;;  %v7761_v55 = vld [vmem:[%s11899_s10 + $0xa8] sm:$0xff]   ;;  %v7767_v21 = vld [vmem:[%s11899_s10 + $0xd8] sm:$0xff]  }
 0x85f   :  { %v3764_v36 = vadd.f32 %v3763_v22, %v12173_v6  ;;  %v7571_v42 = vpop.f32.mrb[42].mxu1  ;;  %v7762_v22 = vld [vmem:[%s11899_s10 + $0xb0] sm:$0xff]   ;;  %v7763_v6 = vld [vmem:[%s11899_s10 + $0xb8] sm:$0xff]  }
 0x860   :  { %v3766_v38 = vpop.f32.mrb[43].mxu1  ;;  %v3775_v31 = vadd.f32 %v7571_v42, %v12177_v56  ;;  %v3780_v50 = vadd.f32 %v3772_v23, %v12179_v18  ;;  %v7765_v42 = vld [vmem:[%s11899_s10 + $0xc8] sm:$0xff]   ;;  %v7768_v23 = vld [vmem:[%s11899_s10 + $0xe0] sm:$0xff]   ;;  %v3963_v56 = vpop.permute.xlu0 %3962 }
 0x861   :  { %v3767_v37 = vadd.f32 %v3766_v38, %v12175_v32  ;;  %v3778_v5 = vadd.f32 %v3764_v36, %v12176_v20  ;;  %v7764_v36 = vld [vmem:[%s11899_s10 + $0xc0] sm:$0xff]   ;;  %v7766_v38 = vld [vmem:[%s11899_s10 + $0xd0] sm:$0xff]   ;;  %v7769_v32 = vld [vmem:[%s11899_s10 + $0xe8] sm:$0xff]  }
 0x862   :  { %v3781_v61 = vadd.f32 %v3775_v31, %v12180_v44  ;;  %v7771_v20 = vld [vmem:[%s11899_s10 + $0xf8] sm:$0xff]   ;;  %v3968_v31 = vpop.permute.xlu1 %3967 }
 0x863   :  { %v3779_v53 = vadd.f32 %v3767_v37, %v12178_v33  ;;  %v7770_v37 = vld [vmem:[%s11899_s10 + $0xf0] sm:$0xff]  }
 0x864   :  { %v10882_v33 = vpop.permute.xlu0 %4052 }
 0x865   :  { %v3792_v57 = vadd.f32 %v3779_v53, %v3778_v5 }
 0x867   :  { %v3793_v39 = vadd.f32 %v3792_v57, %v3780_v50 }
 0x868   :  { %v3973_v18 = vpop.permute.xlu0 %3972 }
 0x869   :  { %v3794_v1 = vadd.f32 %v3793_v39, %v3781_v61 }
 0x86b   :  { %v3795_v12 = vmul.f32 0.25, %v3794_v1  ;;  %v12189_v1 = vld [vmem:[#allocation99_spill] sm:$0xff] }
 0x86c   :  { %v10886_v57 = vpop.permute.xlu0 %4062 }
 0x86d   :  { %v3796_v60 = vsub.f32 %v3778_v5, %v3795_v12  ;;  %v3797_v3 = vsub.f32 %v3779_v53, %v3795_v12  ;;  %v3798_v8 = vsub.f32 %v3780_v50, %v3795_v12  ;;  %v3799_v51 = vsub.f32 %v3781_v61, %v3795_v12  ;;  %v7774_v5 = vld [vmem:[%s11901_s12 + $0x24] ss:$8 sps:$4 sm:$0xff]   ;;  %v10884_v53 = vpop.permute.xlu1 %4057 }
 0x86e   :  { %4509 = vmatprep.mubr.bf16.mxu0 %v7774_v5 }
 0x86f   :  { %v3800_v63 = vmul.f32 %v3796_v60, %v3796_v60  ;;  %v3801_v19 = vmul.f32 %v3797_v3, %v3797_v3  ;;  %v3803_v62 = vmul.f32 %v3798_v8, %v3798_v8  ;;  %v3805_v4 = vmul.f32 %v3799_v51, %v3799_v51 }
 0x870   :  { %v3983_v61 = vpop.permute.xlu0 %3982 }
 0x871   :  { %v3802_v48 = vadd.f32 %v3801_v19, %v3800_v63  ;;  %v3978_v50 = vpop.permute.xlu1 %3977  ;;  %v12191_v19 = vld [vmem:[#allocation98_spill] sm:$0xff] }
 0x873   :  { %v3804_v41 = vadd.f32 %v3803_v62, %v3802_v48 }
 0x875   :  { %v3806_v9 = vadd.f32 %v3805_v4, %v3804_v41  ;;  %v10888_v44 = vpop.permute.xlu1 %4067  ;;  %v12192_v41 = vld [vmem:[#allocation94_spill] sm:$0xff] }
 0x877   :  { %v3807_v52 = vmul.f32 0.25, %v3806_v9 }
 0x879   :  { %v3808_v58 = vadd.f32 1e-05, %v3807_v52 }
 0x87b   :  { %7940 = vrsqrt.f32 %v3808_v58  ;;  %v10894_v58 = vpop.permute.xlu0 %4072 }
 0x885   :  { %v7941_v29 = vpop.eup %7940 }
 0x886   :  { %v3823_v30 = vmul.f32 %v7941_v29, %v3797_v3  ;;  %v3810_v45 = vmul.f32 %v7941_v29, %v3796_v60  ;;  %v3836_v26 = vmul.f32 %v7941_v29, %v3798_v8  ;;  %v3849_v47 = vmul.f32 %v7941_v29, %v3799_v51  ;;  %v3988_v3 = vpop.permute.xlu1 %3987  ;;  %v12190_v8 = vld [vmem:[#allocation95_spill] sm:$0xff] }
 0x888   :  { %v3816_v24 = vmul.f32 %v12181_v0, %v3810_v45  ;;  %v3829_v40 = vmul.f32 %v12182_v14, %v3823_v30  ;;  %v3842_v16 = vmul.f32 %v12183_v11, %v3836_v26  ;;  %v3855_v35 = vmul.f32 %v12184_v49, %v3849_v47 }
 0x88a   :  { %v10804_v15 = vadd.f32 %v12185_v59, %v3816_v24  ;;  %v10807_v2 = vadd.f32 %v12186_v27, %v3829_v40  ;;  %v10810_v34 = vadd.f32 %v12187_v7, %v3842_v16  ;;  %v10813_v46 = vadd.f32 %v12188_v17, %v3855_v35  ;;  %v10898_v26 = vpop.permute.xlu1 %4077  ;;  %v12193_v40 = vld [vmem:[#allocation104_spill] sm:$0xff]  ;;  %v3993_v59 = vpop.permute.xlu0 %3992  ;;  %v12194_v27 = vld [vmem:[#allocation103_spill] sm:$0xff] }
 0x88c   :  { %v3895_v13 = vpack.c.bf16 %v10807_v2, %v10804_v15  ;;  %v3896_v28 = vpack.c.bf16 %v10813_v46, %v10810_v34 }
 0x88e   :  { %7572 = vmatprep.subr.bf16.mxu1 %v3895_v13 }
 0x88f   :  { %7573 = vmatpush3.bf16.msra.mxu1 %v3895_v13 }
 0x890   :  { %7574 = vmatprep.subr.bf16.mxu1 %v3896_v28 }
 0x893   :  { %7575 = vmatpush3.bf16.msra.mxu1 %v3896_v28  ;;  %v3998_v28 = vpop.permute.xlu1 %3997 }
 0x896   :  { %7577 = vmatmul.mubr.msk.bf16.vlgmr.msra.gmra.mrb[44].mxu1 %vm117_vm0, %v7757_v25 }
 0x897   :  { %7580 = vmatprep.mubr.msk.bf16.mxu1 %vm117_vm0, %v7758_v43 }
 0x89e   :  { %7581 = vmatmul.mubr.msk.bf16.gmra.mrb[48].mxu1 %vm117_vm0, %v7759_v54 }
 0x89f   :  { %7584 = vmatprep.mubr.msk.bf16.mxu1 %vm117_vm0, %v7760_v10 }
 0x8a6   :  { %7585 = vmatmul.mubr.msk.bf16.gmra.mrb[52].mxu1 %vm117_vm0, %v7761_v55 }
 0x8a7   :  { %7588 = vmatprep.mubr.msk.bf16.mxu1 %vm117_vm0, %v7762_v22 }
 0x8ae   :  { %7589 = vmatmul.mubr.msk.bf16.gmra.mrb[56].mxu1 %vm117_vm0, %v7763_v6 }
 0x8af   :  { %7592 = vmatprep.mubr.msk.bf16.mxu1 %vm117_vm0, %v7764_v36  ;;  %v10908_v36 = vpop.permute.xlu0 %4082 }
 0x8b6   :  { %7593 = vmatmul.mubr.msk.bf16.gmra.mrb[60].mxu1 %vm117_vm0, %v7765_v42 }
 0x8b7   :  { %7596 = vmatprep.mubr.msk.bf16.mxu1 %vm117_vm0, %v7766_v38 }
 0x8be   :  { %7597 = vmatmul.mubr.msk.bf16.gmra.mrb[64].mxu1 %vm117_vm0, %v7767_v21 }
 0x8bf   :  { %7600 = vmatprep.mubr.msk.bf16.mxu1 %vm117_vm0, %v7768_v23 }
 0x8c6   :  { %7601 = vmatmul.mubr.msk.bf16.gmra.mrb[68].mxu1 %vm117_vm0, %v7769_v32  ;;  %v10910_v32 = vpop.permute.xlu1 %4087 }
 0x8c7   :  { %7604 = vmatprep.mubr.msk.bf16.mxu1 %vm117_vm0, %v7770_v37 }
 0x8ce   :  { %7605 = vmatmul.mubr.msk.bf16.gmra.mrb[72].mxu1 %vm117_vm0, %v7771_v20 }
 0x969   :  { %v7578_v39 = vpop.f32.mrb[44].mxu1 }
 0x96a   :  { %v4261_v12 = vadd.f32 %v7578_v39, %v12189_v1  ;;  %v4252_v60 = vpop.f32.mrb[45].mxu1  ;;  %v4003_v1 = vpop.permute.xlu0 %4002 }
 0x96b   :  { %v4253_v51 = vadd.f32 %v4252_v60, %v12190_v8  ;;  %v7579_v63 = vpop.f32.mrb[46].mxu1 }
 0x96c   :  { %v4264_v48 = vadd.f32 %v7579_v63, %v12191_v19  ;;  %v4255_v62 = vpop.f32.mrb[47].mxu1  ;;  %v4381_v9 = vmax.f32 %v4261_v12, 0.0 }
 0x96d   :  { %v4256_v4 = vadd.f32 %v4255_v62, %v12192_v41  ;;  %v4379_v29 = vmax.f32 %v4253_v51, 0.0  ;;  %v4008_v51 = vpop.permute.xlu1 %4007 }
 0x96e   :  { %v4382_v52 = vmax.f32 %v4264_v48, 0.0 }
 0x96f   :  { %v4380_v30 = vmax.f32 %v4256_v4, 0.0 }
 0x970   :  { %v10896_v45 = vpack.c.bf16 %v4382_v52, %v4381_v9 }
 0x971   :  { %v10900_v47 = vpack.c.bf16 %v4380_v30, %v4379_v29  ;;  %v7582_v0 = vpop.f32.mrb[48].mxu1  ;;  %v12195_v30 = vld [vmem:[#allocation97_spill] sm:$0xff] }
 0x972   :  { %v4277_v24 = vadd.f32 %v7582_v0, %v3963_v56  ;;  %v4268_v14 = vpop.f32.mrb[49].mxu1 }
 0x973   :  { %v4269_v11 = vadd.f32 %v4268_v14, %v12193_v40  ;;  %v7583_v16 = vpop.f32.mrb[50].mxu1  ;;  %v12196_v14 = vld [vmem:[#allocation93_spill] sm:$0xff] }
 0x974   :  { %v4280_v49 = vadd.f32 %v7583_v16, %v3968_v31  ;;  %v4271_v35 = vpop.f32.mrb[51].mxu1  ;;  %v4385_v17 = vmax.f32 %v4277_v24, 0.0  ;;  %v12197_v16 = vld [vmem:[#allocation96_spill] sm:$0xff] }
 0x975   :  { %v4272_v7 = vadd.f32 %v4271_v35, %v12194_v27  ;;  %v4383_v25 = vmax.f32 %v4269_v11, 0.0 }
 0x976   :  { %v4386_v13 = vmax.f32 %v4280_v49, 0.0 }
 0x977   :  { %v4384_v43 = vmax.f32 %v4272_v7, 0.0 }
 0x978   :  { %v10904_v54 = vpack.c.bf16 %v4386_v13, %v4385_v17 }
 0x979   :  { %v10906_v10 = vpack.c.bf16 %v4384_v43, %v4383_v25  ;;  %v7586_v55 = vpop.f32.mrb[52].mxu1 }
 0x97a   :  { %v4293_v22 = vadd.f32 %v7586_v55, %v3983_v61  ;;  %v4284_v6 = vpop.f32.mrb[53].mxu1 }
 0x97b   :  { %v4285_v42 = vadd.f32 %v4284_v6, %v3973_v18  ;;  %v7587_v38 = vpop.f32.mrb[54].mxu1 }
 0x97c   :  { %v4296_v21 = vadd.f32 %v7587_v38, %v3988_v3  ;;  %v4287_v23 = vpop.f32.mrb[55].mxu1  ;;  %v4389_v20 = vmax.f32 %v4293_v22, 0.0  ;;  %v12199_v22 = vld [vmem:[#allocation106_spill] sm:$0xff]  ;;  %v12200_v38 = vld [vmem:[#allocation101_spill] sm:$0xff] }
 0x97d   :  { %v4288_v37 = vadd.f32 %v4287_v23, %v3978_v50  ;;  %v4387_v56 = vmax.f32 %v4285_v42, 0.0 }
 0x97e   :  { %v4390_v5 = vmax.f32 %v4296_v21, 0.0 }
 0x97f   :  { %v4388_v31 = vmax.f32 %v4288_v37, 0.0  ;;  %v12201_v37 = vld [vmem:[#allocation105_spill] sm:$0xff] }
 0x980   :  { %v10912_v39 = vpack.c.bf16 %v4390_v5, %v4389_v20 }
 0x981   :  { %v10914_v12 = vpack.c.bf16 %v4388_v31, %v4387_v56  ;;  %v7590_v61 = vpop.f32.mrb[56].mxu1  ;;  %v12202_v56 = vld [vmem:[#allocation100_spill] sm:$0xff] }
 0x982   :  { %v4309_v60 = vadd.f32 %v7590_v61, %v4003_v1  ;;  %v4300_v8 = vpop.f32.mrb[57].mxu1 }
 0x983   :  { %v4301_v18 = vadd.f32 %v4300_v8, %v3993_v59  ;;  %v7591_v63 = vpop.f32.mrb[58].mxu1  ;;  %v12198_v59 = vld [vmem:[#allocation92_spill] sm:$0xff] }
 0x984   :  { %v4312_v3 = vadd.f32 %v7591_v63, %v4008_v51  ;;  %v4303_v19 = vpop.f32.mrb[59].mxu1  ;;  %v4393_v62 = vmax.f32 %v4309_v60, 0.0 }
 0x985   :  { %v4304_v48 = vadd.f32 %v4303_v19, %v3998_v28  ;;  %v4391_v41 = vmax.f32 %v4301_v18, 0.0 }
 0x986   :  { %v4394_v50 = vmax.f32 %v4312_v3, 0.0 }
 0x987   :  { %v4392_v4 = vmax.f32 %v4304_v48, 0.0 }
 0x988   :  { %v10916_v9 = vpack.c.bf16 %v4394_v50, %v4393_v62 }
 0x989   :  { %v10918_v52 = vpack.c.bf16 %v4392_v4, %v4391_v41  ;;  %v7594_v29 = vpop.f32.mrb[60].mxu1 }
 0x98a   :  { %v4325_v0 = vadd.f32 %v7594_v29, %v12195_v30  ;;  %v4316_v24 = vpop.f32.mrb[61].mxu1 }
 0x98b   :  { %v4317_v40 = vadd.f32 %v4316_v24, %v12196_v14  ;;  %v7595_v11 = vpop.f32.mrb[62].mxu1 }
 0x98c   :  { %v4328_v49 = vadd.f32 %v7595_v11, %v12197_v16  ;;  %v4319_v35 = vpop.f32.mrb[63].mxu1  ;;  %v4397_v7 = vmax.f32 %v4325_v0, 0.0 }
 0x98d   :  { %v4320_v27 = vadd.f32 %v4319_v35, %v12198_v59  ;;  %v4395_v13 = vmax.f32 %v4317_v40, 0.0 }
 0x98e   :  { %v4398_v17 = vmax.f32 %v4328_v49, 0.0 }
 0x98f   :  { %v4396_v28 = vmax.f32 %v4320_v27, 0.0 }
 0x990   :  { %v4425_v25 = vpack.c.bf16 %v4398_v17, %v4397_v7  ;;  %v4440_v7 = vpop.permute.xlu0 %4439 }
 0x991   :  { %v4424_v43 = vpack.c.bf16 %v4396_v28, %v4395_v13  ;;  %v7598_v55 = vpop.f32.mrb[64].mxu1 }
 0x992   :  { %v4341_v6 = vadd.f32 %v7598_v55, %v12199_v22  ;;  %v4332_v42 = vpop.f32.mrb[65].mxu1 }
 0x993   :  { %v4333_v21 = vadd.f32 %v4332_v42, %v12200_v38  ;;  %v7599_v23 = vpop.f32.mrb[66].mxu1  ;;  %7347 = vmatprep.subr.bf16.mxu0 %v4424_v43 }
 0x994   :  { %v4344_v20 = vadd.f32 %v7599_v23, %v12201_v37  ;;  %v4335_v5 = vpop.f32.mrb[67].mxu1  ;;  %7348 = vmatpush3.bf16.msra.mxu0 %v10900_v47  ;;  %v4401_v1 = vmax.f32 %v4341_v6, 0.0  ;;  %v4450_v37 = vpop.permute.xlu0 %4449 }
 0x995   :  { %v4336_v31 = vadd.f32 %v4335_v5, %v12202_v56  ;;  %7349 = vmatprep.subr.bf16.mxu0 %v4425_v25  ;;  %v4399_v60 = vmax.f32 %v4333_v21, 0.0  ;;  %v4445_v25 = vpop.permute.xlu1 %4444 }
 0x996   :  { %v4402_v61 = vmax.f32 %v4344_v20, 0.0 }
 0x997   :  { %v4400_v8 = vmax.f32 %v4336_v31, 0.0 }
 0x998   :  { %v4427_v51 = vpack.c.bf16 %v4402_v61, %v4401_v1  ;;  %7350 = vmatpush3.bf16.msra.mxu0 %v10896_v45 }
 0x999   :  { %v4426_v18 = vpack.c.bf16 %v4400_v8, %v4399_v60  ;;  %v7602_v63 = vpop.f32.mrb[68].mxu1  ;;  %v4455_v31 = vpop.permute.xlu1 %4454 }
 0x99a   :  { %v4357_v3 = vadd.f32 %v7602_v63, %v10886_v57  ;;  %v4348_v19 = vpop.f32.mrb[69].mxu1 }
 0x99b   :  { %v4349_v48 = vadd.f32 %v4348_v19, %v10882_v33  ;;  %v7603_v62 = vpop.f32.mrb[70].mxu1  ;;  %7351 = vmatprep.subr.bf16.mxu0 %v4426_v18 }
 0x99c   :  { %v4360_v47 = vadd.f32 %v7603_v62, %v10888_v44  ;;  %v4351_v50 = vpop.f32.mrb[71].mxu1  ;;  %7352 = vmatpush3.bf16.msra.mxu0 %v10906_v10  ;;  %v4405_v4 = vmax.f32 %v4357_v3, 0.0 }
 0x99d   :  { %v4352_v41 = vadd.f32 %v4351_v50, %v10884_v53  ;;  %7353 = vmatprep.subr.bf16.mxu0 %v4427_v51  ;;  %v4403_v45 = vmax.f32 %v4349_v48, 0.0 }
 0x99e   :  { %v4406_v29 = vmax.f32 %v4360_v47, 0.0 }
 0x99f   :  { %v4404_v30 = vmax.f32 %v4352_v41, 0.0 }
 0x9a0   :  { %v4429_v0 = vpack.c.bf16 %v4406_v29, %v4405_v4  ;;  %7354 = vmatpush3.bf16.msra.mxu0 %v10904_v54  ;;  %v4575_v29 = vpop.permute.xlu1 %4574 }
 0x9a1   :  { %v4428_v57 = vpack.c.bf16 %v4404_v30, %v4403_v45  ;;  %v7606_v24 = vpop.f32.mrb[72].mxu1  ;;  %v4562_v45 = vpop.permute.xlu0 %4561 }
 0x9a2   :  { %v4373_v33 = vadd.f32 %v7606_v24, %v10908_v36  ;;  %v4364_v14 = vpop.f32.mrb[73].mxu1 }
 0x9a3   :  { %v4365_v44 = vadd.f32 %v4364_v14, %v10894_v58  ;;  %v7607_v40 = vpop.f32.mrb[74].mxu1  ;;  %7355 = vmatprep.subr.bf16.mxu0 %v4428_v57  ;;  %v7772_v58 = vld [vmem:[%s11901_s12 + $0x20] ss:$8 sps:$4 sm:$0xff]  }
 0x9a4   :  { %v4376_v10 = vadd.f32 %v7607_v40, %v10910_v32  ;;  %v4367_v53 = vpop.f32.mrb[75].mxu1  ;;  %7356 = vmatpush3.bf16.msra.mxu0 %v10914_v12  ;;  %v4409_v16 = vmax.f32 %v4373_v33, 0.0  ;;  %v7777_v32 = vld [vmem:[%s11901_s12 + $0x30] ss:$8 sps:$4 sm:$0xff]  }
 0x9a5   :  { %v4368_v11 = vadd.f32 %v4367_v53, %v10898_v26  ;;  %7357 = vmatprep.subr.bf16.mxu0 %v4429_v0  ;;  %v4407_v54 = vmax.f32 %v4365_v44, 0.0  ;;  %v7775_v26 = vld [vmem:[%s11901_s12 + $0x34] ss:$8 sps:$4 sm:$0xff]   ;;  %v4581_v0 = vpop.permute.xlu1 %4580 }
 0x9a6   :  { %v4410_v49 = vmax.f32 %v4376_v10, 0.0 }
 0x9a7   :  { %v4408_v35 = vmax.f32 %v4368_v11, 0.0 }
 0x9a8   :  { %v4431_v59 = vpack.c.bf16 %v4410_v49, %v4409_v16  ;;  %7358 = vmatpush3.bf16.msra.mxu0 %v10912_v39  ;;  %v7778_v39 = vld [vmem:[%s11893_s4 + $0x60] sm:$0xff]  }
 0x9a9   :  { %v4430_v36 = vpack.c.bf16 %v4408_v35, %v4407_v54  ;;  %v4601_v57 = vpop.permute.xlu1 %4600 }
 0x9ab   :  { %7359 = vmatprep.subr.bf16.mxu0 %v4430_v36 }
 0x9ac   :  { %7360 = vmatpush3.bf16.msra.mxu0 %v10918_v52 }
 0x9ad   :  { %7361 = vmatprep.subr.bf16.mxu0 %v4431_v59  ;;  %v4607_v54 = vpop.permute.xlu1 %4606 }
 0x9b0   :  { %7362 = vmatpush3.bf16.msra.mxu0 %v10916_v9 }
 0x9b3   :  { %4510 = vmatmul.mubr.bf16.vlgmr.msra.gmra.mrb[36].mxu0 %v7772_v58 }
 0x9b4   :  { %4517 = vmatprep.mubr.bf16.mxu0 %v7775_v26 }
 0x9bb   :  { %4518 = vmatmul.mubr.bf16.gmra.mrb[40].mxu0 %v7777_v32 }
 0x9bc   :  { %7612 = vmatprep.mubr.msk.bf16.mxu0 %vm117_vm0, %v7778_v39 }
 0xa86   :  { %v7363_v12 = vpop.f32.mrb[36].mxu0 }
 0xa87   :  { %v7364_v52 = vpop.f32.mrb[37].mxu0 }
 0xa88   :  { %v7365_v9 = vadd.f32 %v7364_v52, %v7363_v12  ;;  %v7366_v27 = vpop.f32.mrb[38].mxu0  ;;  %v7779_v12 = vld [vmem:[%s11893_s4 + $0x68] sm:$0xff]   ;;  %v7780_v52 = vld [vmem:[%s11893_s4 + $0x70] sm:$0xff]  }
 0xa89   :  { %v7367_v17 = vpop.f32.mrb[39].mxu0 }
 0xa8a   :  { %v4512_v13 = vadd.f32 %v7365_v9, %v4440_v7  ;;  %v7368_v28 = vadd.f32 %v7367_v17, %v7366_v27  ;;  %v7781_v9 = vld [vmem:[%s11893_s4 + $0x78] sm:$0xff]   ;;  %v7782_v27 = vld [vmem:[%s11893_s4 + $0x80] sm:$0xff]   ;;  %v7783_v7 = vld [vmem:[%s11893_s4 + $0x88] sm:$0xff]  }
 0xa8c   :  { %v4515_v43 = vadd.f32 %v7368_v28, %v4445_v25  ;;  %v4526_v55 = vadd.f32 %v4512_v13, %v10804_v15  ;;  %v4646_v13 = vpop.permute.xlu1 %4645 }
 0xa8e   :  { %v4527_v22 = vadd.f32 %v4515_v43, %v10807_v2  ;;  %v7369_v6 = vpop.f32.mrb[40].mxu0 }
 0xa8f   :  { %v7370_v42 = vpop.f32.mrb[41].mxu0 }
 0xa90   :  { %v4540_v38 = vadd.f32 %v4527_v22, %v4526_v55  ;;  %v7371_v21 = vadd.f32 %v7370_v42, %v7369_v6  ;;  %v7372_v23 = vpop.f32.mrb[42].mxu0 }
 0xa91   :  { %v7373_v20 = vpop.f32.mrb[43].mxu0 }
 0xa92   :  { %v4520_v5 = vadd.f32 %v7371_v21, %v4450_v37  ;;  %v7374_v56 = vadd.f32 %v7373_v20, %v7372_v23  ;;  %v12207_v21 = vld [vmem:[#allocation107_spill] sm:$0xff] }
 0xa94   :  { %v4528_v1 = vadd.f32 %v4520_v5, %v10810_v34  ;;  %v4523_v61 = vadd.f32 %v7374_v56, %v4455_v31 }
 0xa96   :  { %v4541_v60 = vadd.f32 %v4540_v38, %v4528_v1  ;;  %v4529_v8 = vadd.f32 %v4523_v61, %v10813_v46  ;;  %v4568_v46 = vpop.permute.xlu0 %4567 }
 0xa98   :  { %v4542_v51 = vadd.f32 %v4541_v60, %v4529_v8 }
 0xa9a   :  { %v4543_v15 = vmul.f32 0.25, %v4542_v51  ;;  %v4588_v24 = vpop.permute.xlu0 %4587 }
 0xa9c   :  { %v4544_v18 = vsub.f32 %v4526_v55, %v4543_v15  ;;  %v4545_v2 = vsub.f32 %v4527_v22, %v4543_v15  ;;  %v4546_v63 = vsub.f32 %v4528_v1, %v4543_v15  ;;  %v4547_v3 = vsub.f32 %v4529_v8, %v4543_v15  ;;  %v4656_v22 = vpop.permute.xlu1 %4655 }
 0xa9e   :  { %v4548_v19 = vmul.f32 %v4544_v18, %v4544_v18  ;;  %v4549_v48 = vmul.f32 %v4545_v2, %v4545_v2  ;;  %v4551_v47 = vmul.f32 %v4546_v63, %v4546_v63  ;;  %v4553_v41 = vmul.f32 %v4547_v3, %v4547_v3  ;;  %v4594_v35 = vpop.permute.xlu0 %4593 }
 0xaa0   :  { %v4550_v62 = vadd.f32 %v4549_v48, %v4548_v19 }
 0xaa2   :  { %v4552_v50 = vadd.f32 %v4551_v47, %v4550_v62  ;;  %v4641_v17 = vpop.permute.xlu0 %4640  ;;  %v11014_v62 = vpop.permute.xlu1 %4665  ;;  %v12208_v47 = vld [vmem:[#allocation108_spill] sm:$0xff] }
 0xaa4   :  { %v4554_v4 = vadd.f32 %v4553_v41, %v4552_v50 }
 0xaa6   :  { %v4555_v34 = vmul.f32 0.25, %v4554_v4  ;;  %v4651_v28 = vpop.permute.xlu0 %4650 }
 0xaa8   :  { %v4556_v30 = vadd.f32 1e-05, %v4555_v34 }
 0xaaa   :  { %7942 = vrsqrt.f32 %v4556_v30  ;;  %v4661_v34 = vpop.permute.xlu0 %4660 }
 0xab4   :  { %v7943_v33 = vpop.eup %7942 }
 0xab5   :  { %v4597_v14 = vmul.f32 %v7943_v33, %v4547_v3  ;;  %v4558_v44 = vmul.f32 %v7943_v33, %v4544_v18  ;;  %v4571_v40 = vmul.f32 %v7943_v33, %v4545_v2  ;;  %v4584_v10 = vmul.f32 %v7943_v33, %v4546_v63 }
 0xab7   :  { %v4564_v53 = vmul.f32 %v4562_v45, %v4558_v44  ;;  %v4577_v11 = vmul.f32 %v4575_v29, %v4571_v40  ;;  %v4590_v16 = vmul.f32 %v4588_v24, %v4584_v10  ;;  %v4603_v49 = vmul.f32 %v4601_v57, %v4597_v14 }
 0xab9   :  { %v10961_v59 = vadd.f32 %v4568_v46, %v4564_v53  ;;  %v10963_v36 = vadd.f32 %v4581_v0, %v4577_v11  ;;  %v10965_v58 = vadd.f32 %v4594_v35, %v4590_v16  ;;  %v10967_v26 = vadd.f32 %v4607_v54, %v4603_v49 }
 0xabb   :  { %12203 = vst [vmem:[#allocation58_spill] sm:$0xff] %v10961_v59  ;;  %12204 = vst [vmem:[#allocation10_spill] sm:$0xff] %v10963_v36  ;;  %v4623_v32 = vpack.c.bf16 %v10963_v36, %v10961_v59  ;;  %v4624_v39 = vpack.c.bf16 %v10967_v26, %v10965_v58 }
 0xabc   :  { %12205 = vst [vmem:[#allocation60_spill] sm:$0xff] %v10965_v58  ;;  %12206 = vst [vmem:[#allocation61_spill] sm:$0xff] %v10967_v26 }
 0xabd   :  { %7608 = vmatprep.subr.bf16.mxu0 %v4623_v32 }
 0xabe   :  { %7609 = vmatpush3.bf16.msra.mxu0 %v4623_v32 }
 0xabf   :  { %7610 = vmatprep.subr.bf16.mxu0 %v4624_v39 }
 0xac2   :  { %7611 = vmatpush3.bf16.msra.mxu0 %v4624_v39 }
 0xac5   :  { %7613 = vmatmul.mubr.msk.bf16.vlgmr.msra.gmra.mrb[44].mxu0 %vm117_vm0, %v7779_v12 }
 0xac6   :  { %7616 = vmatprep.mubr.msk.bf16.mxu0 %vm117_vm0, %v7780_v52 }
 0xacd   :  { %7617 = vmatmul.mubr.msk.bf16.gmra.mrb[48].mxu0 %vm117_vm0, %v7781_v9 }
 0xace   :  { %7620 = vmatprep.mubr.msk.bf16.mxu0 %vm117_vm0, %v7782_v27 }
 0xad5   :  { %7621 = vmatmul.mubr.msk.bf16.gmra.mrb[52].mxu0 %vm117_vm0, %v7783_v7 }
 0xb98   :  { %v7614_v25 = vpop.f32.mrb[44].mxu0 }
 0xb99   :  { %v4789_v43 = vadd.f32 %v7614_v25, %v4651_v28  ;;  %v4780_v55 = vpop.f32.mrb[45].mxu0 }
 0xb9a   :  { %v4781_v6 = vadd.f32 %v4780_v55, %v4641_v17  ;;  %v7615_v42 = vpop.f32.mrb[46].mxu0  ;;  %v4671_v55 = vpop.permute.xlu0 %4670 }
 0xb9b   :  { %v5296_v38 = vcombine.high %v4789_v43, %v4789_v43  ;;  %v5303_v23 = vrot.slane %v4789_v43, %v12207_v21  ;;  %v4792_v37 = vadd.f32 %v7615_v42, %v4656_v22  ;;  %v4783_v20 = vpop.f32.mrb[47].mxu0  ;;  %v4676_v43 = vpop.permute.xlu1 %4675 }
 0xb9c   :  { %v4828_v5 = vcombine.high %v4781_v6, %v4781_v6  ;;  %v4835_v56 = vrot.slane %v4781_v6, %v12207_v21  ;;  %v10995_v31 = vadd.f32 %v4783_v20, %v4646_v13 }
 0xb9d   :  { %v5310_v1 = vrot.slane %v5296_v38, %v12207_v21  ;;  %v5311_v61 = vcombine.high %v5303_v23, %v5303_v23  ;;  %v10999_v60 = vrot.slane %v5303_v23, %v12207_v21  ;;  %v5394_v8 = vcombine.high %v4792_v37, %v4792_v37 }
 0xb9e   :  { %v4842_v51 = vrot.slane %v4828_v5, %v12207_v21  ;;  %v4843_v15 = vcombine.high %v4835_v56, %v4835_v56  ;;  %v11003_v18 = vrot.slane %v4835_v56, %v12207_v21  ;;  %v5401_v2 = vrot.slane %v4792_v37, %v12207_v21 }
 0xb9f   :  { %v5312_v63 = vcombine.high %v5310_v1, %v5310_v1  ;;  %v11007_v3 = vrot.slane %v5310_v1, %v12207_v21  ;;  %v11010_v19 = vrot.slane %v5311_v61, %v12207_v21  ;;  %v5341_v48 = vcombine.high %v10999_v60, %v10999_v60 }
 0xba0   :  { %v5348_v50 = vrot.slane %v10999_v60, %v12208_v47  ;;  %v4844_v41 = vcombine.high %v4842_v51, %v4842_v51  ;;  %v11019_v4 = vrot.slane %v4842_v51, %v12207_v21  ;;  %v11022_v29 = vrot.slane %v4843_v15, %v12207_v21  ;;  %v7618_v45 = vpop.f32.mrb[48].mxu0 }
 0xba1   :  { %v11025_v30 = vrot.slane %v5312_v63, %v12207_v21  ;;  %v5342_v0 = vcombine.high %v11007_v3, %v11007_v3  ;;  %v5343_v46 = vcombine.high %v11010_v19, %v11010_v19  ;;  %v5352_v57 = vrot.slane %v11010_v19, %v12208_v47  ;;  %v4796_v24 = vpop.f32.mrb[49].mxu0 }
 0xba2   :  { %v11034_v33 = vrot.slane %v5341_v48, %v12208_v47  ;;  %v5364_v14 = vrot.slane %v11007_v3, %v12208_v47  ;;  %v11039_v44 = vrot.slane %v4844_v41, %v12207_v21  ;;  %v4873_v40 = vcombine.high %v11003_v18, %v11003_v18  ;;  %v7619_v10 = vpop.f32.mrb[50].mxu0 }
 0xba3   :  { %v5344_v53 = vcombine.high %v11025_v30, %v11025_v30  ;;  %v11046_v11 = vrot.slane %v5343_v46, %v12208_v47  ;;  %v5368_v16 = vrot.slane %v11025_v30, %v12208_v47  ;;  %v11051_v49 = vrot.slane %v5342_v0, %v12208_v47  ;;  %v11053_v54 = vpop.f32.mrb[51].mxu0 }
 0xba4   :  { %v4874_v35 = vcombine.high %v11019_v4, %v11019_v4  ;;  %v4875_v32 = vcombine.high %v11022_v29, %v11022_v29  ;;  %v4876_v39 = vcombine.high %v11039_v44, %v11039_v44  ;;  %v4880_v12 = vrot.slane %v11003_v18, %v12208_v47 }
 0xba5   :  { %v11064_v52 = vrot.slane %v5344_v53, %v12208_v47  ;;  %v4884_v9 = vrot.slane %v11022_v29, %v12208_v47  ;;  %v11069_v27 = vrot.slane %v4873_v40, %v12208_v47  ;;  %v4896_v7 = vrot.slane %v11019_v4, %v12208_v47 }
 0xba6   :  { %v11074_v17 = vrot.slane %v4875_v32, %v12208_v47  ;;  %v4900_v13 = vrot.slane %v11039_v44, %v12208_v47  ;;  %v11079_v28 = vrot.slane %v4874_v35, %v12208_v47  ;;  %v11082_v25 = vrot.slane %v4876_v39, %v12208_v47 }
 0xba7   :  { %v5408_v22 = vrot.slane %v5394_v8, %v12207_v21  ;;  %v5409_v6 = vcombine.high %v5401_v2, %v5401_v2  ;;  %v11086_v42 = vrot.slane %v5401_v2, %v12207_v21  ;;  %v4926_v38 = vcombine.high %v10995_v31, %v10995_v31 }
 0xba8   :  { %v4933_v23 = vrot.slane %v10995_v31, %v12207_v21  ;;  %v4805_v37 = vadd.f32 %v7618_v45, %v4671_v55  ;;  %v4797_v20 = vadd.f32 %v4796_v24, %v4661_v34  ;;  %v11092_v5 = vadd.f32 %v7619_v10, %v4676_v43  ;;  %v11094_v56 = vpop.f32.mrb[52].mxu0 }
 0xba9   :  { %v5410_v1 = vcombine.high %v5408_v22, %v5408_v22  ;;  %v5424_v61 = vrot.slane %v5408_v22, %v12207_v21  ;;  %v5431_v8 = vrot.slane %v5409_v6, %v12207_v21  ;;  %v5439_v51 = vcombine.high %v11086_v42, %v11086_v42  ;;  %v11100_v15 = vpop.f32.mrb[53].mxu0 }
 0xbaa   :  { %v5446_v2 = vrot.slane %v11086_v42, %v12208_v47  ;;  %v4940_v31 = vrot.slane %v4926_v38, %v12207_v21  ;;  %v4941_v63 = vcombine.high %v4933_v23, %v4933_v23  ;;  %v11106_v48 = vrot.slane %v4933_v23, %v12207_v21  ;;  %v11108_v41 = vpop.f32.mrb[54].mxu0 }
 0xbab   :  { %12209 = vst [vmem:[#allocation59_spill] sm:$0xff] %v11108_v41  ;;  %v5438_v45 = vrot.slane %v5410_v1, %v12207_v21  ;;  %v5440_v34 = vcombine.high %v5424_v61, %v5424_v61  ;;  %v5441_v0 = vcombine.high %v5431_v8, %v5431_v8  ;;  %v5450_v46 = vrot.slane %v5431_v8, %v12208_v47  ;;  %v11112_v24 = vpop.f32.mrb[55].mxu0 }
 0xbac   :  { %12210 = vst [vmem:[#allocation13_spill] sm:$0xff] %v11112_v24  ;;  %v5454_v40 = vrot.slane %v5439_v51, %v12208_v47  ;;  %v5462_v10 = vrot.slane %v5424_v61, %v12208_v47  ;;  %v4942_v53 = vcombine.high %v4940_v31, %v4940_v31  ;;  %v11117_v35 = vrot.slane %v4940_v31, %v12207_v21 }
 0xbad   :  { %v5442_v32 = vcombine.high %v5438_v45, %v5438_v45  ;;  %v5458_v39 = vrot.slane %v5441_v0, %v12208_v47  ;;  %v5466_v43 = vrot.slane %v5438_v45, %v12208_v47  ;;  %v5470_v55 = vrot.slane %v5440_v34, %v12208_v47 }
 0xbae   :  { %v11123_v22 = vrot.slane %v4941_v63, %v12207_v21  ;;  %v11126_v6 = vrot.slane %v4942_v53, %v12207_v21  ;;  %v4971_v42 = vcombine.high %v11106_v48, %v11106_v48  ;;  %v4972_v38 = vcombine.high %v11117_v35, %v11117_v35 }
 0xbaf   :  { %v5474_v23 = vrot.slane %v5442_v32, %v12208_v47  ;;  %v5385_v8 = vmul.f32 %v5348_v50, %v4805_v37  ;;  %v5386_v60 = vmul.f32 %v5352_v57, %v4805_v37  ;;  %v5387_v50 = vmul.f32 %v11034_v33, %v4805_v37 }
 0xbb0   :  { %v4973_v21 = vcombine.high %v11123_v22, %v11123_v22  ;;  %v4974_v51 = vcombine.high %v11126_v6, %v11126_v6  ;;  %v11147_v63 = vrot.slane %v4971_v42, %v12208_v47  ;;  %v11152_v34 = vrot.slane %v4972_v38, %v12208_v47 }
 0xbb1   :  { %v5388_v32 = vmul.f32 %v11046_v11, %v4805_v37  ;;  %v5389_v42 = vmul.f32 %v5364_v14, %v4805_v37  ;;  %v5390_v38 = vmul.f32 %v5368_v16, %v4805_v37  ;;  %v5391_v19 = vmul.f32 %v11051_v49, %v4805_v37 }
 0xbb2   :  { %v11159_v0 = vrot.slane %v4973_v21, %v12208_v47  ;;  %v11162_v53 = vrot.slane %v4974_v51, %v12208_v47  ;;  %v5392_v57 = vmul.f32 %v11064_v52, %v4805_v37  ;;  %v11176_v33 = vmul.f32 %v4880_v12, %v4797_v20  ;;  %v11178_v21 = vpop.permute.xlu0 %4680 }
 0xbb3   :  { %v11183_v3 = vmul.f32 %v4884_v9, %v4797_v20  ;;  %v11186_v14 = vmul.f32 %v11069_v27, %v4797_v20  ;;  %v11189_v30 = vmul.f32 %v11074_v17, %v4797_v20  ;;  %v11194_v11 = vmul.f32 %v4896_v7, %v4797_v20 }
 0xbb4   :  { %v11199_v18 = vmul.f32 %v4900_v13, %v4797_v20  ;;  %v11202_v29 = vmul.f32 %v11079_v28, %v4797_v20  ;;  %v11205_v16 = vmul.f32 %v11082_v25, %v4797_v20  ;;  %v5483_v49 = vmul.f32 %v5446_v2, %v11092_v5 }
 0xbb5   :  { %v5484_v12 = vmul.f32 %v5450_v46, %v11092_v5  ;;  %v5485_v52 = vmul.f32 %v5454_v40, %v11092_v5  ;;  %v5486_v4 = vmul.f32 %v5458_v39, %v11092_v5  ;;  %v5487_v9 = vmul.f32 %v5462_v10, %v11092_v5 }
 0xbb6   :  { %v5488_v44 = vmul.f32 %v5466_v43, %v11092_v5  ;;  %v5489_v27 = vmul.f32 %v5470_v55, %v11092_v5  ;;  %v5490_v7 = vmul.f32 %v5474_v23, %v11092_v5  ;;  %v5491_v17 = vadd.f32 %v5483_v49, %v5385_v8  ;;  %v4691_v39 = vpop.permute.xlu0 %4690 }
 0xbb7   :  { %v5492_v13 = vadd.f32 %v5484_v12, %v5386_v60  ;;  %v5493_v28 = vadd.f32 %v5485_v52, %v5387_v50  ;;  %v5494_v25 = vadd.f32 %v5486_v4, %v5388_v32  ;;  %v5495_v37 = vadd.f32 %v5487_v9, %v5389_v42 }
 0xbb8   :  { %v5496_v20 = vadd.f32 %v5488_v44, %v5390_v38  ;;  %v5497_v2 = vadd.f32 %v5489_v27, %v5391_v19  ;;  %v5498_v46 = vadd.f32 %v5490_v7, %v5392_v57  ;;  %v11217_v40 = vsel %vm319_vm3, %v5491_v17, -1e+09 }
 0xbb9   :  { %v11221_v10 = vsel %vm319_vm3, %v5492_v13, -1e+09  ;;  %v11225_v5 = vsel %vm319_vm3, %v5493_v28, -1e+09  ;;  %v11229_v43 = vsel %vm319_vm3, %v5494_v25, -1e+09  ;;  %v11233_v55 = vadd.f32 %v11053_v54, %v11014_v62 }
 0xbba   :  { %v11237_v23 = vsel %vm319_vm3, %v5495_v37, -1e+09  ;;  %v11241_v8 = vsel %vm319_vm3, %v5496_v20, -1e+09  ;;  %v11245_v60 = vsel %vm319_vm3, %v5497_v2, -1e+09  ;;  %v11248_v50 = vadd.f32 %v11094_v56, %v4691_v39 }
 0xbbb   :  { %v11252_v32 = vsel %vm319_vm3, %v5498_v46, -1e+09  ;;  %v5507_v62 = vrot.slane %v11217_v40, 4  ;;  %v5513_v54 = vrot.slane %v11221_v10, 4  ;;  %v5519_v42 = vrot.slane %v11225_v5, 4 }
 0xbbc   :  { %12212 = vst [vmem:[#allocation12_spill] sm:$0xff] %v11248_v50  ;;  %v5525_v38 = vrot.slane %v11229_v43, 4  ;;  %v5531_v19 = vrot.slane %v11237_v23, 4  ;;  %v5537_v57 = vrot.slane %v11241_v8, 4  ;;  %v5543_v49 = vrot.slane %v11245_v60, 4 }
 0xbbd   :  { %v5508_v56 = vmax.f32 %v11217_v40, %v5507_v62  ;;  %v5514_v12 = vmax.f32 %v11221_v10, %v5513_v54  ;;  %v5520_v52 = vmax.f32 %v11225_v5, %v5519_v42  ;;  %v5549_v4 = vrot.slane %v11252_v32, 4 }
 0xbbe   :  { %v5526_v9 = vmax.f32 %v11229_v43, %v5525_v38  ;;  %v5532_v44 = vmax.f32 %v11237_v23, %v5531_v19  ;;  %v5538_v27 = vmax.f32 %v11241_v8, %v5537_v57  ;;  %v5544_v7 = vmax.f32 %v11245_v60, %v5543_v49 }
 0xbbf   :  { %v5509_v17 = vrot.slane %v5508_v56, 2  ;;  %v5515_v13 = vrot.slane %v5514_v12, 2  ;;  %v5521_v28 = vrot.slane %v5520_v52, 2  ;;  %v5550_v25 = vmax.f32 %v11252_v32, %v5549_v4 }
 0xbc0   :  { %v5527_v37 = vrot.slane %v5526_v9, 2  ;;  %v5533_v20 = vrot.slane %v5532_v44, 2  ;;  %v5539_v2 = vrot.slane %v5538_v27, 2  ;;  %v5545_v46 = vrot.slane %v5544_v7, 2 }
 0xbc1   :  { %v5510_v39 = vmax.f32 %v5508_v56, %v5509_v17  ;;  %v5516_v62 = vmax.f32 %v5514_v12, %v5515_v13  ;;  %v5522_v54 = vmax.f32 %v5520_v52, %v5521_v28  ;;  %v5551_v42 = vrot.slane %v5550_v25, 2 }
 0xbc2   :  { %v5528_v38 = vmax.f32 %v5526_v9, %v5527_v37  ;;  %v5534_v45 = vmax.f32 %v5532_v44, %v5533_v20  ;;  %v5540_v19 = vmax.f32 %v5538_v27, %v5539_v2  ;;  %v5546_v61 = vmax.f32 %v5544_v7, %v5545_v46 }
 0xbc3   :  { %v5511_v57 = vrot.slane %v5510_v39, 1  ;;  %v5517_v31 = vrot.slane %v5516_v62, 1  ;;  %v5523_v49 = vrot.slane %v5522_v54, 1  ;;  %v5552_v1 = vmax.f32 %v5550_v25, %v5551_v42 }
 0xbc4   :  { %v5529_v26 = vrot.slane %v5528_v38, 1  ;;  %v5535_v58 = vrot.slane %v5534_v45, 1  ;;  %v5541_v36 = vrot.slane %v5540_v19, 1  ;;  %v5547_v4 = vrot.slane %v5546_v61, 1 }
 0xbc5   :  { %v5512_v59 = vmax.f32 %v5510_v39, %v5511_v57  ;;  %v5518_v50 = vmax.f32 %v5516_v62, %v5517_v31  ;;  %v5524_v24 = vmax.f32 %v5522_v54, %v5523_v49  ;;  %v5553_v41 = vrot.slane %v5552_v1, 1 }
 0xbc6   :  { %v5530_v56 = vmax.f32 %v5528_v38, %v5529_v26  ;;  %v5536_v12 = vmax.f32 %v5534_v45, %v5535_v58  ;;  %v5542_v52 = vmax.f32 %v5540_v19, %v5541_v36  ;;  %v5548_v17 = vmax.f32 %v5546_v61, %v5547_v4 }
 0xbc7   :  { %v5554_v9 = vmax.f32 %v5552_v1, %v5553_v41  ;;  %v5555_v44 = vsub.f32 %v11217_v40, %v5512_v59  ;;  %v5556_v27 = vsub.f32 %v11221_v10, %v5518_v50  ;;  %v5557_v7 = vsub.f32 %v11225_v5, %v5524_v24 }
 0xbc8   :  { %v5558_v13 = vsub.f32 %v11229_v43, %v5530_v56  ;;  %v5559_v28 = vsub.f32 %v11237_v23, %v5536_v12  ;;  %v5560_v25 = vsub.f32 %v11241_v8, %v5542_v52  ;;  %v5561_v31 = vsub.f32 %v11245_v60, %v5548_v17 }
 0xbc9   :  { %v5562_v26 = vsub.f32 %v11252_v32, %v5554_v9  ;;  %v5563_v58 = vmul.f32 1.442695, %v5555_v44  ;;  %v5565_v36 = vmul.f32 1.442695, %v5556_v27  ;;  %v5567_v61 = vmul.f32 1.442695, %v5557_v7 }
 0xbca   :  { %v5569_v41 = vmul.f32 1.442695, %v5558_v13  ;;  %v5571_v1 = vmul.f32 1.442695, %v5559_v28  ;;  %v5573_v59 = vmul.f32 1.442695, %v5560_v25  ;;  %v12213_v24 = vrot.slane %v11106_v48, %v12208_v47 }
 0xbcb   :  { %7944 = vpow2.f32 %v5563_v58  ;;  %v5575_v40 = vmul.f32 1.442695, %v5561_v31  ;;  %v5577_v10 = vmul.f32 1.442695, %v5562_v26  ;;  %v12214_v5 = vrot.slane %v11123_v22, %v12208_v47 }
 0xbcc   :  { %v5015_v45 = vmul.f32 %v12213_v24, %v11233_v55  ;;  %7946 = vpow2.f32 %v5565_v36  ;;  %v5017_v23 = vmul.f32 %v11147_v63, %v11233_v55  ;;  %v5018_v8 = vmul.f32 %v11159_v0, %v11233_v55 }
 0xbcd   :  { %v5016_v43 = vmul.f32 %v12214_v5, %v11233_v55  ;;  %v12215_v48 = vrot.slane %v11117_v35, %v12208_v47  ;;  %7948 = vpow2.f32 %v5567_v61  ;;  %v12216_v50 = vrot.slane %v11126_v6, %v12208_v47 }
 0xbce   :  { %v5021_v22 = vmul.f32 %v11152_v34, %v11233_v55  ;;  %v5022_v63 = vmul.f32 %v11162_v53, %v11233_v55  ;;  %7950 = vpow2.f32 %v5569_v41  ;;  %v5023_v0 = vadd.f32 %v5015_v45, %v11176_v33  ;;  %v7784_v33 = vld [vmem:[%s11895_s6 + $0x20] sm:$0xff]  }
 0xbcf   :  { %v5019_v60 = vmul.f32 %v12215_v48, %v11233_v55  ;;  %v5020_v32 = vmul.f32 %v12216_v50, %v11233_v55  ;;  %v5024_v37 = vadd.f32 %v5016_v43, %v11183_v3  ;;  %v5025_v35 = vadd.f32 %v5017_v23, %v11186_v14  ;;  %7628 = vmatprep.mubr.msk.bf16.mxu1 %vm117_vm0, %v7784_v33 }
 0xbd0   :  { %7952 = vpow2.f32 %v5571_v1  ;;  %v5026_v20 = vadd.f32 %v5018_v8, %v11189_v30  ;;  %v5029_v6 = vadd.f32 %v5021_v22, %v11202_v29  ;;  %v5030_v34 = vadd.f32 %v5022_v63, %v11205_v16  ;;  %v4686_v63 = vpop.permute.xlu1 %4685 }
 0xbd1   :  { %v5027_v2 = vadd.f32 %v5019_v60, %v11194_v11  ;;  %v5028_v47 = vadd.f32 %v5020_v32, %v11199_v18  ;;  %7954 = vpow2.f32 %v5573_v59  ;;  %v11312_v53 = vsel %vm319_vm3, %v5023_v0, -1e+09 }
 0xbd2   :  { %7956 = vpow2.f32 %v5575_v40  ;;  %v11319_v3 = vsel %vm319_vm3, %v5024_v37, -1e+09  ;;  %v11323_v14 = vsel %vm319_vm3, %v5025_v35, -1e+09  ;;  %v11327_v30 = vsel %vm319_vm3, %v5026_v20, -1e+09 }
 0xbd3   :  { %7958 = vpow2.f32 %v5577_v10  ;;  %v11331_v11 = vsel %vm319_vm3, %v5027_v2, -1e+09  ;;  %v11335_v18 = vsel %vm319_vm3, %v5028_v47, -1e+09  ;;  %v11339_v29 = vsel %vm319_vm3, %v5029_v6, -1e+09 }
 0xbd4   :  { %v11344_v16 = vsel %vm319_vm3, %v5030_v34, -1e+09  ;;  %v5039_v55 = vrot.slane %v11312_v53, 4  ;;  %v5045_v46 = vrot.slane %v11319_v3, 4  ;;  %v5051_v39 = vrot.slane %v11323_v14, 4 }
 0xbd5   :  { %v5057_v62 = vrot.slane %v11327_v30, 4  ;;  %v5063_v54 = vrot.slane %v11331_v11, 4  ;;  %v5069_v42 = vrot.slane %v11335_v18, 4  ;;  %v5075_v38 = vrot.slane %v11339_v29, 4  ;;  %v11353_v19 = vpop.eup %7944 }
 0xbd6   :  { %v5040_v57 = vmax.f32 %v11312_v53, %v5039_v55  ;;  %v5046_v49 = vmax.f32 %v11319_v3, %v5045_v46  ;;  %v5052_v4 = vmax.f32 %v11323_v14, %v5051_v39  ;;  %v5081_v56 = vrot.slane %v11344_v16, 4  ;;  %v11359_v12 = vpop.eup %7946 }
 0xbd7   :  { %v5058_v52 = vmax.f32 %v11327_v30, %v5057_v62  ;;  %v5064_v17 = vmax.f32 %v11331_v11, %v5063_v54  ;;  %v5070_v9 = vmax.f32 %v11335_v18, %v5069_v42  ;;  %v5076_v44 = vmax.f32 %v11339_v29, %v5075_v38  ;;  %v11365_v27 = vpop.eup %7948 }
 0xbd8   :  { %v5041_v7 = vrot.slane %v5040_v57, 2  ;;  %v5047_v13 = vrot.slane %v5046_v49, 2  ;;  %v5053_v28 = vrot.slane %v5052_v4, 2  ;;  %v5082_v25 = vmax.f32 %v11344_v16, %v5081_v56  ;;  %v11368_v31 = vpop.eup %7950 }
 0xbd9   :  { %v5059_v26 = vrot.slane %v5058_v52, 2  ;;  %v5065_v58 = vrot.slane %v5064_v17, 2  ;;  %v5071_v36 = vrot.slane %v5070_v9, 2  ;;  %v5077_v61 = vrot.slane %v5076_v44, 2 }
 0xbda   :  { %v11370_v41 = vpop.eup %7952  ;;  %v5042_v1 = vmax.f32 %v5040_v57, %v5041_v7  ;;  %v5048_v59 = vmax.f32 %v5046_v49, %v5047_v13  ;;  %v5054_v24 = vmax.f32 %v5052_v4, %v5053_v28  ;;  %v5083_v45 = vrot.slane %v5082_v25, 2  ;;  %v4696_v7 = vpop.permute.xlu1 %4695 }
 0xbdb   :  { %v11372_v40 = vpop.eup %7954  ;;  %v5060_v10 = vmax.f32 %v5058_v52, %v5059_v26  ;;  %v5066_v5 = vmax.f32 %v5064_v17, %v5065_v58  ;;  %v5072_v43 = vmax.f32 %v5070_v9, %v5071_v36  ;;  %v5078_v23 = vmax.f32 %v5076_v44, %v5077_v61 }
 0xbdc   :  { %12217 = vst [vmem:[#allocation17_spill] sm:$0xff] %v11372_v40  ;;  %v11374_v8 = vpop.eup %7956  ;;  %v5043_v48 = vrot.slane %v5042_v1, 1  ;;  %v5049_v60 = vrot.slane %v5048_v59, 1  ;;  %v5055_v50 = vrot.slane %v5054_v24, 1  ;;  %v5084_v32 = vmax.f32 %v5082_v25, %v5083_v45 }
 0xbdd   :  { %12218 = vst [vmem:[#allocation16_spill] sm:$0xff] %v11374_v8  ;;  %v11376_v22 = vpop.eup %7958  ;;  %v5061_v0 = vrot.slane %v5060_v10, 1  ;;  %v5067_v37 = vrot.slane %v5066_v5, 1  ;;  %v5073_v35 = vrot.slane %v5072_v43, 1  ;;  %v5079_v20 = vrot.slane %v5078_v23, 1 }
 0xbde   :  { %v5044_v2 = vmax.f32 %v5042_v1, %v5043_v48  ;;  %v5050_v47 = vmax.f32 %v5048_v59, %v5049_v60  ;;  %v5056_v6 = vmax.f32 %v5054_v24, %v5055_v50  ;;  %v5085_v34 = vrot.slane %v5084_v32, 1 }
 0xbdf   :  { %v5062_v33 = vmax.f32 %v5060_v10, %v5061_v0  ;;  %v5068_v55 = vmax.f32 %v5066_v5, %v5067_v37  ;;  %v5074_v46 = vmax.f32 %v5072_v43, %v5073_v35  ;;  %v5080_v39 = vmax.f32 %v5078_v23, %v5079_v20 }
 0xbe0   :  { %v5086_v62 = vmax.f32 %v5084_v32, %v5085_v34  ;;  %v5087_v54 = vsub.f32 %v11312_v53, %v5044_v2  ;;  %v5088_v42 = vsub.f32 %v11319_v3, %v5050_v47  ;;  %v5089_v38 = vsub.f32 %v11323_v14, %v5056_v6 }
 0xbe1   :  { %v5090_v57 = vsub.f32 %v11327_v30, %v5062_v33  ;;  %v5091_v49 = vsub.f32 %v11331_v11, %v5068_v55  ;;  %v5092_v4 = vsub.f32 %v11335_v18, %v5074_v46  ;;  %v5093_v56 = vsub.f32 %v11339_v29, %v5080_v39  ;;  %v12219_v11 = vld [vmem:[#allocation59_spill] sm:$0xff]  ;;  %v12221_v29 = vld [vmem:[#allocation13_spill] sm:$0xff] }
 0xbe2   :  { %v5094_v52 = vsub.f32 %v11344_v16, %v5086_v62  ;;  %v5095_v17 = vmul.f32 1.442695, %v5087_v54  ;;  %v5097_v9 = vmul.f32 1.442695, %v5088_v42  ;;  %v5099_v44 = vmul.f32 1.442695, %v5089_v38 }
 0xbe3   :  { %v5101_v13 = vmul.f32 1.442695, %v5090_v57  ;;  %v5103_v53 = vmul.f32 1.442695, %v5091_v49  ;;  %v5105_v28 = vmul.f32 1.442695, %v5092_v4  ;;  %v11388_v3 = vadd.f32 %v11100_v15, %v11178_v21 }
 0xbe4   :  { %7960 = vpow2.f32 %v5095_v17  ;;  %v5107_v14 = vmul.f32 1.442695, %v5093_v56  ;;  %v5109_v30 = vmul.f32 1.442695, %v5094_v52  ;;  %v11391_v18 = vadd.f32 %v12219_v11, %v4696_v7 }
 0xbe5   :  { %7962 = vpow2.f32 %v5097_v9  ;;  %v11394_v16 = vadd.f32 %v12221_v29, %v4686_v63  ;;  %v5579_v25 = vrot.slane %v11353_v19, 4  ;;  %v5585_v26 = vrot.slane %v11359_v12, 4 }
 0xbe6   :  { %12220 = vst [vmem:[#allocation15_spill] sm:$0xff] %v11391_v18  ;;  %7964 = vpow2.f32 %v5099_v44  ;;  %v5591_v58 = vrot.slane %v11365_v27, 4  ;;  %v5597_v15 = vrot.slane %v11368_v31, 4  ;;  %v5603_v21 = vrot.slane %v11370_v41, 4 }
 0xbe7   :  { %7966 = vpow2.f32 %v5101_v13  ;;  %v5580_v36 = vadd.f32 %v11353_v19, %v5579_v25  ;;  %v5586_v61 = vadd.f32 %v11359_v12, %v5585_v26  ;;  %v5609_v1 = vrot.slane %v11372_v40, 4 }
 0xbe8   :  { %7968 = vpow2.f32 %v5103_v53  ;;  %v5592_v59 = vadd.f32 %v11365_v27, %v5591_v58  ;;  %v5598_v24 = vadd.f32 %v11368_v31, %v5597_v15  ;;  %v5604_v45 = vadd.f32 %v11370_v41, %v5603_v21 }
 0xbe9   :  { %7970 = vpow2.f32 %v5105_v28  ;;  %v5581_v10 = vrot.slane %v5580_v36, 2  ;;  %v5587_v5 = vrot.slane %v5586_v61, 2  ;;  %v5610_v43 = vadd.f32 %v11372_v40, %v5609_v1 }
 0xbea   :  { %7972 = vpow2.f32 %v5107_v14  ;;  %v5593_v23 = vrot.slane %v5592_v59, 2  ;;  %v5599_v48 = vrot.slane %v5598_v24, 2  ;;  %v5605_v60 = vrot.slane %v5604_v45, 2 }
 0xbeb   :  { %7974 = vpow2.f32 %v5109_v30  ;;  %v5582_v50 = vadd.f32 %v5581_v10, %v5580_v36  ;;  %v5588_v32 = vadd.f32 %v5587_v5, %v5586_v61  ;;  %v5611_v63 = vrot.slane %v5610_v43, 2 }
 0xbec   :  { %v11408_v0 = vadd.f32 %v5593_v23, %v5592_v59  ;;  %v11410_v37 = vadd.f32 %v5599_v48, %v5598_v24  ;;  %v11412_v35 = vadd.f32 %v5605_v60, %v5604_v45  ;;  %v5615_v20 = vrot.slane %v11374_v8, 4 }
 0xbed   :  { %v5583_v2 = vrot.slane %v5582_v50, 1  ;;  %v5589_v47 = vrot.slane %v5588_v32, 1  ;;  %v11415_v6 = vadd.f32 %v5611_v63, %v5610_v43 }
 0xbee   :  { %v7961_v33 = vpop.eup %7960  ;;  %v11422_v62 = vadd.f32 %v11374_v8, %v5615_v20 }
 0xbef   :  { %v7963_v54 = vpop.eup %7962  ;;  %v5111_v42 = vrot.slane %v7961_v33, 4  ;;  %v11425_v38 = vmul.f32 %v7961_v33, %v11388_v3  ;;  %v11428_v57 = vmul.f32 %v7961_v33, %v11394_v16  ;;  %v11430_v49 = vadd.f32 %v5583_v2, %v5582_v50 }
 0xbf0   :  { %v11432_v4 = vpop.eup %7964  ;;  %v5117_v56 = vrot.slane %v7963_v54, 4  ;;  %v11435_v52 = vmul.f32 %v7963_v54, %v11388_v3  ;;  %v11438_v17 = vmul.f32 %v7963_v54, %v11394_v16  ;;  %v11440_v9 = vadd.f32 %v5589_v47, %v5588_v32 }
 0xbf1   :  { %v11442_v44 = vpop.eup %7966  ;;  %v5112_v7 = vadd.f32 %v7961_v33, %v5111_v42  ;;  %v5123_v13 = vrot.slane %v11432_v4, 4  ;;  %v11447_v53 = vmul.f32 %v11432_v4, %v11388_v3  ;;  %v5175_v28 = vrot.slane %v11425_v38, 4 }
 0xbf2   :  { %v11450_v14 = vpop.eup %7968  ;;  %v5118_v30 = vadd.f32 %v7963_v54, %v5117_v56  ;;  %v5129_v11 = vrot.slane %v11442_v44, 4  ;;  %v11455_v29 = vmul.f32 %v11442_v44, %v11388_v3  ;;  %v5181_v25 = vrot.slane %v11435_v52, 4 }
 0xbf3   :  { %v11458_v26 = vpop.eup %7970  ;;  %v5113_v58 = vrot.slane %v5112_v7, 2  ;;  %v5124_v15 = vadd.f32 %v11432_v4, %v5123_v13  ;;  %v5135_v21 = vrot.slane %v11450_v14, 4  ;;  %v11464_v36 = vmul.f32 %v11450_v14, %v11388_v3 }
 0xbf4   :  { %v11466_v61 = vpop.eup %7972  ;;  %v5119_v1 = vrot.slane %v5118_v30, 2  ;;  %v5130_v59 = vadd.f32 %v11442_v44, %v5129_v11  ;;  %v5141_v24 = vrot.slane %v11458_v26, 4  ;;  %v11472_v45 = vmul.f32 %v11458_v26, %v11388_v3 }
 0xbf5   :  { %v11474_v10 = vpop.eup %7974  ;;  %v5114_v5 = vadd.f32 %v5113_v58, %v5112_v7  ;;  %v5125_v43 = vrot.slane %v5124_v15, 2  ;;  %v5136_v23 = vadd.f32 %v11450_v14, %v5135_v21  ;;  %v5147_v48 = vrot.slane %v11466_v61, 4 }
 0xbf6   :  { %v5120_v60 = vadd.f32 %v5119_v1, %v5118_v30  ;;  %v5131_v50 = vrot.slane %v5130_v59, 2  ;;  %v5142_v32 = vadd.f32 %v11458_v26, %v5141_v24  ;;  %v5153_v63 = vrot.slane %v11474_v10, 4 }
 0xbf7   :  { %v5115_v20 = vrot.slane %v5114_v5, 1  ;;  %v5126_v2 = vadd.f32 %v5125_v43, %v5124_v15  ;;  %v5137_v47 = vrot.slane %v5136_v23, 2  ;;  %v5148_v33 = vadd.f32 %v11466_v61, %v5147_v48 }
 0xbf8   :  { %v5121_v54 = vrot.slane %v5120_v60, 1  ;;  %v5132_v42 = vadd.f32 %v5131_v50, %v5130_v59  ;;  %v5143_v56 = vrot.slane %v5142_v32, 2  ;;  %v5154_v7 = vadd.f32 %v11474_v10, %v5153_v63 }
 0xbf9   :  { %v5116_v13 = vadd.f32 %v5115_v20, %v5114_v5  ;;  %v5127_v11 = vrot.slane %v5126_v2, 1  ;;  %v5138_v58 = vadd.f32 %v5137_v47, %v5136_v23  ;;  %v5149_v21 = vrot.slane %v5148_v33, 2 }
 0xbfa   :  { %v5122_v30 = vadd.f32 %v5121_v54, %v5120_v60  ;;  %v5133_v1 = vrot.slane %v5132_v42, 1  ;;  %v5144_v34 = vadd.f32 %v5143_v56, %v5142_v32  ;;  %v5155_v24 = vrot.slane %v5154_v7, 2 }
 0xbfb   :  { %v5128_v39 = vadd.f32 %v5127_v11, %v5126_v2  ;;  %v5139_v46 = vrot.slane %v5138_v58, 1  ;;  %v5150_v55 = vadd.f32 %v5149_v21, %v5148_v33  ;;  %7976 = vrcp.f32 %v5116_v13 }
 0xbfc   :  { %v5134_v15 = vadd.f32 %v5133_v1, %v5132_v42  ;;  %v5145_v43 = vrot.slane %v5144_v34, 1  ;;  %v5156_v48 = vadd.f32 %v5155_v24, %v5154_v7  ;;  %7978 = vrcp.f32 %v5122_v30 }
 0xbfd   :  { %v5140_v59 = vadd.f32 %v5139_v46, %v5138_v58  ;;  %v5151_v50 = vrot.slane %v5150_v55, 1  ;;  %7980 = vrcp.f32 %v5128_v39  ;;  %v5173_v5 = vmul.f32 %v11466_v61, %v11388_v3 }
 0xbfe   :  { %v5146_v23 = vadd.f32 %v5145_v43, %v5144_v34  ;;  %v5157_v63 = vrot.slane %v5156_v48, 1  ;;  %7982 = vrcp.f32 %v5134_v15  ;;  %v5174_v60 = vmul.f32 %v11474_v10, %v11388_v3 }
 0xbff   :  { %v5152_v32 = vadd.f32 %v5151_v50, %v5150_v55  ;;  %7984 = vrcp.f32 %v5140_v59  ;;  %v5176_v20 = vadd.f32 %v5175_v28, %v11425_v38  ;;  %v5182_v2 = vadd.f32 %v5181_v25, %v11435_v52 }
 0xc00   :  { %v5158_v47 = vadd.f32 %v5157_v63, %v5156_v48  ;;  %7986 = vrcp.f32 %v5146_v23  ;;  %v5187_v46 = vrot.slane %v11447_v53, 4  ;;  %v5193_v39 = vrot.slane %v11455_v29, 4 }
 0xc01   :  { %7988 = vrcp.f32 %v5152_v32  ;;  %v5177_v33 = vrot.slane %v5176_v20, 2  ;;  %v5183_v34 = vrot.slane %v5182_v2, 2  ;;  %v5199_v54 = vrot.slane %v11464_v36, 4 }
 0xc02   :  { %7990 = vrcp.f32 %v5158_v47  ;;  %v5188_v3 = vadd.f32 %v5187_v46, %v11447_v53  ;;  %v5194_v55 = vadd.f32 %v5193_v39, %v11455_v29  ;;  %v5205_v38 = vrot.slane %v11472_v45, 4 }
 0xc03   :  { %v5178_v28 = vadd.f32 %v5177_v33, %v5176_v20  ;;  %v5184_v52 = vadd.f32 %v5183_v34, %v5182_v2  ;;  %v5200_v25 = vadd.f32 %v5199_v54, %v11464_v36  ;;  %v5211_v42 = vrot.slane %v5173_v5, 4 }
 0xc04   :  { %v5189_v56 = vrot.slane %v5188_v3, 2  ;;  %v5195_v7 = vrot.slane %v5194_v55, 2  ;;  %v5206_v13 = vadd.f32 %v5205_v38, %v11472_v45  ;;  %v5217_v11 = vrot.slane %v5174_v60, 4 }
 0xc05   :  { %v11496_v58 = vpop.eup %7976  ;;  %v5179_v21 = vrot.slane %v5178_v28, 1  ;;  %v5185_v30 = vrot.slane %v5184_v52, 1  ;;  %v5201_v1 = vrot.slane %v5200_v25, 2  ;;  %v5212_v53 = vadd.f32 %v5211_v42, %v5173_v5 }
 0xc06   :  { %v11498_v24 = vpop.eup %7978  ;;  %v5190_v29 = vadd.f32 %v5189_v56, %v5188_v3  ;;  %v5196_v15 = vadd.f32 %v5195_v7, %v5194_v55  ;;  %v5207_v43 = vrot.slane %v5206_v13, 2  ;;  %v5218_v48 = vadd.f32 %v5217_v11, %v5174_v60 }
 0xc07   :  { %v11500_v59 = vpop.eup %7980  ;;  %v5180_v36 = vadd.f32 %v5179_v21, %v5178_v28  ;;  %v5186_v50 = vadd.f32 %v5185_v30, %v5184_v52  ;;  %v5202_v23 = vadd.f32 %v5201_v1, %v5200_v25  ;;  %v5213_v63 = vrot.slane %v5212_v53, 2 }
 0xc08   :  { %v11502_v45 = vpop.eup %7982  ;;  %v5191_v32 = vrot.slane %v5190_v29, 1  ;;  %v5197_v20 = vrot.slane %v5196_v15, 1  ;;  %v5208_v2 = vadd.f32 %v5207_v43, %v5206_v13  ;;  %v5219_v47 = vrot.slane %v5218_v48, 2 }
 0xc09   :  { %v11504_v46 = vpop.eup %7984  ;;  %v5203_v5 = vrot.slane %v5202_v23, 1  ;;  %v5214_v39 = vadd.f32 %v5213_v63, %v5212_v53  ;;  %v11507_v33 = vmul.f32 %v11496_v58, %v5180_v36  ;;  %v11510_v60 = vmul.f32 %v11498_v24, %v5186_v50 }
 0xc0a   :  { %v11512_v34 = vpop.eup %7986  ;;  %v5192_v54 = vadd.f32 %v5191_v32, %v5190_v29  ;;  %v5198_v3 = vadd.f32 %v5197_v20, %v5196_v15  ;;  %v5209_v55 = vrot.slane %v5208_v2, 1  ;;  %v5220_v38 = vadd.f32 %v5219_v47, %v5218_v48 }
 0xc0b   :  { %v11514_v28 = vpop.eup %7988  ;;  %v5204_v52 = vadd.f32 %v5203_v5, %v5202_v23  ;;  %v5215_v25 = vrot.slane %v5214_v39, 1  ;;  %v5233_v42 = vmul.f32 %v11432_v4, %v11394_v16  ;;  %v5234_v56 = vmul.f32 %v11442_v44, %v11394_v16 }
 0xc0c   :  { %v11520_v7 = vpop.eup %7990  ;;  %v5210_v13 = vadd.f32 %v5209_v55, %v5208_v2  ;;  %v5221_v11 = vrot.slane %v5220_v38, 1  ;;  %v11523_v21 = vmul.f32 %v11500_v59, %v5192_v54  ;;  %v11526_v30 = vmul.f32 %v11502_v45, %v5198_v3 }
 0xc0d   :  { %v5216_v1 = vadd.f32 %v5215_v25, %v5214_v39  ;;  %v11529_v53 = vmul.f32 %v11504_v46, %v5204_v52  ;;  %v5235_v4 = vmul.f32 %v11450_v14, %v11394_v16  ;;  %v5236_v44 = vmul.f32 %v11458_v26, %v11394_v16 }
 0xc0e   :  { %v5222_v29 = vadd.f32 %v5221_v11, %v5220_v38  ;;  %v11536_v15 = vmul.f32 %v11512_v34, %v5210_v13  ;;  %v5237_v43 = vmul.f32 %v11466_v61, %v11394_v16  ;;  %v5238_v48 = vmul.f32 %v11474_v10, %v11394_v16 }
 0xc0f   :  { %v11543_v36 = vmul.f32 %v11514_v28, %v5216_v1  ;;  %v5239_v50 = vrot.slane %v11428_v57, 4  ;;  %v5245_v14 = vrot.slane %v11438_v17, 4  ;;  %v5251_v23 = vrot.slane %v5233_v42, 4 }
 0xc10   :  { %v11548_v26 = vmul.f32 %v11520_v7, %v5222_v29  ;;  %v5257_v63 = vrot.slane %v5234_v56, 4  ;;  %v5263_v32 = vrot.slane %v5235_v4, 4  ;;  %v5269_v20 = vrot.slane %v5236_v44, 4 }
 0xc11   :  { %v5240_v2 = vadd.f32 %v5239_v50, %v11428_v57  ;;  %v5246_v61 = vadd.f32 %v5245_v14, %v11438_v17  ;;  %v5252_v47 = vadd.f32 %v5251_v23, %v5233_v42  ;;  %v5275_v16 = vrot.slane %v5237_v43, 4 }
 0xc12   :  { %v5258_v10 = vadd.f32 %v5257_v63, %v5234_v56  ;;  %v5264_v5 = vadd.f32 %v5263_v32, %v5235_v4  ;;  %v5270_v39 = vadd.f32 %v5269_v20, %v5236_v44  ;;  %v5281_v54 = vrot.slane %v5238_v48, 4 }
 0xc13   :  { %v5241_v3 = vrot.slane %v5240_v2, 2  ;;  %v5247_v55 = vrot.slane %v5246_v61, 2  ;;  %v5253_v38 = vrot.slane %v5252_v47, 2  ;;  %v5276_v52 = vadd.f32 %v5275_v16, %v5237_v43 }
 0xc14   :  { %v5259_v25 = vrot.slane %v5258_v10, 2  ;;  %v5265_v13 = vrot.slane %v5264_v5, 2  ;;  %v5271_v11 = vrot.slane %v5270_v39, 2  ;;  %v5282_v1 = vadd.f32 %v5281_v54, %v5238_v48 }
 0xc15   :  { %v5242_v29 = vadd.f32 %v5241_v3, %v5240_v2  ;;  %v5248_v51 = vadd.f32 %v5247_v55, %v5246_v61  ;;  %v5254_v18 = vadd.f32 %v5253_v38, %v5252_v47  ;;  %v5277_v57 = vrot.slane %v5276_v52, 2 }
 0xc16   :  { %v5260_v50 = vadd.f32 %v5259_v25, %v5258_v10  ;;  %v5266_v17 = vadd.f32 %v5265_v13, %v5264_v5  ;;  %v5272_v42 = vadd.f32 %v5271_v11, %v5270_v39  ;;  %v5283_v14 = vrot.slane %v5282_v1, 2 }
 0xc17   :  { %v5243_v56 = vrot.slane %v5242_v29, 1  ;;  %v5249_v4 = vrot.slane %v5248_v51, 1  ;;  %v5255_v44 = vrot.slane %v5254_v18, 1  ;;  %v5278_v23 = vadd.f32 %v5277_v57, %v5276_v52 }
 0xc18   :  { %v5261_v63 = vrot.slane %v5260_v50, 1  ;;  %v5267_v32 = vrot.slane %v5266_v17, 1  ;;  %v5273_v20 = vrot.slane %v5272_v42, 1  ;;  %v5284_v43 = vadd.f32 %v5283_v14, %v5282_v1 }
 0xc19   :  { %v5244_v16 = vadd.f32 %v5243_v56, %v5242_v29  ;;  %v5250_v8 = vadd.f32 %v5249_v4, %v5248_v51  ;;  %v5256_v40 = vadd.f32 %v5255_v44, %v5254_v18  ;;  %v5279_v48 = vrot.slane %v5278_v23, 1 }
 0xc1a   :  { %v5262_v2 = vadd.f32 %v5261_v63, %v5260_v50  ;;  %v5268_v61 = vadd.f32 %v5267_v32, %v5266_v17  ;;  %v5274_v47 = vadd.f32 %v5273_v20, %v5272_v42  ;;  %v5285_v54 = vrot.slane %v5284_v43, 1  ;;  %v12227_v63 = vld [vmem:[#allocation17_spill] sm:$0xff]  ;;  %v12228_v20 = vld [vmem:[#allocation16_spill] sm:$0xff] }
 0xc1b   :  { %v5280_v10 = vadd.f32 %v5279_v48, %v5278_v23  ;;  %v5287_v5 = vmul.f32 %v11496_v58, %v5244_v16  ;;  %v5288_v39 = vmul.f32 %v11498_v24, %v5250_v8  ;;  %v5289_v3 = vmul.f32 %v11500_v59, %v5256_v40 }
 0xc1c   :  { %v5286_v55 = vadd.f32 %v5285_v54, %v5284_v43  ;;  %v5290_v38 = vmul.f32 %v11502_v45, %v5262_v2  ;;  %v5291_v52 = vmul.f32 %v11504_v46, %v5268_v61  ;;  %v5292_v51 = vmul.f32 %v11512_v34, %v5274_v47 }
 0xc1d   :  { %v5293_v18 = vmul.f32 %v11514_v28, %v5280_v10  ;;  %v5771_v25 = vsel %vm1482_vm4, %v11510_v60, %v11507_v33  ;;  %v5787_v13 = vsel %vm1482_vm4, %v5288_v39, %v5287_v5  ;;  %v12222_v8 = vrot.slane %v11408_v0, 1 }
 0xc1e   :  { %v5294_v40 = vmul.f32 %v11520_v7, %v5286_v55  ;;  %v5772_v24 = vsel %vm1484_vm5, %v11523_v21, %v5771_v25  ;;  %v5788_v59 = vsel %vm1484_vm5, %v5289_v3, %v5787_v13  ;;  %v12223_v45 = vrot.slane %v11410_v37, 1 }
 0xc1f   :  { %v5596_v58 = vadd.f32 %v12222_v8, %v11408_v0  ;;  %v5773_v33 = vsel %vm1486_vm6, %v11526_v30, %v5772_v24  ;;  %v5789_v60 = vsel %vm1486_vm6, %v5290_v38, %v5788_v59  ;;  %v12224_v34 = vrot.slane %v11412_v35, 1 }
 0xc20   :  { %v5602_v46 = vadd.f32 %v12223_v45, %v11410_v37  ;;  %v5613_v28 = vrot.slane %v11415_v6, 1  ;;  %v5774_v7 = vsel %vm1488_vm7, %v11529_v53, %v5773_v33  ;;  %v5790_v21 = vsel %vm1488_vm7, %v5291_v52, %v5789_v60 }
 0xc21   :  { %v5608_v0 = vadd.f32 %v12224_v34, %v11412_v35  ;;  %v5617_v11 = vrot.slane %v11422_v62, 2  ;;  %v12225_v37 = vrot.slane %v11376_v22, 4  ;;  %v5775_v30 = vsel %vm1490_vm8, %v11536_v15, %v5774_v7  ;;  %v12226_v15 = vld [vmem:[#allocation12_spill] sm:$0xff] }
 0xc22   :  { %v5791_v29 = vsel %vm1490_vm8, %v5292_v51, %v5790_v21  ;;  %v5614_v35 = vadd.f32 %v5613_v28, %v11415_v6  ;;  %7992 = vrcp.f32 %v11430_v49  ;;  %v5776_v53 = vsel %vm1492_vm9, %v11543_v36, %v5775_v30 }
 0xc23   :  { %v5622_v1 = vadd.f32 %v11376_v22, %v12225_v37  ;;  %v5792_v57 = vsel %vm1492_vm9, %v5293_v18, %v5791_v29  ;;  %v5618_v50 = vadd.f32 %v5617_v11, %v11422_v62  ;;  %v5777_v42 = vsel %vm1494_vm10, %v11548_v26, %v5776_v53 }
 0xc24   :  { %v5793_v14 = vsel %vm1494_vm10, %v5294_v40, %v5792_v57  ;;  %7994 = vrcp.f32 %v11440_v9  ;;  %v5635_v6 = vmul.f32 %v11353_v19, %v12226_v15  ;;  %v5636_v36 = vmul.f32 %v11359_v12, %v12226_v15 }
 0xc25   :  { %v5623_v17 = vrot.slane %v5622_v1, 2  ;;  %v5832_v56 = vpack.c.bf16 %v5793_v14, %v5777_v42  ;;  %v5619_v49 = vrot.slane %v5618_v50, 1  ;;  %7996 = vrcp.f32 %v5596_v58 }
 0xc26   :  { %7998 = vrcp.f32 %v5602_v46  ;;  %v5637_v62 = vmul.f32 %v11365_v27, %v12226_v15  ;;  %v5638_v26 = vmul.f32 %v11368_v31, %v12226_v15  ;;  %v5639_v23 = vmul.f32 %v11370_v41, %v12226_v15 }
 0xc27   :  { %v5624_v4 = vadd.f32 %v5623_v17, %v5622_v1  ;;  %7624 = vmatprep.subr.bf16.mxu1 %v5832_v56  ;;  %v5620_v44 = vadd.f32 %v5619_v49, %v5618_v50  ;;  %8000 = vrcp.f32 %v5608_v0  ;;  %v5640_v32 = vmul.f32 %v12227_v63, %v12226_v15 }
 0xc28   :  { %7625 = vmatpush3.bf16.msra.mxu1 %v5832_v56  ;;  %8002 = vrcp.f32 %v5614_v35  ;;  %v5641_v43 = vmul.f32 %v12228_v20, %v12226_v15  ;;  %v5642_v16 = vmul.f32 %v11376_v22, %v12226_v15  ;;  %v5643_v2 = vrot.slane %v5635_v6, 4 }
 0xc29   :  { %v5625_v9 = vrot.slane %v5624_v4, 1  ;;  %8004 = vrcp.f32 %v5620_v44  ;;  %v5649_v61 = vrot.slane %v5636_v36, 4  ;;  %v5655_v47 = vrot.slane %v5637_v62, 4 }
 0xc2a   :  { %v5661_v54 = vrot.slane %v5638_v26, 4  ;;  %v5667_v10 = vrot.slane %v5639_v23, 4  ;;  %v5673_v5 = vrot.slane %v5640_v32, 4  ;;  %v5644_v39 = vadd.f32 %v5643_v2, %v5635_v6 }
 0xc2b   :  { %v5626_v48 = vadd.f32 %v5625_v9, %v5624_v4  ;;  %v5650_v3 = vadd.f32 %v5649_v61, %v5636_v36  ;;  %v5679_v55 = vrot.slane %v5641_v43, 4  ;;  %v5656_v52 = vadd.f32 %v5655_v47, %v5637_v62 }
 0xc2c   :  { %v11616_v38 = vpop.eup %7992  ;;  %v5662_v51 = vadd.f32 %v5661_v54, %v5638_v26  ;;  %v5668_v18 = vadd.f32 %v5667_v10, %v5639_v23  ;;  %v5674_v25 = vadd.f32 %v5673_v5, %v5640_v32  ;;  %v5645_v13 = vrot.slane %v5644_v39, 2 }
 0xc2d   :  { %8006 = vrcp.f32 %v5626_v48  ;;  %v5651_v8 = vrot.slane %v5650_v3, 2  ;;  %v5680_v58 = vadd.f32 %v5679_v55, %v5641_v43  ;;  %v5685_v40 = vrot.slane %v5642_v16, 4 }
 0xc2e   :  { %v11618_v24 = vpop.eup %7994  ;;  %v5657_v59 = vrot.slane %v5656_v52, 2  ;;  %v5663_v45 = vrot.slane %v5662_v51, 2  ;;  %v5669_v46 = vrot.slane %v5668_v18, 2  ;;  %v5675_v33 = vrot.slane %v5674_v25, 2 }
 0xc2f   :  { %v11620_v60 = vpop.eup %7996  ;;  %v5646_v34 = vadd.f32 %v5645_v13, %v5644_v39  ;;  %v5652_v0 = vadd.f32 %v5651_v8, %v5650_v3  ;;  %v5681_v28 = vrot.slane %v5680_v58, 2  ;;  %v5686_v7 = vadd.f32 %v5685_v40, %v5642_v16  ;;  %v12229_v3 = vld [vmem:[#allocation15_spill] sm:$0xff] }
 0xc30   :  { %v11622_v21 = vpop.eup %7998  ;;  %v5658_v11 = vadd.f32 %v5657_v59, %v5656_v52  ;;  %v5664_v37 = vadd.f32 %v5663_v45, %v5662_v51  ;;  %v5670_v1 = vadd.f32 %v5669_v46, %v5668_v18  ;;  %v5676_v30 = vadd.f32 %v5675_v33, %v5674_v25 }
 0xc31   :  { %v11624_v29 = vpop.eup %8000  ;;  %v5647_v35 = vrot.slane %v5646_v34, 1  ;;  %v5653_v53 = vrot.slane %v5652_v0, 1  ;;  %v5682_v57 = vadd.f32 %v5681_v28, %v5680_v58  ;;  %v5687_v50 = vrot.slane %v5686_v7, 2 }
 0xc32   :  { %v11626_v17 = vpop.eup %8002  ;;  %v5659_v42 = vrot.slane %v5658_v11, 1  ;;  %v5665_v14 = vrot.slane %v5664_v37, 1  ;;  %v5671_v15 = vrot.slane %v5670_v1, 1  ;;  %v5677_v6 = vrot.slane %v5676_v30, 1 }
 0xc33   :  { %v11628_v56 = vpop.eup %8004  ;;  %v5648_v49 = vadd.f32 %v5647_v35, %v5646_v34  ;;  %v5654_v4 = vadd.f32 %v5653_v53, %v5652_v0  ;;  %v5683_v36 = vrot.slane %v5682_v57, 1  ;;  %v5688_v62 = vadd.f32 %v5687_v50, %v5686_v7 }
 0xc34   :  { %v5660_v26 = vadd.f32 %v5659_v42, %v5658_v11  ;;  %v5666_v44 = vadd.f32 %v5665_v14, %v5664_v37  ;;  %v5672_v9 = vadd.f32 %v5671_v15, %v5670_v1  ;;  %v5678_v23 = vadd.f32 %v5677_v6, %v5676_v30 }
 0xc35   :  { %v5684_v43 = vadd.f32 %v5683_v36, %v5682_v57  ;;  %v5689_v16 = vrot.slane %v5688_v62, 1  ;;  %v11633_v48 = vmul.f32 %v11616_v38, %v5648_v49  ;;  %v11636_v2 = vmul.f32 %v11618_v24, %v5654_v4 }
 0xc36   :  { %v11639_v61 = vmul.f32 %v11620_v60, %v5660_v26  ;;  %v11642_v47 = vmul.f32 %v11622_v21, %v5666_v44  ;;  %v11645_v54 = vmul.f32 %v11624_v29, %v5672_v9  ;;  %v11648_v10 = vmul.f32 %v11626_v17, %v5678_v23 }
 0xc37   :  { %v11630_v32 = vpop.eup %8006  ;;  %v5690_v5 = vadd.f32 %v5689_v16, %v5688_v62  ;;  %v11651_v39 = vmul.f32 %v11628_v56, %v5684_v43  ;;  %v5699_v55 = vmul.f32 %v11353_v19, %v12229_v3  ;;  %v5700_v52 = vmul.f32 %v11359_v12, %v12229_v3 }
 0xc38   :  { %v5701_v51 = vmul.f32 %v11365_v27, %v12229_v3  ;;  %v5702_v18 = vmul.f32 %v11368_v31, %v12229_v3  ;;  %v5703_v25 = vmul.f32 %v11370_v41, %v12229_v3  ;;  %v5704_v13 = vmul.f32 %v12227_v63, %v12229_v3 }
 0xc39   :  { %v11666_v8 = vmul.f32 %v11630_v32, %v5690_v5  ;;  %v5705_v19 = vmul.f32 %v12228_v20, %v12229_v3  ;;  %v5706_v12 = vmul.f32 %v11376_v22, %v12229_v3  ;;  %v5707_v58 = vrot.slane %v5699_v55, 4 }
 0xc3a   :  { %v5713_v27 = vrot.slane %v5700_v52, 4  ;;  %v5719_v40 = vrot.slane %v5701_v51, 4  ;;  %v5725_v59 = vrot.slane %v5702_v18, 4  ;;  %v5731_v31 = vrot.slane %v5703_v25, 4 }
 0xc3b   :  { %v5708_v45 = vadd.f32 %v5707_v58, %v5699_v55  ;;  %v5737_v46 = vrot.slane %v5704_v13, 4  ;;  %v5743_v41 = vrot.slane %v5705_v19, 4  ;;  %v5749_v33 = vrot.slane %v5706_v12, 4 }
 0xc3c   :  { %v5714_v34 = vadd.f32 %v5713_v27, %v5700_v52  ;;  %v5720_v63 = vadd.f32 %v5719_v40, %v5701_v51  ;;  %v5726_v0 = vadd.f32 %v5725_v59, %v5702_v18  ;;  %v5732_v28 = vadd.f32 %v5731_v31, %v5703_v25 }
 0xc3d   :  { %v5709_v7 = vrot.slane %v5708_v45, 2  ;;  %v5738_v11 = vadd.f32 %v5737_v46, %v5704_v13  ;;  %v5744_v37 = vadd.f32 %v5743_v41, %v5705_v19  ;;  %v5750_v20 = vadd.f32 %v5749_v33, %v5706_v12 }
 0xc3e   :  { %v5715_v1 = vrot.slane %v5714_v34, 2  ;;  %v5721_v30 = vrot.slane %v5720_v63, 2  ;;  %v5727_v22 = vrot.slane %v5726_v0, 2  ;;  %v5733_v35 = vrot.slane %v5732_v28, 2 }
 0xc3f   :  { %v5710_v53 = vadd.f32 %v5709_v7, %v5708_v45  ;;  %v5739_v57 = vrot.slane %v5738_v11, 2  ;;  %v5745_v50 = vrot.slane %v5744_v37, 2  ;;  %v5751_v42 = vrot.slane %v5750_v20, 2 }
 0xc40   :  { %v5716_v14 = vadd.f32 %v5715_v1, %v5714_v34  ;;  %v5722_v15 = vadd.f32 %v5721_v30, %v5720_v63  ;;  %v5728_v6 = vadd.f32 %v5727_v22, %v5726_v0  ;;  %v5734_v49 = vadd.f32 %v5733_v35, %v5732_v28  ;;  %v5847_v63 = vpop.permute.xlu1 %5846  ;;  %v12230_v35 = vld [vmem:[#allocation58_spill] sm:$0xff] }
 0xc41   :  { %v5711_v4 = vrot.slane %v5710_v53, 1  ;;  %v5740_v36 = vadd.f32 %v5739_v57, %v5738_v11  ;;  %v5746_v62 = vadd.f32 %v5745_v50, %v5744_v37  ;;  %v5752_v26 = vadd.f32 %v5751_v42, %v5750_v20  ;;  %v12231_v50 = vld [vmem:[#allocation10_spill] sm:$0xff] }
 0xc42   :  { %v5717_v44 = vrot.slane %v5716_v14, 1  ;;  %v5723_v9 = vrot.slane %v5722_v15, 1  ;;  %v5729_v23 = vrot.slane %v5728_v6, 1  ;;  %v5735_v43 = vrot.slane %v5734_v49, 1 }
 0xc43   :  { %v5712_v16 = vadd.f32 %v5711_v4, %v5710_v53  ;;  %v5741_v5 = vrot.slane %v5740_v36, 1  ;;  %v5747_v3 = vrot.slane %v5746_v62, 1  ;;  %v5753_v55 = vrot.slane %v5752_v26, 1 }
 0xc44   :  { %v5718_v52 = vadd.f32 %v5717_v44, %v5716_v14  ;;  %v5724_v51 = vadd.f32 %v5723_v9, %v5722_v15  ;;  %v5730_v18 = vadd.f32 %v5729_v23, %v5728_v6  ;;  %v5736_v25 = vadd.f32 %v5735_v43, %v5734_v49  ;;  %v5857_v22 = vpop.permute.xlu1 %5856  ;;  %v12232_v14 = vld [vmem:[#allocation60_spill] sm:$0xff]  ;;  %v12233_v49 = vld [vmem:[#allocation61_spill] sm:$0xff] }
 0xc45   :  { %v5742_v13 = vadd.f32 %v5741_v5, %v5740_v36  ;;  %v5748_v19 = vadd.f32 %v5747_v3, %v5746_v62  ;;  %v5754_v12 = vadd.f32 %v5753_v55, %v5752_v26  ;;  %v5755_v58 = vmul.f32 %v11616_v38, %v5712_v16 }
 0xc46   :  { %v5756_v27 = vmul.f32 %v11618_v24, %v5718_v52  ;;  %v5757_v40 = vmul.f32 %v11620_v60, %v5724_v51  ;;  %v5758_v59 = vmul.f32 %v11622_v21, %v5730_v18  ;;  %v5759_v31 = vmul.f32 %v11624_v29, %v5736_v25 }
 0xc47   :  { %v5760_v45 = vmul.f32 %v11626_v17, %v5742_v13  ;;  %v5761_v46 = vmul.f32 %v11628_v56, %v5748_v19  ;;  %v5762_v41 = vmul.f32 %v11630_v32, %v5754_v12  ;;  %v5803_v33 = vsel %vm1482_vm4, %v11636_v2, %v11633_v48 }
 0xc48   :  { %v5804_v38 = vsel %vm1484_vm5, %v11639_v61, %v5803_v33  ;;  %v5819_v24 = vsel %vm1482_vm4, %v5756_v27, %v5755_v58  ;;  %v5973_v25 = vpop.permute.xlu1 %5972 }
 0xc49   :  { %v5805_v60 = vsel %vm1486_vm6, %v11642_v47, %v5804_v38  ;;  %v5820_v21 = vsel %vm1484_vm5, %v5757_v40, %v5819_v24 }
 0xc4a   :  { %v5806_v29 = vsel %vm1488_vm7, %v11645_v54, %v5805_v60  ;;  %v5821_v17 = vsel %vm1486_vm6, %v5758_v59, %v5820_v21 }
 0xc4b   :  { %v5807_v56 = vsel %vm1490_vm8, %v11648_v10, %v5806_v29  ;;  %v5822_v32 = vsel %vm1488_vm7, %v5759_v31, %v5821_v17  ;;  %v7785_v10 = vld [vmem:[%s11895_s6 + $0x28] sm:$0xff]  }
 0xc4c   :  { %v5808_v48 = vsel %vm1492_vm9, %v11651_v39, %v5807_v56  ;;  %v5823_v2 = vsel %vm1490_vm8, %v5760_v45, %v5822_v32  ;;  %v7786_v39 = vld [vmem:[%s11899_s10 + $0x100] sm:$0xff]   ;;  %v5979_v58 = vpop.permute.xlu1 %5978 }
 0xc4d   :  { %v5809_v61 = vsel %vm1494_vm10, %v11666_v8, %v5808_v48  ;;  %v5824_v47 = vsel %vm1492_vm9, %v5761_v46, %v5823_v2  ;;  %7636 = vmatprep.mubr.msk.bf16.mxu0 %vm117_vm0, %v7786_v39  ;;  %v5842_v8 = vpop.permute.xlu0 %5841  ;;  %v7790_v39 = vld [vmem:[%s11899_s10 + $0x120] sm:$0xff]  }
 0xc4e   :  { %v5825_v34 = vsel %vm1494_vm10, %v5762_v41, %v5824_v47 }
 0xc4f   :  { %v5833_v54 = vpack.c.bf16 %v5825_v34, %v5809_v61  ;;  %v7787_v34 = vld [vmem:[%s11899_s10 + $0x108] sm:$0xff]  }
 0xc50   :  { %v5999_v40 = vpop.permute.xlu1 %5998 }
 0xc51   :  { %7626 = vmatprep.subr.bf16.mxu1 %v5833_v54  ;;  %v5852_v37 = vpop.permute.xlu0 %5851 }
 0xc52   :  { %7627 = vmatpush3.bf16.msra.mxu1 %v5833_v54  ;;  %v7788_v54 = vld [vmem:[%s11899_s10 + $0x110] sm:$0xff]  }
 0xc54   :  { %v6005_v29 = vpop.permute.xlu1 %6004 }
 0xc55   :  { %7629 = vmatmul.mubr.msk.bf16.vlgmr.msra.gmra.mrb[76].mxu1 %vm117_vm0, %v7785_v10  ;;  %v5960_v13 = vpop.permute.xlu0 %5959  ;;  %v7789_v10 = vld [vmem:[%s11899_s10 + $0x118] sm:$0xff]  }
 0xc59   :  { %v5966_v27 = vpop.permute.xlu0 %5965 }
 0xc5d   :  { %v5986_v59 = vpop.permute.xlu0 %5985 }
 0xc61   :  { %v5992_v17 = vpop.permute.xlu0 %5991 }
 0xd28   :  { %v7630_v0 = vpop.f32.mrb[76].mxu1 }
 0xd29   :  { %v5909_v28 = vpop.f32.mrb[77].mxu1  ;;  %v5918_v1 = vadd.f32 %v7630_v0, %v5852_v37  ;;  %v7793_v0 = vld [vmem:[%s11899_s10 + $0x138] sm:$0xff]  }
 0xd2a   :  { %v5910_v7 = vadd.f32 %v5909_v28, %v5842_v8  ;;  %v7631_v11 = vpop.f32.mrb[78].mxu1  ;;  %v7791_v8 = vld [vmem:[%s11899_s10 + $0x128] sm:$0xff]   ;;  %v7794_v28 = vld [vmem:[%s11899_s10 + $0x140] sm:$0xff]   ;;  %v7797_v37 = vld [vmem:[%s11899_s10 + $0x158] sm:$0xff]  }
 0xd2b   :  { %v5912_v20 = vpop.f32.mrb[79].mxu1  ;;  %v5921_v57 = vadd.f32 %v7631_v11, %v5857_v22  ;;  %v5926_v15 = vadd.f32 %v5918_v1, %v12232_v14  ;;  %v7796_v11 = vld [vmem:[%s11899_s10 + $0x150] sm:$0xff]   ;;  %v7799_v1 = vld [vmem:[%s11899_s10 + $0x168] sm:$0xff]   ;;  %v7801_v22 = vld [vmem:[%s11899_s10 + $0x178] sm:$0xff]  }
 0xd2c   :  { %v5913_v30 = vadd.f32 %v5912_v20, %v5847_v63  ;;  %v5924_v53 = vadd.f32 %v5910_v7, %v12230_v35  ;;  %v7792_v63 = vld [vmem:[%s11899_s10 + $0x130] sm:$0xff]   ;;  %v7795_v7 = vld [vmem:[%s11899_s10 + $0x148] sm:$0xff]   ;;  %v7798_v20 = vld [vmem:[%s11899_s10 + $0x160] sm:$0xff]   ;;  %v11786_v35 = vpop.permute.xlu0 %6158 }
 0xd2d   :  { %v5927_v4 = vadd.f32 %v5921_v57, %v12233_v49 }
 0xd2e   :  { %v5925_v42 = vadd.f32 %v5913_v30, %v12231_v50  ;;  %v7800_v30 = vld [vmem:[%s11899_s10 + $0x170] sm:$0xff]  }
 0xd30   :  { %v5938_v6 = vadd.f32 %v5925_v42, %v5924_v53  ;;  %v6079_v57 = vpop.permute.xlu0 %6078 }
 0xd32   :  { %v5939_v36 = vadd.f32 %v5938_v6, %v5926_v15 }
 0xd34   :  { %v5940_v62 = vadd.f32 %v5939_v36, %v5927_v4  ;;  %v11793_v14 = vpop.permute.xlu0 %6168 }
 0xd36   :  { %v5941_v26 = vmul.f32 0.25, %v5940_v62 }
 0xd38   :  { %v5942_v44 = vsub.f32 %v5924_v53, %v5941_v26  ;;  %v5943_v9 = vsub.f32 %v5925_v42, %v5941_v26  ;;  %v5944_v23 = vsub.f32 %v5926_v15, %v5941_v26  ;;  %v5945_v43 = vsub.f32 %v5927_v4, %v5941_v26  ;;  %v11788_v53 = vpop.permute.xlu1 %6163  ;;  %v7804_v42 = vld [vmem:[%s11901_s12 + $0x44] ss:$8 sps:$4 sm:$0xff]   ;;  %v6089_v6 = vpop.permute.xlu0 %6088 }
 0xd39   :  { %6655 = vmatprep.mubr.bf16.mxu1 %v7804_v42 }
 0xd3a   :  { %v5946_v16 = vmul.f32 %v5942_v44, %v5942_v44  ;;  %v5947_v5 = vmul.f32 %v5943_v9, %v5943_v9  ;;  %v5949_v55 = vmul.f32 %v5944_v23, %v5944_v23  ;;  %v5951_v51 = vmul.f32 %v5945_v43, %v5945_v43 }
 0xd3c   :  { %v5948_v3 = vadd.f32 %v5947_v5, %v5946_v16  ;;  %v6084_v50 = vpop.permute.xlu1 %6083  ;;  %v11797_v4 = vpop.permute.xlu0 %6178 }
 0xd3e   :  { %v5950_v52 = vadd.f32 %v5949_v55, %v5948_v3 }
 0xd40   :  { %v5952_v18 = vadd.f32 %v5951_v51, %v5950_v52  ;;  %v11795_v15 = vpop.permute.xlu1 %6173  ;;  %v6099_v62 = vpop.permute.xlu0 %6098 }
 0xd42   :  { %v5953_v19 = vmul.f32 0.25, %v5952_v18 }
 0xd44   :  { %v5954_v12 = vadd.f32 1e-05, %v5953_v19  ;;  %v6094_v49 = vpop.permute.xlu1 %6093 }
 0xd46   :  { %8008 = vrsqrt.f32 %v5954_v12 }
 0xd48   :  { %v11799_v36 = vpop.permute.xlu1 %6183 }
 0xd4c   :  { %v6104_v26 = vpop.permute.xlu1 %6103 }
 0xd50   :  { %v8009_v31 = vpop.eup %8008 }
 0xd51   :  { %v5969_v45 = vmul.f32 %v8009_v31, %v5943_v9  ;;  %v5956_v46 = vmul.f32 %v8009_v31, %v5942_v44  ;;  %v5982_v41 = vmul.f32 %v8009_v31, %v5944_v23  ;;  %v5995_v33 = vmul.f32 %v8009_v31, %v5945_v43  ;;  %v11801_v44 = vpop.permute.xlu0 %6188  ;;  %v11803_v9 = vpop.permute.xlu1 %6193 }
 0xd53   :  { %v5962_v38 = vmul.f32 %v5960_v13, %v5956_v46  ;;  %v5975_v24 = vmul.f32 %v5973_v25, %v5969_v45  ;;  %v5988_v60 = vmul.f32 %v5986_v59, %v5982_v41  ;;  %v6001_v21 = vmul.f32 %v5999_v40, %v5995_v33 }
 0xd55   :  { %v11714_v56 = vadd.f32 %v5966_v27, %v5962_v38  ;;  %v11716_v32 = vadd.f32 %v5979_v58, %v5975_v24  ;;  %v11718_v48 = vadd.f32 %v5992_v17, %v5988_v60  ;;  %v11720_v2 = vadd.f32 %v6005_v29, %v6001_v21  ;;  %v6109_v23 = vpop.permute.xlu0 %6108  ;;  %v6114_v43 = vpop.permute.xlu1 %6113 }
 0xd57   :  { %v6041_v61 = vpack.c.bf16 %v11716_v32, %v11714_v56  ;;  %v6042_v47 = vpack.c.bf16 %v11720_v2, %v11718_v48 }
 0xd59   :  { %7632 = vmatprep.subr.bf16.mxu0 %v6041_v61  ;;  %v11805_v16 = vpop.permute.xlu0 %6198  ;;  %v11807_v5 = vpop.permute.xlu1 %6203 }
 0xd5a   :  { %7633 = vmatpush3.bf16.msra.mxu0 %v6041_v61 }
 0xd5b   :  { %7634 = vmatprep.subr.bf16.mxu0 %v6042_v47 }
 0xd5d   :  { %v6119_v3 = vpop.permute.xlu0 %6118  ;;  %v6124_v55 = vpop.permute.xlu1 %6123 }
 0xd5e   :  { %7635 = vmatpush3.bf16.msra.mxu0 %v6042_v47 }
 0xd61   :  { %7637 = vmatmul.mubr.msk.bf16.vlgmr.msra.gmra.mrb[56].mxu0 %vm117_vm0, %v7787_v34  ;;  %v11809_v52 = vpop.permute.xlu0 %6208  ;;  %v11811_v51 = vpop.permute.xlu1 %6213 }
 0xd62   :  { %7640 = vmatprep.mubr.msk.bf16.mxu0 %vm117_vm0, %v7788_v54 }
 0xd65   :  { %v6129_v18 = vpop.permute.xlu0 %6128  ;;  %v6134_v12 = vpop.permute.xlu1 %6133 }
 0xd69   :  { %7641 = vmatmul.mubr.msk.bf16.gmra.mrb[60].mxu0 %vm117_vm0, %v7789_v10  ;;  %v11813_v41 = vpop.permute.xlu0 %6218  ;;  %v11817_v60 = vpop.permute.xlu1 %6223 }
 0xd6a   :  { %7644 = vmatprep.mubr.msk.bf16.mxu0 %vm117_vm0, %v7790_v39 }
 0xd6d   :  { %v6139_v39 = vpop.permute.xlu0 %6138 }
 0xd71   :  { %7645 = vmatmul.mubr.msk.bf16.gmra.mrb[64].mxu0 %vm117_vm0, %v7791_v8 }
 0xd72   :  { %7648 = vmatprep.mubr.msk.bf16.mxu0 %vm117_vm0, %v7792_v63 }
 0xd79   :  { %7649 = vmatmul.mubr.msk.bf16.gmra.mrb[68].mxu0 %vm117_vm0, %v7793_v0 }
 0xd7a   :  { %7652 = vmatprep.mubr.msk.bf16.mxu0 %vm117_vm0, %v7794_v28  ;;  %v6144_v28 = vpop.permute.xlu1 %6143 }
 0xd81   :  { %7653 = vmatmul.mubr.msk.bf16.gmra.mrb[72].mxu0 %vm117_vm0, %v7795_v7 }
 0xd82   :  { %7656 = vmatprep.mubr.msk.bf16.mxu0 %vm117_vm0, %v7796_v11 }
 0xd89   :  { %7657 = vmatmul.mubr.msk.bf16.gmra.mrb[76].mxu0 %vm117_vm0, %v7797_v37 }
 0xd8a   :  { %7660 = vmatprep.mubr.msk.bf16.mxu0 %vm117_vm0, %v7798_v20 }
 0xd91   :  { %7661 = vmatmul.mubr.msk.bf16.gmra.mrb[80].mxu0 %vm117_vm0, %v7799_v1 }
 0xd92   :  { %7664 = vmatprep.mubr.msk.bf16.mxu0 %vm117_vm0, %v7800_v30 }
 0xd99   :  { %7665 = vmatmul.mubr.msk.bf16.gmra.mrb[84].mxu0 %vm117_vm0, %v7801_v22 }
 0xe34   :  { %v7638_v25 = vpop.f32.mrb[56].mxu0 }
 0xe35   :  { %v6407_v13 = vadd.f32 %v7638_v25, %v6089_v6  ;;  %v6398_v19 = vpop.f32.mrb[57].mxu0 }
 0xe36   :  { %v6399_v58 = vadd.f32 %v6398_v19, %v6079_v57  ;;  %v7639_v27 = vpop.f32.mrb[58].mxu0  ;;  %v11825_v57 = vpop.permute.xlu0 %6228 }
 0xe37   :  { %v6410_v40 = vadd.f32 %v7639_v27, %v6094_v49  ;;  %v6401_v59 = vpop.f32.mrb[59].mxu0  ;;  %v6527_v45 = vmax.f32 %v6407_v13, 0.0 }
 0xe38   :  { %v6402_v31 = vadd.f32 %v6401_v59, %v6084_v50  ;;  %v6525_v33 = vmax.f32 %v6399_v58, 0.0 }
 0xe39   :  { %v6528_v46 = vmax.f32 %v6410_v40, 0.0 }
 0xe3a   :  { %v6526_v38 = vmax.f32 %v6402_v31, 0.0  ;;  %v6149_v58 = vpop.permute.xlu0 %6148 }
 0xe3b   :  { %v11815_v24 = vpack.c.bf16 %v6528_v46, %v6527_v45 }
 0xe3c   :  { %v11819_v21 = vpack.c.bf16 %v6526_v38, %v6525_v33  ;;  %v7642_v29 = vpop.f32.mrb[60].mxu0 }
 0xe3d   :  { %v6423_v17 = vadd.f32 %v7642_v29, %v6109_v23  ;;  %v6414_v61 = vpop.f32.mrb[61].mxu0 }
 0xe3e   :  { %v6415_v47 = vadd.f32 %v6414_v61, %v6099_v62  ;;  %v7643_v34 = vpop.f32.mrb[62].mxu0  ;;  %v11827_v62 = vpop.permute.xlu1 %6233 }
 0xe3f   :  { %v6426_v54 = vadd.f32 %v7643_v34, %v6114_v43  ;;  %v6417_v10 = vpop.f32.mrb[63].mxu0  ;;  %v6531_v63 = vmax.f32 %v6423_v17, 0.0 }
 0xe40   :  { %v6418_v8 = vadd.f32 %v6417_v10, %v6104_v26  ;;  %v6529_v7 = vmax.f32 %v6415_v47, 0.0 }
 0xe41   :  { %v6532_v0 = vmax.f32 %v6426_v54, 0.0 }
 0xe42   :  { %v6530_v11 = vmax.f32 %v6418_v8, 0.0  ;;  %v6154_v31 = vpop.permute.xlu1 %6153 }
 0xe43   :  { %v11821_v37 = vpack.c.bf16 %v6532_v0, %v6531_v63 }
 0xe44   :  { %v11823_v20 = vpack.c.bf16 %v6530_v11, %v6529_v7  ;;  %v7646_v1 = vpop.f32.mrb[64].mxu0 }
 0xe45   :  { %v6439_v30 = vadd.f32 %v7646_v1, %v6129_v18  ;;  %v6430_v22 = vpop.f32.mrb[65].mxu0 }
 0xe46   :  { %v6431_v50 = vadd.f32 %v6430_v22, %v6119_v3  ;;  %v7647_v42 = vpop.f32.mrb[66].mxu0 }
 0xe47   :  { %v6442_v6 = vadd.f32 %v7647_v42, %v6134_v12  ;;  %v6433_v49 = vpop.f32.mrb[67].mxu0  ;;  %v6535_v23 = vmax.f32 %v6439_v30, 0.0 }
 0xe48   :  { %v6434_v26 = vadd.f32 %v6433_v49, %v6124_v55  ;;  %v6533_v25 = vmax.f32 %v6431_v50, 0.0 }
 0xe49   :  { %v6536_v43 = vmax.f32 %v6442_v6, 0.0 }
 0xe4a   :  { %v6534_v13 = vmax.f32 %v6434_v26, 0.0 }
 0xe4b   :  { %v11829_v19 = vpack.c.bf16 %v6536_v43, %v6535_v23 }
 0xe4c   :  { %v11831_v27 = vpack.c.bf16 %v6534_v13, %v6533_v25  ;;  %v7650_v18 = vpop.f32.mrb[68].mxu0 }
 0xe4d   :  { %v6455_v40 = vadd.f32 %v7650_v18, %v6149_v58  ;;  %v6446_v59 = vpop.f32.mrb[69].mxu0 }
 0xe4e   :  { %v6447_v3 = vadd.f32 %v6446_v59, %v6139_v39  ;;  %v7651_v45 = vpop.f32.mrb[70].mxu0 }
 0xe4f   :  { %v6458_v12 = vadd.f32 %v7651_v45, %v6154_v31  ;;  %v6449_v46 = vpop.f32.mrb[71].mxu0  ;;  %v6539_v38 = vmax.f32 %v6455_v40, 0.0 }
 0xe50   :  { %v6450_v33 = vadd.f32 %v6449_v46, %v6144_v28  ;;  %v6537_v29 = vmax.f32 %v6447_v3, 0.0 }
 0xe51   :  { %v6540_v55 = vmax.f32 %v6458_v12, 0.0 }
 0xe52   :  { %v6538_v17 = vmax.f32 %v6450_v33, 0.0 }
 0xe53   :  { %v11833_v61 = vpack.c.bf16 %v6540_v55, %v6539_v38 }
 0xe54   :  { %v11835_v47 = vpack.c.bf16 %v6538_v17, %v6537_v29  ;;  %v7654_v34 = vpop.f32.mrb[72].mxu0 }
 0xe55   :  { %v6471_v54 = vadd.f32 %v7654_v34, %v11793_v14  ;;  %v6462_v10 = vpop.f32.mrb[73].mxu0 }
 0xe56   :  { %v6463_v8 = vadd.f32 %v6462_v10, %v11786_v35  ;;  %v7655_v63 = vpop.f32.mrb[74].mxu0 }
 0xe57   :  { %v6474_v39 = vadd.f32 %v7655_v63, %v11795_v15  ;;  %v6465_v0 = vpop.f32.mrb[75].mxu0  ;;  %v6543_v7 = vmax.f32 %v6471_v54, 0.0  ;;  %v6586_v63 = vpop.permute.xlu0 %6585 }
 0xe58   :  { %v6466_v28 = vadd.f32 %v6465_v0, %v11788_v53  ;;  %v6541_v1 = vmax.f32 %v6463_v8, 0.0 }
 0xe59   :  { %v6544_v11 = vmax.f32 %v6474_v39, 0.0 }
 0xe5a   :  { %v6542_v30 = vmax.f32 %v6466_v28, 0.0 }
 0xe5b   :  { %v6571_v22 = vpack.c.bf16 %v6544_v11, %v6543_v7 }
 0xe5c   :  { %v6570_v50 = vpack.c.bf16 %v6542_v30, %v6541_v1  ;;  %v7658_v42 = vpop.f32.mrb[76].mxu0 }
 0xe5d   :  { %v6487_v6 = vadd.f32 %v7658_v42, %v11801_v44  ;;  %v6478_v49 = vpop.f32.mrb[77].mxu0 }
 0xe5e   :  { %v6479_v14 = vadd.f32 %v6478_v49, %v11797_v4  ;;  %v7659_v26 = vpop.f32.mrb[78].mxu0  ;;  %7405 = vmatprep.subr.bf16.mxu1 %v6570_v50  ;;  %v6596_v49 = vpop.permute.xlu0 %6595 }
 0xe5f   :  { %v6490_v35 = vadd.f32 %v7659_v26, %v11803_v9  ;;  %v6481_v15 = vpop.f32.mrb[79].mxu0  ;;  %7406 = vmatpush3.bf16.msra.mxu1 %v11819_v21  ;;  %v6547_v23 = vmax.f32 %v6487_v6, 0.0 }
 0xe60   :  { %v6482_v53 = vadd.f32 %v6481_v15, %v11799_v36  ;;  %7407 = vmatprep.subr.bf16.mxu1 %v6571_v22  ;;  %v6545_v25 = vmax.f32 %v6479_v14, 0.0 }
 0xe61   :  { %v6548_v43 = vmax.f32 %v6490_v35, 0.0 }
 0xe62   :  { %v6546_v13 = vmax.f32 %v6482_v53, 0.0 }
 0xe63   :  { %v6573_v58 = vpack.c.bf16 %v6548_v43, %v6547_v23  ;;  %7408 = vmatpush3.bf16.msra.mxu1 %v11815_v24 }
 0xe64   :  { %v6572_v44 = vpack.c.bf16 %v6546_v13, %v6545_v25  ;;  %v7662_v18 = vpop.f32.mrb[80].mxu0 }
 0xe65   :  { %v6503_v4 = vadd.f32 %v7662_v18, %v11809_v52  ;;  %v6494_v40 = vpop.f32.mrb[81].mxu0 }
 0xe66   :  { %v6495_v9 = vadd.f32 %v6494_v40, %v11805_v16  ;;  %v7663_v59 = vpop.f32.mrb[82].mxu0  ;;  %7409 = vmatprep.subr.bf16.mxu1 %v6572_v44 }
 0xe67   :  { %v6506_v21 = vadd.f32 %v7663_v59, %v11811_v51  ;;  %v6497_v36 = vpop.f32.mrb[83].mxu0  ;;  %7410 = vmatpush3.bf16.msra.mxu1 %v11823_v20  ;;  %v6551_v3 = vmax.f32 %v6503_v4, 0.0 }
 0xe68   :  { %v6498_v31 = vadd.f32 %v6497_v36, %v11807_v5  ;;  %7411 = vmatprep.subr.bf16.mxu1 %v6573_v58  ;;  %v6549_v24 = vmax.f32 %v6495_v9, 0.0  ;;  %v12234_v9 = vmov 0.0  }
 0xe69   :  { %v6552_v45 = vmax.f32 %v6506_v21, 0.0  ;;  %v6835_v21 = vsel %vm319_vm3, 1.0, %v12234_v9 }
 0xe6a   :  { %v6550_v12 = vmax.f32 %v6498_v31, 0.0 }
 0xe6b   :  { %v6575_v46 = vpack.c.bf16 %v6552_v45, %v6551_v3  ;;  %7412 = vmatpush3.bf16.msra.mxu1 %v11821_v37  ;;  %v6756_v3 = vrot.slane %v6835_v21, 4 }
 0xe6c   :  { %v6574_v52 = vpack.c.bf16 %v6550_v12, %v6549_v24  ;;  %v7666_v33 = vpop.f32.mrb[84].mxu0 }
 0xe6d   :  { %v6519_v16 = vadd.f32 %v7666_v33, %v11825_v57  ;;  %v6510_v38 = vpop.f32.mrb[85].mxu0  ;;  %v6757_v12 = vadd.f32 %v6835_v21, %v6756_v3 }
 0xe6e   :  { %v6511_v51 = vadd.f32 %v6510_v38, %v11813_v41  ;;  %v7667_v55 = vpop.f32.mrb[86].mxu0  ;;  %7413 = vmatprep.subr.bf16.mxu1 %v6574_v52  ;;  %v7802_v41 = vld [vmem:[%s11901_s12 + $0x40] ss:$8 sps:$4 sm:$0xff]  }
 0xe6f   :  { %v6522_v20 = vadd.f32 %v7667_v55, %v11827_v62  ;;  %v6513_v5 = vpop.f32.mrb[87].mxu0  ;;  %7414 = vmatpush3.bf16.msra.mxu1 %v11831_v27  ;;  %v6555_v17 = vmax.f32 %v6519_v16, 0.0  ;;  %v7807_v62 = vld [vmem:[%s11901_s12 + $0x50] ss:$8 sps:$4 sm:$0xff]   ;;  %v6758_v16 = vrot.slane %v6757_v12, 2 }
 0xe70   :  { %v6514_v29 = vadd.f32 %v6513_v5, %v11817_v60  ;;  %7415 = vmatprep.subr.bf16.mxu1 %v6575_v46  ;;  %v6553_v37 = vmax.f32 %v6511_v51, 0.0  ;;  %v7805_v60 = vld [vmem:[%s11901_s12 + $0x54] ss:$8 sps:$4 sm:$0xff]   ;;  %v6708_v46 = vpop.permute.xlu0 %6707  ;;  %s8043_s12 = smov [#allocation2]  }
 0xe71   :  { %v6556_v34 = vmax.f32 %v6522_v20, 0.0  ;;  %v6759_v55 = vadd.f32 %v6758_v16, %v6757_v12  ;;  %s6806_s21 = sshll.u32 %s8043_s12, 4  ;;  %s6807_s21 = int_to_ptr.vmem [resolvable:$true] %s6806_s21 }
 0xe72   :  { %v6554_v54 = vmax.f32 %v6514_v29, 0.0  ;;  %s8014_s14 = scalar_lea.vmem %s6807_s21, 64  ;;  %p8019_p1 = scmp.lt.s32.totalorder %s6807_s21, %s6807_s21 }
 0xe73   :  { %v6577_v10 = vpack.c.bf16 %v6556_v34, %v6555_v17  ;;  %7416 = vmatpush3.bf16.msra.mxu1 %v11829_v19  ;;  %v6760_v20 = vrot.slane %v6759_v55, 1  ;;  %p8015_p0 = scmp.ne.s32.totalorder %s6807_s21, %s8014_s14  ;;  %p8020_p2 = scmp.lt.s32.totalorder %s8014_s14, %s8014_s14 }
 0xe74   :  { %v6576_v57 = vpack.c.bf16 %v6554_v54, %v6553_v37  ;;  %v6734_v51 = vpop.permute.xlu0 %6733 }
 0xe75   :  { %p8021_p3 = por %p8020_p2, %p8019_p1 }
 0xe76   :  { %7417 = vmatprep.subr.bf16.mxu1 %v6576_v57  ;;  %v6761_v57 = vadd.f32 %v6760_v20, %v6759_v55 }
 0xe77   :  { %7418 = vmatpush3.bf16.msra.mxu1 %v11835_v47  ;;  %p8022_p4 = pnand %p8021_p3, %p8015_p0 }
 0xe78   :  { %7419 = vmatprep.subr.bf16.mxu1 %v6577_v10  ;;  %v6714_v29 = vpop.permute.xlu0 %6713 }
 0xe7b   :  { %7420 = vmatpush3.bf16.msra.mxu1 %v11833_v61  ;;  %v6591_v61 = vpop.permute.xlu1 %6590 }
 0xe7e   :  { %6656 = vmatmul.mubr.bf16.vlgmr.msra.gmra.mrb[80].mxu1 %v7802_v41 }
 0xe7f   :  { %6663 = vmatprep.mubr.bf16.mxu1 %v7805_v60  ;;  %v6601_v15 = vpop.permute.xlu1 %6600 }
 0xe86   :  { %6664 = vmatmul.mubr.bf16.gmra.mrb[84].mxu1 %v7807_v62 }
 0xf51   :  { %v7421_v19 = vpop.f32.mrb[80].mxu1 }
 0xf52   :  { %v7422_v27 = vpop.f32.mrb[81].mxu1 }
 0xf53   :  { %v7423_v47 = vadd.f32 %v7422_v27, %v7421_v19  ;;  %v7424_v8 = vpop.f32.mrb[82].mxu1 }
 0xf54   :  { %v7425_v39 = vpop.f32.mrb[83].mxu1 }
 0xf55   :  { %v6658_v0 = vadd.f32 %v7423_v47, %v6586_v63  ;;  %v7426_v28 = vadd.f32 %v7425_v39, %v7424_v8  ;;  %v6740_v47 = vpop.permute.xlu0 %6739 }
 0xf57   :  { %v6661_v7 = vadd.f32 %v7426_v28, %v6591_v61  ;;  %v6672_v11 = vadd.f32 %v6658_v0, %v11714_v56  ;;  %v6762_v28 = vmax.f32 %v6761_v57, 1.0 }
 0xf59   :  { %v6673_v1 = vadd.f32 %v6661_v7, %v11716_v32  ;;  %v7427_v30 = vpop.f32.mrb[84].mxu1 }
 0xf5a   :  { %v7428_v22 = vpop.f32.mrb[85].mxu1 }
 0xf5b   :  { %v6686_v50 = vadd.f32 %v6673_v1, %v6672_v11  ;;  %v7429_v42 = vadd.f32 %v7428_v22, %v7427_v30  ;;  %v7430_v6 = vpop.f32.mrb[86].mxu1 }
 0xf5c   :  { %v7431_v14 = vpop.f32.mrb[87].mxu1 }
 0xf5d   :  { %v6666_v26 = vadd.f32 %v7429_v42, %v6596_v49  ;;  %v7432_v35 = vadd.f32 %v7431_v14, %v7430_v6 }
 0xf5f   :  { %v6674_v53 = vadd.f32 %v6666_v26, %v11718_v48  ;;  %v6669_v23 = vadd.f32 %v7432_v35, %v6601_v15 }
 0xf61   :  { %v6687_v43 = vadd.f32 %v6686_v50, %v6674_v53  ;;  %v6675_v25 = vadd.f32 %v6669_v23, %v11720_v2  ;;  %v6721_v2 = vpop.permute.xlu1 %6720 }
 0xf63   :  { %v6688_v13 = vadd.f32 %v6687_v43, %v6675_v25 }
 0xf65   :  { %v6689_v56 = vmul.f32 0.25, %v6688_v13  ;;  %v6747_v38 = vpop.permute.xlu1 %6746 }
 0xf67   :  { %v6690_v58 = vsub.f32 %v6672_v11, %v6689_v56  ;;  %v6691_v32 = vsub.f32 %v6673_v1, %v6689_v56  ;;  %v6692_v44 = vsub.f32 %v6674_v53, %v6689_v56  ;;  %v6693_v18 = vsub.f32 %v6675_v25, %v6689_v56 }
 0xf69   :  { %v6694_v4 = vmul.f32 %v6690_v58, %v6690_v58  ;;  %v6695_v40 = vmul.f32 %v6691_v32, %v6691_v32  ;;  %v6697_v31 = vmul.f32 %v6692_v44, %v6692_v44  ;;  %v6699_v45 = vmul.f32 %v6693_v18, %v6693_v18  ;;  %v6727_v5 = vpop.permute.xlu1 %6726 }
 0xf6b   :  { %v6696_v36 = vadd.f32 %v6695_v40, %v6694_v4 }
 0xf6d   :  { %v6698_v48 = vadd.f32 %v6697_v31, %v6696_v36  ;;  %v6753_v27 = vpop.permute.xlu1 %6752 }
 0xf6f   :  { %v6700_v24 = vadd.f32 %v6699_v45, %v6698_v48 }
 0xf71   :  { %v6701_v52 = vmul.f32 0.25, %v6700_v24 }
 0xf73   :  { %v6702_v33 = vadd.f32 1e-05, %v6701_v52 }
 0xf75   :  { %8010 = vrsqrt.f32 %v6702_v33 }
 0xf76   :  { %8012 = vrcp.f32 %v6762_v28 }
 0xf7f   :  { %v8011_v17 = vpop.eup %8010 }
 0xf80   :  { %v6704_v34 = vmul.f32 %v8011_v17, %v6690_v58  ;;  %v6717_v37 = vmul.f32 %v8011_v17, %v6691_v32  ;;  %v6730_v54 = vmul.f32 %v8011_v17, %v6692_v44  ;;  %v6743_v10 = vmul.f32 %v8011_v17, %v6693_v18 }
 0xf82   :  { %v6710_v41 = vmul.f32 %v6708_v46, %v6704_v34  ;;  %v6723_v60 = vmul.f32 %v6721_v2, %v6717_v37  ;;  %v6736_v62 = vmul.f32 %v6734_v51, %v6730_v54  ;;  %v6749_v19 = vmul.f32 %v6747_v38, %v6743_v10 }
 0xf84   :  { %v6755_v8 = vadd.f32 %v6753_v27, %v6749_v19  ;;  %v6716_v63 = vadd.f32 %v6714_v29, %v6710_v41  ;;  %v6729_v39 = vadd.f32 %v6727_v5, %v6723_v60  ;;  %v6742_v0 = vadd.f32 %v6740_v47, %v6736_v62 }
 0xf86   :  { %v6791_v61 = vmul.f32 %v6835_v21, %v6755_v8  ;;  %v6764_v7 = vmul.f32 %v6835_v21, %v6716_v63  ;;  %v6773_v11 = vmul.f32 %v6835_v21, %v6729_v39  ;;  %v6782_v1 = vmul.f32 %v6835_v21, %v6742_v0  ;;  %v8013_v21 = vpop.eup %8012 }
 0xf88   :  { %v6792_v30 = vrot.slane %v6791_v61, 4  ;;  %v6765_v22 = vrot.slane %v6764_v7, 4  ;;  %v6774_v50 = vrot.slane %v6773_v11, 4  ;;  %v6783_v42 = vrot.slane %v6782_v1, 4 }
 0xf8a   :  { %v6766_v6 = vadd.f32 %v6765_v22, %v6764_v7  ;;  %v6775_v49 = vadd.f32 %v6774_v50, %v6773_v11  ;;  %v6784_v14 = vadd.f32 %v6783_v42, %v6782_v1  ;;  %v6793_v26 = vadd.f32 %v6792_v30, %v6791_v61 }
 0xf8c   :  { %v6767_v35 = vrot.slane %v6766_v6, 2  ;;  %v6776_v15 = vrot.slane %v6775_v49, 2  ;;  %v6785_v53 = vrot.slane %v6784_v14, 2  ;;  %v6794_v23 = vrot.slane %v6793_v26, 2 }
 0xf8e   :  { %v6768_v43 = vadd.f32 %v6767_v35, %v6766_v6  ;;  %v6777_v25 = vadd.f32 %v6776_v15, %v6775_v49  ;;  %v6786_v13 = vadd.f32 %v6785_v53, %v6784_v14  ;;  %v6795_v56 = vadd.f32 %v6794_v23, %v6793_v26 }
 0xf90   :  { %v6769_v58 = vrot.slane %v6768_v43, 1  ;;  %v6778_v32 = vrot.slane %v6777_v25, 1  ;;  %v6787_v44 = vrot.slane %v6786_v13, 1  ;;  %v6796_v18 = vrot.slane %v6795_v56, 1 }
 0xf92   :  { %v6770_v4 = vadd.f32 %v6769_v58, %v6768_v43  ;;  %v6779_v40 = vadd.f32 %v6778_v32, %v6777_v25  ;;  %v6788_v9 = vadd.f32 %v6787_v44, %v6786_v13  ;;  %v6797_v59 = vadd.f32 %v6796_v18, %v6795_v56 }
 0xf94   :  { %v6771_v36 = vmul.f32 %v8013_v21, %v6770_v4  ;;  %v6780_v31 = vmul.f32 %v8013_v21, %v6779_v40  ;;  %v6789_v3 = vmul.f32 %v8013_v21, %v6788_v9  ;;  %v6798_v48 = vmul.f32 %v8013_v21, %v6797_v59 }
 0xf96   :  { %6772 = vst [vmem:[#allocation2] sm:$0x1] %v6771_v36  ;;  %6781 = vst [vmem:[#allocation2 + $0x1] sm:$0x1] %v6780_v31 }
 0xf97   :  { %6790 = vst [vmem:[#allocation2 + $0x2] sm:$0x1] %v6789_v3  ;;  %6799 = vst [vmem:[#allocation2 + $0x3] sm:$0x1] %v6798_v48 }
 0xf98   :  { %8025 = shalt.err (!%p8022_p4)
}
 0xf99   :  { %s8026_s5 = scalar_lea.hbm %s11905_s16, 64 }
 0xf9a   :  { %p8027_p5 = scmp.ne.s32.totalorder %s11905_s16, %s8026_s5  ;;  %p8030_p6 = scmp.lt.u32.totalorder %s8026_s5, %s11905_s16 }
 0xf9c   :  { %p8032_p7 = pnand %p8030_p6, %p8027_p5 }
 0xf9e   :  { %8035 = shalt.err (!%p8032_p7)
}
 0xf9f   :  { %6809 = dma.vmem_to_hbm [thread:$0]  %s6807_s21, 64, %s11905_s16, [#allocation3]  }
 0xfa0   :  { %8036 = dma.done.wait [#allocation3], 64  }
 0xfa1   :  { %8037 = vsyncadd [#allocation3], 4294967232 }
 0xfa2   :  { %6813 = vsyncpa [#allocation3], 1 }

</bundles_post_ra>
